<compile_context>
chip_gen: v7x
topology: tpu7x:2x2x1
jax: 0.10.0
libtpu: 0.0.40
codegen_flags: <defaults>
</compile_context>

<pallas_src>
import functools

import numpy as np
import jax
import jax.numpy as jnp
from jax.experimental import pallas as pl
from jax.experimental.pallas import tpu as pltpu

BN_EPS = 1e-5
LN_EPS = 1e-5


# ----------------------------------------------------------------------------
# Kernel 1: fused matmul + folded-BN + ReLU (used for conv1's im2col matmul)
# ----------------------------------------------------------------------------
def _mm_bn_relu_kernel(x_ref, w_ref, scale_ref, bias_ref, o_ref):
    y = jnp.dot(x_ref[...], w_ref[...], preferred_element_type=jnp.float32)
    o_ref[...] = jnp.maximum(y * scale_ref[...] + bias_ref[...], 0.0).astype(o_ref.dtype)


def matmul_bn_relu(x, w, scale, bias):
    P, K = x.shape
    _, C = w.shape
    return pl.pallas_call(
        _mm_bn_relu_kernel,
        out_shape=jax.ShapeDtypeStruct((P, C), jnp.float32),
        grid=(1,),
        in_specs=[
            pl.BlockSpec((P, K), lambda i: (0, 0)),
            pl.BlockSpec((K, C), lambda i: (0, 0)),
            pl.BlockSpec((1, C), lambda i: (0, 0)),
            pl.BlockSpec((1, C), lambda i: (0, 0)),
        ],
        out_specs=pl.BlockSpec((P, C), lambda i: (0, 0)),
    )(x, w, scale, bias)


# ----------------------------------------------------------------------------
# Kernel 2/3: fully fused SKConv (branches + attention), one batch sample / step
# ----------------------------------------------------------------------------
def _skconv_kernel(ap_ref, wb_ref, sb_ref, bb_ref, wfc_ref, sfc_ref, bfc_ref,
                   wfcs_ref, bfcs_ref, o_ref, *, M, H, Wout, pad):
    # ap_ref : (1, (H+2*pad)*Wout, C) H-and-W padded NHWC slab, (h, w)-row-major
    # wb_ref : (M, 3, C, C) per-tap dense (block-diagonal) branch weights
    # sb/bb  : (M, 1, C)   folded branch BN scale / bias
    # wfc    : (C, d), sfc/bfc: (1, d) folded fc BN
    # wfcs   : (M, d, C), bfcs: (M, 1, C)
    # o_ref  : (1, S, C) with S = H * Wout
    S = H * Wout

    ap = ap_ref[0]                    # (Hp*Wout, C) for this batch sample
    wb = wb_ref[...]
    sb = sb_ref[...]
    bb = bb_ref[...]
    wfcs = wfcs_ref[...]
    bfcs = bfcs_ref[...]

    # ---- M branches: in-kernel im2col taps, 3 partial (S,C)x(C,C) matmuls ---
    feats = []
    for m in range(M):
        dil = m + 1
        acc = None
        for k in range(3):
            off = (pad - dil + k * dil) * Wout          # static tap offset
            tap = ap[off:off + S]                       # (S, C) value slice
            part = jnp.dot(tap, wb[m, k], preferred_element_type=jnp.float32)
            acc = part if acc is None else acc + part
        feats.append(jnp.maximum(acc * sb[m] + bb[m], 0.0))   # BN + ReLU, (S, C)

    # ---- SK attention: GAP -> fc+BN+ReLU -> per-branch fc -> softmax --------
    U = feats[0]
    for m in range(1, M):
        U = U + feats[m]
    s_gap = jnp.mean(U, axis=0, keepdims=True)                     # (1, C)
    z = jnp.dot(s_gap, wfc_ref[...], preferred_element_type=jnp.float32)
    z = jnp.maximum(z * sfc_ref[...] + bfc_ref[...], 0.0)          # (1, d)
    logits = [jnp.dot(z, wfcs[m], preferred_element_type=jnp.float32) + bfcs[m]
              for m in range(M)]                                   # (1, C) each
    mx = logits[0]
    for m in range(1, M):
        mx = jnp.maximum(mx, logits[m])
    exps = [jnp.exp(l - mx) for l in logits]
    den = exps[0]
    for m in range(1, M):
        den = den + exps[m]
    inv = pl.reciprocal(den, approx=True)                          # EUP slot

    # ---- weighted sum over branches -----------------------------------------
    v = feats[0] * (exps[0] * inv)
    for m in range(1, M):
        v = v + feats[m] * (exps[m] * inv)
    o_ref[0] = v.astype(o_ref.dtype)


def sk_conv(a, p):
    """Fused SKConv: one pallas_call, grid over the batch dimension."""
    N, H, W, C = a.shape
    M = p["wb"].shape[0]
    d = p["fc_w"].shape[1]
    pad = M                                   # max dilation = M
    Wout = W + 2                              # branch convs pad W by 1 each side
    Hp = H + 2 * pad
    S = H * Wout
    ap = jnp.pad(a, ((0, 0), (pad, pad), (1, 1), (0, 0)))   # (N, Hp, Wout, C)
    apf = ap.reshape(N, Hp * Wout, C)         # contiguous NHWC flatten (free)

    v = pl.pallas_call(
        functools.partial(_skconv_kernel, M=M, H=H, Wout=Wout, pad=pad),
        out_shape=jax.ShapeDtypeStruct((N, S, C), jnp.float32),
        grid=(N,),
        in_specs=[
            pl.BlockSpec((1, Hp * Wout, C), lambda n: (n, 0, 0)),
            pl.BlockSpec((M, 3, C, C), lambda n: (0, 0, 0, 0)),
            pl.BlockSpec((M, 1, C), lambda n: (0, 0, 0)),
            pl.BlockSpec((M, 1, C), lambda n: (0, 0, 0)),
            pl.BlockSpec((C, d), lambda n: (0, 0)),
            pl.BlockSpec((1, d), lambda n: (0, 0)),
            pl.BlockSpec((1, d), lambda n: (0, 0)),
            pl.BlockSpec((M, d, C), lambda n: (0, 0, 0)),
            pl.BlockSpec((M, 1, C), lambda n: (0, 0, 0)),
        ],
        out_specs=pl.BlockSpec((1, S, C), lambda n: (n, 0, 0)),
        compiler_params=pltpu.CompilerParams(
            dimension_semantics=("parallel",)),   # 2nd TC on v7x; harmless elsewhere
    )(apf, p["wb"], p["bn_scale"], p["bn_bias"],
      p["fc_w"], p["fc_scale"], p["fc_bias"], p["fcs_w"], p["fcs_b"])
    return v.reshape(N, H, Wout, C)


# ----------------------------------------------------------------------------
# Kernel 4: final Linear + whole-tensor LayerNorm
# ----------------------------------------------------------------------------
def _linear_layernorm_kernel(x_ref, w_ref, b_ref, o_ref):
    y = jnp.dot(x_ref[...], w_ref[...], preferred_element_type=jnp.float32)
    y = y + b_ref[...]
    mu = jnp.mean(y, keepdims=True)
    var = jnp.mean((y - mu) ** 2, keepdims=True)
    o_ref[...] = ((y - mu) * jax.lax.rsqrt(var + LN_EPS)).astype(o_ref.dtype)


def linear_layernorm(x, w, b):
    N, F = x.shape
    _, O = w.shape
    return pl.pallas_call(
        _linear_layernorm_kernel,
        out_shape=jax.ShapeDtypeStruct((N, O), jnp.float32),
        grid=(1,),
        in_specs=[
            pl.BlockSpec((N, F), lambda i: (0, 0)),
            pl.BlockSpec((F, O), lambda i: (0, 0)),
            pl.BlockSpec((1, O), lambda i: (0, 0)),
        ],
        out_specs=pl.BlockSpec((N, O), lambda i: (0, 0)),
    )(x, w, b)


# ----------------------------------------------------------------------------
# Glue: conv1 im2col (strided slices, no gather), BN folding, grouped->dense,
#       parameter init, full forward
# ----------------------------------------------------------------------------
def fold_bn(gamma, beta, mean, var):
    scale = gamma / jnp.sqrt(var + BN_EPS)
    bias = beta - mean * scale
    return scale.reshape(1, -1), bias.reshape(1, -1)


def conv1_block(x, w_mat, scale, bias):
    # x: (N, 1, H, W) NCHW. Conv2d(1, C, (6,1), stride=(3,1), pad=(1,0)) + BN + ReLU.
    N, _, H, W = x.shape
    C = w_mat.shape[1]
    xp = jnp.pad(x[:, 0], ((0, 0), (1, 1), (0, 0)))                 # (N, H+2, W)
    Hout = (H + 2 - 6) // 3 + 1
    # 6 strided slices (stride 3 along H) instead of an XLA gather
    taps = [jax.lax.slice(xp, (0, k, 0), (N, k + 3 * (Hout - 1) + 1, W), (1, 3, 1))
            for k in range(6)]                                      # each (N, Hout, W)
    patches = jnp.stack(taps, axis=-1).reshape(N * Hout * W, 6)
    y = matmul_bn_relu(patches, w_mat, scale, bias)
    return y.reshape(N, Hout, W, C)                                 # NHWC


def grouped_to_dense_taps(w, C, G):
    # w: (C_out, C_in/G, 3, 1) grouped-conv weight -> per-tap dense (3, C_in, C_out)
    cpg = C // G
    wn = np.asarray(w)
    Wd = np.zeros((3, C, C), dtype=np.float32)
    for cout in range(C):
        g = cout // cpg
        for j in range(cpg):
            Wd[:, g * cpg + j, cout] = wn[cout, j, :, 0]
    return jnp.asarray(Wd)


def init_bn(key, c):
    k1, k2, k3, k4 = jax.random.split(key, 4)
    gamma = 1.0 + 0.1 * jax.random.normal(k1, (c,), jnp.float32)
    beta = 0.1 * jax.random.normal(k2, (c,), jnp.float32)
    mean = 0.1 * jax.random.normal(k3, (c,), jnp.float32)
    var = 1.0 + 0.1 * jnp.abs(jax.random.normal(k4, (c,), jnp.float32))
    return gamma, beta, mean, var


def init_sk_params(key, C, M, G, r):
    d = C // r
    keys = jax.random.split(key, 3 * M + 2)
    wb, bns, bnb = [], [], []
    for i in range(M):
        w = 0.2 * jax.random.normal(keys[2 * i], (C, C // G, 3, 1), jnp.float32)
        wb.append(grouped_to_dense_taps(w, C, G))
        s, b = fold_bn(*init_bn(keys[2 * i + 1], C))
        bns.append(s)
        bnb.append(b)
    fc_w_conv = 0.2 * jax.random.normal(keys[2 * M], (d, C, 1, 1), jnp.float32)
    fc_w = fc_w_conv.reshape(d, C).T                              # (C, d)
    fc_scale, fc_bias = fold_bn(*init_bn(keys[2 * M + 1], d))
    fcs_w, fcs_b = [], []
    for i in range(M):
        kw = keys[2 * M + 2 + i]
        w = 0.2 * jax.random.normal(kw, (C, d, 1, 1), jnp.float32)
        fcs_w.append(w.reshape(C, d).T)                           # (d, C)
        fcs_b.append(0.1 * jax.random.normal(jax.random.fold_in(kw, 7), (1, C),
                                             jnp.float32))
    return dict(wb=jnp.stack(wb, 0),
                bn_scale=jnp.stack(bns, 0), bn_bias=jnp.stack(bnb, 0),
                fc_w=fc_w, fc_scale=fc_scale, fc_bias=fc_bias,
                fcs_w=jnp.stack(fcs_w, 0), fcs_b=jnp.stack(fcs_b, 0))


def init_sknet_params(key, C1, M, G, r):
    k1, k2, k3, k4 = jax.random.split(key, 4)
    conv1_w = 0.2 * jax.random.normal(k1, (C1, 1, 6, 1), jnp.float32)
    c1_scale, c1_bias = fold_bn(*init_bn(k2, C1))
    return dict(conv1_w=conv1_w.reshape(C1, 6).T,                 # (6, C1) matmul-ready
                conv1_scale=c1_scale, conv1_bias=c1_bias,
                sk2=init_sk_params(k3, C1, M, G, r),
                sk3=init_sk_params(k4, C1, M, G, r))


def sknet_forward(x, params, fc_w, fc_b):
    a = conv1_block(x, params["conv1_w"], params["conv1_scale"],
                    params["conv1_bias"])                         # (N, H1, W0, C1)
    a = sk_conv(a, params["sk2"])                                 # (N, H1, W0+2, C1)
    a = sk_conv(a, params["sk3"])                                 # (N, H1, W0+4, C1)
    N, H, W, C = a.shape
    # NHWC-contiguous flatten (free); fc_w rows were pre-permuted at init to
    # match PyTorch's NCHW x.view(N, -1) ordering.
    flat = a.reshape(N, H * W * C)
    return linear_layernorm(flat, fc_w, fc_b)


# ----------------------------------------------------------------------------
if __name__ == "__main__":
    key = jax.random.PRNGKey(0)
    kx, kp, kfw, kfb = jax.random.split(key, 4)

    # small PAMAP2-like input: (batch=2, channels=1, time=24, sensors=9)
    N, H0, W0 = 2, 24, 9
    C1, M, G, r = 64, 3, 32, 32

    x = jax.random.normal(kx, (N, 1, H0, W0), jnp.float32)
    params = init_sknet_params(kp, C1, M, G, r)

    H1 = (H0 + 2 - 6) // 3 + 1
    Wf = W0 + 4                      # two SKConvs each add +2 width (W padding)
    Fin = C1 * H1 * Wf

    # Final Linear: weight generated in PyTorch NCHW-flatten row order, then
    # pre-permuted ONCE at init into NHWC-flatten row order so the runtime
    # flatten needs no transpose.
    fc_w_torch = 0.05 * jax.random.normal(kfw, (Fin, 18), jnp.float32)
    perm = np.transpose(np.arange(Fin).reshape(C1, H1, Wf), (1, 2, 0)).reshape(-1)
    fc_w = fc_w_torch[jnp.asarray(perm)]
    fc_b = 0.05 * jax.random.normal(kfb, (1, 18), jnp.float32)

    fwd = jax.jit(sknet_forward)
    out = fwd(x, params, fc_w, fc_b)
    out = jax.block_until_ready(out)
    assert out.shape == (N, 18)
    assert bool(jnp.all(jnp.isfinite(out)))
    print("KERNEL_OK")
</pallas_src>

<mosaic_0001>
module attributes {stable_mosaic.version = 11 : i64} {
  func.func @_mm_bn_relu_kernel(%arg0: i32, %arg1: memref<126x6xf32, #tpu.memory_space<vmem>>, %arg2: memref<6x64xf32, #tpu.memory_space<vmem>>, %arg3: memref<1x64xf32, #tpu.memory_space<vmem>>, %arg4: memref<1x64xf32, #tpu.memory_space<vmem>>, %arg5: memref<126x64xf32, #tpu.memory_space<vmem>>) attributes {dimension_semantics = [#tpu.dimension_semantics<arbitrary>], iteration_bounds = array<i64: 1>, scalar_prefetch = 0 : i64, scratch_operands = 0 : i64, tpu.core_type = #tpu.core_type<tc>, window_params = [{pipeline_mode = #tpu.pipeline_mode<synchronous>, transform_indices = @transform_0, window_bounds = array<i64: 126, 6>}, {pipeline_mode = #tpu.pipeline_mode<synchronous>, transform_indices = @transform_1, window_bounds = array<i64: 6, 64>}, {pipeline_mode = #tpu.pipeline_mode<synchronous>, transform_indices = @transform_2, window_bounds = array<i64: 1, 64>}, {pipeline_mode = #tpu.pipeline_mode<synchronous>, transform_indices = @transform_3, window_bounds = array<i64: 1, 64>}, {pipeline_mode = #tpu.pipeline_mode<synchronous>, transform_indices = @transform_4, window_bounds = array<i64: 126, 64>}]} {
    %c0 = arith.constant 0 : index
    %c0_0 = arith.constant 0 : index
    %0 = vector.load %arg1[%c0, %c0_0] : memref<126x6xf32, #tpu.memory_space<vmem>>, vector<126x6xf32>
    %c0_1 = arith.constant 0 : index
    %c0_2 = arith.constant 0 : index
    %1 = vector.load %arg2[%c0_1, %c0_2] : memref<6x64xf32, #tpu.memory_space<vmem>>, vector<6x64xf32>
    %cst = arith.constant dense<0.000000e+00> : vector<126x64xf32>
    %2 = tpu.matmul %0, %1, %cst {dimension_numbers = #tpu.dot_dimension_numbers<[1], [0], [0], [1], [0, 0, 1, 1], [], []>} : vector<126x6xf32>, vector<6x64xf32>, vector<126x64xf32> -> vector<126x64xf32>
    %c0_3 = arith.constant 0 : index
    %c0_4 = arith.constant 0 : index
    %3 = vector.load %arg3[%c0_3, %c0_4] : memref<1x64xf32, #tpu.memory_space<vmem>>, vector<1x64xf32>
    %4 = vector.broadcast %3 : vector<1x64xf32> to vector<126x64xf32>
    %5 = arith.mulf %2, %4 : vector<126x64xf32>
    %c0_5 = arith.constant 0 : index
    %c0_6 = arith.constant 0 : index
    %6 = vector.load %arg4[%c0_5, %c0_6] : memref<1x64xf32, #tpu.memory_space<vmem>>, vector<1x64xf32>
    %7 = vector.broadcast %6 : vector<1x64xf32> to vector<126x64xf32>
    %8 = arith.addf %5, %7 : vector<126x64xf32>
    %cst_7 = arith.constant 0.000000e+00 : f32
    %9 = vector.broadcast %cst_7 : f32 to vector<126x64xf32>
    %10 = arith.maximumf %8, %9 : vector<126x64xf32>
    %c0_8 = arith.constant 0 : index
    %c0_9 = arith.constant 0 : index
    %11 = vector.load %arg5[%c0_8, %c0_9] : memref<126x64xf32, #tpu.memory_space<vmem>>, vector<126x64xf32>
    tpu.vector_store %arg5[%c0_8, %c0_9], %10 {strides = array<i32>} : memref<126x64xf32, #tpu.memory_space<vmem>>, vector<126x64xf32>,
    return
  }
  func.func @transform_0(%arg0: i32) -> (i32, i32) {
    %c0_i32 = arith.constant 0 : i32
    %c0_i32_0 = arith.constant 0 : i32
    %c0_i32_1 = arith.constant 0 : i32
    return %c0_i32, %c0_i32_0 : i32, i32
  }
  func.func @transform_1(%arg0: i32) -> (i32, i32) {
    %c0_i32 = arith.constant 0 : i32
    %c0_i32_0 = arith.constant 0 : i32
    %c0_i32_1 = arith.constant 0 : i32
    return %c0_i32, %c0_i32_0 : i32, i32
  }
  func.func @transform_2(%arg0: i32) -> (i32, i32) {
    %c0_i32 = arith.constant 0 : i32
    %c0_i32_0 = arith.constant 0 : i32
    %c0_i32_1 = arith.constant 0 : i32
    return %c0_i32, %c0_i32_0 : i32, i32
  }
  func.func @transform_3(%arg0: i32) -> (i32, i32) {
    %c0_i32 = arith.constant 0 : i32
    %c0_i32_0 = arith.constant 0 : i32
    %c0_i32_1 = arith.constant 0 : i32
    return %c0_i32, %c0_i32_0 : i32, i32
  }
  func.func @transform_4(%arg0: i32) -> (i32, i32) {
    %c0_i32 = arith.constant 0 : i32
    %c0_i32_0 = arith.constant 0 : i32
    %c0_i32_1 = arith.constant 0 : i32
    return %c0_i32, %c0_i32_0 : i32, i32
  }
}

module attributes {stable_mosaic.version = 11 : i64} {
  func.func @_skconv_kernel(%arg0: i32, %arg1: memref<1x143x64xf32, #tpu.memory_space<vmem>>, %arg2: memref<3x3x64x64xf32, #tpu.memory_space<vmem>>, %arg3: memref<3x1x64xf32, #tpu.memory_space<vmem>>, %arg4: memref<3x1x64xf32, #tpu.memory_space<vmem>>, %arg5: memref<64x2xf32, #tpu.memory_space<vmem>>, %arg6: memref<1x2xf32, #tpu.memory_space<vmem>>, %arg7: memref<1x2xf32, #tpu.memory_space<vmem>>, %arg8: memref<3x2x64xf32, #tpu.memory_space<vmem>>, %arg9: memref<3x1x64xf32, #tpu.memory_space<vmem>>, %arg10: memref<1x77x64xf32, #tpu.memory_space<vmem>>) attributes {dimension_semantics = [#tpu.dimension_semantics<parallel>], iteration_bounds = array<i64: 2>, scalar_prefetch = 0 : i64, scratch_operands = 0 : i64, tpu.core_type = #tpu.core_type<tc>, window_params = [{transform_indices = @transform_0, window_bounds = array<i64: 1, 143, 64>}, {pipeline_mode = #tpu.pipeline_mode<synchronous>, transform_indices = @transform_1, window_bounds = array<i64: 3, 3, 64, 64>}, {pipeline_mode = #tpu.pipeline_mode<synchronous>, transform_indices = @transform_2, window_bounds = array<i64: 3, 1, 64>}, {pipeline_mode = #tpu.pipeline_mode<synchronous>, transform_indices = @transform_3, window_bounds = array<i64: 3, 1, 64>}, {pipeline_mode = #tpu.pipeline_mode<synchronous>, transform_indices = @transform_4, window_bounds = array<i64: 64, 2>}, {pipeline_mode = #tpu.pipeline_mode<synchronous>, transform_indices = @transform_5, window_bounds = array<i64: 1, 2>}, {pipeline_mode = #tpu.pipeline_mode<synchronous>, transform_indices = @transform_6, window_bounds = array<i64: 1, 2>}, {pipeline_mode = #tpu.pipeline_mode<synchronous>, transform_indices = @transform_7, window_bounds = array<i64: 3, 2, 64>}, {pipeline_mode = #tpu.pipeline_mode<synchronous>, transform_indices = @transform_8, window_bounds = array<i64: 3, 1, 64>}, {transform_indices = @transform_9, window_bounds = array<i64: 1, 77, 64>}]} {
    %c0 = arith.constant 0 : index
    %c0_0 = arith.constant 0 : index
    %c0_1 = arith.constant 0 : index
    %0 = vector.load %arg1[%c0, %c0_0, %c0_1] : memref<1x143x64xf32, #tpu.memory_space<vmem>>, vector<1x143x64xf32>
    %1 = vector.shape_cast %0 : vector<1x143x64xf32> to vector<143x64xf32>
    %c0_2 = arith.constant 0 : index
    %c0_3 = arith.constant 0 : index
    %c0_4 = arith.constant 0 : index
    %c0_5 = arith.constant 0 : index
    %2 = vector.load %arg2[%c0_2, %c0_3, %c0_4, %c0_5] : memref<3x3x64x64xf32, #tpu.memory_space<vmem>>, vector<3x3x64x64xf32>
    %c0_6 = arith.constant 0 : index
    %c0_7 = arith.constant 0 : index
    %c0_8 = arith.constant 0 : index
    %3 = vector.load %arg3[%c0_6, %c0_7, %c0_8] : memref<3x1x64xf32, #tpu.memory_space<vmem>>, vector<3x1x64xf32>
    %c0_9 = arith.constant 0 : index
    %c0_10 = arith.constant 0 : index
    %c0_11 = arith.constant 0 : index
    %4 = vector.load %arg4[%c0_9, %c0_10, %c0_11] : memref<3x1x64xf32, #tpu.memory_space<vmem>>, vector<3x1x64xf32>
    %c0_12 = arith.constant 0 : index
    %c0_13 = arith.constant 0 : index
    %c0_14 = arith.constant 0 : index
    %5 = vector.load %arg8[%c0_12, %c0_13, %c0_14] : memref<3x2x64xf32, #tpu.memory_space<vmem>>, vector<3x2x64xf32>
    %c0_15 = arith.constant 0 : index
    %c0_16 = arith.constant 0 : index
    %c0_17 = arith.constant 0 : index
    %6 = vector.load %arg9[%c0_15, %c0_16, %c0_17] : memref<3x1x64xf32, #tpu.memory_space<vmem>>, vector<3x1x64xf32>
    %7 = vector.extract_strided_slice %1 {offsets = [22, 0], sizes = [77, 64], strides = [1, 1]} : vector<143x64xf32> to vector<77x64xf32>
    %8 = vector.extract_strided_slice %2 {offsets = [0, 0, 0, 0], sizes = [1, 1, 64, 64], strides = [1, 1, 1, 1]} : vector<3x3x64x64xf32> to vector<1x1x64x64xf32>
    %9 = vector.shape_cast %8 : vector<1x1x64x64xf32> to vector<64x64xf32>
    %cst = arith.constant dense<0.000000e+00> : vector<77x64xf32>
    %10 = tpu.matmul %7, %9, %cst {dimension_numbers = #tpu.dot_dimension_numbers<[1], [0], [0], [1], [0, 0, 1, 1], [], []>} : vector<77x64xf32>, vector<64x64xf32>, vector<77x64xf32> -> vector<77x64xf32>
    %11 = vector.extract_strided_slice %1 {offsets = [33, 0], sizes = [77, 64], strides = [1, 1]} : vector<143x64xf32> to vector<77x64xf32>
    %12 = vector.extract_strided_slice %2 {offsets = [0, 1, 0, 0], sizes = [1, 1, 64, 64], strides = [1, 1, 1, 1]} : vector<3x3x64x64xf32> to vector<1x1x64x64xf32>
    %13 = vector.shape_cast %12 : vector<1x1x64x64xf32> to vector<64x64xf32>
    %cst_18 = arith.constant dense<0.000000e+00> : vector<77x64xf32>
    %14 = tpu.matmul %11, %13, %cst_18 {dimension_numbers = #tpu.dot_dimension_numbers<[1], [0], [0], [1], [0, 0, 1, 1], [], []>} : vector<77x64xf32>, vector<64x64xf32>, vector<77x64xf32> -> vector<77x64xf32>
    %15 = arith.addf %10, %14 : vector<77x64xf32>
    %16 = vector.extract_strided_slice %1 {offsets = [44, 0], sizes = [77, 64], strides = [1, 1]} : vector<143x64xf32> to vector<77x64xf32>
    %17 = vector.extract_strided_slice %2 {offsets = [0, 2, 0, 0], sizes = [1, 1, 64, 64], strides = [1, 1, 1, 1]} : vector<3x3x64x64xf32> to vector<1x1x64x64xf32>
    %18 = vector.shape_cast %17 : vector<1x1x64x64xf32> to vector<64x64xf32>
    %cst_19 = arith.constant dense<0.000000e+00> : vector<77x64xf32>
    %19 = tpu.matmul %16, %18, %cst_19 {dimension_numbers = #tpu.dot_dimension_numbers<[1], [0], [0], [1], [0, 0, 1, 1], [], []>} : vector<77x64xf32>, vector<64x64xf32>, vector<77x64xf32> -> vector<77x64xf32>
    %20 = arith.addf %15, %19 : vector<77x64xf32>
    %21 = vector.extract_strided_slice %3 {offsets = [0, 0, 0], sizes = [1, 1, 64], strides = [1, 1, 1]} : vector<3x1x64xf32> to vector<1x1x64xf32>
    %22 = vector.shape_cast %21 : vector<1x1x64xf32> to vector<1x64xf32>
    %23 = vector.broadcast %22 : vector<1x64xf32> to vector<77x64xf32>
    %24 = arith.mulf %20, %23 : vector<77x64xf32>
    %25 = vector.extract_strided_slice %4 {offsets = [0, 0, 0], sizes = [1, 1, 64], strides = [1, 1, 1]} : vector<3x1x64xf32> to vector<1x1x64xf32>
    %26 = vector.shape_cast %25 : vector<1x1x64xf32> to vector<1x64xf32>
    %27 = vector.broadcast %26 : vector<1x64xf32> to vector<77x64xf32>
    %28 = arith.addf %24, %27 : vector<77x64xf32>
    %cst_20 = arith.constant 0.000000e+00 : f32
    %29 = vector.broadcast %cst_20 : f32 to vector<77x64xf32>
    %30 = arith.maximumf %28, %29 : vector<77x64xf32>
    %31 = vector.extract_strided_slice %1 {offsets = [11, 0], sizes = [77, 64], strides = [1, 1]} : vector<143x64xf32> to vector<77x64xf32>
    %32 = vector.extract_strided_slice %2 {offsets = [1, 0, 0, 0], sizes = [1, 1, 64, 64], strides = [1, 1, 1, 1]} : vector<3x3x64x64xf32> to vector<1x1x64x64xf32>
    %33 = vector.shape_cast %32 : vector<1x1x64x64xf32> to vector<64x64xf32>
    %cst_21 = arith.constant dense<0.000000e+00> : vector<77x64xf32>
    %34 = tpu.matmul %31, %33, %cst_21 {dimension_numbers = #tpu.dot_dimension_numbers<[1], [0], [0], [1], [0, 0, 1, 1], [], []>} : vector<77x64xf32>, vector<64x64xf32>, vector<77x64xf32> -> vector<77x64xf32>
    %35 = vector.extract_strided_slice %1 {offsets = [33, 0], sizes = [77, 64], strides = [1, 1]} : vector<143x64xf32> to vector<77x64xf32>
    %36 = vector.extract_strided_slice %2 {offsets = [1, 1, 0, 0], sizes = [1, 1, 64, 64], strides = [1, 1, 1, 1]} : vector<3x3x64x64xf32> to vector<1x1x64x64xf32>
    %37 = vector.shape_cast %36 : vector<1x1x64x64xf32> to vector<64x64xf32>
    %cst_22 = arith.constant dense<0.000000e+00> : vector<77x64xf32>
    %38 = tpu.matmul %35, %37, %cst_22 {dimension_numbers = #tpu.dot_dimension_numbers<[1], [0], [0], [1], [0, 0, 1, 1], [], []>} : vector<77x64xf32>, vector<64x64xf32>, vector<77x64xf32> -> vector<77x64xf32>
    %39 = arith.addf %34, %38 : vector<77x64xf32>
    %40 = vector.extract_strided_slice %1 {offsets = [55, 0], sizes = [77, 64], strides = [1, 1]} : vector<143x64xf32> to vector<77x64xf32>
    %41 = vector.extract_strided_slice %2 {offsets = [1, 2, 0, 0], sizes = [1, 1, 64, 64], strides = [1, 1, 1, 1]} : vector<3x3x64x64xf32> to vector<1x1x64x64xf32>
    %42 = vector.shape_cast %41 : vector<1x1x64x64xf32> to vector<64x64xf32>
    %cst_23 = arith.constant dense<0.000000e+00> : vector<77x64xf32>
    %43 = tpu.matmul %40, %42, %cst_23 {dimension_numbers = #tpu.dot_dimension_numbers<[1], [0], [0], [1], [0, 0, 1, 1], [], []>} : vector<77x64xf32>, vector<64x64xf32>, vector<77x64xf32> -> vector<77x64xf32>
    %44 = arith.addf %39, %43 : vector<77x64xf32>
    %45 = vector.extract_strided_slice %3 {offsets = [1, 0, 0], sizes = [1, 1, 64], strides = [1, 1, 1]} : vector<3x1x64xf32> to vector<1x1x64xf32>
    %46 = vector.shape_cast %45 : vector<1x1x64xf32> to vector<1x64xf32>
    %47 = vector.broadcast %46 : vector<1x64xf32> to vector<77x64xf32>
    %48 = arith.mulf %44, %47 : vector<77x64xf32>
    %49 = vector.extract_strided_slice %4 {offsets = [1, 0, 0], sizes = [1, 1, 64], strides = [1, 1, 1]} : vector<3x1x64xf32> to vector<1x1x64xf32>
    %50 = vector.shape_cast %49 : vector<1x1x64xf32> to vector<1x64xf32>
    %51 = vector.broadcast %50 : vector<1x64xf32> to vector<77x64xf32>
    %52 = arith.addf %48, %51 : vector<77x64xf32>
    %cst_24 = arith.constant 0.000000e+00 : f32
    %53 = vector.broadcast %cst_24 : f32 to vector<77x64xf32>
    %54 = arith.maximumf %52, %53 : vector<77x64xf32>
    %55 = vector.extract_strided_slice %1 {offsets = [0, 0], sizes = [77, 64], strides = [1, 1]} : vector<143x64xf32> to vector<77x64xf32>
    %56 = vector.extract_strided_slice %2 {offsets = [2, 0, 0, 0], sizes = [1, 1, 64, 64], strides = [1, 1, 1, 1]} : vector<3x3x64x64xf32> to vector<1x1x64x64xf32>
    %57 = vector.shape_cast %56 : vector<1x1x64x64xf32> to vector<64x64xf32>
    %cst_25 = arith.constant dense<0.000000e+00> : vector<77x64xf32>
    %58 = tpu.matmul %55, %57, %cst_25 {dimension_numbers = #tpu.dot_dimension_numbers<[1], [0], [0], [1], [0, 0, 1, 1], [], []>} : vector<77x64xf32>, vector<64x64xf32>, vector<77x64xf32> -> vector<77x64xf32>
    %59 = vector.extract_strided_slice %1 {offsets = [33, 0], sizes = [77, 64], strides = [1, 1]} : vector<143x64xf32> to vector<77x64xf32>
    %60 = vector.extract_strided_slice %2 {offsets = [2, 1, 0, 0], sizes = [1, 1, 64, 64], strides = [1, 1, 1, 1]} : vector<3x3x64x64xf32> to vector<1x1x64x64xf32>
    %61 = vector.shape_cast %60 : vector<1x1x64x64xf32> to vector<64x64xf32>
    %cst_26 = arith.constant dense<0.000000e+00> : vector<77x64xf32>
    %62 = tpu.matmul %59, %61, %cst_26 {dimension_numbers = #tpu.dot_dimension_numbers<[1], [0], [0], [1], [0, 0, 1, 1], [], []>} : vector<77x64xf32>, vector<64x64xf32>, vector<77x64xf32> -> vector<77x64xf32>
    %63 = arith.addf %58, %62 : vector<77x64xf32>
    %64 = vector.extract_strided_slice %1 {offsets = [66, 0], sizes = [77, 64], strides = [1, 1]} : vector<143x64xf32> to vector<77x64xf32>
    %65 = vector.extract_strided_slice %2 {offsets = [2, 2, 0, 0], sizes = [1, 1, 64, 64], strides = [1, 1, 1, 1]} : vector<3x3x64x64xf32> to vector<1x1x64x64xf32>
    %66 = vector.shape_cast %65 : vector<1x1x64x64xf32> to vector<64x64xf32>
    %cst_27 = arith.constant dense<0.000000e+00> : vector<77x64xf32>
    %67 = tpu.matmul %64, %66, %cst_27 {dimension_numbers = #tpu.dot_dimension_numbers<[1], [0], [0], [1], [0, 0, 1, 1], [], []>} : vector<77x64xf32>, vector<64x64xf32>, vector<77x64xf32> -> vector<77x64xf32>
    %68 = arith.addf %63, %67 : vector<77x64xf32>
    %69 = vector.extract_strided_slice %3 {offsets = [2, 0, 0], sizes = [1, 1, 64], strides = [1, 1, 1]} : vector<3x1x64xf32> to vector<1x1x64xf32>
    %70 = vector.shape_cast %69 : vector<1x1x64xf32> to vector<1x64xf32>
    %71 = vector.broadcast %70 : vector<1x64xf32> to vector<77x64xf32>
    %72 = arith.mulf %68, %71 : vector<77x64xf32>
    %73 = vector.extract_strided_slice %4 {offsets = [2, 0, 0], sizes = [1, 1, 64], strides = [1, 1, 1]} : vector<3x1x64xf32> to vector<1x1x64xf32>
    %74 = vector.shape_cast %73 : vector<1x1x64xf32> to vector<1x64xf32>
    %75 = vector.broadcast %74 : vector<1x64xf32> to vector<77x64xf32>
    %76 = arith.addf %72, %75 : vector<77x64xf32>
    %cst_28 = arith.constant 0.000000e+00 : f32
    %77 = vector.broadcast %cst_28 : f32 to vector<77x64xf32>
    %78 = arith.maximumf %76, %77 : vector<77x64xf32>
    %79 = arith.addf %30, %54 : vector<77x64xf32>
    %80 = arith.addf %79, %78 : vector<77x64xf32>
    %cst_29 = arith.constant dense<0.000000e+00> : vector<64xf32>
    %81 = vector.multi_reduction <add>, %80, %cst_29 [0] : vector<77x64xf32> to vector<64xf32>
    %82 = vector.shape_cast %81 : vector<64xf32> to vector<1x64xf32>
    %cst_30 = arith.constant 7.700000e+01 : f32
    %83 = vector.broadcast %cst_30 : f32 to vector<1x64xf32>
    %84 = arith.divf %82, %83 : vector<1x64xf32>
    %c0_31 = arith.constant 0 : index
    %c0_32 = arith.constant 0 : index
    %85 = vector.load %arg5[%c0_31, %c0_32] : memref<64x2xf32, #tpu.memory_space<vmem>>, vector<64x2xf32>
    %cst_33 = arith.constant dense<0.000000e+00> : vector<1x2xf32>
    %86 = tpu.matmul %84, %85, %cst_33 {dimension_numbers = #tpu.dot_dimension_numbers<[1], [0], [0], [1], [0, 0, 1, 1], [], []>} : vector<1x64xf32>, vector<64x2xf32>, vector<1x2xf32> -> vector<1x2xf32>
    %c0_34 = arith.constant 0 : index
    %c0_35 = arith.constant 0 : index
    %87 = vector.load %arg6[%c0_34, %c0_35] : memref<1x2xf32, #tpu.memory_space<vmem>>, vector<1x2xf32>
    %88 = arith.mulf %86, %87 : vector<1x2xf32>
    %c0_36 = arith.constant 0 : index
    %c0_37 = arith.constant 0 : index
    %89 = vector.load %arg7[%c0_36, %c0_37] : memref<1x2xf32, #tpu.memory_space<vmem>>, vector<1x2xf32>
    %90 = arith.addf %88, %89 : vector<1x2xf32>
    %cst_38 = arith.constant 0.000000e+00 : f32
    %91 = vector.broadcast %cst_38 : f32 to vector<1x2xf32>
    %92 = arith.maximumf %90, %91 : vector<1x2xf32>
    %93 = vector.extract_strided_slice %5 {offsets = [0, 0, 0], sizes = [1, 2, 64], strides = [1, 1, 1]} : vector<3x2x64xf32> to vector<1x2x64xf32>
    %94 = vector.shape_cast %93 : vector<1x2x64xf32> to vector<2x64xf32>
    %cst_39 = arith.constant dense<0.000000e+00> : vector<1x64xf32>
    %95 = tpu.matmul %92, %94, %cst_39 {dimension_numbers = #tpu.dot_dimension_numbers<[1], [0], [0], [1], [0, 0, 1, 1], [], []>} : vector<1x2xf32>, vector<2x64xf32>, vector<1x64xf32> -> vector<1x64xf32>
    %96 = vector.extract_strided_slice %6 {offsets = [0, 0, 0], sizes = [1, 1, 64], strides = [1, 1, 1]} : vector<3x1x64xf32> to vector<1x1x64xf32>
    %97 = vector.shape_cast %96 : vector<1x1x64xf32> to vector<1x64xf32>
    %98 = arith.addf %95, %97 : vector<1x64xf32>
    %99 = vector.extract_strided_slice %5 {offsets = [1, 0, 0], sizes = [1, 2, 64], strides = [1, 1, 1]} : vector<3x2x64xf32> to vector<1x2x64xf32>
    %100 = vector.shape_cast %99 : vector<1x2x64xf32> to vector<2x64xf32>
    %cst_40 = arith.constant dense<0.000000e+00> : vector<1x64xf32>
    %101 = tpu.matmul %92, %100, %cst_40 {dimension_numbers = #tpu.dot_dimension_numbers<[1], [0], [0], [1], [0, 0, 1, 1], [], []>} : vector<1x2xf32>, vector<2x64xf32>, vector<1x64xf32> -> vector<1x64xf32>
    %102 = vector.extract_strided_slice %6 {offsets = [1, 0, 0], sizes = [1, 1, 64], strides = [1, 1, 1]} : vector<3x1x64xf32> to vector<1x1x64xf32>
    %103 = vector.shape_cast %102 : vector<1x1x64xf32> to vector<1x64xf32>
    %104 = arith.addf %101, %103 : vector<1x64xf32>
    %105 = vector.extract_strided_slice %5 {offsets = [2, 0, 0], sizes = [1, 2, 64], strides = [1, 1, 1]} : vector<3x2x64xf32> to vector<1x2x64xf32>
    %106 = vector.shape_cast %105 : vector<1x2x64xf32> to vector<2x64xf32>
    %cst_41 = arith.constant dense<0.000000e+00> : vector<1x64xf32>
    %107 = tpu.matmul %92, %106, %cst_41 {dimension_numbers = #tpu.dot_dimension_numbers<[1], [0], [0], [1], [0, 0, 1, 1], [], []>} : vector<1x2xf32>, vector<2x64xf32>, vector<1x64xf32> -> vector<1x64xf32>
    %108 = vector.extract_strided_slice %6 {offsets = [2, 0, 0], sizes = [1, 1, 64], strides = [1, 1, 1]} : vector<3x1x64xf32> to vector<1x1x64xf32>
    %109 = vector.shape_cast %108 : vector<1x1x64xf32> to vector<1x64xf32>
    %110 = arith.addf %107, %109 : vector<1x64xf32>
    %111 = arith.maximumf %98, %104 : vector<1x64xf32>
    %112 = arith.maximumf %111, %110 : vector<1x64xf32>
    %113 = arith.subf %98, %112 : vector<1x64xf32>
    %114 = math.exp %113 : vector<1x64xf32>
    %115 = arith.subf %104, %112 : vector<1x64xf32>
    %116 = math.exp %115 : vector<1x64xf32>
    %117 = arith.subf %110, %112 : vector<1x64xf32>
    %118 = math.exp %117 : vector<1x64xf32>
    %119 = arith.addf %114, %116 : vector<1x64xf32>
    %120 = arith.addf %119, %118 : vector<1x64xf32>
    %121 = tpu.reciprocal %120 {approx = true} : vector<1x64xf32> -> vector<1x64xf32>
    %122 = arith.mulf %114, %121 : vector<1x64xf32>
    %123 = vector.broadcast %122 : vector<1x64xf32> to vector<77x64xf32>
    %124 = arith.mulf %30, %123 : vector<77x64xf32>
    %125 = arith.mulf %116, %121 : vector<1x64xf32>
    %126 = vector.broadcast %125 : vector<1x64xf32> to vector<77x64xf32>
    %127 = arith.mulf %54, %126 : vector<77x64xf32>
    %128 = arith.addf %124, %127 : vector<77x64xf32>
    %129 = arith.mulf %118, %121 : vector<1x64xf32>
    %130 = vector.broadcast %129 : vector<1x64xf32> to vector<77x64xf32>
    %131 = arith.mulf %78, %130 : vector<77x64xf32>
    %132 = arith.addf %128, %131 : vector<77x64xf32>
    %c0_42 = arith.constant 0 : index
    %c0_43 = arith.constant 0 : index
    %c0_44 = arith.constant 0 : index
    %133 = vector.load %arg10[%c0_42, %c0_43, %c0_44] : memref<1x77x64xf32, #tpu.memory_space<vmem>>, vector<1x77x64xf32>
    %134 = vector.shape_cast %133 : vector<1x77x64xf32> to vector<77x64xf32>
    %135 = vector.shape_cast %132 : vector<77x64xf32> to vector<1x77x64xf32>
    tpu.vector_store %arg10[%c0_42, %c0_43, %c0_44], %135 {strides = array<i32>} : memref<1x77x64xf32, #tpu.memory_space<vmem>>, vector<1x77x64xf32>,
    return
  }
  func.func @transform_0(%arg0: i32) -> (i32, i32, i32) {
    %c0_i32 = arith.constant 0 : i32
    %c0_i32_0 = arith.constant 0 : i32
    %c0_i32_1 = arith.constant 0 : i32
    return %arg0, %c0_i32, %c0_i32_0 : i32, i32, i32
  }
  func.func @transform_1(%arg0: i32) -> (i32, i32, i32, i32) {
    %c0_i32 = arith.constant 0 : i32
    %c0_i32_0 = arith.constant 0 : i32
    %c0_i32_1 = arith.constant 0 : i32
    %c0_i32_2 = arith.constant 0 : i32
    %c0_i32_3 = arith.constant 0 : i32
    return %c0_i32, %c0_i32_0, %c0_i32_1, %c0_i32_2 : i32, i32, i32, i32
  }
  func.func @transform_2(%arg0: i32) -> (i32, i32, i32) {
    %c0_i32 = arith.constant 0 : i32
    %c0_i32_0 = arith.constant 0 : i32
    %c0_i32_1 = arith.constant 0 : i32
    %c0_i32_2 = arith.constant 0 : i32
    return %c0_i32, %c0_i32_0, %c0_i32_1 : i32, i32, i32
  }
  func.func @transform_3(%arg0: i32) -> (i32, i32, i32) {
    %c0_i32 = arith.constant 0 : i32
    %c0_i32_0 = arith.constant 0 : i32
    %c0_i32_1 = arith.constant 0 : i32
    %c0_i32_2 = arith.constant 0 : i32
    return %c0_i32, %c0_i32_0, %c0_i32_1 : i32, i32, i32
  }
  func.func @transform_4(%arg0: i32) -> (i32, i32) {
    %c0_i32 = arith.constant 0 : i32
    %c0_i32_0 = arith.constant 0 : i32
    %c0_i32_1 = arith.constant 0 : i32
    return %c0_i32, %c0_i32_0 : i32, i32
  }
  func.func @transform_5(%arg0: i32) -> (i32, i32) {
    %c0_i32 = arith.constant 0 : i32
    %c0_i32_0 = arith.constant 0 : i32
    %c0_i32_1 = arith.constant 0 : i32
    return %c0_i32, %c0_i32_0 : i32, i32
  }
  func.func @transform_6(%arg0: i32) -> (i32, i32) {
    %c0_i32 = arith.constant 0 : i32
    %c0_i32_0 = arith.constant 0 : i32
    %c0_i32_1 = arith.constant 0 : i32
    return %c0_i32, %c0_i32_0 : i32, i32
  }
  func.func @transform_7(%arg0: i32) -> (i32, i32, i32) {
    %c0_i32 = arith.constant 0 : i32
    %c0_i32_0 = arith.constant 0 : i32
    %c0_i32_1 = arith.constant 0 : i32
    %c0_i32_2 = arith.constant 0 : i32
    return %c0_i32, %c0_i32_0, %c0_i32_1 : i32, i32, i32
  }
  func.func @transform_8(%arg0: i32) -> (i32, i32, i32) {
    %c0_i32 = arith.constant 0 : i32
    %c0_i32_0 = arith.constant 0 : i32
    %c0_i32_1 = arith.constant 0 : i32
    %c0_i32_2 = arith.constant 0 : i32
    return %c0_i32, %c0_i32_0, %c0_i32_1 : i32, i32, i32
  }
  func.func @transform_9(%arg0: i32) -> (i32, i32, i32) {
    %c0_i32 = arith.constant 0 : i32
    %c0_i32_0 = arith.constant 0 : i32
    %c0_i32_1 = arith.constant 0 : i32
    return %arg0, %c0_i32, %c0_i32_0 : i32, i32, i32
  }
}

module attributes {stable_mosaic.version = 11 : i64} {
  func.func @_skconv_kernel(%arg0: i32, %arg1: memref<1x169x64xf32, #tpu.memory_space<vmem>>, %arg2: memref<3x3x64x64xf32, #tpu.memory_space<vmem>>, %arg3: memref<3x1x64xf32, #tpu.memory_space<vmem>>, %arg4: memref<3x1x64xf32, #tpu.memory_space<vmem>>, %arg5: memref<64x2xf32, #tpu.memory_space<vmem>>, %arg6: memref<1x2xf32, #tpu.memory_space<vmem>>, %arg7: memref<1x2xf32, #tpu.memory_space<vmem>>, %arg8: memref<3x2x64xf32, #tpu.memory_space<vmem>>, %arg9: memref<3x1x64xf32, #tpu.memory_space<vmem>>, %arg10: memref<1x91x64xf32, #tpu.memory_space<vmem>>) attributes {dimension_semantics = [#tpu.dimension_semantics<parallel>], iteration_bounds = array<i64: 2>, scalar_prefetch = 0 : i64, scratch_operands = 0 : i64, tpu.core_type = #tpu.core_type<tc>, window_params = [{transform_indices = @transform_0, window_bounds = array<i64: 1, 169, 64>}, {pipeline_mode = #tpu.pipeline_mode<synchronous>, transform_indices = @transform_1, window_bounds = array<i64: 3, 3, 64, 64>}, {pipeline_mode = #tpu.pipeline_mode<synchronous>, transform_indices = @transform_2, window_bounds = array<i64: 3, 1, 64>}, {pipeline_mode = #tpu.pipeline_mode<synchronous>, transform_indices = @transform_3, window_bounds = array<i64: 3, 1, 64>}, {pipeline_mode = #tpu.pipeline_mode<synchronous>, transform_indices = @transform_4, window_bounds = array<i64: 64, 2>}, {pipeline_mode = #tpu.pipeline_mode<synchronous>, transform_indices = @transform_5, window_bounds = array<i64: 1, 2>}, {pipeline_mode = #tpu.pipeline_mode<synchronous>, transform_indices = @transform_6, window_bounds = array<i64: 1, 2>}, {pipeline_mode = #tpu.pipeline_mode<synchronous>, transform_indices = @transform_7, window_bounds = array<i64: 3, 2, 64>}, {pipeline_mode = #tpu.pipeline_mode<synchronous>, transform_indices = @transform_8, window_bounds = array<i64: 3, 1, 64>}, {transform_indices = @transform_9, window_bounds = array<i64: 1, 91, 64>}]} {
    %c0 = arith.constant 0 : index
    %c0_0 = arith.constant 0 : index
    %c0_1 = arith.constant 0 : index
    %0 = vector.load %arg1[%c0, %c0_0, %c0_1] : memref<1x169x64xf32, #tpu.memory_space<vmem>>, vector<1x169x64xf32>
    %1 = vector.shape_cast %0 : vector<1x169x64xf32> to vector<169x64xf32>
    %c0_2 = arith.constant 0 : index
    %c0_3 = arith.constant 0 : index
    %c0_4 = arith.constant 0 : index
    %c0_5 = arith.constant 0 : index
    %2 = vector.load %arg2[%c0_2, %c0_3, %c0_4, %c0_5] : memref<3x3x64x64xf32, #tpu.memory_space<vmem>>, vector<3x3x64x64xf32>
    %c0_6 = arith.constant 0 : index
    %c0_7 = arith.constant 0 : index
    %c0_8 = arith.constant 0 : index
    %3 = vector.load %arg3[%c0_6, %c0_7, %c0_8] : memref<3x1x64xf32, #tpu.memory_space<vmem>>, vector<3x1x64xf32>
    %c0_9 = arith.constant 0 : index
    %c0_10 = arith.constant 0 : index
    %c0_11 = arith.constant 0 : index
    %4 = vector.load %arg4[%c0_9, %c0_10, %c0_11] : memref<3x1x64xf32, #tpu.memory_space<vmem>>, vector<3x1x64xf32>
    %c0_12 = arith.constant 0 : index
    %c0_13 = arith.constant 0 : index
    %c0_14 = arith.constant 0 : index
    %5 = vector.load %arg8[%c0_12, %c0_13, %c0_14] : memref<3x2x64xf32, #tpu.memory_space<vmem>>, vector<3x2x64xf32>
    %c0_15 = arith.constant 0 : index
    %c0_16 = arith.constant 0 : index
    %c0_17 = arith.constant 0 : index
    %6 = vector.load %arg9[%c0_15, %c0_16, %c0_17] : memref<3x1x64xf32, #tpu.memory_space<vmem>>, vector<3x1x64xf32>
    %7 = vector.extract_strided_slice %1 {offsets = [26, 0], sizes = [91, 64], strides = [1, 1]} : vector<169x64xf32> to vector<91x64xf32>
    %8 = vector.extract_strided_slice %2 {offsets = [0, 0, 0, 0], sizes = [1, 1, 64, 64], strides = [1, 1, 1, 1]} : vector<3x3x64x64xf32> to vector<1x1x64x64xf32>
    %9 = vector.shape_cast %8 : vector<1x1x64x64xf32> to vector<64x64xf32>
    %cst = arith.constant dense<0.000000e+00> : vector<91x64xf32>
    %10 = tpu.matmul %7, %9, %cst {dimension_numbers = #tpu.dot_dimension_numbers<[1], [0], [0], [1], [0, 0, 1, 1], [], []>} : vector<91x64xf32>, vector<64x64xf32>, vector<91x64xf32> -> vector<91x64xf32>
    %11 = vector.extract_strided_slice %1 {offsets = [39, 0], sizes = [91, 64], strides = [1, 1]} : vector<169x64xf32> to vector<91x64xf32>
    %12 = vector.extract_strided_slice %2 {offsets = [0, 1, 0, 0], sizes = [1, 1, 64, 64], strides = [1, 1, 1, 1]} : vector<3x3x64x64xf32> to vector<1x1x64x64xf32>
    %13 = vector.shape_cast %12 : vector<1x1x64x64xf32> to vector<64x64xf32>
    %cst_18 = arith.constant dense<0.000000e+00> : vector<91x64xf32>
    %14 = tpu.matmul %11, %13, %cst_18 {dimension_numbers = #tpu.dot_dimension_numbers<[1], [0], [0], [1], [0, 0, 1, 1], [], []>} : vector<91x64xf32>, vector<64x64xf32>, vector<91x64xf32> -> vector<91x64xf32>
    %15 = arith.addf %10, %14 : vector<91x64xf32>
    %16 = vector.extract_strided_slice %1 {offsets = [52, 0], sizes = [91, 64], strides = [1, 1]} : vector<169x64xf32> to vector<91x64xf32>
    %17 = vector.extract_strided_slice %2 {offsets = [0, 2, 0, 0], sizes = [1, 1, 64, 64], strides = [1, 1, 1, 1]} : vector<3x3x64x64xf32> to vector<1x1x64x64xf32>
    %18 = vector.shape_cast %17 : vector<1x1x64x64xf32> to vector<64x64xf32>
    %cst_19 = arith.constant dense<0.000000e+00> : vector<91x64xf32>
    %19 = tpu.matmul %16, %18, %cst_19 {dimension_numbers = #tpu.dot_dimension_numbers<[1], [0], [0], [1], [0, 0, 1, 1], [], []>} : vector<91x64xf32>, vector<64x64xf32>, vector<91x64xf32> -> vector<91x64xf32>
    %20 = arith.addf %15, %19 : vector<91x64xf32>
    %21 = vector.extract_strided_slice %3 {offsets = [0, 0, 0], sizes = [1, 1, 64], strides = [1, 1, 1]} : vector<3x1x64xf32> to vector<1x1x64xf32>
    %22 = vector.shape_cast %21 : vector<1x1x64xf32> to vector<1x64xf32>
    %23 = vector.broadcast %22 : vector<1x64xf32> to vector<91x64xf32>
    %24 = arith.mulf %20, %23 : vector<91x64xf32>
    %25 = vector.extract_strided_slice %4 {offsets = [0, 0, 0], sizes = [1, 1, 64], strides = [1, 1, 1]} : vector<3x1x64xf32> to vector<1x1x64xf32>
    %26 = vector.shape_cast %25 : vector<1x1x64xf32> to vector<1x64xf32>
    %27 = vector.broadcast %26 : vector<1x64xf32> to vector<91x64xf32>
    %28 = arith.addf %24, %27 : vector<91x64xf32>
    %cst_20 = arith.constant 0.000000e+00 : f32
    %29 = vector.broadcast %cst_20 : f32 to vector<91x64xf32>
    %30 = arith.maximumf %28, %29 : vector<91x64xf32>
    %31 = vector.extract_strided_slice %1 {offsets = [13, 0], sizes = [91, 64], strides = [1, 1]} : vector<169x64xf32> to vector<91x64xf32>
    %32 = vector.extract_strided_slice %2 {offsets = [1, 0, 0, 0], sizes = [1, 1, 64, 64], strides = [1, 1, 1, 1]} : vector<3x3x64x64xf32> to vector<1x1x64x64xf32>
    %33 = vector.shape_cast %32 : vector<1x1x64x64xf32> to vector<64x64xf32>
    %cst_21 = arith.constant dense<0.000000e+00> : vector<91x64xf32>
    %34 = tpu.matmul %31, %33, %cst_21 {dimension_numbers = #tpu.dot_dimension_numbers<[1], [0], [0], [1], [0, 0, 1, 1], [], []>} : vector<91x64xf32>, vector<64x64xf32>, vector<91x64xf32> -> vector<91x64xf32>
    %35 = vector.extract_strided_slice %1 {offsets = [39, 0], sizes = [91, 64], strides = [1, 1]} : vector<169x64xf32> to vector<91x64xf32>
    %36 = vector.extract_strided_slice %2 {offsets = [1, 1, 0, 0], sizes = [1, 1, 64, 64], strides = [1, 1, 1, 1]} : vector<3x3x64x64xf32> to vector<1x1x64x64xf32>
    %37 = vector.shape_cast %36 : vector<1x1x64x64xf32> to vector<64x64xf32>
    %cst_22 = arith.constant dense<0.000000e+00> : vector<91x64xf32>
    %38 = tpu.matmul %35, %37, %cst_22 {dimension_numbers = #tpu.dot_dimension_numbers<[1], [0], [0], [1], [0, 0, 1, 1], [], []>} : vector<91x64xf32>, vector<64x64xf32>, vector<91x64xf32> -> vector<91x64xf32>
    %39 = arith.addf %34, %38 : vector<91x64xf32>
    %40 = vector.extract_strided_slice %1 {offsets = [65, 0], sizes = [91, 64], strides = [1, 1]} : vector<169x64xf32> to vector<91x64xf32>
    %41 = vector.extract_strided_slice %2 {offsets = [1, 2, 0, 0], sizes = [1, 1, 64, 64], strides = [1, 1, 1, 1]} : vector<3x3x64x64xf32> to vector<1x1x64x64xf32>
    %42 = vector.shape_cast %41 : vector<1x1x64x64xf32> to vector<64x64xf32>
    %cst_23 = arith.constant dense<0.000000e+00> : vector<91x64xf32>
    %43 = tpu.matmul %40, %42, %cst_23 {dimension_numbers = #tpu.dot_dimension_numbers<[1], [0], [0], [1], [0, 0, 1, 1], [], []>} : vector<91x64xf32>, vector<64x64xf32>, vector<91x64xf32> -> vector<91x64xf32>
    %44 = arith.addf %39, %43 : vector<91x64xf32>
    %45 = vector.extract_strided_slice %3 {offsets = [1, 0, 0], sizes = [1, 1, 64], strides = [1, 1, 1]} : vector<3x1x64xf32> to vector<1x1x64xf32>
    %46 = vector.shape_cast %45 : vector<1x1x64xf32> to vector<1x64xf32>
    %47 = vector.broadcast %46 : vector<1x64xf32> to vector<91x64xf32>
    %48 = arith.mulf %44, %47 : vector<91x64xf32>
    %49 = vector.extract_strided_slice %4 {offsets = [1, 0, 0], sizes = [1, 1, 64], strides = [1, 1, 1]} : vector<3x1x64xf32> to vector<1x1x64xf32>
    %50 = vector.shape_cast %49 : vector<1x1x64xf32> to vector<1x64xf32>
    %51 = vector.broadcast %50 : vector<1x64xf32> to vector<91x64xf32>
    %52 = arith.addf %48, %51 : vector<91x64xf32>
    %cst_24 = arith.constant 0.000000e+00 : f32
    %53 = vector.broadcast %cst_24 : f32 to vector<91x64xf32>
    %54 = arith.maximumf %52, %53 : vector<91x64xf32>
    %55 = vector.extract_strided_slice %1 {offsets = [0, 0], sizes = [91, 64], strides = [1, 1]} : vector<169x64xf32> to vector<91x64xf32>
    %56 = vector.extract_strided_slice %2 {offsets = [2, 0, 0, 0], sizes = [1, 1, 64, 64], strides = [1, 1, 1, 1]} : vector<3x3x64x64xf32> to vector<1x1x64x64xf32>
    %57 = vector.shape_cast %56 : vector<1x1x64x64xf32> to vector<64x64xf32>
    %cst_25 = arith.constant dense<0.000000e+00> : vector<91x64xf32>
    %58 = tpu.matmul %55, %57, %cst_25 {dimension_numbers = #tpu.dot_dimension_numbers<[1], [0], [0], [1], [0, 0, 1, 1], [], []>} : vector<91x64xf32>, vector<64x64xf32>, vector<91x64xf32> -> vector<91x64xf32>
    %59 = vector.extract_strided_slice %1 {offsets = [39, 0], sizes = [91, 64], strides = [1, 1]} : vector<169x64xf32> to vector<91x64xf32>
    %60 = vector.extract_strided_slice %2 {offsets = [2, 1, 0, 0], sizes = [1, 1, 64, 64], strides = [1, 1, 1, 1]} : vector<3x3x64x64xf32> to vector<1x1x64x64xf32>
    %61 = vector.shape_cast %60 : vector<1x1x64x64xf32> to vector<64x64xf32>
    %cst_26 = arith.constant dense<0.000000e+00> : vector<91x64xf32>
    %62 = tpu.matmul %59, %61, %cst_26 {dimension_numbers = #tpu.dot_dimension_numbers<[1], [0], [0], [1], [0, 0, 1, 1], [], []>} : vector<91x64xf32>, vector<64x64xf32>, vector<91x64xf32> -> vector<91x64xf32>
    %63 = arith.addf %58, %62 : vector<91x64xf32>
    %64 = vector.extract_strided_slice %1 {offsets = [78, 0], sizes = [91, 64], strides = [1, 1]} : vector<169x64xf32> to vector<91x64xf32>
    %65 = vector.extract_strided_slice %2 {offsets = [2, 2, 0, 0], sizes = [1, 1, 64, 64], strides = [1, 1, 1, 1]} : vector<3x3x64x64xf32> to vector<1x1x64x64xf32>
    %66 = vector.shape_cast %65 : vector<1x1x64x64xf32> to vector<64x64xf32>
    %cst_27 = arith.constant dense<0.000000e+00> : vector<91x64xf32>
    %67 = tpu.matmul %64, %66, %cst_27 {dimension_numbers = #tpu.dot_dimension_numbers<[1], [0], [0], [1], [0, 0, 1, 1], [], []>} : vector<91x64xf32>, vector<64x64xf32>, vector<91x64xf32> -> vector<91x64xf32>
    %68 = arith.addf %63, %67 : vector<91x64xf32>
    %69 = vector.extract_strided_slice %3 {offsets = [2, 0, 0], sizes = [1, 1, 64], strides = [1, 1, 1]} : vector<3x1x64xf32> to vector<1x1x64xf32>
    %70 = vector.shape_cast %69 : vector<1x1x64xf32> to vector<1x64xf32>
    %71 = vector.broadcast %70 : vector<1x64xf32> to vector<91x64xf32>
    %72 = arith.mulf %68, %71 : vector<91x64xf32>
    %73 = vector.extract_strided_slice %4 {offsets = [2, 0, 0], sizes = [1, 1, 64], strides = [1, 1, 1]} : vector<3x1x64xf32> to vector<1x1x64xf32>
    %74 = vector.shape_cast %73 : vector<1x1x64xf32> to vector<1x64xf32>
    %75 = vector.broadcast %74 : vector<1x64xf32> to vector<91x64xf32>
    %76 = arith.addf %72, %75 : vector<91x64xf32>
    %cst_28 = arith.constant 0.000000e+00 : f32
    %77 = vector.broadcast %cst_28 : f32 to vector<91x64xf32>
    %78 = arith.maximumf %76, %77 : vector<91x64xf32>
    %79 = arith.addf %30, %54 : vector<91x64xf32>
    %80 = arith.addf %79, %78 : vector<91x64xf32>
    %cst_29 = arith.constant dense<0.000000e+00> : vector<64xf32>
    %81 = vector.multi_reduction <add>, %80, %cst_29 [0] : vector<91x64xf32> to vector<64xf32>
    %82 = vector.shape_cast %81 : vector<64xf32> to vector<1x64xf32>
    %cst_30 = arith.constant 9.100000e+01 : f32
    %83 = vector.broadcast %cst_30 : f32 to vector<1x64xf32>
    %84 = arith.divf %82, %83 : vector<1x64xf32>
    %c0_31 = arith.constant 0 : index
    %c0_32 = arith.constant 0 : index
    %85 = vector.load %arg5[%c0_31, %c0_32] : memref<64x2xf32, #tpu.memory_space<vmem>>, vector<64x2xf32>
    %cst_33 = arith.constant dense<0.000000e+00> : vector<1x2xf32>
    %86 = tpu.matmul %84, %85, %cst_33 {dimension_numbers = #tpu.dot_dimension_numbers<[1], [0], [0], [1], [0, 0, 1, 1], [], []>} : vector<1x64xf32>, vector<64x2xf32>, vector<1x2xf32> -> vector<1x2xf32>
    %c0_34 = arith.constant 0 : index
    %c0_35 = arith.constant 0 : index
    %87 = vector.load %arg6[%c0_34, %c0_35] : memref<1x2xf32, #tpu.memory_space<vmem>>, vector<1x2xf32>
    %88 = arith.mulf %86, %87 : vector<1x2xf32>
    %c0_36 = arith.constant 0 : index
    %c0_37 = arith.constant 0 : index
    %89 = vector.load %arg7[%c0_36, %c0_37] : memref<1x2xf32, #tpu.memory_space<vmem>>, vector<1x2xf32>
    %90 = arith.addf %88, %89 : vector<1x2xf32>
    %cst_38 = arith.constant 0.000000e+00 : f32
    %91 = vector.broadcast %cst_38 : f32 to vector<1x2xf32>
    %92 = arith.maximumf %90, %91 : vector<1x2xf32>
    %93 = vector.extract_strided_slice %5 {offsets = [0, 0, 0], sizes = [1, 2, 64], strides = [1, 1, 1]} : vector<3x2x64xf32> to vector<1x2x64xf32>
    %94 = vector.shape_cast %93 : vector<1x2x64xf32> to vector<2x64xf32>
    %cst_39 = arith.constant dense<0.000000e+00> : vector<1x64xf32>
    %95 = tpu.matmul %92, %94, %cst_39 {dimension_numbers = #tpu.dot_dimension_numbers<[1], [0], [0], [1], [0, 0, 1, 1], [], []>} : vector<1x2xf32>, vector<2x64xf32>, vector<1x64xf32> -> vector<1x64xf32>
    %96 = vector.extract_strided_slice %6 {offsets = [0, 0, 0], sizes = [1, 1, 64], strides = [1, 1, 1]} : vector<3x1x64xf32> to vector<1x1x64xf32>
    %97 = vector.shape_cast %96 : vector<1x1x64xf32> to vector<1x64xf32>
    %98 = arith.addf %95, %97 : vector<1x64xf32>
    %99 = vector.extract_strided_slice %5 {offsets = [1, 0, 0], sizes = [1, 2, 64], strides = [1, 1, 1]} : vector<3x2x64xf32> to vector<1x2x64xf32>
    %100 = vector.shape_cast %99 : vector<1x2x64xf32> to vector<2x64xf32>
    %cst_40 = arith.constant dense<0.000000e+00> : vector<1x64xf32>
    %101 = tpu.matmul %92, %100, %cst_40 {dimension_numbers = #tpu.dot_dimension_numbers<[1], [0], [0], [1], [0, 0, 1, 1], [], []>} : vector<1x2xf32>, vector<2x64xf32>, vector<1x64xf32> -> vector<1x64xf32>
    %102 = vector.extract_strided_slice %6 {offsets = [1, 0, 0], sizes = [1, 1, 64], strides = [1, 1, 1]} : vector<3x1x64xf32> to vector<1x1x64xf32>
    %103 = vector.shape_cast %102 : vector<1x1x64xf32> to vector<1x64xf32>
    %104 = arith.addf %101, %103 : vector<1x64xf32>
    %105 = vector.extract_strided_slice %5 {offsets = [2, 0, 0], sizes = [1, 2, 64], strides = [1, 1, 1]} : vector<3x2x64xf32> to vector<1x2x64xf32>
    %106 = vector.shape_cast %105 : vector<1x2x64xf32> to vector<2x64xf32>
    %cst_41 = arith.constant dense<0.000000e+00> : vector<1x64xf32>
    %107 = tpu.matmul %92, %106, %cst_41 {dimension_numbers = #tpu.dot_dimension_numbers<[1], [0], [0], [1], [0, 0, 1, 1], [], []>} : vector<1x2xf32>, vector<2x64xf32>, vector<1x64xf32> -> vector<1x64xf32>
    %108 = vector.extract_strided_slice %6 {offsets = [2, 0, 0], sizes = [1, 1, 64], strides = [1, 1, 1]} : vector<3x1x64xf32> to vector<1x1x64xf32>
    %109 = vector.shape_cast %108 : vector<1x1x64xf32> to vector<1x64xf32>
    %110 = arith.addf %107, %109 : vector<1x64xf32>
    %111 = arith.maximumf %98, %104 : vector<1x64xf32>
    %112 = arith.maximumf %111, %110 : vector<1x64xf32>
    %113 = arith.subf %98, %112 : vector<1x64xf32>
    %114 = math.exp %113 : vector<1x64xf32>
    %115 = arith.subf %104, %112 : vector<1x64xf32>
    %116 = math.exp %115 : vector<1x64xf32>
    %117 = arith.subf %110, %112 : vector<1x64xf32>
    %118 = math.exp %117 : vector<1x64xf32>
    %119 = arith.addf %114, %116 : vector<1x64xf32>
    %120 = arith.addf %119, %118 : vector<1x64xf32>
    %121 = tpu.reciprocal %120 {approx = true} : vector<1x64xf32> -> vector<1x64xf32>
    %122 = arith.mulf %114, %121 : vector<1x64xf32>
    %123 = vector.broadcast %122 : vector<1x64xf32> to vector<91x64xf32>
    %124 = arith.mulf %30, %123 : vector<91x64xf32>
    %125 = arith.mulf %116, %121 : vector<1x64xf32>
    %126 = vector.broadcast %125 : vector<1x64xf32> to vector<91x64xf32>
    %127 = arith.mulf %54, %126 : vector<91x64xf32>
    %128 = arith.addf %124, %127 : vector<91x64xf32>
    %129 = arith.mulf %118, %121 : vector<1x64xf32>
    %130 = vector.broadcast %129 : vector<1x64xf32> to vector<91x64xf32>
    %131 = arith.mulf %78, %130 : vector<91x64xf32>
    %132 = arith.addf %128, %131 : vector<91x64xf32>
    %c0_42 = arith.constant 0 : index
    %c0_43 = arith.constant 0 : index
    %c0_44 = arith.constant 0 : index
    %133 = vector.load %arg10[%c0_42, %c0_43, %c0_44] : memref<1x91x64xf32, #tpu.memory_space<vmem>>, vector<1x91x64xf32>
    %134 = vector.shape_cast %133 : vector<1x91x64xf32> to vector<91x64xf32>
    %135 = vector.shape_cast %132 : vector<91x64xf32> to vector<1x91x64xf32>
    tpu.vector_store %arg10[%c0_42, %c0_43, %c0_44], %135 {strides = array<i32>} : memref<1x91x64xf32, #tpu.memory_space<vmem>>, vector<1x91x64xf32>,
    return
  }
  func.func @transform_0(%arg0: i32) -> (i32, i32, i32) {
    %c0_i32 = arith.constant 0 : i32
    %c0_i32_0 = arith.constant 0 : i32
    %c0_i32_1 = arith.constant 0 : i32
    return %arg0, %c0_i32, %c0_i32_0 : i32, i32, i32
  }
  func.func @transform_1(%arg0: i32) -> (i32, i32, i32, i32) {
    %c0_i32 = arith.constant 0 : i32
    %c0_i32_0 = arith.constant 0 : i32
    %c0_i32_1 = arith.constant 0 : i32
    %c0_i32_2 = arith.constant 0 : i32
    %c0_i32_3 = arith.constant 0 : i32
    return %c0_i32, %c0_i32_0, %c0_i32_1, %c0_i32_2 : i32, i32, i32, i32
  }
  func.func @transform_2(%arg0: i32) -> (i32, i32, i32) {
    %c0_i32 = arith.constant 0 : i32
    %c0_i32_0 = arith.constant 0 : i32
    %c0_i32_1 = arith.constant 0 : i32
    %c0_i32_2 = arith.constant 0 : i32
    return %c0_i32, %c0_i32_0, %c0_i32_1 : i32, i32, i32
  }
  func.func @transform_3(%arg0: i32) -> (i32, i32, i32) {
    %c0_i32 = arith.constant 0 : i32
    %c0_i32_0 = arith.constant 0 : i32
    %c0_i32_1 = arith.constant 0 : i32
    %c0_i32_2 = arith.constant 0 : i32
    return %c0_i32, %c0_i32_0, %c0_i32_1 : i32, i32, i32
  }
  func.func @transform_4(%arg0: i32) -> (i32, i32) {
    %c0_i32 = arith.constant 0 : i32
    %c0_i32_0 = arith.constant 0 : i32
    %c0_i32_1 = arith.constant 0 : i32
    return %c0_i32, %c0_i32_0 : i32, i32
  }
  func.func @transform_5(%arg0: i32) -> (i32, i32) {
    %c0_i32 = arith.constant 0 : i32
    %c0_i32_0 = arith.constant 0 : i32
    %c0_i32_1 = arith.constant 0 : i32
    return %c0_i32, %c0_i32_0 : i32, i32
  }
  func.func @transform_6(%arg0: i32) -> (i32, i32) {
    %c0_i32 = arith.constant 0 : i32
    %c0_i32_0 = arith.constant 0 : i32
    %c0_i32_1 = arith.constant 0 : i32
    return %c0_i32, %c0_i32_0 : i32, i32
  }
  func.func @transform_7(%arg0: i32) -> (i32, i32, i32) {
    %c0_i32 = arith.constant 0 : i32
    %c0_i32_0 = arith.constant 0 : i32
    %c0_i32_1 = arith.constant 0 : i32
    %c0_i32_2 = arith.constant 0 : i32
    return %c0_i32, %c0_i32_0, %c0_i32_1 : i32, i32, i32
  }
  func.func @transform_8(%arg0: i32) -> (i32, i32, i32) {
    %c0_i32 = arith.constant 0 : i32
    %c0_i32_0 = arith.constant 0 : i32
    %c0_i32_1 = arith.constant 0 : i32
    %c0_i32_2 = arith.constant 0 : i32
    return %c0_i32, %c0_i32_0, %c0_i32_1 : i32, i32, i32
  }
  func.func @transform_9(%arg0: i32) -> (i32, i32, i32) {
    %c0_i32 = arith.constant 0 : i32
    %c0_i32_0 = arith.constant 0 : i32
    %c0_i32_1 = arith.constant 0 : i32
    return %arg0, %c0_i32, %c0_i32_0 : i32, i32, i32
  }
}

module attributes {stable_mosaic.version = 11 : i64} {
  func.func @_linear_layernorm_kernel(%arg0: i32, %arg1: memref<2x5824xf32, #tpu.memory_space<vmem>>, %arg2: memref<5824x18xf32, #tpu.memory_space<vmem>>, %arg3: memref<1x18xf32, #tpu.memory_space<vmem>>, %arg4: memref<2x18xf32, #tpu.memory_space<vmem>>) attributes {dimension_semantics = [#tpu.dimension_semantics<arbitrary>], iteration_bounds = array<i64: 1>, scalar_prefetch = 0 : i64, scratch_operands = 0 : i64, tpu.core_type = #tpu.core_type<tc>, window_params = [{pipeline_mode = #tpu.pipeline_mode<synchronous>, transform_indices = @transform_0, window_bounds = array<i64: 2, 5824>}, {pipeline_mode = #tpu.pipeline_mode<synchronous>, transform_indices = @transform_1, window_bounds = array<i64: 5824, 18>}, {pipeline_mode = #tpu.pipeline_mode<synchronous>, transform_indices = @transform_2, window_bounds = array<i64: 1, 18>}, {pipeline_mode = #tpu.pipeline_mode<synchronous>, transform_indices = @transform_3, window_bounds = array<i64: 2, 18>}]} {
    %c0 = arith.constant 0 : index
    %c0_0 = arith.constant 0 : index
    %0 = vector.load %arg1[%c0, %c0_0] : memref<2x5824xf32, #tpu.memory_space<vmem>>, vector<2x5824xf32>
    %c0_1 = arith.constant 0 : index
    %c0_2 = arith.constant 0 : index
    %1 = vector.load %arg2[%c0_1, %c0_2] : memref<5824x18xf32, #tpu.memory_space<vmem>>, vector<5824x18xf32>
    %cst = arith.constant dense<0.000000e+00> : vector<2x18xf32>
    %2 = tpu.matmul %0, %1, %cst {dimension_numbers = #tpu.dot_dimension_numbers<[1], [0], [0], [1], [0, 0, 1, 1], [], []>} : vector<2x5824xf32>, vector<5824x18xf32>, vector<2x18xf32> -> vector<2x18xf32>
    %c0_3 = arith.constant 0 : index
    %c0_4 = arith.constant 0 : index
    %3 = vector.load %arg3[%c0_3, %c0_4] : memref<1x18xf32, #tpu.memory_space<vmem>>, vector<1x18xf32>
    %4 = vector.broadcast %3 : vector<1x18xf32> to vector<2x18xf32>
    %5 = arith.addf %2, %4 : vector<2x18xf32>
    %6 = vector.shape_cast %5 : vector<2x18xf32> to vector<1x2x18xf32>
    %cst_5 = arith.constant dense<0.000000e+00> : vector<1xf32>
    %7 = vector.multi_reduction <add>, %6, %cst_5 [1, 2] : vector<1x2x18xf32> to vector<1xf32>
    %8 = vector.shape_cast %7 : vector<1xf32> to vector<1x1x1xf32>
    %9 = vector.extract %8[0, 0, 0] : f32 from vector<1x1x1xf32>
    %10 = vector.broadcast %9 : f32 to vector<1x1xf32>
    %cst_6 = arith.constant 3.600000e+01 : f32
    %11 = vector.broadcast %cst_6 : f32 to vector<1x1xf32>
    %12 = arith.divf %10, %11 : vector<1x1xf32>
    %13 = vector.broadcast %12 : vector<1x1xf32> to vector<2x18xf32>
    %14 = arith.subf %5, %13 : vector<2x18xf32>
    %15 = arith.mulf %14, %14 : vector<2x18xf32>
    %16 = vector.shape_cast %15 : vector<2x18xf32> to vector<1x2x18xf32>
    %cst_7 = arith.constant dense<0.000000e+00> : vector<1xf32>
    %17 = vector.multi_reduction <add>, %16, %cst_7 [1, 2] : vector<1x2x18xf32> to vector<1xf32>
    %18 = vector.shape_cast %17 : vector<1xf32> to vector<1x1x1xf32>
    %19 = vector.extract %18[0, 0, 0] : f32 from vector<1x1x1xf32>
    %20 = vector.broadcast %19 : f32 to vector<1x1xf32>
    %cst_8 = arith.constant 3.600000e+01 : f32
    %21 = vector.broadcast %cst_8 : f32 to vector<1x1xf32>
    %22 = arith.divf %20, %21 : vector<1x1xf32>
    %23 = vector.broadcast %12 : vector<1x1xf32> to vector<2x18xf32>
    %24 = arith.subf %5, %23 : vector<2x18xf32>
    %cst_9 = arith.constant 9.99999974E-6 : f32
    %25 = vector.broadcast %cst_9 : f32 to vector<1x1xf32>
    %26 = arith.addf %22, %25 : vector<1x1xf32>
    %27 = math.rsqrt %26 : vector<1x1xf32>
    %28 = vector.broadcast %27 : vector<1x1xf32> to vector<2x18xf32>
    %29 = arith.mulf %24, %28 : vector<2x18xf32>
    %c0_10 = arith.constant 0 : index
    %c0_11 = arith.constant 0 : index
    %30 = vector.load %arg4[%c0_10, %c0_11] : memref<2x18xf32, #tpu.memory_space<vmem>>, vector<2x18xf32>
    tpu.vector_store %arg4[%c0_10, %c0_11], %29 {strides = array<i32>} : memref<2x18xf32, #tpu.memory_space<vmem>>, vector<2x18xf32>,
    return
  }
  func.func @transform_0(%arg0: i32) -> (i32, i32) {
    %c0_i32 = arith.constant 0 : i32
    %c0_i32_0 = arith.constant 0 : i32
    %c0_i32_1 = arith.constant 0 : i32
    return %c0_i32, %c0_i32_0 : i32, i32
  }
  func.func @transform_1(%arg0: i32) -> (i32, i32) {
    %c0_i32 = arith.constant 0 : i32
    %c0_i32_0 = arith.constant 0 : i32
    %c0_i32_1 = arith.constant 0 : i32
    return %c0_i32, %c0_i32_0 : i32, i32
  }
  func.func @transform_2(%arg0: i32) -> (i32, i32) {
    %c0_i32 = arith.constant 0 : i32
    %c0_i32_0 = arith.constant 0 : i32
    %c0_i32_1 = arith.constant 0 : i32
    return %c0_i32, %c0_i32_0 : i32, i32
  }
  func.func @transform_3(%arg0: i32) -> (i32, i32) {
    %c0_i32 = arith.constant 0 : i32
    %c0_i32_0 = arith.constant 0 : i32
    %c0_i32_1 = arith.constant 0 : i32
    return %c0_i32, %c0_i32_0 : i32, i32
  }
}

</mosaic_0001>

<bundles_post_ra>
// kernel: sknet_forward.4
= control target key start
LH: loop header
LB: loop body
LE: loop exit
PB: predicated region body
PF: predicated region fallthrough
CT: control target
= control target key end

     0   :  { %9 = vsyncpa [#allocation3], 0  ;;  %s717_s0 = inlined_call_operand.vmem [shape: f32[126,6], index: 0, kind: input, shape index: {}]   ;;  %s718_s1 = inlined_call_operand.hbm [shape: f32[6,64], index: 1, kind: input, shape index: {}]   ;;  %s719_s2 = inlined_call_operand.hbm [shape: f32[1,64], index: 2, kind: input, shape index: {}]   ;;  %s720_s3 = inlined_call_operand.hbm [shape: f32[1,64], index: 3, kind: input, shape index: {}]   ;;  %s721_s4 = inlined_call_operand.vmem [shape: f32[126,64], index: 4, kind: output, shape index: {}]  }
   0x1   :  { %10 = vsyncpa [#allocation5], 0  ;;  %s490_s15 = smov [#allocation4]   ;;  %s491_s17 = smov [#allocation2]  }
   0x2   :  { %s29_s16 = sshll.u32 %s490_s15, 4  ;;  %s19_s18 = sshll.u32 %s491_s17, 4  ;;  %s30_s16 = int_to_ptr.vmem [resolvable:$true] %s29_s16  ;;  %s20_s18 = int_to_ptr.vmem [resolvable:$true] %s19_s18 }
   0x3   :  { %s420_s21 = scalar_lea.hbm %s719_s2, 16 }
   0x4   :  { %p421_p0 = scmp.ne.s32.totalorder %s719_s2, %s420_s21  ;;  %p424_p1 = scmp.lt.u32.totalorder %s420_s21, %s719_s2 }
   0x6   :  { %p426_p2 = pnand %p424_p1, %p421_p0 }
   0x8   :  { %429 = shalt.err (!%p426_p2)
}
   0x9   :  { %s430_s26 = scalar_lea.vmem %s30_s16, 16  ;;  %s434_s27 = scalar_lea.vmem %s30_s16, 32 }
   0xa   :  { %p431_p3 = scmp.ne.s32.totalorder %s30_s16, %s430_s26  ;;  %p435_p4 = scmp.lt.s32.totalorder %s30_s16, %s30_s16 }
   0xb   :  { %p436_p5 = scmp.lt.s32.totalorder %s434_s27, %s430_s26 }
   0xd   :  { %p437_p6 = por %p436_p5, %p435_p4 }
   0xf   :  { %p438_p7 = pnand %p437_p6, %p431_p3 }
  0x11   :  { %441 = shalt.err (!%p438_p7)
}
  0x12   :  { %32 = dma.hbm_to_vmem [thread:$0]  %s719_s2, 16, %s30_s16, [#allocation5]  }
  0x13   :  { %s442_s6 = scalar_lea.hbm %s718_s1, 128 }
  0x14   :  { %p443_p8 = scmp.ne.s32.totalorder %s718_s1, %s442_s6  ;;  %p446_p9 = scmp.lt.u32.totalorder %s442_s6, %s718_s1 }
  0x16   :  { %p448_p10 = pnand %p446_p9, %p443_p8 }
  0x18   :  { %451 = shalt.err (!%p448_p10)
}
  0x19   :  { %s452_s11 = scalar_lea.vmem %s20_s18, 128  ;;  %p457_p12 = scmp.lt.s32.totalorder %s20_s18, %s20_s18 }
  0x1a   :  { %p453_p11 = scmp.ne.s32.totalorder %s20_s18, %s452_s11  ;;  %p458_p13 = scmp.lt.s32.totalorder %s452_s11, %s452_s11 }
  0x1c   :  { %p459_p0 = por %p458_p13, %p457_p12 }
  0x1e   :  { %p460_p1 = pnand %p459_p0, %p453_p11 }
  0x20   :  { %463 = shalt.err (!%p460_p1)
}
  0x21   :  { %22 = dma.hbm_to_vmem [thread:$0]  %s718_s1, 128, %s20_s18, [#allocation3]  }
  0x22   :  { %s492_s13 = smov [#allocation6]   ;;  %s464_s17 = scalar_lea.hbm %s720_s3, 16 }
  0x23   :  { %s39_s14 = sshll.u32 %s492_s13, 4  ;;  %p465_p2 = scmp.ne.s32.totalorder %s720_s3, %s464_s17  ;;  %s40_s14 = int_to_ptr.vmem [resolvable:$true] %s39_s14 }
  0x24   :  { %p468_p3 = scmp.lt.u32.totalorder %s464_s17, %s720_s3 }
  0x26   :  { %p470_p4 = pnand %p468_p3, %p465_p2 }
  0x28   :  { %473 = shalt.err (!%p470_p4)
}
  0x29   :  { %s474_s23 = scalar_lea.vmem %s40_s14, 16  ;;  %s478_s1 = scalar_lea.vmem %s40_s14, 32 }
  0x2a   :  { %p475_p5 = scmp.ne.s32.totalorder %s40_s14, %s474_s23  ;;  %p479_p6 = scmp.lt.s32.totalorder %s40_s14, %s40_s14 }
  0x2b   :  { %p480_p7 = scmp.lt.s32.totalorder %s478_s1, %s474_s23 }
  0x2d   :  { %p481_p8 = por %p480_p7, %p479_p6 }
  0x2f   :  { %p482_p9 = pnand %p481_p8, %p475_p5 }
  0x31   :  { %485 = shalt.err (!%p482_p9)
}
  0x32   :  { %42 = dma.hbm_to_vmem [thread:$0]  %s720_s3, 16, %s40_s14, [#allocation5]  }
  0x33   :  { %486 = dma.done.wait [#allocation3], 128  }
  0x34   :  { %487 = vsyncadd [#allocation3], 4294967168 }
  0x35   :  { %488 = dma.done.wait [#allocation5], 32  }
  0x36   :  { %489 = vsyncadd [#allocation5], 4294967264  ;;  %vm118_vm0 = vcmask 1045504   ;;  %v68_v0 = vld [vmem:[#allocation2] sm:$0x3f]  ;;  %v52_v1 = vld [vmem:[%s717_s0] sm:$0xff] }
  0x37   :  { %vm69_vm1 = vcmask 48128   ;;  %v60_v2 = vld [vmem:[%s717_s0 + $0x40] sm:$0xff]  ;;  %389 = vmatprep.subr.msk.mxu0 %vm118_vm0, %v68_v0  ;;  %415 = vmatprep.subr.msk.mxu1 %vm118_vm0, %v68_v0  ;;  %v53_v3 = vld [vmem:[%s717_s0 + $0x8] sm:$0xff]  ;;  %v54_v5 = vld [vmem:[%s717_s0 + $0x10] sm:$0xff]  ;;  %vm329_vm2 = vcmask 523264   ;;  %vm345_vm3 = vcmask 521216  }
  0x38   :  { %v61_v4 = vld [vmem:[%s717_s0 + $0x48] sm:$0xff]  ;;  %390 = vmatpush3.msk.msra.mxu0 %vm118_vm0, %v68_v0  ;;  %416 = vmatpush3.msk.msra.mxu1 %vm118_vm0, %v68_v0  ;;  %v62_v6 = vld [vmem:[%s717_s0 + $0x50] sm:$0xff]  ;;  %v55_v7 = vld [vmem:[%s717_s0 + $0x18] sm:$0xff] }
  0x39   :  { %391 = vmatprep.mubr.msk.f32.mxu0 %vm69_vm1, %v52_v1  ;;  %403 = vmatprep.mubr.msk.f32.mxu1 %vm69_vm1, %v60_v2  ;;  %v63_v8 = vld [vmem:[%s717_s0 + $0x58] sm:$0xff]  ;;  %v56_v9 = vld [vmem:[%s717_s0 + $0x20] sm:$0xff]  ;;  %v57_v11 = vld [vmem:[%s717_s0 + $0x28] sm:$0xff] }
  0x3a   :  { %392 = vmatmul.mubr.msk.f32.vlgmr.msra.gmra.mrb[0].mxu0 %vm69_vm1, %v53_v3  ;;  %404 = vmatmul.mubr.msk.f32.vlgmr.msra.gmra.mrb[0].mxu1 %vm69_vm1, %v61_v4  ;;  %v64_v10 = vld [vmem:[%s717_s0 + $0x60] sm:$0xff]  ;;  %v65_v12 = vld [vmem:[%s717_s0 + $0x68] sm:$0xff]  ;;  %v58_v13 = vld [vmem:[%s717_s0 + $0x30] sm:$0xff] }
  0x3b   :  { %394 = vmatprep.mubr.msk.f32.mxu0 %vm69_vm1, %v54_v5  ;;  %406 = vmatprep.mubr.msk.f32.mxu1 %vm69_vm1, %v62_v6  ;;  %v66_v14 = vld [vmem:[%s717_s0 + $0x70] sm:$0xff]  ;;  %v59_v15 = vld [vmem:[%s717_s0 + $0x38] sm:$0xff] }
  0x3c   :  { %v67_v16 = vld [vmem:[%s717_s0 + $0x78] sm:$0x3f] }
  0x3d   :  { %v618_v17 = vld [vmem:[#allocation4] ss:$0 sm:$0xff]  ;;  %v620_v19 = vld [vmem:[#allocation6] ss:$0 sm:$0xff] }
  0x3e   :  { %395 = vmatmul.mubr.msk.f32.gmra.mrb[2].mxu0 %vm69_vm1, %v55_v7  ;;  %407 = vmatmul.mubr.msk.f32.gmra.mrb[2].mxu1 %vm69_vm1, %v63_v8 }
  0x3f   :  { %397 = vmatprep.mubr.msk.f32.mxu0 %vm69_vm1, %v56_v9  ;;  %409 = vmatprep.mubr.msk.f32.mxu1 %vm69_vm1, %v64_v10 }
  0x42   :  { %398 = vmatmul.mubr.msk.f32.gmra.mrb[4].mxu0 %vm69_vm1, %v57_v11  ;;  %410 = vmatmul.mubr.msk.f32.gmra.mrb[4].mxu1 %vm69_vm1, %v65_v12 }
  0x43   :  { %400 = vmatprep.mubr.msk.f32.mxu0 %vm69_vm1, %v58_v13  ;;  %412 = vmatprep.mubr.msk.f32.mxu1 %vm69_vm1, %v66_v14 }
  0x46   :  { %401 = vmatmul.mubr.msk.f32.gmra.mrb[6].mxu0 %vm69_vm1, %v59_v15  ;;  %413 = vmatmul.mubr.msk.f32.gmra.mrb[6].mxu1 %vm69_vm1, %v67_v16 }
 0x10d   :  { %v393_v18 = vpop.f32.mrb[0].mxu0  ;;  %v405_v20 = vpop.f32.mrb[0].mxu1 }
 0x10e   :  { %v275_v21 = vmul.f32 %v393_v18, %v618_v17  ;;  %v283_v22 = vmul.f32 %v405_v20, %v618_v17  ;;  %v188_v23 = vpop.f32.mrb[1].mxu0  ;;  %v228_v24 = vpop.f32.mrb[1].mxu1 }
 0x10f   :  { %v274_v25 = vmul.f32 %v618_v17, %v188_v23  ;;  %v282_v26 = vmul.f32 %v618_v17, %v228_v24 }
 0x110   :  { %v298_v27 = vadd.f32 %v620_v19, %v275_v21  ;;  %v306_v28 = vadd.f32 %v620_v19, %v283_v22 }
 0x111   :  { %v297_v29 = vadd.f32 %v620_v19, %v274_v25  ;;  %v305_v30 = vadd.f32 %v620_v19, %v282_v26  ;;  %v396_v31 = vpop.f32.mrb[2].mxu0  ;;  %v408_v32 = vpop.f32.mrb[2].mxu1 }
 0x112   :  { %v314_v33 = vmax.f32 %v298_v27, 0.0  ;;  %v322_v34 = vmax.f32 %v306_v28, 0.0  ;;  %v277_v35 = vmul.f32 %v396_v31, %v618_v17  ;;  %v285_v36 = vmul.f32 %v408_v32, %v618_v17  ;;  %v198_v37 = vpop.f32.mrb[3].mxu0  ;;  %v238_v38 = vpop.f32.mrb[3].mxu1 }
 0x113   :  { %v313_v39 = vmax.f32 %v297_v29, 0.0  ;;  %v321_v40 = vmax.f32 %v305_v30, 0.0  ;;  %v276_v41 = vmul.f32 %v618_v17, %v198_v37  ;;  %v284_v42 = vmul.f32 %v618_v17, %v238_v38 }
 0x114   :  { %331 = vst.msk [vmem:[%s721_s4 + $0x8] sm:$0xff] %vm329_vm2, %v314_v33  ;;  %339 = vst.msk [vmem:[%s721_s4 + $0x48] sm:$0xff] %vm329_vm2, %v322_v34  ;;  %v300_v43 = vadd.f32 %v620_v19, %v277_v35  ;;  %v308_v44 = vadd.f32 %v620_v19, %v285_v36 }
 0x115   :  { %330 = vst.msk [vmem:[%s721_s4] sm:$0xff] %vm329_vm2, %v313_v39  ;;  %338 = vst.msk [vmem:[%s721_s4 + $0x40] sm:$0xff] %vm329_vm2, %v321_v40  ;;  %v299_v45 = vadd.f32 %v620_v19, %v276_v41  ;;  %v307_v46 = vadd.f32 %v620_v19, %v284_v42  ;;  %v399_v47 = vpop.f32.mrb[4].mxu0  ;;  %v411_v48 = vpop.f32.mrb[4].mxu1 }
 0x116   :  { %v316_v49 = vmax.f32 %v300_v43, 0.0  ;;  %v324_v50 = vmax.f32 %v308_v44, 0.0  ;;  %v279_v51 = vmul.f32 %v399_v47, %v618_v17  ;;  %v287_v52 = vmul.f32 %v411_v48, %v618_v17  ;;  %v208_v53 = vpop.f32.mrb[5].mxu0  ;;  %v248_v54 = vpop.f32.mrb[5].mxu1 }
 0x117   :  { %v315_v55 = vmax.f32 %v299_v45, 0.0  ;;  %v323_v56 = vmax.f32 %v307_v46, 0.0  ;;  %v278_v57 = vmul.f32 %v618_v17, %v208_v53  ;;  %v286_v58 = vmul.f32 %v618_v17, %v248_v54 }
 0x118   :  { %333 = vst.msk [vmem:[%s721_s4 + $0x18] sm:$0xff] %vm329_vm2, %v316_v49  ;;  %341 = vst.msk [vmem:[%s721_s4 + $0x58] sm:$0xff] %vm329_vm2, %v324_v50  ;;  %v302_v59 = vadd.f32 %v620_v19, %v279_v51  ;;  %v310_v60 = vadd.f32 %v620_v19, %v287_v52 }
 0x119   :  { %332 = vst.msk [vmem:[%s721_s4 + $0x10] sm:$0xff] %vm329_vm2, %v315_v55  ;;  %340 = vst.msk [vmem:[%s721_s4 + $0x50] sm:$0xff] %vm329_vm2, %v323_v56  ;;  %v301_v61 = vadd.f32 %v620_v19, %v278_v57  ;;  %v309_v62 = vadd.f32 %v620_v19, %v286_v58  ;;  %v402_v63 = vpop.f32.mrb[6].mxu0  ;;  %v414_v0 = vpop.f32.mrb[6].mxu1 }
 0x11a   :  { %v318_v1 = vmax.f32 %v302_v59, 0.0  ;;  %v326_v2 = vmax.f32 %v310_v60, 0.0  ;;  %v281_v3 = vmul.f32 %v402_v63, %v618_v17  ;;  %v289_v4 = vmul.f32 %v414_v0, %v618_v17  ;;  %v218_v5 = vpop.f32.mrb[7].mxu0  ;;  %v258_v6 = vpop.f32.mrb[7].mxu1 }
 0x11b   :  { %v317_v7 = vmax.f32 %v301_v61, 0.0  ;;  %v325_v8 = vmax.f32 %v309_v62, 0.0  ;;  %v280_v9 = vmul.f32 %v618_v17, %v218_v5  ;;  %v288_v10 = vmul.f32 %v618_v17, %v258_v6 }
 0x11c   :  { %335 = vst.msk [vmem:[%s721_s4 + $0x28] sm:$0xff] %vm329_vm2, %v318_v1  ;;  %343 = vst.msk [vmem:[%s721_s4 + $0x68] sm:$0xff] %vm329_vm2, %v326_v2  ;;  %v304_v11 = vadd.f32 %v620_v19, %v281_v3  ;;  %v312_v12 = vadd.f32 %v620_v19, %v289_v4 }
 0x11d   :  { %334 = vst.msk [vmem:[%s721_s4 + $0x20] sm:$0xff] %vm329_vm2, %v317_v7  ;;  %342 = vst.msk [vmem:[%s721_s4 + $0x60] sm:$0xff] %vm329_vm2, %v325_v8  ;;  %v303_v13 = vadd.f32 %v620_v19, %v280_v9  ;;  %v311_v14 = vadd.f32 %v620_v19, %v288_v10 }
 0x11e   :  { %v320_v15 = vmax.f32 %v304_v11, 0.0  ;;  %v328_v16 = vmax.f32 %v312_v12, 0.0 }
 0x11f   :  { %v319_v17 = vmax.f32 %v303_v13, 0.0  ;;  %v327_v18 = vmax.f32 %v311_v14, 0.0 }
 0x120   :  { %337 = vst.msk [vmem:[%s721_s4 + $0x38] sm:$0xff] %vm329_vm2, %v320_v15 }
 0x121   :  { %346 = vst.msk [vmem:[%s721_s4 + $0x78] sm:$0x3f] %vm345_vm3, %v328_v16 }
 0x122   :  { %336 = vst.msk [vmem:[%s721_s4 + $0x30] sm:$0xff] %vm329_vm2, %v319_v17  ;;  %344 = vst.msk [vmem:[%s721_s4 + $0x70] sm:$0xff] %vm329_vm2, %v327_v18 }
 0x123   :  { %351 = vsyncpa [#allocation3], 1 }
 0x124   :  { %352 = vsyncpa [#allocation5], 1 }

// kernel: sknet_forward.5
= control target key start
LH: loop header
LB: loop body
LE: loop exit
PB: predicated region body
PF: predicated region fallthrough
CT: control target
= control target key end

     0   :  { %14 = vsyncpa [#allocation3], 0  ;;  %s4666_s0 = inlined_call_operand.vmem [shape: f32[2,143,64], index: 0, kind: input, shape index: {}]   ;;  %s4667_s1 = inlined_call_operand.hbm [shape: f32[3,3,64,64], index: 1, kind: input, shape index: {}]   ;;  %s4668_s2 = inlined_call_operand.hbm [shape: f32[3,1,64], index: 2, kind: input, shape index: {}]   ;;  %s4669_s3 = inlined_call_operand.hbm [shape: f32[3,1,64], index: 3, kind: input, shape index: {}]   ;;  %s4670_s4 = inlined_call_operand.vmem [shape: f32[64,2], index: 4, kind: input, shape index: {}]   ;;  %s4671_s5 = inlined_call_operand.hbm [shape: f32[1,2], index: 5, kind: input, shape index: {}]   ;;  %s4672_s6 = inlined_call_operand.hbm [shape: f32[1,2], index: 6, kind: input, shape index: {}]   ;;  %s4673_s7 = inlined_call_operand.hbm [shape: f32[3,2,64], index: 7, kind: input, shape index: {}]   ;;  %s4674_s8 = inlined_call_operand.hbm [shape: f32[3,1,64], index: 8, kind: input, shape index: {}]   ;;  %s4675_s9 = inlined_call_operand.vmem [shape: f32[2,77,64], index: 9, kind: output, shape index: {}]  }
   0x1   :  { %15 = vsyncpa [#allocation5], 0 }
   0x2   :  { %16 = vsyncpa [#allocation8], 0 }
   0x3   :  { %17 = vsyncpa [#allocation11], 0  ;;  %s3795_s30 = smov 0  }
   0x4 LB: > { %s3729_s10 = smov [#allocation4]   ;;  %s3801_s12 = sadd.s32 4294967295, %s3727_s30   ;;  %s3727_s30 = sphi %s3795_s30, %s23_s30  }
   0x5   : > { %s273_s11 = sshll.u32 %s3729_s10, 4  ;;  %p2581_p0 = scmp.ge.s32.totalorder %s3727_s30, 1  ;;  %s3806_s11 = int_to_ptr.vmem [resolvable:$true] %s273_s11 }
   0x6   : > { %p248_p1 = scmp.lt.s32.totalorder %s3727_s30, 3  ;;  %p4676_p2 = scmp.eq.s32.totalorder %s3801_s12, 0 }
   0x7   : > { %s3730_s14 = smov [#allocation7]   ;;  %s3731_s17 = smov [#allocation10]  }
   0x8   : > { %p3808_p3 = pnand %p2581_p0, %p248_p1  ;;  %s303_s15 = sshll.u32 %s3730_s14, 4  ;;  %s3814_s15 = int_to_ptr.vmem [resolvable:$true] %s303_s15 }
   0x9   : > { %s324_s18 = sshll.u32 %s3731_s17, 4  ;;  %s3509_s21 = scalar_lea.hbm %s4668_s2, 48  ;;  %s3822_s18 = int_to_ptr.vmem [resolvable:$true] %s324_s18 }
   0xa   : > { %s4699_s13 = scalar_select %p3808_p3, 1, 0 }
   0xb   : > { %p3441_p4 = pneg %p3808_p3  ;;  %p3510_p6 = scmp.ne.s32.totalorder %s4668_s2, %s3509_s21 }
   0xc   : > { %p3516_p10 = scmp.lt.u32.totalorder %s3509_s21, %s4668_s2 }
   0xd   : > { %p3818_p5 = pnand %p4676_p2, %p3441_p4 }
   0xf   : > { %p3832_p7 = pneg %p3818_p5 }
  0x11   : > { %p3512_p8 = pnand %p3832_p7, %p3510_p6 }
  0x13   : > { %p3513_p9 = pneg %p3512_p8 }
  0x15   : > { %p3518_p11 = pnand %p3516_p10, %p3513_p9 }
  0x17   : > { %3521 = shalt.err (!%p3518_p11)
}
  0x18   : > { %s3522_s27 = scalar_lea.vmem %s3806_s11, 48  ;;  %s3529_s28 = scalar_lea.vmem %s3806_s11, 64 }
  0x19   : > { %p3523_p12 = scmp.ne.s32.totalorder %s3806_s11, %s3522_s27  ;;  %p3530_p1 = scmp.lt.s32.totalorder %s3806_s11, %s3806_s11 }
  0x1a   : > { %p3531_p4 = scmp.lt.s32.totalorder %s3529_s28, %s3522_s27 }
  0x1b   : > { %p3525_p13 = pnand %p3523_p12, %p3832_p7 }
  0x1c   : > { %p3532_p6 = por %p3531_p4, %p3530_p1 }
  0x1d   : > { %p3526_p0 = pneg %p3525_p13 }
  0x1f   : > { %p3533_p8 = pnand %p3532_p6, %p3526_p0 }
  0x21   : > { %3536 = shalt.err (!%p3533_p8)
}
  0x22   : > { %s4678_s29 = smov 16   ;;  %s4680_s10 = smov 1  }
  0x23   : > { %3447 = dma.hbm_to_vmem [thread:$0]  (!%p3818_p5), %s4668_s2, 48, %s3806_s11, [#allocation5], %s4678_s29, %s4678_s29, %s4680_s10  }
  0x24   : > { %s3537_s21 = scalar_lea.hbm %s4671_s5, 16 }
  0x25   : > { %p3538_p9 = scmp.ne.s32.totalorder %s4671_s5, %s3537_s21  ;;  %p3544_p12 = scmp.lt.u32.totalorder %s3537_s21, %s4671_s5 }
  0x27   : > { %p3540_p10 = pnand %p3538_p9, %p3832_p7 }
  0x29   : > { %p3541_p11 = pneg %p3540_p10 }
  0x2b   : > { %p3546_p13 = pnand %p3544_p12, %p3541_p11 }
  0x2d   : > { %3549 = shalt.err (!%p3546_p13)
}
  0x2e   : > { %s3550_s11 = scalar_lea.vmem %s3814_s15, 16  ;;  %s3557_s27 = scalar_lea.vmem %s3814_s15, 32 }
  0x2f   : > { %p3551_p0 = scmp.ne.s32.totalorder %s3814_s15, %s3550_s11  ;;  %p3558_p6 = scmp.lt.s32.totalorder %s3814_s15, %s3814_s15 }
  0x30   : > { %p3559_p8 = scmp.lt.s32.totalorder %s3557_s27, %s3550_s11 }
  0x31   : > { %p3553_p1 = pnand %p3551_p0, %p3832_p7 }
  0x32   : > { %p3560_p9 = por %p3559_p8, %p3558_p6 }
  0x33   : > { %p3554_p4 = pneg %p3553_p1 }
  0x35   : > { %p3561_p10 = pnand %p3560_p9, %p3554_p4 }
  0x37   : > { %3564 = shalt.err (!%p3561_p10)
}
  0x38   : > { %3453 = dma.hbm_to_vmem [thread:$0]  (!%p3818_p5), %s4671_s5, 16, %s3814_s15, [#allocation8]  }
  0x39   : > { %s3565_s20 = scalar_lea.hbm %s4673_s7, 96 }
  0x3a   : > { %p3566_p11 = scmp.ne.s32.totalorder %s4673_s7, %s3565_s20  ;;  %p3572_p0 = scmp.lt.u32.totalorder %s3565_s20, %s4673_s7 }
  0x3c   : > { %p3568_p12 = pnand %p3566_p11, %p3832_p7 }
  0x3e   : > { %p3569_p13 = pneg %p3568_p12 }
  0x40   : > { %p3574_p1 = pnand %p3572_p0, %p3569_p13 }
  0x42   : > { %3577 = shalt.err (!%p3574_p1)
}
  0x43   : > { %s3578_s15 = scalar_lea.vmem %s3822_s18, 96  ;;  %p3586_p9 = scmp.lt.s32.totalorder %s3822_s18, %s3822_s18 }
  0x44   : > { %p3579_p4 = scmp.ne.s32.totalorder %s3822_s18, %s3578_s15  ;;  %p3587_p10 = scmp.lt.s32.totalorder %s3578_s15, %s3578_s15 }
  0x46   : > { %p3581_p6 = pnand %p3579_p4, %p3832_p7  ;;  %p3588_p11 = por %p3587_p10, %p3586_p9 }
  0x48   : > { %p3582_p8 = pneg %p3581_p6 }
  0x4a   : > { %p3589_p12 = pnand %p3588_p11, %p3582_p8 }
  0x4c   : > { %3592 = shalt.err (!%p3589_p12)
}
  0x4d   : > { %s3734_s26 = smov 32   ;;  %s3735_s11 = smov 2  }
  0x4e   : > { %3459 = dma.hbm_to_vmem [thread:$0]  (!%p3818_p5), %s4673_s7, 96, %s3822_s18, [#allocation11], %s3734_s26, %s3734_s26, %s3735_s11  }
  0x4f   : > { %s3736_s14 = smov [#allocation2]   ;;  %s3593_s21 = scalar_lea.hbm %s4667_s1, 9216 }
  0x50   : > { %s260_s17 = sshll.u32 %s3736_s14, 4  ;;  %p3594_p13 = scmp.ne.s32.totalorder %s4667_s1, %s3593_s21  ;;  %s261_s17 = int_to_ptr.vmem [resolvable:$true] %s260_s17 }
  0x51   : > { %p3600_p4 = scmp.lt.u32.totalorder %s3593_s21, %s4667_s1 }
  0x52   : > { %p3596_p0 = pnand %p3594_p13, %p3832_p7 }
  0x54   : > { %p3597_p1 = pneg %p3596_p0 }
  0x56   : > { %p3602_p6 = pnand %p3600_p4, %p3597_p1 }
  0x58   : > { %3605 = shalt.err (!%p3602_p6)
}
  0x59   : > { %s3606_s18 = scalar_lea.vmem %s261_s17, 9216  ;;  %p3614_p11 = scmp.lt.s32.totalorder %s261_s17, %s261_s17 }
  0x5a   : > { %p3607_p8 = scmp.ne.s32.totalorder %s261_s17, %s3606_s18  ;;  %p3615_p12 = scmp.lt.s32.totalorder %s3606_s18, %s3606_s18 }
  0x5c   : > { %p3609_p9 = pnand %p3607_p8, %p3832_p7  ;;  %p3616_p2 = por %p3615_p12, %p3614_p11 }
  0x5e   : > { %p3610_p10 = pneg %p3609_p9 }
  0x60   : > { %p3617_p3 = pnand %p3616_p2, %p3610_p10 }
  0x62   : > { %3620 = shalt.err (!%p3617_p3)
}
  0x63   : > { %s3737_s26 = smov 128   ;;  %s3738_s11 = smov 8  }
  0x64   : > { %3444 = dma.hbm_to_vmem [thread:$0]  (!%p3818_p5), %s4667_s1, 9216, %s261_s17, [#allocation3], %s3737_s26, %s3737_s26, %s3738_s11  }
  0x65   : > { %s3739_s14 = smov [#allocation6]   ;;  %s3740_s20 = smov [#allocation9]  }
  0x66   : > { %s286_s19 = sshll.u32 %s3739_s14, 4  ;;  %s314_s21 = sshll.u32 %s3740_s20, 4  ;;  %s287_s19 = int_to_ptr.vmem [resolvable:$true] %s286_s19  ;;  %s315_s21 = int_to_ptr.vmem [resolvable:$true] %s314_s21 }
  0x67   : > { %s3621_s25 = scalar_lea.hbm %s4669_s3, 48 }
  0x68   : > { %p3622_p2 = scmp.ne.s32.totalorder %s4669_s3, %s3621_s25  ;;  %p3628_p0 = scmp.lt.u32.totalorder %s3621_s25, %s4669_s3 }
  0x6a   : > { %p3624_p3 = pnand %p3622_p2, %p3832_p7 }
  0x6c   : > { %p3625_p13 = pneg %p3624_p3 }
  0x6e   : > { %p3630_p1 = pnand %p3628_p0, %p3625_p13 }
  0x70   : > { %3633 = shalt.err (!%p3630_p1)
}
  0x71   : > { %s3634_s17 = scalar_lea.vmem %s287_s19, 48  ;;  %s3641_s26 = scalar_lea.vmem %s287_s19, 64 }
  0x72   : > { %p3635_p4 = scmp.ne.s32.totalorder %s287_s19, %s3634_s17  ;;  %p3642_p9 = scmp.lt.s32.totalorder %s287_s19, %s287_s19 }
  0x73   : > { %p3643_p10 = scmp.lt.s32.totalorder %s3641_s26, %s3634_s17 }
  0x74   : > { %p3637_p6 = pnand %p3635_p4, %p3832_p7 }
  0x75   : > { %p3644_p11 = por %p3643_p10, %p3642_p9 }
  0x76   : > { %p3638_p8 = pneg %p3637_p6 }
  0x78   : > { %p3645_p12 = pnand %p3644_p11, %p3638_p8 }
  0x7a   : > { %3648 = shalt.err (!%p3645_p12)
}
  0x7b   : > { %s4702_s11 = smov 1   ;;  %s4703_s27 = smov 16  }
  0x7c   : > { %3450 = dma.hbm_to_vmem [thread:$0]  (!%p3818_p5), %s4669_s3, 48, %s287_s19, [#allocation5], %s4703_s27, %s4703_s27, %s4702_s11  }
  0x7d   : > { %s3649_s20 = scalar_lea.hbm %s4672_s6, 16 }
  0x7e   : > { %p3650_p2 = scmp.ne.s32.totalorder %s4672_s6, %s3649_s20  ;;  %p3656_p0 = scmp.lt.u32.totalorder %s3649_s20, %s4672_s6 }
  0x80   : > { %p3652_p3 = pnand %p3650_p2, %p3832_p7 }
  0x82   : > { %p3653_p13 = pneg %p3652_p3 }
  0x84   : > { %p3658_p1 = pnand %p3656_p0, %p3653_p13 }
  0x86   : > { %3661 = shalt.err (!%p3658_p1)
}
  0x87   : > { %s3662_s18 = scalar_lea.vmem %s315_s21, 16  ;;  %s3669_s19 = scalar_lea.vmem %s315_s21, 32 }
  0x88   : > { %p3663_p4 = scmp.ne.s32.totalorder %s315_s21, %s3662_s18  ;;  %p3670_p9 = scmp.lt.s32.totalorder %s315_s21, %s315_s21 }
  0x89   : > { %p3671_p10 = scmp.lt.s32.totalorder %s3669_s19, %s3662_s18 }
  0x8a   : > { %p3665_p6 = pnand %p3663_p4, %p3832_p7 }
  0x8b   : > { %p3672_p11 = por %p3671_p10, %p3670_p9 }
  0x8c   : > { %p3666_p8 = pneg %p3665_p6 }
  0x8e   : > { %p3673_p12 = pnand %p3672_p11, %p3666_p8 }
  0x90   : > { %3676 = shalt.err (!%p3673_p12)
}
  0x91   : > { %3456 = dma.hbm_to_vmem [thread:$0]  (!%p3818_p5), %s4672_s6, 16, %s315_s21, [#allocation8]  }
  0x92   : > { %s3741_s29 = smov [#allocation12]   ;;  %s3677_s20 = scalar_lea.hbm %s4674_s8, 48 }
  0x93   : > { %s337_s10 = sshll.u32 %s3741_s29, 4  ;;  %p3678_p2 = scmp.ne.s32.totalorder %s4674_s8, %s3677_s20  ;;  %s338_s10 = int_to_ptr.vmem [resolvable:$true] %s337_s10 }
  0x94   : > { %p3684_p0 = scmp.lt.u32.totalorder %s3677_s20, %s4674_s8 }
  0x95   : > { %p3680_p3 = pnand %p3678_p2, %p3832_p7 }
  0x97   : > { %p3681_p13 = pneg %p3680_p3 }
  0x99   : > { %p3686_p1 = pnand %p3684_p0, %p3681_p13 }
  0x9b   : > { %3689 = shalt.err (!%p3686_p1)
}
  0x9c   : > { %s3690_s21 = scalar_lea.vmem %s338_s10, 48  ;;  %s3697_s18 = scalar_lea.vmem %s338_s10, 64 }
  0x9d   : > { %p3691_p4 = scmp.ne.s32.totalorder %s338_s10, %s3690_s21  ;;  %p3698_p9 = scmp.lt.s32.totalorder %s338_s10, %s338_s10 }
  0x9e   : > { %p3699_p10 = scmp.lt.s32.totalorder %s3697_s18, %s3690_s21 }
  0x9f   : > { %p3693_p6 = pnand %p3691_p4, %p3832_p7 }
  0xa0   : > { %p3700_p11 = por %p3699_p10, %p3698_p9 }
  0xa1   : > { %p3694_p8 = pneg %p3693_p6 }
  0xa3   : > { %p3701_p12 = pnand %p3700_p11, %p3694_p8 }
  0xa5   : > { %3704 = shalt.err (!%p3701_p12)
}
  0xa6   : > { %3462 = dma.hbm_to_vmem [thread:$0]  (!%p3818_p5), %s4674_s8, 48, %s338_s10, [#allocation11], %s4703_s27, %s4703_s27, %s4702_s11  }
  0xa7   : > { %p4704_p2 = scmp.ne.s32.totalorder %s4699_s13, 0 }
  0xa8   : > { %p4705_p7 = scmp.eq.s32.totalorder (!%p4704_p2), %s3801_s12, 0 }
  0xa9   : > { %361 = sbr.rel (%p4704_p2) target bundleno = 1038 (0x40e), region = 56 }
  0xb0   : > { %3710 = dma.done.wait (%p4705_p7), [#allocation3], 9216   ;;  %p4706_p3 = pmov %p4705_p7 }
  0xb2   : > { %3712 = vsyncadd (%p4706_p3), [#allocation3], 4294958080  ;;  %p4707_p13 = pmov %p4706_p3 }
  0xb3   : > { %p4708_p0 = pmov %p4706_p3 }
  0xb4   : > { %3714 = dma.done.wait (%p4707_p13), [#allocation5], 96  }
  0xb5   : > { %3716 = vsyncadd (%p4708_p0), [#allocation5], 4294967200  ;;  %p4709_p1 = pmov %p4708_p0 }
  0xb6   : > { %p4710_p5 = pmov %p4708_p0 }
  0xb7   : > { %3718 = dma.done.wait (%p4709_p1), [#allocation8], 32  }
  0xb8   : > { %3720 = vsyncadd (%p4710_p5), [#allocation8], 4294967264  ;;  %p4711_p4 = pmov %p4708_p0 }
  0xb9   : > { %p4712_p6 = pmov %p4708_p0 }
  0xba   : > { %3722 = dma.done.wait (%p4711_p4), [#allocation11], 144  }
  0xbb   : > { %3724 = vsyncadd (%p4712_p6), [#allocation11], 4294967152  ;;  %p421_p8 = scmp.lt.s32.totalorder %s3801_s12, 1  ;;  %v457_v0 = vld [vmem:[#allocation2 + $0x40] sm:$0xff]  ;;  %v458_v1 = vld [vmem:[#allocation2 + $0x48] sm:$0xff]  ;;  %vm543_vm0 = vcmask 1046528  }
  0xbc   : > { %v449_v2 = vld [vmem:[#allocation2] sm:$0xff]  ;;  %v3195_v3 = vpack.c.bf16 %v458_v1, %v457_v0  ;;  %v450_v4 = vld [vmem:[#allocation2 + $0x8] sm:$0xff]  ;;  %v459_v5 = vld [vmem:[#allocation2 + $0x50] sm:$0xff]  ;;  %vm701_vm1 = vcmask 1041408   ;;  %vm563_vm2 = vcmask 523264   ;;  %vm860_vm3 = vcmask 1043456  }
  0xbd   : > { %s4731_s12 = smov (!%p421_p8, %s3801_s12), 1  ;;  %v460_v6 = vld [vmem:[#allocation2 + $0x58] sm:$0xff]  ;;  %v3211_v7 = vpack.c.bf16 %v450_v4, %v449_v2  ;;  %v451_v9 = vld [vmem:[#allocation2 + $0x10] sm:$0xff]  ;;  %v461_v11 = vld [vmem:[#allocation2 + $0x60] sm:$0xff]  ;;  %vm1802_vm4 = vcmask 1045504   ;;  %vm1185_vm5 = vcmask 1044480  }
  0xbe   : > { %s3411_s13 = smul.u32 144, %s4731_s12  ;;  %v3199_v8 = vpack.c.bf16 %v460_v6, %v459_v5  ;;  %v452_v10 = vld [vmem:[#allocation2 + $0x18] sm:$0xff]  ;;  %3196 = vmatprep.subr.bf16.mxu1 %v3195_v3  ;;  %v462_v13 = vld [vmem:[#allocation2 + $0x68] sm:$0xff]  ;;  %v453_v14 = vld [vmem:[#allocation2 + $0x20] sm:$0xff]  ;;  %vm1341_vm6 = vcmask 1040384   ;;  %vm3743_vm7 = vmmov 0  }
  0xbf   : > { %v3215_v12 = vpack.c.bf16 %v452_v10, %v451_v9  ;;  %v454_v15 = vld [vmem:[#allocation2 + $0x28] sm:$0xff]  ;;  %3212 = vmatprep.subr.bf16.mxu0 %v3211_v7  ;;  %3198 = vmatpush3.bf16.msra.mxu1 %v3195_v3  ;;  %v3203_v16 = vpack.c.bf16 %v462_v13, %v461_v11  ;;  %v463_v17 = vld [vmem:[#allocation2 + $0x70] sm:$0xff]  ;;  %v464_v21 = vld [vmem:[#allocation2 + $0x78] sm:$0xff]  ;;  %vm2046_vm8 = vcmask 520192   ;;  %vm2143_vm9 = vcmask 15360   ;;  %s3412_s16 = smul.u32 80, %s4731_s12 }
  0xc0   : > { %s4008_s11 = scalar_lea.vmem %s4666_s0, %s3411_s13  ;;  %3214 = vmatpush3.bf16.msra.mxu0 %v3211_v7  ;;  %3200 = vmatprep.subr.bf16.mxu1 %v3199_v8  ;;  %v3219_v20 = vpack.c.bf16 %v454_v15, %v453_v14  ;;  %v455_v26 = vld [vmem:[#allocation2 + $0x30] sm:$0xff]  ;;  %v456_v27 = vld [vmem:[#allocation2 + $0x38] sm:$0xff]  ;;  %v3207_v31 = vpack.c.bf16 %v464_v21, %v463_v17  ;;  %v481_v36 = vld [vmem:[#allocation2 + $0x100] sm:$0xff] }
  0xc1   : > { %v4011_v18 = vld [vmem:[%s4008_s11 + $0x20] sm:$0xff]  ;;  %v4014_v19 = vld [vmem:[%s4008_s11 + $0x28] sm:$0xff]  ;;  %3216 = vmatprep.subr.bf16.mxu0 %v3215_v12  ;;  %v4019_v24 = vld [vmem:[%s4008_s11 + $0x10] sm:$0xff]  ;;  %v3223_v34 = vpack.c.bf16 %v456_v27, %v455_v26 }
  0xc2   : > { %v544_v22 = vrot.slane %v4011_v18, 1  ;;  %v545_v23 = vrot.slane %v4014_v19, 1  ;;  %v4022_v25 = vld [vmem:[%s4008_s11 + $0x18] sm:$0xff]  ;;  %v702_v28 = vrot.slane %v4019_v24, 6  ;;  %v4031_v33 = vld [vmem:[%s4008_s11 + $0x30] sm:$0xff]  ;;  %v705_v41 = vrot.slane %v4011_v18, 6 }
  0xc3   : > { %v703_v29 = vrot.slane %v4022_v25, 6  ;;  %3202 = vmatpush3.bf16.msra.mxu1 %v3199_v8  ;;  %v4036_v35 = vld [vmem:[%s4008_s11 + $0x38] sm:$0xff]  ;;  %v465_v38 = vld [vmem:[#allocation2 + $0x80] sm:$0xff]  ;;  %v547_v40 = vrot.slane %v4031_v33, 1  ;;  %v4043_v43 = vld [vmem:[%s4008_s11 + $0x40] sm:$0xff]  ;;  %v707_v46 = vrot.slane %v4014_v19, 6 }
  0xc4   : > { %v4027_v30 = vsel %vm543_vm0, %v544_v22, %v545_v23  ;;  %3218 = vmatpush3.bf16.msra.mxu0 %v3215_v12  ;;  %3204 = vmatprep.subr.bf16.mxu1 %v3203_v16  ;;  %v482_v37 = vld [vmem:[#allocation2 + $0x108] sm:$0xff]  ;;  %v549_v42 = vrot.slane %v4036_v35, 1  ;;  %v4047_v47 = vld [vmem:[%s4008_s11 + $0x48] sm:$0xff]  ;;  %v467_v48 = vld [vmem:[#allocation2 + $0x90] sm:$0xff]  ;;  %v551_v51 = vrot.slane %v4043_v43, 1  ;;  %v709_v56 = vrot.slane %v4031_v33, 6 }
  0xc5   : > { %v704_v32 = vsel %vm701_vm1, %v702_v28, %v703_v29  ;;  %3220 = vmatprep.subr.bf16.mxu0 %v3219_v20  ;;  %2898 = vmatprep.mubr.msk.f32.mxu1 %vm563_vm2, %v4027_v30  ;;  %v466_v39 = vld [vmem:[#allocation2 + $0x88] sm:$0xff]  ;;  %v3243_v44 = vpack.c.bf16 %v482_v37, %v481_v36  ;;  %v468_v49 = vld [vmem:[#allocation2 + $0x98] sm:$0xff]  ;;  %v4050_v50 = vsel %vm543_vm0, %v545_v23, %v547_v40  ;;  %v483_v52 = vld [vmem:[#allocation2 + $0x110] sm:$0xff]  ;;  %v553_v57 = vrot.slane %v4047_v47, 1 }
  0xc6   : > { %2929 = vmatprep.mubr.msk.f32.mxu0 %vm563_vm2, %v704_v32  ;;  %v3227_v45 = vpack.c.bf16 %v466_v39, %v465_v38  ;;  %v484_v53 = vld [vmem:[#allocation2 + $0x118] sm:$0xff]  ;;  %v706_v54 = vsel %vm701_vm1, %v703_v29, %v705_v41  ;;  %v4055_v55 = vsel %vm543_vm0, %v547_v40, %v549_v42  ;;  %v4060_v58 = vld [vmem:[%s4008_s11 + $0x50] sm:$0xff]  ;;  %v708_v59 = vsel %vm701_vm1, %v705_v41, %v707_v46  ;;  %v4065_v62 = vld [vmem:[%s4008_s11 + $0x58] sm:$0xff] }
  0xc7   : > { %3206 = vmatpush3.bf16.msra.mxu1 %v3203_v16  ;;  %v3231_v60 = vpack.c.bf16 %v468_v49, %v467_v48  ;;  %v711_v61 = vrot.slane %v4036_v35, 6  ;;  %v3247_v63 = vpack.c.bf16 %v484_v53, %v483_v52  ;;  %v469_v0 = vld [vmem:[#allocation2 + $0xa0] sm:$0xff]  ;;  %v470_v1 = vld [vmem:[#allocation2 + $0xa8] sm:$0xff]  ;;  %v4073_v2 = vsel %vm543_vm0, %v549_v42, %v551_v51  ;;  %v4084_v10 = vld [vmem:[%s4008_s11 + $0x60] sm:$0xff] }
  0xc8   : > { %3222 = vmatpush3.bf16.msra.mxu0 %v3219_v20  ;;  %3208 = vmatprep.subr.bf16.mxu1 %v3207_v31  ;;  %v555_v3 = vrot.slane %v4060_v58, 1  ;;  %v485_v4 = vld [vmem:[#allocation2 + $0x120] sm:$0xff]  ;;  %v486_v5 = vld [vmem:[#allocation2 + $0x128] sm:$0xff]  ;;  %v710_v6 = vsel %vm701_vm1, %v707_v46, %v709_v56  ;;  %v4079_v7 = vsel %vm543_vm0, %v551_v51, %v553_v57  ;;  %v713_v8 = vrot.slane %v4043_v43, 6  ;;  %v4089_v14 = vld [vmem:[%s4008_s11 + $0x68] sm:$0xff] }
  0xc9   : > { %3224 = vmatprep.subr.bf16.mxu0 %v3223_v34  ;;  %v557_v9 = vrot.slane %v4065_v62, 1  ;;  %v712_v11 = vsel %vm701_vm1, %v709_v56, %v711_v61  ;;  %v3235_v12 = vpack.c.bf16 %v470_v1, %v469_v0  ;;  %v715_v13 = vrot.slane %v4047_v47, 6  ;;  %v471_v16 = vld [vmem:[#allocation2 + $0xb0] sm:$0xff]  ;;  %v472_v17 = vld [vmem:[#allocation2 + $0xb8] sm:$0xff]  ;;  %v505_v37 = vld [vmem:[#allocation2 + $0x1c0] sm:$0xff] }
  0xca   : > { %v3251_v15 = vpack.c.bf16 %v486_v5, %v485_v4  ;;  %v4097_v20 = vsel %vm543_vm0, %v553_v57, %v555_v3  ;;  %v559_v21 = vrot.slane %v4084_v10, 1  ;;  %v487_v22 = vld [vmem:[#allocation2 + $0x130] sm:$0xff]  ;;  %v488_v23 = vld [vmem:[#allocation2 + $0x138] sm:$0xff]  ;;  %v714_v26 = vsel %vm701_vm1, %v711_v61, %v713_v8  ;;  %v506_v38 = vld [vmem:[#allocation2 + $0x1c8] sm:$0xff] }
  0xcb   : > { %3210 = vmatpush3.bf16.msra.mxu1 %v3207_v31  ;;  %v4103_v27 = vsel %vm543_vm0, %v555_v3, %v557_v9  ;;  %v717_v28 = vrot.slane %v4060_v58, 6  ;;  %v4107_v29 = vrot.slane %v4089_v14, 1  ;;  %v716_v31 = vsel %vm701_vm1, %v713_v8, %v715_v13  ;;  %v473_v40 = vld [vmem:[#allocation2 + $0xc0] sm:$0xff]  ;;  %v474_v41 = vld [vmem:[#allocation2 + $0xc8] sm:$0xff]  ;;  %v475_v61 = vld [vmem:[#allocation2 + $0xd0] sm:$0xff] }
  0xcc   : > { %3226 = vmatpush3.bf16.msra.mxu0 %v3223_v34  ;;  %3244 = vmatprep.subr.bf16.mxu1 %v3243_v44  ;;  %v719_v32 = vrot.slane %v4065_v62, 6  ;;  %v3239_v34 = vpack.c.bf16 %v472_v17, %v471_v16  ;;  %v3255_v36 = vpack.c.bf16 %v488_v23, %v487_v22  ;;  %v4117_v39 = vsel %vm543_vm0, %v557_v9, %v559_v21  ;;  %v509_v8 = vld [vmem:[#allocation2 + $0x1e0] sm:$0xff]  ;;  %v510_v9 = vld [vmem:[#allocation2 + $0x1e8] sm:$0xff] }
  0xcd   : > { %3228 = vmatprep.subr.bf16.mxu0 %v3227_v45  ;;  %v718_v42 = vsel %vm701_vm1, %v715_v13, %v717_v28  ;;  %v861_v48 = vrot.slane %v4014_v19, 4  ;;  %v862_v49 = vrot.slane %v4031_v33, 4  ;;  %v3291_v51 = vpack.c.bf16 %v506_v38, %v505_v37  ;;  %v477_v17 = vld [vmem:[#allocation2 + $0xe0] sm:$0xff]  ;;  %v511_v38 = vld [vmem:[#allocation2 + $0x1f0] sm:$0xff] }
  0xce   : > { %2899 = vmatmul.mubr.msk.f32.vlgmr.msra.gmra.mrb[0].mxu1 %vm563_vm2, %v4050_v50  ;;  %v720_v46 = vsel %vm701_vm1, %v717_v28, %v719_v32  ;;  %v3259_v52 = vpack.c.bf16 %v474_v41, %v473_v40  ;;  %v866_v57 = vrot.slane %v4043_v43, 4  ;;  %v868_v0 = vrot.slane %v4047_v47, 4  ;;  %v4179_v37 = vld [vmem:[%s4008_s11 + $0x70] sm:$0xff]  ;;  %v512_v40 = vld [vmem:[#allocation2 + $0x1f8] sm:$0xff]  ;;  %v479_v41 = vld [vmem:[#allocation2 + $0xf0] sm:$0xff] }
  0xcf   : > { %2930 = vmatmul.mubr.msk.f32.vlgmr.msra.gmra.mrb[0].mxu0 %vm563_vm2, %v706_v54  ;;  %2901 = vmatprep.mubr.msk.f32.mxu1 %vm563_vm2, %v4055_v55  ;;  %v864_v54 = vrot.slane %v4036_v35, 4  ;;  %v863_v56 = vsel %vm860_vm3, %v861_v48, %v862_v49  ;;  %v870_v5 = vrot.slane %v4060_v58, 4  ;;  %v1810_v13 = vrot.slane %v4084_v10, 2 }
  0xd0   : > { %3230 = vmatpush3.bf16.msra.mxu0 %v3227_v45  ;;  %2932 = vmatprep.mubr.msk.f32.mxu0 %vm563_vm2, %v708_v59  ;;  %v721_v45 = vrot.slane %v4084_v10, 6  ;;  %v507_v59 = vld [vmem:[#allocation2 + $0x1d0] sm:$0xff]  ;;  %v869_v16 = vsel %vm860_vm3, %v866_v57, %v868_v0  ;;  %v872_v22 = vrot.slane %v4065_v62, 4 }
  0xd1   : > { %3232 = vmatprep.subr.bf16.mxu0 %v3231_v60  ;;  %3246 = vmatpush3.bf16.msra.mxu1 %v3243_v44  ;;  %v4123_v44 = vsel %vm543_vm0, %v559_v21, %v4107_v29  ;;  %v865_v1 = vsel %vm860_vm3, %v862_v49, %v864_v54  ;;  %v867_v3 = vsel %vm860_vm3, %v864_v54, %v866_v57  ;;  %v478_v21 = vld [vmem:[#allocation2 + $0xe8] sm:$0xff]  ;;  %v878_v49 = vrot.slane %v4179_v37, 4 }
  0xd2   : > { %2902 = vmatmul.mubr.msk.f32.gmra.mrb[2].mxu1 %vm563_vm2, %v4073_v2  ;;  %3248 = vmatprep.subr.bf16.mxu1 %v3247_v63  ;;  %v722_v53 = vsel %vm701_vm1, %v719_v32, %v721_v45  ;;  %v3299_v32 = vpack.c.bf16 %v510_v9, %v509_v8  ;;  %v873_v45 = vsel %vm860_vm3, %v870_v5, %v872_v22  ;;  %v498_v57 = vld [vmem:[#allocation2 + $0x188] sm:$0xff] }
  0xd3   : > { %2933 = vmatmul.mubr.msk.f32.gmra.mrb[2].mxu0 %vm563_vm2, %v710_v6  ;;  %2904 = vmatprep.mubr.msk.f32.mxu1 %vm563_vm2, %v4079_v7 }
  0xd4   : > { %3234 = vmatpush3.bf16.msra.mxu0 %v3231_v60  ;;  %2935 = vmatprep.mubr.msk.f32.mxu0 %vm563_vm2, %v712_v11  ;;  %v508_v60 = vld [vmem:[#allocation2 + $0x1d8] sm:$0xff]  ;;  %v1806_v11 = vrot.slane %v4060_v58, 2 }
  0xd5   : > { %3250 = vmatpush3.bf16.msra.mxu1 %v3247_v63  ;;  %3236 = vmatprep.subr.bf16.mxu0 %v3235_v12  ;;  %v476_v63 = vld [vmem:[#allocation2 + $0xd8] sm:$0xff]  ;;  %v3295_v4 = vpack.c.bf16 %v508_v60, %v507_v59  ;;  %v489_v59 = vld [vmem:[#allocation2 + $0x140] sm:$0xff]  ;;  %v490_v60 = vld [vmem:[#allocation2 + $0x148] sm:$0xff] }
  0xd6   : > { %2905 = vmatmul.mubr.msk.f32.gmra.mrb[4].mxu1 %vm563_vm2, %v4097_v20  ;;  %3252 = vmatprep.subr.bf16.mxu1 %v3251_v15  ;;  %v3263_v6 = vpack.c.bf16 %v476_v63, %v475_v61 }
  0xd7   : > { %2936 = vmatmul.mubr.msk.f32.gmra.mrb[4].mxu0 %vm563_vm2, %v714_v26  ;;  %2907 = vmatprep.mubr.msk.f32.mxu1 %vm563_vm2, %v4103_v27 }
  0xd8   : > { %2938 = vmatprep.mubr.msk.f32.mxu0 %vm563_vm2, %v716_v31  ;;  %3238 = vmatpush3.bf16.msra.mxu0 %v3235_v12  ;;  %v1808_v12 = vrot.slane %v4065_v62, 2  ;;  %v871_v31 = vsel %vm860_vm3, %v868_v0, %v870_v5  ;;  %v3275_v5 = vpack.c.bf16 %v490_v60, %v489_v59  ;;  %v495_v59 = vld [vmem:[#allocation2 + $0x170] sm:$0xff]  ;;  %v496_v60 = vld [vmem:[#allocation2 + $0x178] sm:$0xff] }
  0xd9   : > { %3254 = vmatpush3.bf16.msra.mxu1 %v3251_v15  ;;  %3240 = vmatprep.subr.bf16.mxu0 %v3239_v34  ;;  %v1812_v15 = vrot.slane %v4089_v14, 2 }
  0xda   : > { %2908 = vmatmul.mubr.msk.f32.gmra.mrb[6].mxu1 %vm563_vm2, %v4117_v39  ;;  %3256 = vmatprep.subr.bf16.mxu1 %v3255_v36  ;;  %v4164_v23 = vsel %vm1802_vm4, %v1806_v11, %v1808_v12  ;;  %v4167_v26 = vsel %vm1802_vm4, %v1808_v12, %v1810_v13  ;;  %v1191_v12 = vrot.slane %v4011_v18, 3 }
  0xdb   : > { %2939 = vmatmul.mubr.msk.f32.gmra.mrb[6].mxu0 %vm563_vm2, %v718_v42  ;;  %2910 = vmatprep.mubr.msk.f32.mxu1 %vm563_vm2, %v4123_v44  ;;  %v4172_v28 = vsel %vm1802_vm4, %v1810_v13, %v1812_v15  ;;  %v480_v42 = vld [vmem:[#allocation2 + $0xf8] sm:$0xff]  ;;  %v499_v13 = vld [vmem:[#allocation2 + $0x190] sm:$0xff] }
  0xdc   : > { %2941 = vmatprep.mubr.msk.f32.mxu0 %vm563_vm2, %v720_v46  ;;  %3242 = vmatpush3.bf16.msra.mxu0 %v3239_v34  ;;  %v874_v34 = vrot.slane %v4084_v10, 4  ;;  %v876_v46 = vrot.slane %v4089_v14, 4  ;;  %v3271_v54 = vpack.c.bf16 %v480_v42, %v479_v41  ;;  %v502_v41 = vld [vmem:[#allocation2 + $0x1a8] sm:$0xff] }
  0xdd   : > { %3258 = vmatpush3.bf16.msra.mxu1 %v3255_v36  ;;  %3292 = vmatprep.subr.bf16.mxu0 %v3291_v51  ;;  %v3267_v36 = vpack.c.bf16 %v478_v21, %v477_v17  ;;  %v1193_v21 = vrot.slane %v4014_v19, 3 }
  0xde   : > { %2911 = vmatmul.mubr.msk.f32.gmra.mrb[8].mxu1 %vm563_vm2, %v4107_v29  ;;  %3260 = vmatprep.subr.bf16.mxu1 %v3259_v52  ;;  %v875_v48 = vsel %vm860_vm3, %v872_v22, %v874_v34  ;;  %v877_v61 = vsel %vm860_vm3, %v874_v34, %v876_v46  ;;  %v491_v22 = vld [vmem:[#allocation2 + $0x150] sm:$0xff]  ;;  %v1195_v34 = vrot.slane %v4031_v33, 3 }
  0xdf   : > { %2942 = vmatmul.mubr.msk.f32.gmra.mrb[8].mxu0 %vm563_vm2, %v722_v53  ;;  %2991 = vmatprep.mubr.msk.f32.mxu1 %vm563_vm2, %v4027_v30  ;;  %v4193_v53 = vld [vmem:[%s4008_s11 + $0x8] sm:$0xff]  ;;  %v1194_v42 = vsel %vm1185_vm5, %v1191_v12, %v1193_v21 }
  0xe0   : > { %2960 = vmatprep.mubr.msk.f32.mxu0 %vm563_vm2, %v863_v56  ;;  %v497_v56 = vld [vmem:[#allocation2 + $0x180] sm:$0xff]  ;;  %v1186_v0 = vrot.slane %v4193_v53, 3 }
  0xe2   : > { %2992 = vmatmul.mubr.msk.f32.vlgmr.msra.gmra.mrb[10].mxu1 %vm563_vm2, %v4050_v50 }
  0xe3   : > { %2961 = vmatmul.mubr.msk.f32.vlgmr.msra.gmra.mrb[0].mxu0 %vm563_vm2, %v865_v1  ;;  %2994 = vmatprep.mubr.msk.f32.mxu1 %vm563_vm2, %v4055_v55  ;;  %v1187_v1 = vrot.slane %v4019_v24, 3 }
  0xe4   : > { %3294 = vmatpush3.bf16.msra.mxu0 %v3291_v51  ;;  %2963 = vmatprep.mubr.msk.f32.mxu0 %vm563_vm2, %v867_v3  ;;  %v3303_v51 = vpack.c.bf16 %v512_v40, %v511_v38  ;;  %v879_v3 = vsel %vm860_vm3, %v876_v46, %v878_v49  ;;  %v501_v40 = vld [vmem:[#allocation2 + $0x1a0] sm:$0xff]  ;;  %v494_v46 = vld [vmem:[#allocation2 + $0x168] sm:$0xff] }
  0xe5   : > { %3262 = vmatpush3.bf16.msra.mxu1 %v3259_v52  ;;  %3296 = vmatprep.subr.bf16.mxu0 %v3295_v4  ;;  %v4190_v52 = vld [vmem:[%s4008_s11 + $0x78] sm:$0xff]  ;;  %v1188_v9 = vsel %vm1185_vm5, %v1186_v0, %v1187_v1 }
  0xe6   : > { %2995 = vmatmul.mubr.msk.f32.gmra.mrb[12].mxu1 %vm563_vm2, %v4073_v2  ;;  %3264 = vmatprep.subr.bf16.mxu1 %v3263_v6  ;;  %v880_v63 = vrot.slane %v4190_v52, 4 }
  0xe7   : > { %2964 = vmatmul.mubr.msk.f32.gmra.mrb[2].mxu0 %vm563_vm2, %v869_v16  ;;  %2997 = vmatprep.mubr.msk.f32.mxu1 %vm563_vm2, %v4079_v7  ;;  %v500_v16 = vld [vmem:[#allocation2 + $0x198] sm:$0xff] }
  0xe8   : > { %3298 = vmatpush3.bf16.msra.mxu0 %v3295_v4  ;;  %2966 = vmatprep.mubr.msk.f32.mxu0 %vm563_vm2, %v871_v31  ;;  %v3307_v4 = vpack.c.bf16 %v498_v57, %v497_v56  ;;  %v881_v8 = vsel %vm860_vm3, %v878_v49, %v880_v63  ;;  %v492_v31 = vld [vmem:[#allocation2 + $0x158] sm:$0xff]  ;;  %v1199_v49 = vrot.slane %v4043_v43, 3  ;;  %v1201_v57 = vrot.slane %v4047_v47, 3 }
  0xe9   : > { %3266 = vmatpush3.bf16.msra.mxu1 %v3263_v6  ;;  %3300 = vmatprep.subr.bf16.mxu0 %v3299_v32  ;;  %v1189_v6 = vrot.slane %v4022_v25, 3  ;;  %v3279_v38 = vpack.c.bf16 %v492_v31, %v491_v22  ;;  %v504_v56 = vld [vmem:[#allocation2 + $0x1b8] sm:$0xff]  ;;  %v1203_v63 = vrot.slane %v4060_v58, 3  ;;  %v517_v31 = vld [vmem:[#allocation2 + $0x220] sm:$0xff] }
  0xea   : > { %2998 = vmatmul.mubr.msk.f32.gmra.mrb[14].mxu1 %vm563_vm2, %v4097_v20  ;;  %3268 = vmatprep.subr.bf16.mxu1 %v3267_v36 }
  0xeb   : > { %2967 = vmatmul.mubr.msk.f32.gmra.mrb[4].mxu0 %vm563_vm2, %v873_v45  ;;  %3000 = vmatprep.mubr.msk.f32.mxu1 %vm563_vm2, %v4103_v27  ;;  %v1190_v17 = vsel %vm1185_vm5, %v1187_v1, %v1189_v6  ;;  %v1197_v45 = vrot.slane %v4036_v35, 3  ;;  %v513_v1 = vld [vmem:[#allocation2 + $0x200] sm:$0xff] }
  0xec   : > { %2969 = vmatprep.mubr.msk.f32.mxu0 %vm563_vm2, %v875_v48  ;;  %3302 = vmatpush3.bf16.msra.mxu0 %v3299_v32  ;;  %v1192_v32 = vsel %vm1185_vm5, %v1189_v6, %v1191_v12  ;;  %v1196_v48 = vsel %vm1185_vm5, %v1193_v21, %v1195_v34  ;;  %v1343_v6 = vrot.slane %v4036_v35, 7  ;;  %v431_v12 = vld [vmem:[%s4008_s11] sm:$0xff]  ;;  %v1351_v21 = vrot.slane %v4065_v62, 7 }
  0xed   : > { %3270 = vmatpush3.bf16.msra.mxu1 %v3267_v36  ;;  %3304 = vmatprep.subr.bf16.mxu0 %v3303_v51  ;;  %v3311_v36 = vpack.c.bf16 %v500_v16, %v499_v13  ;;  %v515_v13 = vld [vmem:[#allocation2 + $0x210] sm:$0xff]  ;;  %v516_v16 = vld [vmem:[#allocation2 + $0x218] sm:$0xff] }
  0xee   : > { %3001 = vmatmul.mubr.msk.f32.gmra.mrb[16].mxu1 %vm563_vm2, %v4117_v39  ;;  %3272 = vmatprep.subr.bf16.mxu1 %v3271_v54  ;;  %v3327_v22 = vpack.c.bf16 %v516_v16, %v515_v13 }
  0xef   : > { %2970 = vmatmul.mubr.msk.f32.gmra.mrb[6].mxu0 %vm563_vm2, %v877_v61  ;;  %3003 = vmatprep.mubr.msk.f32.mxu1 %vm563_vm2, %v4123_v44  ;;  %v1200_v61 = vsel %vm1185_vm5, %v1197_v45, %v1199_v49 }
  0xf0   : > { %2972 = vmatprep.mubr.msk.f32.mxu0 %vm563_vm2, %v879_v3  ;;  %3306 = vmatpush3.bf16.msra.mxu0 %v3303_v51  ;;  %v3315_v51 = vpack.c.bf16 %v502_v41, %v501_v40  ;;  %v514_v3 = vld [vmem:[#allocation2 + $0x208] sm:$0xff]  ;;  %v520_v40 = vld [vmem:[#allocation2 + $0x238] sm:$0xff] }
  0xf1   : > { %3274 = vmatpush3.bf16.msra.mxu1 %v3271_v54  ;;  %3308 = vmatprep.subr.bf16.mxu0 %v3307_v4  ;;  %v503_v54 = vld [vmem:[#allocation2 + $0x1b0] sm:$0xff] }
  0xf2   : > { %3004 = vmatmul.mubr.msk.f32.gmra.mrb[18].mxu1 %vm563_vm2, %v4107_v29  ;;  %3276 = vmatprep.subr.bf16.mxu1 %v3275_v5  ;;  %v3319_v0 = vpack.c.bf16 %v504_v56, %v503_v54  ;;  %v2060_v56 = vld [vmem:[%s4670_s4 + $0x18] sm:$0xff] }
  0xf3   : > { %2973 = vmatmul.mubr.msk.f32.gmra.mrb[8].mxu0 %vm563_vm2, %v881_v8  ;;  %3022 = vmatprep.mubr.msk.f32.mxu1 %vm563_vm2, %v1188_v9  ;;  %v3323_v8 = vpack.c.bf16 %v514_v3, %v513_v1  ;;  %v1347_v9 = vrot.slane %v4047_v47, 7 }
  0xf4   : > { %3084 = vmatprep.mubr.msk.f32.mxu0 %vm563_vm2, %v4027_v30  ;;  %v493_v30 = vld [vmem:[#allocation2 + $0x160] sm:$0xff] }
  0xf6   : > { %3023 = vmatmul.mubr.msk.f32.vlgmr.msra.gmra.mrb[10].mxu1 %vm563_vm2, %v1190_v17 }
  0xf7   : > { %3085 = vmatmul.mubr.msk.f32.vlgmr.msra.gmra.mrb[10].mxu0 %vm563_vm2, %v4050_v50  ;;  %3025 = vmatprep.mubr.msk.f32.mxu1 %vm563_vm2, %v1192_v32  ;;  %v3283_v50 = vpack.c.bf16 %v494_v46, %v493_v30  ;;  %v518_v32 = vld [vmem:[#allocation2 + $0x228] sm:$0xff] }
  0xf8   : > { %3310 = vmatpush3.bf16.msra.mxu0 %v3307_v4  ;;  %3087 = vmatprep.mubr.msk.f32.mxu0 %vm563_vm2, %v4055_v55  ;;  %v1198_v55 = vsel %vm1185_vm5, %v1195_v34, %v1197_v45  ;;  %v1204_v4 = vsel %vm1185_vm5, %v1201_v57, %v1203_v63  ;;  %v1353_v34 = vrot.slane %v4084_v10, 7  ;;  %v447_v45 = vld [vmem:[%s4008_s11 + $0x80] sm:$0xff] }
  0xf9   : > { %3278 = vmatpush3.bf16.msra.mxu1 %v3275_v5  ;;  %3312 = vmatprep.subr.bf16.mxu0 %v3311_v36  ;;  %v1342_v5 = vrot.slane %v4031_v33, 7  ;;  %v1361_v46 = vrot.slane %v447_v45, 7 }
  0xfa   : > { %3026 = vmatmul.mubr.msk.f32.gmra.mrb[12].mxu1 %vm563_vm2, %v1194_v42  ;;  %3280 = vmatprep.subr.bf16.mxu1 %v3279_v38  ;;  %v1354_v10 = vsel %vm1341_vm6, %v1351_v21, %v1353_v34  ;;  %v1359_v42 = vrot.slane %v4190_v52, 7 }
  0xfb   : > { %3088 = vmatmul.mubr.msk.f32.gmra.mrb[12].mxu0 %vm563_vm2, %v4073_v2  ;;  %3028 = vmatprep.mubr.msk.f32.mxu1 %vm563_vm2, %v1196_v48  ;;  %v3287_v2 = vpack.c.bf16 %v496_v60, %v495_v59  ;;  %v1803_v48 = vrot.slane %v4043_v43, 2  ;;  %v2062_v59 = vld [vmem:[%s4670_s4 + $0x28] sm:$0xff] }
  0xfc   : > { %3314 = vmatpush3.bf16.msra.mxu0 %v3311_v36  ;;  %3090 = vmatprep.mubr.msk.f32.mxu0 %vm563_vm2, %v4079_v7  ;;  %v1202_v7 = vsel %vm1185_vm5, %v1199_v49, %v1201_v57  ;;  %v1355_v36 = vrot.slane %v4089_v14, 7  ;;  %v1804_v49 = vrot.slane %v4047_v47, 2  ;;  %v2057_v14 = vld [vmem:[%s4670_s4] sm:$0xff] }
  0xfd   : > { %3282 = vmatpush3.bf16.msra.mxu1 %v3279_v38  ;;  %3316 = vmatprep.subr.bf16.mxu0 %v3315_v51  ;;  %v3331_v38 = vpack.c.bf16 %v518_v32, %v517_v31  ;;  %v2061_v57 = vld [vmem:[%s4670_s4 + $0x20] sm:$0xff] }
  0xfe   : > { %3029 = vmatmul.mubr.msk.f32.gmra.mrb[14].mxu1 %vm563_vm2, %v1198_v55  ;;  %3284 = vmatprep.subr.bf16.mxu1 %v3283_v50  ;;  %v1356_v41 = vsel %vm1341_vm6, %v1353_v34, %v1355_v36  ;;  %v3346_v60 = vpack.c.bf16 %v2062_v59, %v2061_v57 }
  0xff   : > { %3091 = vmatmul.mubr.msk.f32.gmra.mrb[14].mxu0 %vm563_vm2, %v4097_v20  ;;  %3031 = vmatprep.mubr.msk.f32.mxu1 %vm563_vm2, %v1200_v61  ;;  %v1345_v20 = vrot.slane %v4043_v43, 7  ;;  %v2063_v61 = vld [vmem:[%s4670_s4 + $0x30] sm:$0xff] }
 0x100   : > { %3093 = vmatprep.mubr.msk.f32.mxu0 %vm563_vm2, %v4103_v27  ;;  %3318 = vmatpush3.bf16.msra.mxu0 %v3315_v51  ;;  %v1344_v27 = vsel %vm1341_vm6, %v1342_v5, %v1343_v6  ;;  %v1816_v51 = vrot.slane %v4190_v52, 2  ;;  %v2059_v52 = vld [vmem:[%s4670_s4 + $0x10] sm:$0xff] }
 0x101   : > { %3286 = vmatpush3.bf16.msra.mxu1 %v3283_v50  ;;  %3320 = vmatprep.subr.bf16.mxu0 %v3319_v0  ;;  %v1348_v17 = vsel %vm1341_vm6, %v1345_v20, %v1347_v9  ;;  %v448_v50 = vld [vmem:[%s4008_s11 + $0x88] sm:$0x7f]  ;;  %v3343_v55 = vpack.c.bf16 %v2060_v56, %v2059_v52  ;;  %s430_s11 = scalar_lea.vmem %s4675_s9, %s3412_s16 }
 0x102   : > { %3032 = vmatmul.mubr.msk.f32.gmra.mrb[16].mxu1 %vm563_vm2, %v1202_v7  ;;  %3288 = vmatprep.subr.bf16.mxu1 %v3287_v2  ;;  %v1820_v54 = vrot.slane %v448_v50, 2 }
 0x103   : > { %3094 = vmatmul.mubr.msk.f32.gmra.mrb[16].mxu0 %vm563_vm2, %v4117_v39  ;;  %3034 = vmatprep.mubr.msk.f32.mxu1 %vm563_vm2, %v1204_v4  ;;  %v1346_v39 = vsel %vm1341_vm6, %v1343_v6, %v1345_v20 }
 0x104   : > { %3096 = vmatprep.mubr.msk.f32.mxu0 %vm563_vm2, %v4123_v44  ;;  %3322 = vmatpush3.bf16.msra.mxu0 %v3319_v0  ;;  %v1349_v44 = vrot.slane %v4060_v58, 7  ;;  %v1818_v58 = vrot.slane %v447_v45, 2 }
 0x105   : > { %3290 = vmatpush3.bf16.msra.mxu1 %v3287_v2  ;;  %3324 = vmatprep.subr.bf16.mxu0 %v3323_v8  ;;  %v3744_v2 = vmov 0.0  }
 0x106   : > { %3035 = vmatmul.mubr.msk.f32.gmra.mrb[18].mxu1 %vm563_vm2, %v1203_v63  ;;  %v1352_v62 = vsel %vm1341_vm6, %v1349_v44, %v1351_v21  ;;  %v2064_v63 = vld [vmem:[%s4670_s4 + $0x38] sm:$0xff] }
 0x107   : > { %3097 = vmatmul.mubr.msk.f32.gmra.mrb[18].mxu0 %vm563_vm2, %v4107_v29  ;;  %3053 = vmatprep.mubr.msk.f32.mxu1 %vm563_vm2, %v1344_v27  ;;  %v1350_v29 = vsel %vm1341_vm6, %v1347_v9, %v1349_v44  ;;  %v3349_v0 = vpack.c.bf16 %v2064_v63, %v2063_v61 }
 0x108   : > { %3115 = vmatprep.mubr.msk.f32.mxu0 %vm563_vm2, %v431_v12 }
 0x10a   : > { %3054 = vmatmul.mubr.msk.f32.vlgmr.msra.gmra.mrb[10].mxu1 %vm563_vm2, %v1346_v39 }
 0x10b   : > { %3116 = vmatmul.mubr.msk.f32.vlgmr.msra.gmra.mrb[10].mxu0 %vm563_vm2, %v4193_v53  ;;  %3056 = vmatprep.mubr.msk.f32.mxu1 %vm563_vm2, %v1348_v17  ;;  %v519_v53 = vld [vmem:[#allocation2 + $0x230] sm:$0xff] }
 0x10c   : > { %3326 = vmatpush3.bf16.msra.mxu0 %v3323_v8  ;;  %3118 = vmatprep.mubr.msk.f32.mxu0 %vm563_vm2, %v4019_v24  ;;  %v1357_v24 = vrot.slane %v4179_v37, 7  ;;  %v3335_v30 = vpack.c.bf16 %v520_v40, %v519_v53 }
 0x10d   : > { %3328 = vmatprep.subr.bf16.mxu0 %v3327_v22 }
 0x10e   : > { %3057 = vmatmul.mubr.msk.f32.gmra.mrb[12].mxu1 %vm563_vm2, %v1350_v29 }
 0x10f   : > { %3119 = vmatmul.mubr.msk.f32.gmra.mrb[12].mxu0 %vm563_vm2, %v4022_v25  ;;  %3059 = vmatprep.mubr.msk.f32.mxu1 %vm563_vm2, %v1352_v62  ;;  %v1358_v25 = vsel %vm1341_vm6, %v1355_v36, %v1357_v24 }
 0x110   : > { %3330 = vmatpush3.bf16.msra.mxu0 %v3327_v22  ;;  %3121 = vmatprep.mubr.msk.f32.mxu0 %vm563_vm2, %v4011_v18  ;;  %v1360_v18 = vsel %vm1341_vm6, %v1357_v24, %v1359_v42 }
 0x111   : > { %3332 = vmatprep.subr.bf16.mxu0 %v3331_v38 }
 0x112   : > { %3060 = vmatmul.mubr.msk.f32.gmra.mrb[14].mxu1 %vm563_vm2, %v1354_v10 }
 0x113   : > { %3122 = vmatmul.mubr.msk.f32.gmra.mrb[14].mxu0 %vm563_vm2, %v4014_v19  ;;  %3062 = vmatprep.mubr.msk.f32.mxu1 %vm563_vm2, %v1356_v41  ;;  %v1362_v19 = vsel %vm1341_vm6, %v1359_v42, %v1361_v46  ;;  %v2630_v46 = vld [vmem:[#allocation4] ss:$0 sm:$0xff] }
 0x114   : > { %3124 = vmatprep.mubr.msk.f32.mxu0 %vm563_vm2, %v4031_v33  ;;  %3334 = vmatpush3.bf16.msra.mxu0 %v3331_v38  ;;  %v1805_v33 = vsel %vm1802_vm4, %v1803_v48, %v1804_v49 }
 0x115   : > { %3336 = vmatprep.subr.bf16.mxu0 %v3335_v30 }
 0x116   : > { %3063 = vmatmul.mubr.msk.f32.gmra.mrb[16].mxu1 %vm563_vm2, %v1358_v25 }
 0x117   : > { %3125 = vmatmul.mubr.msk.f32.gmra.mrb[16].mxu0 %vm563_vm2, %v4036_v35  ;;  %3065 = vmatprep.mubr.msk.f32.mxu1 %vm563_vm2, %v1360_v18  ;;  %v1807_v35 = vsel %vm1802_vm4, %v1804_v49, %v1806_v11 }
 0x118   : > { %3127 = vmatprep.mubr.msk.f32.mxu0 %vm563_vm2, %v4043_v43  ;;  %3338 = vmatpush3.bf16.msra.mxu0 %v3335_v30  ;;  %v1814_v43 = vrot.slane %v4179_v37, 2  ;;  %v1821_v37 = vsel %vm1802_vm4, %v1818_v58, %v1820_v54 }
 0x11a   : > { %3066 = vmatmul.mubr.msk.f32.gmra.mrb[18].mxu1 %vm563_vm2, %v1362_v19  ;;  %v1817_v11 = vsel %vm1802_vm4, %v1814_v43, %v1816_v51  ;;  %v2631_v19 = vld [vmem:[#allocation6] ss:$0 sm:$0xff] }
 0x11b   : > { %3128 = vmatmul.mubr.msk.f32.gmra.mrb[18].mxu0 %vm563_vm2, %v4047_v47  ;;  %v1815_v47 = vsel %vm1802_vm4, %v1812_v15, %v1814_v43  ;;  %v2058_v15 = vld [vmem:[%s4670_s4 + $0x8] sm:$0xff]  ;;  %3177 = vmatprep.mubr.msk.f32.mxu1 %vm3743_vm7, %v3744_v2 }
 0x11c   : > { %3146 = vmatprep.mubr.msk.f32.mxu0 %vm563_vm2, %v1805_v33 }
 0x11f   : > { %3147 = vmatmul.mubr.msk.f32.vlgmr.msra.gmra.mrb[10].mxu0 %vm563_vm2, %v1807_v35  ;;  %v4369_v35 = vld [vmem:[#allocation4 + $0x1] ss:$0 sm:$0xff] }
 0x120   : > { %3149 = vmatprep.mubr.msk.f32.mxu0 %vm563_vm2, %v4164_v23  ;;  %v1819_v23 = vsel %vm1802_vm4, %v1816_v51, %v1818_v58 }
 0x123   : > { %3150 = vmatmul.mubr.msk.f32.gmra.mrb[12].mxu0 %vm563_vm2, %v4167_v26  ;;  %v3340_v26 = vpack.c.bf16 %v2058_v15, %v2057_v14 }
 0x124   : > { %3152 = vmatprep.mubr.msk.f32.mxu0 %vm563_vm2, %v4172_v28  ;;  %v3742_v28 = vmov 0.0|0.0  }
 0x125   : > { %3339 = vmatprep.subr.bf16.mxu1 %v3742_v28 }
 0x126   : > { %3341 = vmatpush3.bf16.msra.mxu1 %v3340_v26 }
 0x127   : > { %3153 = vmatmul.mubr.msk.f32.gmra.mrb[14].mxu0 %vm563_vm2, %v1815_v47  ;;  %3342 = vmatprep.subr.bf16.mxu1 %v3742_v28 }
 0x128   : > { %3155 = vmatprep.mubr.msk.f32.mxu0 %vm563_vm2, %v1817_v11 }
 0x12a   : > { %3344 = vmatpush3.bf16.msra.mxu1 %v3343_v55 }
 0x12b   : > { %3156 = vmatmul.mubr.msk.f32.gmra.mrb[16].mxu0 %vm563_vm2, %v1819_v23  ;;  %3345 = vmatprep.subr.bf16.mxu1 %v3742_v28 }
 0x12c   : > { %3158 = vmatprep.mubr.msk.f32.mxu0 %vm563_vm2, %v1821_v37 }
 0x12e   : > { %3347 = vmatpush3.bf16.msra.mxu1 %v3346_v60 }
 0x12f   : > { %3159 = vmatmul.mubr.msk.f32.gmra.mrb[18].mxu0 %vm563_vm2, %v1820_v54  ;;  %3348 = vmatprep.subr.bf16.mxu1 %v3742_v28  ;;  %v4377_v28 = vld [vmem:[#allocation6 + $0x1] ss:$0 sm:$0xff] }
 0x132   : > { %3350 = vmatpush3.bf16.msra.mxu1 %v3349_v0 }
 0x133   : > { %3180 = vmatprep.subr.mxu1 %v3744_v2 }
 0x1a1   : > { %v2900_v1 = vpop.f32.mrb[0].mxu1 }
 0x1a2   : > { %v650_v3 = vpop.f32.mrb[1].mxu1 }
 0x1a5   : > { %v2903_v7 = vpop.f32.mrb[2].mxu1 }
 0x1a6   : > { %v660_v4 = vpop.f32.mrb[3].mxu1 }
 0x1a9   : > { %v2906_v5 = vpop.f32.mrb[4].mxu1 }
 0x1aa   : > { %v670_v6 = vpop.f32.mrb[5].mxu1 }
 0x1ad   : > { %v2909_v8 = vpop.f32.mrb[6].mxu1 }
 0x1ae   : > { %v680_v20 = vpop.f32.mrb[7].mxu1 }
 0x1b1   : > { %v2912_v27 = vpop.f32.mrb[8].mxu1 }
 0x1b2   : > { %v690_v9 = vpop.f32.mrb[9].mxu1 }
 0x1b6   : > { %v2962_v12 = vpop.f32.mrb[0].mxu0 }
 0x1b7   : > { %v3351_v13 = vadd.f32 %v2962_v12, %v2900_v1  ;;  %v968_v16 = vpop.f32.mrb[1].mxu0 }
 0x1b8   : > { %v3352_v39 = vadd.f32 %v968_v16, %v650_v3 }
 0x1b9   : > { %v1034_v49 = vmul.f32 %v3351_v13, %v2630_v46 }
 0x1ba   : > { %v2965_v44 = vpop.f32.mrb[2].mxu0  ;;  %v1033_v33 = vmul.f32 %v3352_v39, %v2630_v46 }
 0x1bb   : > { %v3353_v17 = vadd.f32 %v2965_v44, %v2903_v7  ;;  %v978_v21 = vpop.f32.mrb[3].mxu0  ;;  %v4371_v54 = vadd.f32 %v2631_v19, %v1034_v49 }
 0x1bc   : > { %v3354_v22 = vadd.f32 %v978_v21, %v660_v4  ;;  %v4375_v15 = vadd.f32 %v2631_v19, %v1033_v33  ;;  %v4415_v21 = vld [vmem:[#allocation6 + $0x2] ss:$0 sm:$0xff] }
 0x1bd   : > { %v1036_v43 = vmul.f32 %v3353_v17, %v2630_v46  ;;  %v1060_v0 = vmax.f32 %v4371_v54, 0.0 }
 0x1be   : > { %v2968_v31 = vpop.f32.mrb[4].mxu0  ;;  %v1035_v51 = vmul.f32 %v3354_v22, %v2630_v46  ;;  %v1059_v4 = vmax.f32 %v4375_v15, 0.0 }
 0x1bf   : > { %v3355_v32 = vadd.f32 %v2968_v31, %v2906_v5  ;;  %v988_v29 = vpop.f32.mrb[5].mxu0  ;;  %v4380_v56 = vadd.f32 %v2631_v19, %v1036_v43 }
 0x1c0   : > { %v3356_v34 = vadd.f32 %v988_v29, %v670_v6  ;;  %v4382_v55 = vadd.f32 %v2631_v19, %v1035_v51 }
 0x1c1   : > { %v1038_v50 = vmul.f32 %v3355_v32, %v2630_v46 }
 0x1c2   : > { %v2971_v62 = vpop.f32.mrb[6].mxu0  ;;  %v1037_v58 = vmul.f32 %v3356_v34, %v2630_v46 }
 0x1c3   : > { %v3357_v36 = vadd.f32 %v2971_v62, %v2909_v8  ;;  %v998_v38 = vpop.f32.mrb[7].mxu0  ;;  %v4384_v57 = vadd.f32 %v2631_v19, %v1038_v50 }
 0x1c4   : > { %v3358_v53 = vadd.f32 %v998_v38, %v680_v20  ;;  %v4386_v60 = vadd.f32 %v2631_v19, %v1037_v58  ;;  %v4405_v20 = vld [vmem:[#allocation4 + $0x2] ss:$0 sm:$0xff] }
 0x1c5   : > { %v1040_v23 = vmul.f32 %v3357_v36, %v2630_v46  ;;  %v1064_v12 = vmax.f32 %v4384_v57, 0.0 }
 0x1c6   : > { %v2974_v40 = vpop.f32.mrb[8].mxu0  ;;  %v1039_v26 = vmul.f32 %v3358_v53, %v2630_v46  ;;  %v1063_v16 = vmax.f32 %v4386_v60, 0.0 }
 0x1c7   : > { %v3359_v10 = vadd.f32 %v2974_v40, %v2912_v27  ;;  %v1008_v24 = vpop.f32.mrb[9].mxu0  ;;  %v4390_v1 = vadd.f32 %v2631_v19, %v1040_v23  ;;  %v1062_v27 = vmax.f32 %v4380_v56, 0.0 }
 0x1c8   : > { %v3360_v41 = vadd.f32 %v1008_v24, %v690_v9  ;;  %v4399_v5 = vadd.f32 %v2631_v19, %v1039_v26  ;;  %v1061_v9 = vmax.f32 %v4382_v55, 0.0 }
 0x1c9   : > { %v1042_v13 = vmul.f32 %v3359_v10, %v2630_v46  ;;  %v1066_v31 = vmax.f32 %v4390_v1, 0.0 }
 0x1ca   : > { %v1041_v39 = vmul.f32 %v3360_v41, %v2630_v46  ;;  %v1065_v36 = vmax.f32 %v4399_v5, 0.0 }
 0x1cb   : > { %v4427_v10 = vadd.f32 %v2631_v19, %v1042_v13 }
 0x1dd   : > { %v3055_v42 = vpop.f32.mrb[10].mxu1 }
 0x1de   : > { %v1449_v45 = vpop.f32.mrb[11].mxu1  ;;  %v1515_v37 = vmul.f32 %v3055_v42, %v4369_v35 }
 0x1df   : > { %v1514_v14 = vmul.f32 %v4369_v35, %v1449_v45  ;;  %v4434_v45 = vadd.f32 %v2631_v19, %v1041_v39 }
 0x1e0   : > { %v4393_v3 = vadd.f32 %v4377_v28, %v1515_v37 }
 0x1e1   : > { %v3058_v30 = vpop.f32.mrb[12].mxu1  ;;  %v4396_v7 = vadd.f32 %v4377_v28, %v1514_v14 }
 0x1e2   : > { %v1459_v25 = vpop.f32.mrb[13].mxu1  ;;  %v1517_v52 = vmul.f32 %v3058_v30, %v4369_v35  ;;  %v1541_v32 = vmax.f32 %v4393_v3, 0.0 }
 0x1e3   : > { %v1516_v61 = vmul.f32 %v4369_v35, %v1459_v25  ;;  %v1540_v29 = vmax.f32 %v4396_v7, 0.0 }
 0x1e4   : > { %v4402_v6 = vadd.f32 %v4377_v28, %v1517_v52 }
 0x1e5   : > { %v3061_v18 = vpop.f32.mrb[14].mxu1  ;;  %v4412_v44 = vadd.f32 %v4377_v28, %v1516_v61  ;;  %v2009_v49 = vadd.f32 %v1540_v29, %v1059_v4 }
 0x1e6   : > { %v1469_v48 = vpop.f32.mrb[15].mxu1  ;;  %v1519_v8 = vmul.f32 %v3061_v18, %v4369_v35  ;;  %v4696_v38 = vmax.f32 %v4402_v6, 0.0 }
 0x1e7   : > { %v1518_v17 = vmul.f32 %v4369_v35, %v1469_v48  ;;  %v1542_v30 = vmax.f32 %v4412_v44, 0.0  ;;  %v2010_v48 = vadd.f32 %v1541_v32, %v1060_v0 }
 0x1e8   : > { %v4424_v53 = vadd.f32 %v4377_v28, %v1519_v8  ;;  %v2012_v51 = vadd.f32 %v4696_v38, %v1062_v27 }
 0x1e9   : > { %v3064_v47 = vpop.f32.mrb[16].mxu1  ;;  %v4438_v25 = vadd.f32 %v4377_v28, %v1518_v17  ;;  %v2011_v26 = vadd.f32 %v1542_v30, %v1061_v9 }
 0x1ea   : > { %v1479_v11 = vpop.f32.mrb[17].mxu1  ;;  %v1521_v24 = vmul.f32 %v3064_v47, %v4369_v35  ;;  %v4690_v50 = vmax.f32 %v4424_v53, 0.0 }
 0x1eb   : > { %v1520_v41 = vmul.f32 %v4369_v35, %v1479_v11  ;;  %v4695_v52 = vmax.f32 %v4438_v25, 0.0  ;;  %v4714_v1 = vmax.f32 %v4438_v25, 0.0 }
 0x1ec   : > { %v4461_v11 = vadd.f32 %v4377_v28, %v1521_v24 }
 0x1ed   : > { %v3067_v59 = vpop.f32.mrb[18].mxu1  ;;  %v4464_v23 = vadd.f32 %v4377_v28, %v1520_v41 }
 0x1ee   : > { %v1489_v63 = vpop.f32.mrb[19].mxu1  ;;  %v1523_v39 = vmul.f32 %v3067_v59, %v4369_v35  ;;  %v2014_v59 = vadd.f32 %v4690_v50, %v1064_v12  ;;  %v4717_v7 = vmax.f32 %v4461_v11, 0.0 }
 0x1ef   : > { %v1522_v17 = vmul.f32 %v4369_v35, %v1489_v63  ;;  %v4686_v35 = vmax.f32 %v4461_v11, 0.0  ;;  %v4687_v63 = vmax.f32 %v4464_v23, 0.0 }
 0x1f2   : > { %v3148_v22 = vpop.f32.mrb[10].mxu0 }
 0x1f3   : > { %v1974_v34 = vmul.f32 %v3148_v22, %v4405_v20  ;;  %v1908_v62 = vpop.f32.mrb[11].mxu0 }
 0x1f4   : > { %v1973_v40 = vmul.f32 %v4405_v20, %v1908_v62 }
 0x1f5   : > { %v4432_v42 = vadd.f32 %v4415_v21, %v1974_v34 }
 0x1f6   : > { %v4441_v46 = vadd.f32 %v4415_v21, %v1973_v40  ;;  %v3151_v18 = vpop.f32.mrb[12].mxu0 }
 0x1f7   : > { %v4682_v19 = vmax.f32 %v4432_v42, 0.0  ;;  %v1976_v33 = vmul.f32 %v3151_v18, %v4405_v20  ;;  %v1918_v43 = vpop.f32.mrb[13].mxu0 }
 0x1f8   : > { %v4683_v47 = vmax.f32 %v4441_v46, 0.0  ;;  %v1975_v58 = vmul.f32 %v4405_v20, %v1918_v43  ;;  %v4720_v11 = vmax.f32 %v4441_v46, 0.0 }
 0x1f9   : > { %v2020_v37 = vadd.f32 %v2010_v48, %v4682_v19  ;;  %v4469_v14 = vadd.f32 %v4415_v21, %v1976_v33 }
 0x1fa   : > { %v2019_v61 = vadd.f32 %v2009_v49, %v4683_v47  ;;  %v4479_v8 = vadd.f32 %v4415_v21, %v1975_v58  ;;  %v3154_v13 = vpop.f32.mrb[14].mxu0  ;;  %v2013_v49 = vadd.f32 %v4695_v52, %v1063_v16  ;;  %v4515_v47 = vadd.f32 %v4377_v28, %v1522_v17 }
 0x1fb   : > { %v4684_v22 = vmax.f32 %v4469_v14, 0.0  ;;  %v1978_v34 = vmul.f32 %v3154_v13, %v4405_v20  ;;  %v1928_v62 = vpop.f32.mrb[15].mxu0  ;;  %v2030_v40 = vsel %vm563_vm2, %v2020_v37, 0.0 }
 0x1fc   : > { %v2029_v24 = vsel %vm563_vm2, %v2019_v61, 0.0  ;;  %v4685_v41 = vmax.f32 %v4479_v8, 0.0  ;;  %v1977_v18 = vmul.f32 %v4405_v20, %v1928_v62  ;;  %v4510_v61 = vadd.f32 %v4377_v28, %v1523_v39 }
 0x1fd   : > { %v4496_v48 = vadd.f32 %v4415_v21, %v1978_v34  ;;  %v2022_v33 = vadd.f32 %v2012_v51, %v4684_v22  ;;  %v2031_v13 = vadd.f32 %v2030_v40, %v2029_v24  ;;  %v2016_v39 = vadd.f32 %v4686_v35, %v1066_v31 }
 0x1fe   : > { %v2021_v43 = vadd.f32 %v2011_v26, %v4685_v41  ;;  %v4507_v58 = vadd.f32 %v4415_v21, %v1977_v18  ;;  %v3157_v37 = vpop.f32.mrb[16].mxu0  ;;  %v2015_v40 = vadd.f32 %v4687_v63, %v1065_v36  ;;  %v4693_v41 = vmax.f32 %v4510_v61, 0.0 }
 0x1ff   : > { %v4688_v34 = vmax.f32 %v4496_v48, 0.0  ;;  %v1980_v62 = vmul.f32 %v3157_v37, %v4405_v20  ;;  %v1938_v19 = vpop.f32.mrb[17].mxu0  ;;  %v2034_v17 = vsel %vm563_vm2, %v2022_v33, 0.0  ;;  %v4694_v33 = vmax.f32 %v4515_v47, 0.0 }
 0x200   : > { %v2032_v51 = vsel %vm563_vm2, %v2021_v43, 0.0  ;;  %v4689_v26 = vmax.f32 %v4507_v58, 0.0  ;;  %v1979_v18 = vmul.f32 %v4405_v20, %v1938_v19  ;;  %v4718_v3 = vmax.f32 %v4515_v47, 0.0 }
 0x201   : > { %v2033_v24 = vadd.f32 %v2032_v51, %v2031_v13  ;;  %v4529_v28 = vadd.f32 %v4415_v21, %v1980_v62  ;;  %v2024_v43 = vadd.f32 %v2014_v59, %v4688_v34  ;;  %v1067_v34 = vmax.f32 %v4434_v45, 0.0 }
 0x202   : > { %v2023_v19 = vadd.f32 %v2013_v49, %v4689_v26  ;;  %v4537_v37 = vadd.f32 %v4415_v21, %v1979_v18  ;;  %v3160_v22 = vpop.f32.mrb[18].mxu0  ;;  %v1068_v18 = vmax.f32 %v4427_v10, 0.0  ;;  %v4719_v44 = vmax.f32 %v4510_v61, 0.0 }
 0x203   : > { %v2035_v35 = vadd.f32 %v2034_v17, %v2033_v24  ;;  %v4691_v13 = vmax.f32 %v4529_v28, 0.0  ;;  %v1982_v62 = vmul.f32 %v3160_v22, %v4405_v20  ;;  %v1948_v51 = vpop.f32.mrb[19].mxu0  ;;  %v2038_v17 = vsel %vm563_vm2, %v2024_v43, 0.0 }
 0x204   : > { %v2036_v63 = vsel %vm563_vm2, %v2023_v19, 0.0  ;;  %v4692_v59 = vmax.f32 %v4537_v37, 0.0  ;;  %v1981_v49 = vmul.f32 %v4405_v20, %v1948_v51  ;;  %v4721_v47 = vmax.f32 %v4432_v42, 0.0 }
 0x205   : > { %v2037_v26 = vadd.f32 %v2036_v63, %v2035_v35  ;;  %v4549_v24 = vadd.f32 %v4415_v21, %v1982_v62  ;;  %v2026_v22 = vadd.f32 %v2016_v39, %v4691_v13  ;;  %v2018_v35 = vadd.f32 %v4693_v41, %v1068_v18 }
 0x206   : > { %v2025_v19 = vadd.f32 %v2015_v40, %v4692_v59  ;;  %v4557_v50 = vadd.f32 %v4415_v21, %v1981_v49  ;;  %v2017_v63 = vadd.f32 %v4694_v33, %v1067_v34  ;;  %v4722_v61 = vmax.f32 %v4479_v8, 0.0 }
 0x207   : > { %v2039_v20 = vadd.f32 %v2038_v17, %v2037_v26  ;;  %v4697_v51 = vmax.f32 %v4549_v24, 0.0  ;;  %v2042_v21 = vsel %vm563_vm2, %v2026_v22, 0.0  ;;  %v4726_v46 = vmax.f32 %v4537_v37, 0.0 }
 0x208   : > { %v2040_v39 = vsel %vm563_vm2, %v2025_v19, 0.0  ;;  %v4698_v40 = vmax.f32 %v4557_v50, 0.0 }
 0x209   : > { %v2041_v43 = vadd.f32 %v2040_v39, %v2039_v20  ;;  %v2028_v26 = vadd.f32 %v2018_v35, %v4697_v51  ;;  %v527_v35 = vld [vmem:[#allocation10] sm:$0x3] }
 0x20a   : > { %v2027_v62 = vadd.f32 %v2017_v63, %v4698_v40  ;;  %v2138_v63 = vld [vmem:[#allocation7] sm:$0x1] }
 0x20b   : > { %v2043_v49 = vadd.f32 %v2042_v21, %v2041_v43  ;;  %v2047_v59 = vsel %vm2046_vm8, %v2028_v26, 0.0 }
 0x20c   : > { %v2044_v17 = vsel %vm563_vm2, %v2027_v62, 0.0 }
 0x20d   : > { %v2045_v13 = vadd.f32 %v2044_v17, %v2043_v49  ;;  %v530_v49 = vld [vmem:[#allocation12] sm:$0x1]  ;;  %v531_v17 = vld [vmem:[#allocation12 + $0x1] sm:$0x1] }
 0x20f   : > { %v2048_v41 = vadd.f32 %v2047_v59, %v2045_v13  ;;  %v2140_v13 = vld [vmem:[#allocation9] sm:$0x1] }
 0x211   : > { %v2049_v19 = vrot.slane %v2048_v41, 4 }
 0x213   : > { %v2050_v33 = vadd.f32 %v2049_v19, %v2048_v41 }
 0x215   : > { %v2051_v52 = vrot.slane %v2050_v33, 2 }
 0x217   : > { %v2052_v20 = vadd.f32 %v2051_v52, %v2050_v33  ;;  %v528_v33 = vld [vmem:[#allocation10 + $0x2] sm:$0x3] }
 0x219   : > { %v2053_v39 = vrot.slane %v2052_v20, 1 }
 0x21b   : > { %v2054_v22 = vadd.f32 %v2053_v39, %v2052_v20 }
 0x21d   : > { %v2056_v38 = vmul.f32 0.012987013, %v2054_v22 }
 0x21f   : > { %3178 = vmatmul.mubr.msk.f32.vlgmr.msra.gmra.mrb[20].mxu1 %vm563_vm2, %v2056_v38  ;;  %v529_v38 = vld [vmem:[#allocation10 + $0x4] sm:$0x3] }
 0x220   : > { %3182 = vmatprep.mubr.msk.f32.mxu1 %vm3743_vm7, %v3744_v2  ;;  %3181 = vmatpush3.msk.msra.mxu1 %vm701_vm1, %v527_v35  ;;  %v532_v35 = vld [vmem:[#allocation12 + $0x2] sm:$0x1] }
 0x221   : > { %3185 = vmatprep.subr.mxu1 %v3744_v2 }
 0x2f2   : > { %v2134_v43 = vpop.f32.mrb[20].mxu1 }
 0x2f3   : > { %v2139_v59 = vmul.f32 %v2138_v63, %v2134_v43  ;;  %v3179_v41 = vpop.f32.mrb[21].mxu1 }
 0x2f5   : > { %v2141_v21 = vadd.f32 %v2140_v13, %v2139_v59 }
 0x2f7   : > { %v2142_v52 = vmax.f32 %v2141_v21, 0.0 }
 0x2f9   : > { %3183 = vmatmul.mubr.msk.f32.vlgmr.msra.gmra.mrb[22].mxu1 %vm2143_vm9, %v2142_v52 }
 0x2fa   : > { %3186 = vmatpush3.msk.msra.mxu1 %vm701_vm1, %v528_v33  ;;  %3187 = vmatprep.mubr.msk.f32.mxu1 %vm3743_vm7, %v3744_v2 }
 0x2fb   : > { %3190 = vmatprep.subr.mxu1 %v3744_v2 }
 0x2fd   : > { %3188 = vmatmul.mubr.msk.f32.vlgmr.msra.gmra.mrb[24].mxu1 %vm2143_vm9, %v2142_v52 }
 0x2fe   : > { %3191 = vmatpush3.msk.msra.mxu1 %vm701_vm1, %v529_v38  ;;  %3192 = vmatprep.mubr.msk.f32.mxu1 %vm3743_vm7, %v3744_v2 }
 0x301   : > { %3193 = vmatmul.mubr.msk.f32.vlgmr.msra.gmra.mrb[26].mxu1 %vm2143_vm9, %v2142_v52 }
 0x3cc   : > { %v2216_v26 = vpop.f32.mrb[22].mxu1 }
 0x3cd   : > { %v3184_v62 = vpop.f32.mrb[23].mxu1  ;;  %v2217_v20 = vadd.f32 %v2216_v26, %v530_v49 }
 0x3d0   : > { %v2289_v19 = vpop.f32.mrb[24].mxu1 }
 0x3d1   : > { %v2290_v39 = vadd.f32 %v2289_v19, %v531_v17  ;;  %v3189_v22 = vpop.f32.mrb[25].mxu1  ;;  %v2381_v19 = vlaneseq }
 0x3d3   : > { %v2366_v63 = vmax.f32 %v2217_v20, %v2290_v39  ;;  %v2382_v22 = vshrl.u32 %v2381_v19, 7 }
 0x3d4   : > { %v2362_v43 = vpop.f32.mrb[26].mxu1 }
 0x3d5   : > { %v2363_v13 = vadd.f32 %v2362_v43, %v532_v35  ;;  %v3194_v59 = vpop.f32.mrb[27].mxu1  ;;  %v2383_v35 = vsub.s32 0, %v2382_v22  ;;  %v4724_v22 = vmax.f32 %v4507_v58, 0.0 }
 0x3d7   : > { %v2367_v41 = vmax.f32 %v2366_v63, %v2363_v13 }
 0x3d9   : > { %v2368_v21 = vsub.f32 %v2217_v20, %v2367_v41  ;;  %v2371_v33 = vsub.f32 %v2290_v39, %v2367_v41  ;;  %v2374_v38 = vsub.f32 %v2363_v13, %v2367_v41 }
 0x3db   : > { %v2369_v51 = vmul.f32 1.442695, %v2368_v21  ;;  %v2372_v2 = vmul.f32 1.442695, %v2371_v33  ;;  %v2375_v52 = vmul.f32 1.442695, %v2374_v38 }
 0x3dd   : > { %3501 = vpow2.f32 %v2369_v51 }
 0x3de   : > { %3503 = vpow2.f32 %v2372_v2 }
 0x3df   : > { %3505 = vpow2.f32 %v2375_v52 }
 0x3e7   : > { %v3502_v62 = vpop.eup %3501 }
 0x3e8   : > { %v3504_v40 = vpop.eup %3503 }
 0x3e9   : > { %v2377_v26 = vadd.f32 %v3504_v40, %v3502_v62  ;;  %v3506_v49 = vpop.eup %3505 }
 0x3eb   : > { %v2378_v17 = vadd.f32 %v3506_v49, %v2377_v26 }
 0x3ed   : > { %3507 = vrcp.f32 %v2378_v17  ;;  %v4723_v17 = vmax.f32 %v4469_v14, 0.0 }
 0x3f7   : > { %v3508_v43 = vpop.eup %3507 }
 0x3f8   : > { %v2380_v63 = vmul.f32 %v3508_v43, %v3502_v62  ;;  %v2395_v20 = vmul.f32 %v3508_v43, %v3504_v40  ;;  %v2420_v39 = vmul.f32 %v3508_v43, %v3506_v49  ;;  %v4725_v43 = vmax.f32 %v4496_v48, 0.0 }
 0x3fa   : > { %v2384_v13 = vrot.slane %v2380_v63, %v2383_v35  ;;  %v2399_v59 = vrot.slane %v2395_v20, %v2383_v35  ;;  %v2424_v41 = vrot.slane %v2420_v39, %v2383_v35  ;;  %v4727_v20 = vmax.f32 %v4529_v28, 0.0 }
 0x3fb   : > { %v4728_v39 = vmax.f32 %v4557_v50, 0.0 }
 0x3fc   : > { %v2385_v51 = vmul.f32 %v2384_v13, %v1059_v4  ;;  %v2386_v21 = vmul.f32 %v2384_v13, %v1060_v0  ;;  %v2387_v33 = vmul.f32 %v2384_v13, %v1061_v9  ;;  %v2388_v38 = vmul.f32 %v2384_v13, %v1062_v27 }
 0x3fd   : > { %v2389_v2 = vmul.f32 %v2384_v13, %v1063_v16  ;;  %v2390_v40 = vmul.f32 %v2384_v13, %v1064_v12  ;;  %v2391_v15 = vmul.f32 %v2384_v13, %v1065_v36  ;;  %v2392_v54 = vmul.f32 %v2384_v13, %v1066_v31 }
 0x3fe   : > { %v2393_v55 = vmul.f32 %v2384_v13, %v1067_v34  ;;  %v2394_v56 = vmul.f32 %v2384_v13, %v1068_v18  ;;  %v2400_v60 = vmul.f32 %v2399_v59, %v1540_v29  ;;  %v2401_v57 = vmul.f32 %v2399_v59, %v1541_v32 }
 0x3ff   : > { %v2402_v0 = vmul.f32 %v2399_v59, %v1542_v30  ;;  %v4713_v4 = vmax.f32 %v4402_v6, 0.0  ;;  %v2404_v27 = vmul.f32 %v2399_v59, %v4714_v1  ;;  %v4715_v9 = vmax.f32 %v4424_v53, 0.0 }
 0x400   : > { %v4716_v16 = vmax.f32 %v4464_v23, 0.0  ;;  %v2407_v29 = vmul.f32 %v2399_v59, %v4717_v7  ;;  %v2408_v32 = vmul.f32 %v2399_v59, %v4718_v3  ;;  %v2409_v36 = vmul.f32 %v2399_v59, %v4719_v44 }
 0x401   : > { %v2403_v5 = vmul.f32 %v2399_v59, %v4713_v4  ;;  %v2405_v12 = vmul.f32 %v2399_v59, %v4715_v9  ;;  %v2410_v6 = vadd.f32 %v2400_v60, %v2385_v51  ;;  %v2411_v10 = vadd.f32 %v2401_v57, %v2386_v21 }
 0x402   : > { %v2406_v31 = vmul.f32 %v2399_v59, %v4716_v16  ;;  %v2412_v45 = vadd.f32 %v2402_v0, %v2387_v33  ;;  %v2414_v25 = vadd.f32 %v2404_v27, %v2389_v2  ;;  %v2417_v18 = vadd.f32 %v2407_v29, %v2392_v54 }
 0x403   : > { %v2413_v30 = vadd.f32 %v2403_v5, %v2388_v38  ;;  %v2415_v53 = vadd.f32 %v2405_v12, %v2390_v40  ;;  %v2418_v23 = vadd.f32 %v2408_v32, %v2393_v55  ;;  %v2419_v52 = vadd.f32 %v2409_v36, %v2394_v56 }
 0x404   : > { %v2416_v34 = vadd.f32 %v2406_v31, %v2391_v15  ;;  %v2425_v62 = vmul.f32 %v2424_v41, %v4720_v11  ;;  %v2426_v26 = vmul.f32 %v2424_v41, %v4721_v47  ;;  %v2427_v49 = vmul.f32 %v2424_v41, %v4722_v61 }
 0x405   : > { %v2428_v19 = vmul.f32 %v2424_v41, %v4723_v17  ;;  %v2429_v35 = vmul.f32 %v2424_v41, %v4724_v22  ;;  %v2430_v63 = vmul.f32 %v2424_v41, %v4725_v43  ;;  %v2431_v42 = vmul.f32 %v2424_v41, %v4726_v46 }
 0x406   : > { %v2432_v8 = vmul.f32 %v2424_v41, %v4727_v20  ;;  %v2433_v14 = vmul.f32 %v2424_v41, %v4728_v39  ;;  %v4729_v13 = vmax.f32 %v4549_v24, 0.0  ;;  %v2435_v59 = vadd.f32 %v2425_v62, %v2410_v6 }
 0x407   : > { %v2436_v51 = vadd.f32 %v2426_v26, %v2411_v10  ;;  %v2437_v48 = vadd.f32 %v2427_v49, %v2412_v45  ;;  %v2438_v21 = vadd.f32 %v2428_v19, %v2413_v30  ;;  %v2439_v33 = vadd.f32 %v2429_v35, %v2414_v25 }
 0x408   : > { %v2434_v58 = vmul.f32 %v2424_v41, %v4729_v13  ;;  %v2440_v38 = vadd.f32 %v2430_v63, %v2415_v53  ;;  %v2441_v2 = vadd.f32 %v2431_v42, %v2416_v34  ;;  %v2442_v40 = vadd.f32 %v2432_v8, %v2417_v18  ;;  %2445 = vst.msk [vmem:[%s430_s11] sm:$0xff] %vm563_vm2, %v2435_v59 }
 0x409   : > { %v2443_v15 = vadd.f32 %v2433_v14, %v2418_v23  ;;  %2446 = vst.msk [vmem:[%s430_s11 + $0x8] sm:$0xff] %vm563_vm2, %v2436_v51  ;;  %2447 = vst.msk [vmem:[%s430_s11 + $0x10] sm:$0xff] %vm563_vm2, %v2437_v48 }
 0x40a   : > { %v2444_v37 = vadd.f32 %v2434_v58, %v2419_v52  ;;  %2448 = vst.msk [vmem:[%s430_s11 + $0x18] sm:$0xff] %vm563_vm2, %v2438_v21  ;;  %2449 = vst.msk [vmem:[%s430_s11 + $0x20] sm:$0xff] %vm563_vm2, %v2439_v33 }
 0x40b   : > { %2450 = vst.msk [vmem:[%s430_s11 + $0x28] sm:$0xff] %vm563_vm2, %v2440_v38  ;;  %2451 = vst.msk [vmem:[%s430_s11 + $0x30] sm:$0xff] %vm563_vm2, %v2441_v2 }
 0x40c   : > { %2452 = vst.msk [vmem:[%s430_s11 + $0x38] sm:$0xff] %vm563_vm2, %v2442_v40  ;;  %2453 = vst.msk [vmem:[%s430_s11 + $0x40] sm:$0xff] %vm563_vm2, %v2443_v15 }
 0x40d   : > { %2454 = vst.msk [vmem:[%s430_s11 + $0x48] sm:$0x1f] %vm2046_vm8, %v2444_v37 }
 0x40e PF: > { %s23_s30 = sadd.s32 1, %s3727_s30  }
 0x40f   : > { %p20_p9 = scmp.ge.s32.totalorder %s23_s30, 4  }
 0x411   :  { %22 = sbr.rel (!%p20_p9) target bundleno = 4 (0x4), region = 115 }
 0x418   :  { %2476 = vsyncpa [#allocation3], 1 }
 0x419   :  { %2478 = vsyncpa [#allocation3 + $0x1], 1 }
 0x41a   :  { %2479 = vsyncpa [#allocation5], 1 }
 0x41b   :  { %2480 = vsyncpa [#allocation8], 1 }
 0x41c   :  { %2481 = vsyncpa [#allocation11], 1 }

// kernel: sknet_forward.6
= control target key start
LH: loop header
LB: loop body
LE: loop exit
PB: predicated region body
PF: predicated region fallthrough
CT: control target
= control target key end

     0   :  { %14 = vsyncpa [#allocation3], 0  ;;  %s5244_s0 = inlined_call_operand.vmem [shape: f32[2,169,64], index: 0, kind: input, shape index: {}]   ;;  %s5245_s1 = inlined_call_operand.vmem [shape: f32[3,3,64,64], index: 1, kind: input, shape index: {}]   ;;  %s5246_s2 = inlined_call_operand.hbm [shape: f32[3,1,64], index: 2, kind: input, shape index: {}]   ;;  %s5247_s3 = inlined_call_operand.hbm [shape: f32[3,1,64], index: 3, kind: input, shape index: {}]   ;;  %s5248_s4 = inlined_call_operand.vmem [shape: f32[64,2], index: 4, kind: input, shape index: {}]   ;;  %s5249_s5 = inlined_call_operand.hbm [shape: f32[1,2], index: 5, kind: input, shape index: {}]   ;;  %s5250_s6 = inlined_call_operand.hbm [shape: f32[1,2], index: 6, kind: input, shape index: {}]   ;;  %s5251_s7 = inlined_call_operand.hbm [shape: f32[3,2,64], index: 7, kind: input, shape index: {}]   ;;  %s5252_s8 = inlined_call_operand.hbm [shape: f32[3,1,64], index: 8, kind: input, shape index: {}]   ;;  %s5253_s9 = inlined_call_operand.vmem [shape: f32[2,91,64], index: 9, kind: output, shape index: {}]  }
   0x1   :  { %15 = vsyncpa [#allocation5], 0 }
   0x2   :  { %16 = vsyncpa [#allocation8], 0 }
   0x3   :  { %17 = vsyncpa [#allocation11], 0  ;;  %s3994_s30 = smov 0  }
   0x4 LB: > { %s4000_s10 = sadd.s32 4294967295, %s3929_s30   ;;  %p2750_p0 = scmp.ge.s32.totalorder %s3929_s30, 1  ;;  %s3929_s30 = sphi %s3994_s30, %s23_s30  }
   0x5   : > { %p248_p1 = scmp.lt.s32.totalorder %s3929_s30, 3  ;;  %p5254_p2 = scmp.eq.s32.totalorder %s4000_s10, 0 }
   0x6   : > { %s3931_s12 = smov [#allocation4]   ;;  %s3932_s14 = smov [#allocation7]  }
   0x7   : > { %p4005_p3 = pnand %p2750_p0, %p248_p1  ;;  %s276_s13 = sshll.u32 %s3931_s12, 4  ;;  %s4009_s13 = int_to_ptr.vmem [resolvable:$true] %s276_s13 }
   0x8   : > { %s304_s15 = sshll.u32 %s3932_s14, 4  ;;  %s3933_s17 = smov [#allocation2]   ;;  %s4013_s15 = int_to_ptr.vmem [resolvable:$true] %s304_s15 }
   0x9   : > { %s5285_s11 = scalar_select %p4005_p3, 1, 0 }
   0xa   : > { %p3679_p4 = pneg %p4005_p3  ;;  %s263_s18 = sshll.u32 %s3933_s17, 4  ;;  %s4021_s18 = int_to_ptr.vmem [resolvable:$true] %s263_s18 }
   0xb   : > { %s3934_s19 = smov [#allocation6]   ;;  %s3739_s23 = scalar_lea.hbm %s5247_s3, 48 }
   0xc   : > { %p4017_p5 = pnand %p5254_p2, %p3679_p4  ;;  %s4023_s20 = sshll.u32 %s3934_s19, 4  ;;  %s294_s20 = int_to_ptr.vmem [resolvable:$true] %s4023_s20 }
   0xd   : > { %p3740_p6 = scmp.ne.s32.totalorder %s5247_s3, %s3739_s23  ;;  %p3746_p10 = scmp.lt.u32.totalorder %s3739_s23, %s5247_s3 }
   0xe   : > { %p4033_p7 = pneg %p4017_p5 }
  0x10   : > { %p3742_p8 = pnand %p4033_p7, %p3740_p6 }
  0x12   : > { %p3743_p9 = pneg %p3742_p8 }
  0x14   : > { %p3748_p11 = pnand %p3746_p10, %p3743_p9 }
  0x16   : > { %3751 = shalt.err (!%p3748_p11)
}
  0x17   : > { %s3752_s29 = scalar_lea.vmem %s4009_s13, 48  ;;  %s3759_s12 = scalar_lea.vmem %s4009_s13, 64 }
  0x18   : > { %p3753_p12 = scmp.ne.s32.totalorder %s4009_s13, %s3752_s29  ;;  %p3760_p1 = scmp.lt.s32.totalorder %s4009_s13, %s4009_s13 }
  0x19   : > { %p3761_p4 = scmp.lt.s32.totalorder %s3759_s12, %s3752_s29 }
  0x1a   : > { %p3755_p13 = pnand %p3753_p12, %p4033_p7 }
  0x1b   : > { %p3762_p6 = por %p3761_p4, %p3760_p1 }
  0x1c   : > { %p3756_p0 = pneg %p3755_p13 }
  0x1e   : > { %p3763_p8 = pnand %p3762_p6, %p3756_p0 }
  0x20   : > { %3766 = shalt.err (!%p3763_p8)
}
  0x21   : > { %s3935_s14 = smov 16   ;;  %s3936_s17 = smov 1  }
  0x22   : > { %3685 = dma.hbm_to_vmem [thread:$0]  (!%p4017_p5), %s5247_s3, 48, %s4009_s13, [#allocation5], %s3935_s14, %s3935_s14, %s3936_s17  }
  0x23   : > { %s3767_s24 = scalar_lea.hbm %s5250_s6, 16 }
  0x24   : > { %p3768_p9 = scmp.ne.s32.totalorder %s5250_s6, %s3767_s24  ;;  %p3774_p12 = scmp.lt.u32.totalorder %s3767_s24, %s5250_s6 }
  0x26   : > { %p3770_p10 = pnand %p3768_p9, %p4033_p7 }
  0x28   : > { %p3771_p11 = pneg %p3770_p10 }
  0x2a   : > { %p3776_p13 = pnand %p3774_p12, %p3771_p11 }
  0x2c   : > { %3779 = shalt.err (!%p3776_p13)
}
  0x2d   : > { %s3780_s13 = scalar_lea.vmem %s4013_s15, 16  ;;  %s3787_s12 = scalar_lea.vmem %s4013_s15, 32 }
  0x2e   : > { %p3781_p0 = scmp.ne.s32.totalorder %s4013_s15, %s3780_s13  ;;  %p3788_p6 = scmp.lt.s32.totalorder %s4013_s15, %s4013_s15 }
  0x2f   : > { %p3789_p8 = scmp.lt.s32.totalorder %s3787_s12, %s3780_s13 }
  0x30   : > { %p3783_p1 = pnand %p3781_p0, %p4033_p7 }
  0x31   : > { %p3790_p9 = por %p3789_p8, %p3788_p6 }
  0x32   : > { %p3784_p4 = pneg %p3783_p1 }
  0x34   : > { %p3791_p10 = pnand %p3790_p9, %p3784_p4 }
  0x36   : > { %3794 = shalt.err (!%p3791_p10)
}
  0x37   : > { %3691 = dma.hbm_to_vmem [thread:$0]  (!%p4017_p5), %s5250_s6, 16, %s4013_s15, [#allocation8]  }
  0x38   : > { %s3795_s24 = scalar_lea.hbm %s5246_s2, 48 }
  0x39   : > { %p3796_p11 = scmp.ne.s32.totalorder %s5246_s2, %s3795_s24  ;;  %p3802_p0 = scmp.lt.u32.totalorder %s3795_s24, %s5246_s2 }
  0x3b   : > { %p3798_p12 = pnand %p3796_p11, %p4033_p7 }
  0x3d   : > { %p3799_p13 = pneg %p3798_p12 }
  0x3f   : > { %p3804_p1 = pnand %p3802_p0, %p3799_p13 }
  0x41   : > { %3807 = shalt.err (!%p3804_p1)
}
  0x42   : > { %s3808_s15 = scalar_lea.vmem %s4021_s18, 48  ;;  %s3815_s13 = scalar_lea.vmem %s4021_s18, 64 }
  0x43   : > { %p3809_p4 = scmp.ne.s32.totalorder %s4021_s18, %s3808_s15  ;;  %p3816_p9 = scmp.lt.s32.totalorder %s4021_s18, %s4021_s18 }
  0x44   : > { %p3817_p10 = scmp.lt.s32.totalorder %s3815_s13, %s3808_s15 }
  0x45   : > { %p3811_p6 = pnand %p3809_p4, %p4033_p7 }
  0x46   : > { %p3818_p11 = por %p3817_p10, %p3816_p9 }
  0x47   : > { %p3812_p8 = pneg %p3811_p6 }
  0x49   : > { %p3819_p12 = pnand %p3818_p11, %p3812_p8 }
  0x4b   : > { %3822 = shalt.err (!%p3819_p12)
}
  0x4c   : > { %3682 = dma.hbm_to_vmem [thread:$0]  (!%p4017_p5), %s5246_s2, 48, %s4021_s18, [#allocation3], %s3935_s14, %s3935_s14, %s3936_s17  }
  0x4d   : > { %s3823_s23 = scalar_lea.hbm %s5249_s5, 16 }
  0x4e   : > { %p3824_p13 = scmp.ne.s32.totalorder %s5249_s5, %s3823_s23  ;;  %p3830_p4 = scmp.lt.u32.totalorder %s3823_s23, %s5249_s5 }
  0x50   : > { %p3826_p0 = pnand %p3824_p13, %p4033_p7 }
  0x52   : > { %p3827_p1 = pneg %p3826_p0 }
  0x54   : > { %p3832_p6 = pnand %p3830_p4, %p3827_p1 }
  0x56   : > { %3835 = shalt.err (!%p3832_p6)
}
  0x57   : > { %s3836_s29 = scalar_lea.vmem %s294_s20, 16  ;;  %s3843_s18 = scalar_lea.vmem %s294_s20, 32 }
  0x58   : > { %p3837_p8 = scmp.ne.s32.totalorder %s294_s20, %s3836_s29  ;;  %p3844_p11 = scmp.lt.s32.totalorder %s294_s20, %s294_s20 }
  0x59   : > { %p3845_p12 = scmp.lt.s32.totalorder %s3843_s18, %s3836_s29 }
  0x5a   : > { %p3839_p9 = pnand %p3837_p8, %p4033_p7 }
  0x5b   : > { %p3846_p2 = por %p3845_p12, %p3844_p11 }
  0x5c   : > { %p3840_p10 = pneg %p3839_p9 }
  0x5e   : > { %p3847_p3 = pnand %p3846_p2, %p3840_p10 }
  0x60   : > { %3850 = shalt.err (!%p3847_p3)
}
  0x61   : > { %3688 = dma.hbm_to_vmem [thread:$0]  (!%p4017_p5), %s5249_s5, 16, %s294_s20, [#allocation5]  }
  0x62   : > { %s3937_s12 = smov [#allocation9]   ;;  %s3851_s23 = scalar_lea.hbm %s5251_s7, 96 }
  0x63   : > { %s314_s19 = sshll.u32 %s3937_s12, 4  ;;  %p3852_p13 = scmp.ne.s32.totalorder %s5251_s7, %s3851_s23  ;;  %s315_s19 = int_to_ptr.vmem [resolvable:$true] %s314_s19 }
  0x64   : > { %p3858_p0 = scmp.lt.u32.totalorder %s3851_s23, %s5251_s7 }
  0x65   : > { %p3854_p2 = pnand %p3852_p13, %p4033_p7 }
  0x67   : > { %p3855_p3 = pneg %p3854_p2 }
  0x69   : > { %p3860_p1 = pnand %p3858_p0, %p3855_p3 }
  0x6b   : > { %3863 = shalt.err (!%p3860_p1)
}
  0x6c   : > { %s3864_s20 = scalar_lea.vmem %s315_s19, 96  ;;  %p3872_p9 = scmp.lt.s32.totalorder %s315_s19, %s315_s19 }
  0x6d   : > { %p3865_p4 = scmp.ne.s32.totalorder %s315_s19, %s3864_s20  ;;  %p3873_p10 = scmp.lt.s32.totalorder %s3864_s20, %s3864_s20 }
  0x6f   : > { %p3867_p6 = pnand %p3865_p4, %p4033_p7  ;;  %p3874_p11 = por %p3873_p10, %p3872_p9 }
  0x71   : > { %p3868_p8 = pneg %p3867_p6 }
  0x73   : > { %p3875_p12 = pnand %p3874_p11, %p3868_p8 }
  0x75   : > { %3878 = shalt.err (!%p3875_p12)
}
  0x76   : > { %s3938_s29 = smov 32   ;;  %s3939_s18 = smov 2  }
  0x77   : > { %3694 = dma.hbm_to_vmem [thread:$0]  (!%p4017_p5), %s5251_s7, 96, %s315_s19, [#allocation8], %s3938_s29, %s3938_s29, %s3939_s18  }
  0x78   : > { %s3940_s12 = smov [#allocation10]   ;;  %s3879_s24 = scalar_lea.hbm %s5252_s8, 48 }
  0x79   : > { %s327_s21 = sshll.u32 %s3940_s12, 4  ;;  %p3880_p13 = scmp.ne.s32.totalorder %s5252_s8, %s3879_s24  ;;  %s328_s21 = int_to_ptr.vmem [resolvable:$true] %s327_s21 }
  0x7a   : > { %p3886_p0 = scmp.lt.u32.totalorder %s3879_s24, %s5252_s8 }
  0x7b   : > { %p3882_p2 = pnand %p3880_p13, %p4033_p7 }
  0x7d   : > { %p3883_p3 = pneg %p3882_p2 }
  0x7f   : > { %p3888_p1 = pnand %p3886_p0, %p3883_p3 }
  0x81   : > { %3891 = shalt.err (!%p3888_p1)
}
  0x82   : > { %s3892_s19 = scalar_lea.vmem %s328_s21, 48  ;;  %s3899_s29 = scalar_lea.vmem %s328_s21, 64 }
  0x83   : > { %p3893_p4 = scmp.ne.s32.totalorder %s328_s21, %s3892_s19  ;;  %p3900_p9 = scmp.lt.s32.totalorder %s328_s21, %s328_s21 }
  0x84   : > { %p3901_p10 = scmp.lt.s32.totalorder %s3899_s29, %s3892_s19 }
  0x85   : > { %p3895_p6 = pnand %p3893_p4, %p4033_p7 }
  0x86   : > { %p3902_p11 = por %p3901_p10, %p3900_p9 }
  0x87   : > { %p3896_p8 = pneg %p3895_p6 }
  0x89   : > { %p3903_p12 = pnand %p3902_p11, %p3896_p8 }
  0x8b   : > { %3906 = shalt.err (!%p3903_p12)
}
  0x8c   : > { %3697 = dma.hbm_to_vmem [thread:$0]  (!%p4017_p5), %s5252_s8, 48, %s328_s21, [#allocation11], %s3935_s14, %s3935_s14, %s3936_s17  }
  0x8d   : > { %p5288_p13 = scmp.ne.s32.totalorder %s5285_s11, 0 }
  0x8e   : > { %p5289_p7 = scmp.eq.s32.totalorder (!%p5288_p13), %s4000_s10, 0 }
  0x8f   : > { %351 = sbr.rel (%p5288_p13) target bundleno = 1039 (0x40f), region = 56 }
  0x96   : > { %3912 = dma.done.wait (%p5289_p7), [#allocation3], 48   ;;  %p5290_p2 = pmov %p5289_p7 }
  0x98   : > { %3914 = vsyncadd (%p5290_p2), [#allocation3], 4294967248  ;;  %p5291_p3 = pmov %p5290_p2 }
  0x99   : > { %p5292_p0 = pmov %p5290_p2 }
  0x9a   : > { %3916 = dma.done.wait (%p5291_p3), [#allocation5], 64  }
  0x9b   : > { %3918 = vsyncadd (%p5292_p0), [#allocation5], 4294967232  ;;  %p5293_p1 = pmov %p5292_p0 }
  0x9c   : > { %p5294_p5 = pmov %p5292_p0 }
  0x9d   : > { %3920 = dma.done.wait (%p5293_p1), [#allocation8], 112  }
  0x9e   : > { %3922 = vsyncadd (%p5294_p5), [#allocation8], 4294967184  ;;  %p5295_p4 = pmov %p5292_p0 }
  0x9f   : > { %p5296_p6 = pmov %p5292_p0 }
  0xa0   : > { %3924 = dma.done.wait (%p5295_p4), [#allocation11], 48  }
  0xa1   : > { %3926 = vsyncadd (%p5296_p6), [#allocation11], 4294967248  ;;  %p407_p8 = scmp.lt.s32.totalorder %s4000_s10, 1  ;;  %v447_v0 = vld [vmem:[%s5245_s1 + $0x40] sm:$0xff]  ;;  %v448_v1 = vld [vmem:[%s5245_s1 + $0x48] sm:$0xff]  ;;  %vm536_vm0 = vcmask 1040384  }
  0xa2   : > { %v439_v2 = vld [vmem:[%s5245_s1] sm:$0xff]  ;;  %v3425_v3 = vpack.c.bf16 %v448_v1, %v447_v0  ;;  %v440_v4 = vld [vmem:[%s5245_s1 + $0x8] sm:$0xff]  ;;  %v449_v5 = vld [vmem:[%s5245_s1 + $0x50] sm:$0xff]  ;;  %vm713_vm1 = vcmask 1045504   ;;  %vm562_vm2 = vcmask 523264   ;;  %vm887_vm3 = vcmask 1043456  }
  0xa3   : > { %s5327_s10 = smov (!%p407_p8, %s4000_s10), 1  ;;  %v450_v6 = vld [vmem:[%s5245_s1 + $0x58] sm:$0xff]  ;;  %v3441_v7 = vpack.c.bf16 %v440_v4, %v439_v2  ;;  %v441_v9 = vld [vmem:[%s5245_s1 + $0x10] sm:$0xff]  ;;  %v451_v11 = vld [vmem:[%s5245_s1 + $0x60] sm:$0xff]  ;;  %vm1422_vm4 = vcmask 1046528   ;;  %vm1932_vm5 = vcmask 1041408  }
  0xa4   : > { %s3653_s11 = smul.u32 176, %s5327_s10  ;;  %v3429_v8 = vpack.c.bf16 %v450_v6, %v449_v5  ;;  %v442_v10 = vld [vmem:[%s5245_s1 + $0x18] sm:$0xff]  ;;  %3426 = vmatprep.subr.bf16.mxu1 %v3425_v3  ;;  %v452_v13 = vld [vmem:[%s5245_s1 + $0x68] sm:$0xff]  ;;  %v443_v14 = vld [vmem:[%s5245_s1 + $0x20] sm:$0xff]  ;;  %vm1247_vm6 = vcmask 1042432   ;;  %vm3942_vm7 = vmmov 0  }
  0xa5   : > { %v3445_v12 = vpack.c.bf16 %v442_v10, %v441_v9  ;;  %v444_v15 = vld [vmem:[%s5245_s1 + $0x28] sm:$0xff]  ;;  %3442 = vmatprep.subr.bf16.mxu0 %v3441_v7  ;;  %3428 = vmatpush3.bf16.msra.mxu1 %v3425_v3  ;;  %v3433_v16 = vpack.c.bf16 %v452_v13, %v451_v11  ;;  %v453_v20 = vld [vmem:[%s5245_s1 + $0x70] sm:$0xff]  ;;  %v454_v21 = vld [vmem:[%s5245_s1 + $0x78] sm:$0xff]  ;;  %vm2212_vm8 = vcmask 518144   ;;  %vm2309_vm9 = vcmask 15360   ;;  %s3654_s15 = smul.u32 96, %s5327_s10 }
  0xa6   : > { %s4220_s14 = scalar_lea.vmem %s5244_s0, %s3653_s11  ;;  %3444 = vmatpush3.bf16.msra.mxu0 %v3441_v7  ;;  %3430 = vmatprep.subr.bf16.mxu1 %v3429_v8  ;;  %v3449_v19 = vpack.c.bf16 %v444_v15, %v443_v14  ;;  %v445_v26 = vld [vmem:[%s5245_s1 + $0x30] sm:$0xff]  ;;  %v446_v27 = vld [vmem:[%s5245_s1 + $0x38] sm:$0xff]  ;;  %v3437_v30 = vpack.c.bf16 %v454_v21, %v453_v20  ;;  %v471_v35 = vld [vmem:[%s5245_s1 + $0x100] sm:$0xff] }
  0xa7   : > { %v4232_v17 = vld [vmem:[%s4220_s14 + $0x20] sm:$0xff]  ;;  %v4235_v18 = vld [vmem:[%s4220_s14 + $0x28] sm:$0xff]  ;;  %3446 = vmatprep.subr.bf16.mxu0 %v3445_v12  ;;  %v4246_v24 = vld [vmem:[%s4220_s14 + $0x18] sm:$0xff]  ;;  %v3453_v33 = vpack.c.bf16 %v446_v27, %v445_v26  ;;  %s416_s26 = scalar_lea.vmem %s5253_s9, %s3654_s15 }
  0xa8   : > { %v537_v22 = vrot.slane %v4232_v17, 7  ;;  %v538_v23 = vrot.slane %v4235_v18, 7  ;;  %v715_v25 = vrot.slane %v4232_v17, 2  ;;  %v714_v28 = vrot.slane %v4246_v24, 2  ;;  %v4261_v32 = vld [vmem:[%s4220_s14 + $0x30] sm:$0xff]  ;;  %v4266_v34 = vld [vmem:[%s4220_s14 + $0x38] sm:$0xff] }
  0xa9   : > { %3432 = vmatpush3.bf16.msra.mxu1 %v3429_v8  ;;  %v472_v36 = vld [vmem:[%s5245_s1 + $0x108] sm:$0xff]  ;;  %v455_v37 = vld [vmem:[%s5245_s1 + $0x80] sm:$0xff]  ;;  %v540_v39 = vrot.slane %v4261_v32, 7  ;;  %v717_v40 = vrot.slane %v4235_v18, 2  ;;  %v542_v41 = vrot.slane %v4266_v34, 7  ;;  %v719_v45 = vrot.slane %v4261_v32, 2 }
  0xaa   : > { %v4257_v29 = vsel %vm536_vm0, %v537_v22, %v538_v23  ;;  %3448 = vmatpush3.bf16.msra.mxu0 %v3445_v12  ;;  %3434 = vmatprep.subr.bf16.mxu1 %v3433_v16  ;;  %v716_v31 = vsel %vm713_vm1, %v714_v28, %v715_v25  ;;  %v456_v38 = vld [vmem:[%s5245_s1 + $0x88] sm:$0xff]  ;;  %v4285_v42 = vld [vmem:[%s4220_s14 + $0x40] sm:$0xff]  ;;  %v3473_v43 = vpack.c.bf16 %v472_v36, %v471_v35  ;;  %v457_v47 = vld [vmem:[%s5245_s1 + $0x90] sm:$0xff]  ;;  %v721_v55 = vrot.slane %v4266_v34, 2 }
  0xab   : > { %3450 = vmatprep.subr.bf16.mxu0 %v3449_v19  ;;  %3101 = vmatprep.mubr.msk.f32.mxu1 %vm562_vm2, %v4257_v29  ;;  %v3457_v44 = vpack.c.bf16 %v456_v38, %v455_v37  ;;  %v4289_v46 = vld [vmem:[%s4220_s14 + $0x48] sm:$0xff]  ;;  %v458_v48 = vld [vmem:[%s5245_s1 + $0x98] sm:$0xff]  ;;  %v4298_v49 = vsel %vm536_vm0, %v538_v23, %v540_v39  ;;  %v544_v50 = vrot.slane %v4285_v42, 7  ;;  %v473_v51 = vld [vmem:[%s5245_s1 + $0x110] sm:$0xff]  ;;  %v718_v53 = vsel %vm713_vm1, %v715_v25, %v717_v40 }
  0xac   : > { %3135 = vmatprep.mubr.msk.f32.mxu0 %vm562_vm2, %v716_v31  ;;  %v474_v52 = vld [vmem:[%s5245_s1 + $0x118] sm:$0xff]  ;;  %v4309_v54 = vsel %vm536_vm0, %v540_v39, %v542_v41  ;;  %v546_v56 = vrot.slane %v4289_v46, 7  ;;  %v4314_v57 = vld [vmem:[%s4220_s14 + $0x50] sm:$0xff]  ;;  %v720_v58 = vsel %vm713_vm1, %v717_v40, %v719_v45  ;;  %v3461_v59 = vpack.c.bf16 %v458_v48, %v457_v47  ;;  %v459_v62 = vld [vmem:[%s5245_s1 + $0xa0] sm:$0xff] }
  0xad   : > { %3436 = vmatpush3.bf16.msra.mxu1 %v3433_v16  ;;  %v723_v60 = vrot.slane %v4285_v42, 2  ;;  %v4319_v61 = vld [vmem:[%s4220_s14 + $0x58] sm:$0xff]  ;;  %v460_v63 = vld [vmem:[%s5245_s1 + $0xa8] sm:$0xff]  ;;  %v3477_v0 = vpack.c.bf16 %v474_v52, %v473_v51  ;;  %v4333_v1 = vsel %vm536_vm0, %v542_v41, %v544_v50  ;;  %v548_v2 = vrot.slane %v4314_v57, 7  ;;  %v475_v3 = vld [vmem:[%s5245_s1 + $0x120] sm:$0xff] }
  0xae   : > { %3452 = vmatpush3.bf16.msra.mxu0 %v3449_v19  ;;  %3438 = vmatprep.subr.bf16.mxu1 %v3437_v30  ;;  %v476_v4 = vld [vmem:[%s5245_s1 + $0x128] sm:$0xff]  ;;  %v722_v5 = vsel %vm713_vm1, %v719_v45, %v721_v55  ;;  %v4345_v6 = vsel %vm536_vm0, %v544_v50, %v546_v56  ;;  %v725_v7 = vrot.slane %v4289_v46, 2  ;;  %v550_v8 = vrot.slane %v4319_v61, 7  ;;  %v4350_v9 = vld [vmem:[%s4220_s14 + $0x60] sm:$0xff]  ;;  %v461_v15 = vld [vmem:[%s5245_s1 + $0xb0] sm:$0xff] }
  0xaf   : > { %3454 = vmatprep.subr.bf16.mxu0 %v3453_v33  ;;  %v724_v10 = vsel %vm713_vm1, %v721_v55, %v723_v60  ;;  %v727_v11 = vrot.slane %v4314_v57, 2  ;;  %v3465_v12 = vpack.c.bf16 %v460_v63, %v459_v62  ;;  %v4355_v13 = vld [vmem:[%s4220_s14 + $0x68] sm:$0xff]  ;;  %v3481_v14 = vpack.c.bf16 %v476_v4, %v475_v3  ;;  %v462_v16 = vld [vmem:[%s5245_s1 + $0xb8] sm:$0xff]  ;;  %v477_v21 = vld [vmem:[%s5245_s1 + $0x130] sm:$0xff] }
  0xb0   : > { %v4369_v19 = vsel %vm536_vm0, %v546_v56, %v548_v2  ;;  %v552_v20 = vrot.slane %v4350_v9, 7  ;;  %v478_v22 = vld [vmem:[%s5245_s1 + $0x138] sm:$0xff]  ;;  %v726_v23 = vsel %vm713_vm1, %v723_v60, %v725_v7  ;;  %v4381_v25 = vsel %vm536_vm0, %v548_v2, %v550_v8  ;;  %v4386_v28 = vld [vmem:[%s4220_s14 + $0x70] sm:$0xff]  ;;  %v495_v37 = vld [vmem:[%s5245_s1 + $0x1c0] sm:$0xff] }
  0xb1   : > { %3440 = vmatpush3.bf16.msra.mxu1 %v3437_v30  ;;  %v729_v26 = vrot.slane %v4319_v61, 2  ;;  %v554_v27 = vrot.slane %v4355_v13, 7  ;;  %v728_v30 = vsel %vm713_vm1, %v725_v7, %v727_v11  ;;  %v731_v31 = vrot.slane %v4350_v9, 2  ;;  %v4391_v35 = vld [vmem:[%s4220_s14 + $0x78] sm:$0xff]  ;;  %v496_v38 = vld [vmem:[%s5245_s1 + $0x1c8] sm:$0xff]  ;;  %v463_v41 = vld [vmem:[%s5245_s1 + $0xc0] sm:$0xff] }
  0xb2   : > { %3456 = vmatpush3.bf16.msra.mxu0 %v3453_v33  ;;  %3474 = vmatprep.subr.bf16.mxu1 %v3473_v43  ;;  %v3469_v33 = vpack.c.bf16 %v462_v16, %v461_v15  ;;  %v3485_v36 = vpack.c.bf16 %v478_v22, %v477_v21  ;;  %v4405_v39 = vsel %vm536_vm0, %v550_v8, %v552_v20  ;;  %v556_v40 = vrot.slane %v4386_v28, 7  ;;  %v4422_v50 = vld [vmem:[%s4220_s14 + $0x80] sm:$0xff]  ;;  %v498_v15 = vld [vmem:[%s5245_s1 + $0x1d8] sm:$0xff]  ;;  %v465_v22 = vld [vmem:[%s5245_s1 + $0xd0] sm:$0xff] }
  0xb3   : > { %3458 = vmatprep.subr.bf16.mxu0 %v3457_v44  ;;  %v4417_v45 = vsel %vm536_vm0, %v552_v20, %v554_v27  ;;  %v733_v47 = vrot.slane %v4355_v13, 2  ;;  %v558_v48 = vrot.slane %v4391_v35, 7  ;;  %v732_v51 = vsel %vm713_vm1, %v729_v26, %v731_v31 }
  0xb4   : > { %3102 = vmatmul.mubr.msk.f32.vlgmr.msra.gmra.mrb[0].mxu1 %vm562_vm2, %v4298_v49  ;;  %v735_v52 = vrot.slane %v4386_v28, 2  ;;  %v4436_v56 = vsel %vm536_vm0, %v554_v27, %v556_v40  ;;  %v888_v63 = vrot.slane %v4261_v32, 4  ;;  %v891_v3 = vrot.slane %v4285_v42, 4 }
  0xb5   : > { %3136 = vmatmul.mubr.msk.f32.vlgmr.msra.gmra.mrb[0].mxu0 %vm562_vm2, %v718_v53  ;;  %3104 = vmatprep.mubr.msk.f32.mxu1 %vm562_vm2, %v4309_v54  ;;  %v4426_v53 = vpack.c.bf16 %v496_v38, %v495_v37  ;;  %v4442_v60 = vsel %vm536_vm0, %v556_v40, %v558_v48  ;;  %v893_v4 = vrot.slane %v4289_v46, 4  ;;  %v1432_v7 = vrot.slane %v4355_v13, 1  ;;  %v499_v40 = vld [vmem:[%s5245_s1 + $0x1e0] sm:$0xff] }
  0xb6   : > { %3460 = vmatpush3.bf16.msra.mxu0 %v3457_v44  ;;  %3138 = vmatprep.mubr.msk.f32.mxu0 %vm562_vm2, %v720_v58  ;;  %v730_v44 = vsel %vm713_vm1, %v727_v11, %v729_v26  ;;  %v560_v58 = vrot.slane %v4422_v50, 7  ;;  %v736_v62 = vsel %vm713_vm1, %v733_v47, %v735_v52  ;;  %v1434_v11 = vrot.slane %v4386_v28, 1 }
  0xb7   : > { %3462 = vmatprep.subr.bf16.mxu0 %v3461_v59  ;;  %3476 = vmatpush3.bf16.msra.mxu1 %v3473_v43  ;;  %v464_v43 = vld [vmem:[%s5245_s1 + $0xc8] sm:$0xff]  ;;  %v1438_v20 = vrot.slane %v4422_v50, 1  ;;  %v897_v21 = vrot.slane %v4319_v61, 4 }
  0xb8   : > { %3105 = vmatmul.mubr.msk.f32.gmra.mrb[2].mxu1 %vm562_vm2, %v4333_v1  ;;  %3478 = vmatprep.subr.bf16.mxu1 %v3477_v0  ;;  %v4430_v55 = vpack.c.bf16 %v464_v43, %v463_v41  ;;  %v4455_v2 = vsel %vm536_vm0, %v558_v48, %v560_v58  ;;  %v4491_v26 = vsel %vm1422_vm4, %v1432_v7, %v1434_v11  ;;  %v500_v41 = vld [vmem:[%s5245_s1 + $0x1e8] sm:$0xff]  ;;  %v1938_v43 = vrot.slane %v4350_v9, 6 }
  0xb9   : > { %3139 = vmatmul.mubr.msk.f32.gmra.mrb[2].mxu0 %vm562_vm2, %v722_v5  ;;  %3107 = vmatprep.mubr.msk.f32.mxu1 %vm562_vm2, %v4345_v6  ;;  %v1430_v5 = vrot.slane %v4350_v9, 1  ;;  %v468_v58 = vld [vmem:[%s5245_s1 + $0xe8] sm:$0xff] }
  0xba   : > { %3141 = vmatprep.mubr.msk.f32.mxu0 %vm562_vm2, %v724_v10  ;;  %3464 = vmatpush3.bf16.msra.mxu0 %v3461_v59  ;;  %v734_v59 = vsel %vm713_vm1, %v731_v31, %v733_v47  ;;  %v895_v10 = vrot.slane %v4314_v57, 4  ;;  %v1942_v47 = vrot.slane %v4386_v28, 6 }
  0xbb   : > { %3466 = vmatprep.subr.bf16.mxu0 %v3465_v12  ;;  %3480 = vmatpush3.bf16.msra.mxu1 %v3477_v0  ;;  %v889_v0 = vrot.slane %v4266_v34, 4  ;;  %v4477_v16 = vsel %vm1422_vm4, %v1430_v5, %v1432_v7 }
  0xbc   : > { %3108 = vmatmul.mubr.msk.f32.gmra.mrb[4].mxu1 %vm562_vm2, %v4369_v19  ;;  %3482 = vmatprep.subr.bf16.mxu1 %v3481_v14  ;;  %v898_v48 = vsel %vm887_vm3, %v895_v10, %v897_v21 }
  0xbd   : > { %3142 = vmatmul.mubr.msk.f32.gmra.mrb[4].mxu0 %vm562_vm2, %v726_v23  ;;  %3110 = vmatprep.mubr.msk.f32.mxu1 %vm562_vm2, %v4381_v25  ;;  %v890_v8 = vsel %vm887_vm3, %v888_v63, %v889_v0  ;;  %v466_v23 = vld [vmem:[%s5245_s1 + $0xd8] sm:$0xff]  ;;  %v1946_v63 = vrot.slane %v4422_v50, 6 }
  0xbe   : > { %3144 = vmatprep.mubr.msk.f32.mxu0 %vm562_vm2, %v728_v30  ;;  %3468 = vmatpush3.bf16.msra.mxu0 %v3465_v12  ;;  %v1436_v12 = vrot.slane %v4391_v35, 1  ;;  %v892_v30 = vsel %vm887_vm3, %v889_v0, %v891_v3  ;;  %v3493_v38 = vpack.c.bf16 %v466_v23, %v465_v22  ;;  %v901_v0 = vrot.slane %v4355_v13, 4  ;;  %v469_v22 = vld [vmem:[%s5245_s1 + $0xf0] sm:$0xff]  ;;  %v470_v23 = vld [vmem:[%s5245_s1 + $0xf8] sm:$0xff] }
  0xbf   : > { %3484 = vmatpush3.bf16.msra.mxu1 %v3481_v14  ;;  %3470 = vmatprep.subr.bf16.mxu0 %v3469_v33  ;;  %v497_v14 = vld [vmem:[%s5245_s1 + $0x1d0] sm:$0xff] }
  0xc0   : > { %3111 = vmatmul.mubr.msk.f32.gmra.mrb[6].mxu1 %vm562_vm2, %v4405_v39  ;;  %3486 = vmatprep.subr.bf16.mxu1 %v3485_v36  ;;  %v4494_v27 = vsel %vm1422_vm4, %v1434_v11, %v1436_v12  ;;  %v4501_v31 = vsel %vm1422_vm4, %v1436_v12, %v1438_v20  ;;  %v3525_v37 = vpack.c.bf16 %v498_v15, %v497_v14  ;;  %v501_v14 = vld [vmem:[%s5245_s1 + $0x1f0] sm:$0xff] }
  0xc1   : > { %3145 = vmatmul.mubr.msk.f32.gmra.mrb[6].mxu0 %vm562_vm2, %v730_v44  ;;  %3113 = vmatprep.mubr.msk.f32.mxu1 %vm562_vm2, %v4417_v45  ;;  %v1940_v44 = vrot.slane %v4355_v13, 6 }
  0xc2   : > { %3147 = vmatprep.mubr.msk.f32.mxu0 %vm562_vm2, %v732_v51  ;;  %3472 = vmatpush3.bf16.msra.mxu0 %v3469_v33  ;;  %v894_v33 = vsel %vm887_vm3, %v891_v3, %v893_v4  ;;  %v899_v51 = vrot.slane %v4350_v9, 4  ;;  %v4536_v3 = vld [vmem:[%s4220_s14 + $0x90] sm:$0xff] }
  0xc3   : > { %3488 = vmatpush3.bf16.msra.mxu1 %v3485_v36  ;;  %3522 = vmatprep.subr.bf16.mxu0 %v4426_v53  ;;  %v896_v36 = vsel %vm887_vm3, %v893_v4, %v895_v10  ;;  %v4541_v4 = vsel %vm1932_vm5, %v1938_v43, %v1940_v44  ;;  %v4544_v7 = vsel %vm1932_vm5, %v1940_v44, %v1942_v47  ;;  %v1950_v11 = vrot.slane %v4536_v3, 6 }
  0xc4   : > { %3114 = vmatmul.mubr.msk.f32.gmra.mrb[8].mxu1 %vm562_vm2, %v4436_v56  ;;  %3490 = vmatprep.subr.bf16.mxu1 %v4430_v55 }
  0xc5   : > { %3148 = vmatmul.mubr.msk.f32.gmra.mrb[8].mxu0 %vm562_vm2, %v734_v59  ;;  %3116 = vmatprep.mubr.msk.f32.mxu1 %vm562_vm2, %v4442_v60  ;;  %v4528_v59 = vld [vmem:[%s4220_s14 + $0x88] sm:$0xff] }
  0xc6   : > { %3150 = vmatprep.mubr.msk.f32.mxu0 %vm562_vm2, %v736_v62  ;;  %v1944_v62 = vrot.slane %v4391_v35, 6 }
  0xc8   : > { %3117 = vmatmul.mubr.msk.f32.gmra.mrb[10].mxu1 %vm562_vm2, %v4455_v2  ;;  %v4549_v10 = vsel %vm1932_vm5, %v1942_v47, %v1944_v62  ;;  %v4552_v13 = vsel %vm1932_vm5, %v1944_v62, %v1946_v63  ;;  %v3501_v47 = vpack.c.bf16 %v470_v23, %v469_v22  ;;  %v4611_v62 = vld [vmem:[%s4220_s14 + $0x10] sm:$0xff]  ;;  %v1253_v23 = vrot.slane %v4232_v17, 5 }
  0xc9   : > { %3151 = vmatmul.mubr.msk.f32.gmra.mrb[10].mxu0 %vm562_vm2, %v735_v52  ;;  %3203 = vmatprep.mubr.msk.f32.mxu1 %vm562_vm2, %v4257_v29  ;;  %v467_v52 = vld [vmem:[%s5245_s1 + $0xe0] sm:$0xff] }
  0xca   : > { %3169 = vmatprep.mubr.msk.f32.mxu0 %vm562_vm2, %v890_v8  ;;  %v1948_v8 = vrot.slane %v4528_v59, 6  ;;  %v3497_v12 = vpack.c.bf16 %v468_v58, %v467_v52  ;;  %v909_v52 = vrot.slane %v4528_v59, 4  ;;  %v4608_v58 = vld [vmem:[%s4220_s14 + $0x8] sm:$0xff] }
  0xcc   : > { %3204 = vmatmul.mubr.msk.f32.vlgmr.msra.gmra.mrb[12].mxu1 %vm562_vm2, %v4298_v49  ;;  %v4564_v15 = vsel %vm1932_vm5, %v1946_v63, %v1948_v8 }
  0xcd   : > { %3170 = vmatmul.mubr.msk.f32.vlgmr.msra.gmra.mrb[0].mxu0 %vm562_vm2, %v892_v30  ;;  %3206 = vmatprep.mubr.msk.f32.mxu1 %vm562_vm2, %v4309_v54  ;;  %v4578_v30 = vsel %vm1932_vm5, %v1948_v8, %v1950_v11 }
  0xce   : > { %3524 = vmatpush3.bf16.msra.mxu0 %v4426_v53  ;;  %3172 = vmatprep.mubr.msk.f32.mxu0 %vm562_vm2, %v894_v33  ;;  %v3529_v53 = vpack.c.bf16 %v500_v41, %v499_v40  ;;  %v900_v33 = vsel %vm887_vm3, %v897_v21, %v899_v51  ;;  %v902_v40 = vsel %vm887_vm3, %v899_v51, %v901_v0  ;;  %v905_v41 = vrot.slane %v4391_v35, 4  ;;  %v487_v21 = vld [vmem:[%s5245_s1 + $0x180] sm:$0xff] }
  0xcf   : > { %3526 = vmatprep.subr.bf16.mxu0 %v3525_v37  ;;  %3492 = vmatpush3.bf16.msra.mxu1 %v4430_v55  ;;  %v502_v55 = vld [vmem:[%s5245_s1 + $0x1f8] sm:$0xff]  ;;  %v479_v35 = vld [vmem:[%s5245_s1 + $0x140] sm:$0xff] }
  0xd0   : > { %3207 = vmatmul.mubr.msk.f32.gmra.mrb[14].mxu1 %vm562_vm2, %v4333_v1  ;;  %3494 = vmatprep.subr.bf16.mxu1 %v3493_v38  ;;  %v3533_v44 = vpack.c.bf16 %v502_v55, %v501_v14  ;;  %v1251_v55 = vrot.slane %v4246_v24, 5 }
  0xd1   : > { %3173 = vmatmul.mubr.msk.f32.gmra.mrb[2].mxu0 %vm562_vm2, %v896_v36  ;;  %3209 = vmatprep.mubr.msk.f32.mxu1 %vm562_vm2, %v4345_v6  ;;  %v903_v36 = vrot.slane %v4386_v28, 4  ;;  %v488_v28 = vld [vmem:[%s5245_s1 + $0x188] sm:$0xff] }
  0xd2   : > { %3175 = vmatprep.mubr.msk.f32.mxu0 %vm562_vm2, %v898_v48  ;;  %3528 = vmatpush3.bf16.msra.mxu0 %v3525_v37  ;;  %v480_v37 = vld [vmem:[%s5245_s1 + $0x148] sm:$0xff]  ;;  %v907_v48 = vrot.slane %v4422_v50, 4  ;;  %v3537_v63 = vpack.c.bf16 %v488_v28, %v487_v21  ;;  %v1254_v21 = vsel %vm1247_vm6, %v1251_v55, %v1253_v23  ;;  %v1257_v28 = vrot.slane %v4261_v32, 5 }
  0xd3   : > { %3530 = vmatprep.subr.bf16.mxu0 %v3529_v53  ;;  %3496 = vmatpush3.bf16.msra.mxu1 %v3493_v38  ;;  %v904_v38 = vsel %vm887_vm3, %v901_v0, %v903_v36  ;;  %v906_v51 = vsel %vm887_vm3, %v903_v36, %v905_v41  ;;  %v3505_v8 = vpack.c.bf16 %v480_v37, %v479_v35  ;;  %v490_v36 = vld [vmem:[%s5245_s1 + $0x198] sm:$0xff]  ;;  %v1933_v50 = vrot.slane %v4289_v46, 6 }
  0xd4   : > { %3210 = vmatmul.mubr.msk.f32.gmra.mrb[16].mxu1 %vm562_vm2, %v4369_v19  ;;  %3498 = vmatprep.subr.bf16.mxu1 %v3497_v12  ;;  %v908_v0 = vsel %vm887_vm3, %v905_v41, %v907_v48  ;;  %v910_v14 = vsel %vm887_vm3, %v907_v48, %v909_v52  ;;  %v1255_v41 = vrot.slane %v4235_v18, 5  ;;  %v492_v48 = vld [vmem:[%s5245_s1 + $0x1a8] sm:$0xff] }
  0xd5   : > { %3176 = vmatmul.mubr.msk.f32.gmra.mrb[4].mxu0 %vm562_vm2, %v900_v33  ;;  %3212 = vmatprep.mubr.msk.f32.mxu1 %vm562_vm2, %v4381_v25  ;;  %v489_v33 = vld [vmem:[%s5245_s1 + $0x190] sm:$0xff] }
  0xd6   : > { %3178 = vmatprep.mubr.msk.f32.mxu0 %vm562_vm2, %v902_v40  ;;  %3532 = vmatpush3.bf16.msra.mxu0 %v3529_v53  ;;  %v1248_v53 = vrot.slane %v4608_v58, 5  ;;  %v3541_v35 = vpack.c.bf16 %v490_v36, %v489_v33  ;;  %v1265_v33 = vrot.slane %v4314_v57, 5 }
  0xd7   : > { %3500 = vmatpush3.bf16.msra.mxu1 %v3497_v12  ;;  %3534 = vmatprep.subr.bf16.mxu0 %v3533_v44  ;;  %v1249_v12 = vrot.slane %v4611_v62, 5 }
  0xd8   : > { %3213 = vmatmul.mubr.msk.f32.gmra.mrb[18].mxu1 %vm562_vm2, %v4405_v39  ;;  %3502 = vmatprep.subr.bf16.mxu1 %v3501_v47 }
  0xd9   : > { %3179 = vmatmul.mubr.msk.f32.gmra.mrb[6].mxu0 %vm562_vm2, %v904_v38  ;;  %3215 = vmatprep.mubr.msk.f32.mxu1 %vm562_vm2, %v4417_v45  ;;  %v1250_v22 = vsel %vm1247_vm6, %v1248_v53, %v1249_v12  ;;  %v1252_v40 = vsel %vm1247_vm6, %v1249_v12, %v1251_v55  ;;  %v491_v38 = vld [vmem:[%s5245_s1 + $0x1a0] sm:$0xff]  ;;  %v1261_v53 = vrot.slane %v4285_v42, 5  ;;  %v493_v55 = vld [vmem:[%s5245_s1 + $0x1b0] sm:$0xff] }
  0xda   : > { %3181 = vmatprep.mubr.msk.f32.mxu0 %vm562_vm2, %v906_v51  ;;  %3536 = vmatpush3.bf16.msra.mxu0 %v3533_v44  ;;  %v481_v44 = vld [vmem:[%s5245_s1 + $0x150] sm:$0xff]  ;;  %v1259_v51 = vrot.slane %v4266_v34, 5  ;;  %v3545_v12 = vpack.c.bf16 %v492_v48, %v491_v38  ;;  %v1424_v38 = vrot.slane %v4289_v46, 1  ;;  %v1428_v48 = vrot.slane %v4319_v61, 1 }
  0xdb   : > { %3504 = vmatpush3.bf16.msra.mxu1 %v3501_v47  ;;  %3538 = vmatprep.subr.bf16.mxu0 %v3537_v63  ;;  %v482_v47 = vld [vmem:[%s5245_s1 + $0x158] sm:$0xff] }
  0xdc   : > { %3216 = vmatmul.mubr.msk.f32.gmra.mrb[20].mxu1 %vm562_vm2, %v4436_v56  ;;  %3506 = vmatprep.subr.bf16.mxu1 %v3505_v8  ;;  %v3509_v37 = vpack.c.bf16 %v482_v47, %v481_v44  ;;  %v1267_v47 = vrot.slane %v4319_v61, 5 }
  0xdd   : > { %3182 = vmatmul.mubr.msk.f32.gmra.mrb[8].mxu0 %vm562_vm2, %v908_v0  ;;  %3218 = vmatprep.mubr.msk.f32.mxu1 %vm562_vm2, %v4442_v60  ;;  %v484_v0 = vld [vmem:[%s5245_s1 + $0x168] sm:$0xff] }
  0xde   : > { %3184 = vmatprep.mubr.msk.f32.mxu0 %vm562_vm2, %v910_v14 }
  0xe0   : > { %3219 = vmatmul.mubr.msk.f32.gmra.mrb[22].mxu1 %vm562_vm2, %v4455_v2 }
  0xe1   : > { %3185 = vmatmul.mubr.msk.f32.gmra.mrb[10].mxu0 %vm562_vm2, %v909_v52  ;;  %3237 = vmatprep.mubr.msk.f32.mxu1 %vm562_vm2, %v1250_v22  ;;  %v483_v52 = vld [vmem:[%s5245_s1 + $0x160] sm:$0xff]  ;;  %v485_v22 = vld [vmem:[%s5245_s1 + $0x170] sm:$0xff] }
  0xe2   : > { %3305 = vmatprep.mubr.msk.f32.mxu0 %vm562_vm2, %v4257_v29  ;;  %v1256_v29 = vsel %vm1247_vm6, %v1253_v23, %v1255_v41  ;;  %v3513_v14 = vpack.c.bf16 %v484_v0, %v483_v52  ;;  %v486_v23 = vld [vmem:[%s5245_s1 + $0x178] sm:$0xff] }
  0xe4   : > { %3238 = vmatmul.mubr.msk.f32.vlgmr.msra.gmra.mrb[12].mxu1 %vm562_vm2, %v1252_v40  ;;  %v3517_v40 = vpack.c.bf16 %v486_v23, %v485_v22 }
  0xe5   : > { %3306 = vmatmul.mubr.msk.f32.vlgmr.msra.gmra.mrb[12].mxu0 %vm562_vm2, %v4298_v49  ;;  %3240 = vmatprep.mubr.msk.f32.mxu1 %vm562_vm2, %v1254_v21  ;;  %v1258_v49 = vsel %vm1247_vm6, %v1255_v41, %v1257_v28  ;;  %v503_v41 = vld [vmem:[%s5245_s1 + $0x200] sm:$0xff] }
  0xe6   : > { %3540 = vmatpush3.bf16.msra.mxu0 %v3537_v63  ;;  %3308 = vmatprep.mubr.msk.f32.mxu0 %vm562_vm2, %v4309_v54  ;;  %v494_v63 = vld [vmem:[%s5245_s1 + $0x1b8] sm:$0xff]  ;;  %v1260_v54 = vsel %vm1247_vm6, %v1257_v28, %v1259_v51  ;;  %v1269_v28 = vrot.slane %v4350_v9, 5 }
  0xe7   : > { %3542 = vmatprep.subr.bf16.mxu0 %v3541_v35  ;;  %3508 = vmatpush3.bf16.msra.mxu1 %v3505_v8  ;;  %v1263_v8 = vrot.slane %v4289_v46, 5  ;;  %v3549_v36 = vpack.c.bf16 %v494_v63, %v493_v55  ;;  %v436_v55 = vld [vmem:[%s4220_s14 + $0x98] sm:$0xff]  ;;  %v2225_v63 = vld [vmem:[%s5248_s4 + $0x10] sm:$0xff] }
  0xe8   : > { %3241 = vmatmul.mubr.msk.f32.gmra.mrb[14].mxu1 %vm562_vm2, %v1256_v29  ;;  %3510 = vmatprep.subr.bf16.mxu1 %v3509_v37  ;;  %v417_v29 = vld [vmem:[%s4220_s14] sm:$0xff] }
  0xe9   : > { %3309 = vmatmul.mubr.msk.f32.gmra.mrb[14].mxu0 %vm562_vm2, %v4333_v1  ;;  %3243 = vmatprep.mubr.msk.f32.mxu1 %vm562_vm2, %v1258_v49  ;;  %v1262_v1 = vsel %vm1247_vm6, %v1259_v51, %v1261_v53  ;;  %v1264_v44 = vsel %vm1247_vm6, %v1261_v53, %v1263_v8  ;;  %v1266_v21 = vsel %vm1247_vm6, %v1263_v8, %v1265_v33  ;;  %v505_v51 = vld [vmem:[%s5245_s1 + $0x210] sm:$0xff]  ;;  %v507_v49 = vld [vmem:[%s5245_s1 + $0x220] sm:$0xff]  ;;  %v508_v53 = vld [vmem:[%s5245_s1 + $0x228] sm:$0xff] }
  0xea   : > { %3311 = vmatprep.mubr.msk.f32.mxu0 %vm562_vm2, %v4345_v6  ;;  %3544 = vmatpush3.bf16.msra.mxu0 %v3541_v35  ;;  %v504_v6 = vld [vmem:[%s5245_s1 + $0x208] sm:$0xff] }
  0xeb   : > { %3546 = vmatprep.subr.bf16.mxu0 %v3545_v12  ;;  %3512 = vmatpush3.bf16.msra.mxu1 %v3509_v37  ;;  %v3553_v35 = vpack.c.bf16 %v504_v6, %v503_v41  ;;  %v1423_v37 = vrot.slane %v4285_v42, 1  ;;  %v2229_v6 = vld [vmem:[%s5248_s4 + $0x30] sm:$0xff] }
  0xec   : > { %3244 = vmatmul.mubr.msk.f32.gmra.mrb[16].mxu1 %vm562_vm2, %v1260_v54  ;;  %3514 = vmatprep.subr.bf16.mxu1 %v3513_v14  ;;  %v2226_v54 = vld [vmem:[%s5248_s4 + $0x18] sm:$0xff] }
  0xed   : > { %3312 = vmatmul.mubr.msk.f32.gmra.mrb[16].mxu0 %vm562_vm2, %v4369_v19  ;;  %3246 = vmatprep.mubr.msk.f32.mxu1 %vm562_vm2, %v1262_v1  ;;  %v1268_v19 = vsel %vm1247_vm6, %v1265_v33, %v1267_v47  ;;  %v3573_v22 = vpack.c.bf16 %v2226_v54, %v2225_v63  ;;  %v2227_v1 = vld [vmem:[%s5248_s4 + $0x20] sm:$0xff]  ;;  %v2228_v33 = vld [vmem:[%s5248_s4 + $0x28] sm:$0xff] }
  0xee   : > { %3314 = vmatprep.mubr.msk.f32.mxu0 %vm562_vm2, %v4381_v25  ;;  %3548 = vmatpush3.bf16.msra.mxu0 %v3545_v12  ;;  %v1270_v25 = vsel %vm1247_vm6, %v1267_v47, %v1269_v28  ;;  %v3561_v12 = vpack.c.bf16 %v508_v53, %v507_v49 }
  0xef   : > { %3516 = vmatpush3.bf16.msra.mxu1 %v3513_v14  ;;  %3550 = vmatprep.subr.bf16.mxu0 %v3549_v36  ;;  %v509_v14 = vld [vmem:[%s5245_s1 + $0x230] sm:$0xff] }
  0xf0   : > { %3247 = vmatmul.mubr.msk.f32.gmra.mrb[18].mxu1 %vm562_vm2, %v1264_v44  ;;  %3518 = vmatprep.subr.bf16.mxu1 %v3517_v40  ;;  %v2230_v44 = vld [vmem:[%s5248_s4 + $0x38] sm:$0xff] }
  0xf1   : > { %3315 = vmatmul.mubr.msk.f32.gmra.mrb[18].mxu0 %vm562_vm2, %v4405_v39  ;;  %3249 = vmatprep.mubr.msk.f32.mxu1 %vm562_vm2, %v1266_v21  ;;  %v1426_v39 = vrot.slane %v4314_v57, 1  ;;  %v3579_v21 = vpack.c.bf16 %v2230_v44, %v2229_v6 }
  0xf2   : > { %3317 = vmatprep.mubr.msk.f32.mxu0 %vm562_vm2, %v4417_v45  ;;  %3552 = vmatpush3.bf16.msra.mxu0 %v3549_v36  ;;  %v1425_v45 = vsel %vm1422_vm4, %v1423_v37, %v1424_v38 }
  0xf3   : > { %3520 = vmatpush3.bf16.msra.mxu1 %v3517_v40  ;;  %3554 = vmatprep.subr.bf16.mxu0 %v3553_v35  ;;  %v1429_v52 = vsel %vm1422_vm4, %v1426_v39, %v1428_v48  ;;  %v3576_v40 = vpack.c.bf16 %v2228_v33, %v2227_v1 }
  0xf4   : > { %3250 = vmatmul.mubr.msk.f32.gmra.mrb[20].mxu1 %vm562_vm2, %v1268_v19  ;;  %v3943_v19 = vmov 0.0  }
  0xf5   : > { %3318 = vmatmul.mubr.msk.f32.gmra.mrb[20].mxu0 %vm562_vm2, %v4436_v56  ;;  %3252 = vmatprep.mubr.msk.f32.mxu1 %vm562_vm2, %v1270_v25  ;;  %v506_v56 = vld [vmem:[%s5245_s1 + $0x218] sm:$0xff] }
  0xf6   : > { %3320 = vmatprep.mubr.msk.f32.mxu0 %vm562_vm2, %v4442_v60  ;;  %v1427_v60 = vsel %vm1422_vm4, %v1424_v38, %v1426_v39  ;;  %v3557_v0 = vpack.c.bf16 %v506_v56, %v505_v51 }
  0xf8   : > { %3253 = vmatmul.mubr.msk.f32.gmra.mrb[22].mxu1 %vm562_vm2, %v1269_v28 }
  0xf9   : > { %3321 = vmatmul.mubr.msk.f32.gmra.mrb[22].mxu0 %vm562_vm2, %v4455_v2  ;;  %3271 = vmatprep.mubr.msk.f32.mxu1 %vm562_vm2, %v1425_v45  ;;  %v1431_v2 = vsel %vm1422_vm4, %v1428_v48, %v1430_v5  ;;  %v1440_v5 = vrot.slane %v4528_v59, 1 }
  0xfa   : > { %3339 = vmatprep.mubr.msk.f32.mxu0 %vm562_vm2, %v417_v29 }
  0xfc   : > { %3272 = vmatmul.mubr.msk.f32.vlgmr.msra.gmra.mrb[12].mxu1 %vm562_vm2, %v1427_v60 }
  0xfd   : > { %3340 = vmatmul.mubr.msk.f32.vlgmr.msra.gmra.mrb[12].mxu0 %vm562_vm2, %v4608_v58  ;;  %3274 = vmatprep.mubr.msk.f32.mxu1 %vm562_vm2, %v1429_v52  ;;  %v510_v58 = vld [vmem:[%s5245_s1 + $0x238] sm:$0xff] }
  0xfe   : > { %3556 = vmatpush3.bf16.msra.mxu0 %v3553_v35  ;;  %3342 = vmatprep.mubr.msk.f32.mxu0 %vm562_vm2, %v4611_v62  ;;  %v3565_v62 = vpack.c.bf16 %v510_v58, %v509_v14 }
  0xff   : > { %3558 = vmatprep.subr.bf16.mxu0 %v3557_v0 }
 0x100   : > { %3275 = vmatmul.mubr.msk.f32.gmra.mrb[14].mxu1 %vm562_vm2, %v1431_v2 }
 0x101   : > { %3343 = vmatmul.mubr.msk.f32.gmra.mrb[14].mxu0 %vm562_vm2, %v4246_v24  ;;  %3277 = vmatprep.mubr.msk.f32.mxu1 %vm562_vm2, %v4477_v16  ;;  %v1442_v24 = vrot.slane %v4536_v3, 1  ;;  %v1444_v16 = vrot.slane %v436_v55, 1  ;;  %v2224_v3 = vld [vmem:[%s5248_s4 + $0x8] sm:$0xff] }
 0x102   : > { %3345 = vmatprep.mubr.msk.f32.mxu0 %vm562_vm2, %v4232_v17  ;;  %3560 = vmatpush3.bf16.msra.mxu0 %v3557_v0  ;;  %v1441_v17 = vsel %vm1422_vm4, %v1438_v20, %v1440_v5  ;;  %v1934_v20 = vrot.slane %v4314_v57, 6 }
 0x103   : > { %3562 = vmatprep.subr.bf16.mxu0 %v3561_v12 }
 0x104   : > { %3278 = vmatmul.mubr.msk.f32.gmra.mrb[16].mxu1 %vm562_vm2, %v4491_v26 }
 0x105   : > { %3346 = vmatmul.mubr.msk.f32.gmra.mrb[16].mxu0 %vm562_vm2, %v4235_v18  ;;  %3280 = vmatprep.mubr.msk.f32.mxu1 %vm562_vm2, %v4494_v27  ;;  %v1443_v18 = vsel %vm1422_vm4, %v1440_v5, %v1442_v24  ;;  %v438_v27 = vld [vmem:[%s4220_s14 + $0xa8] sm:$0x1] }
 0x106   : > { %3348 = vmatprep.mubr.msk.f32.mxu0 %vm562_vm2, %v4261_v32  ;;  %3564 = vmatpush3.bf16.msra.mxu0 %v3561_v12  ;;  %v1445_v32 = vsel %vm1422_vm4, %v1442_v24, %v1444_v16 }
 0x107   : > { %3566 = vmatprep.subr.bf16.mxu0 %v3565_v62 }
 0x108   : > { %3281 = vmatmul.mubr.msk.f32.gmra.mrb[18].mxu1 %vm562_vm2, %v4501_v31 }
 0x109   : > { %3349 = vmatmul.mubr.msk.f32.gmra.mrb[18].mxu0 %vm562_vm2, %v4266_v34  ;;  %3283 = vmatprep.mubr.msk.f32.mxu1 %vm562_vm2, %v1441_v17  ;;  %v1936_v34 = vrot.slane %v4319_v61, 6 }
 0x10a   : > { %3351 = vmatprep.mubr.msk.f32.mxu0 %vm562_vm2, %v4285_v42  ;;  %3568 = vmatpush3.bf16.msra.mxu0 %v3565_v62  ;;  %v1935_v42 = vsel %vm1932_vm5, %v1933_v50, %v1934_v20 }
 0x10b   : > { %v1937_v26 = vsel %vm1932_vm5, %v1934_v20, %v1936_v34 }
 0x10c   : > { %3284 = vmatmul.mubr.msk.f32.gmra.mrb[20].mxu1 %vm562_vm2, %v1443_v18 }
 0x10d   : > { %3352 = vmatmul.mubr.msk.f32.gmra.mrb[20].mxu0 %vm562_vm2, %v4289_v46  ;;  %3286 = vmatprep.mubr.msk.f32.mxu1 %vm562_vm2, %v1445_v32  ;;  %v1939_v46 = vsel %vm1932_vm5, %v1936_v34, %v1938_v43  ;;  %v1956_v43 = vrot.slane %v438_v27, 6 }
 0x10e   : > { %3354 = vmatprep.mubr.msk.f32.mxu0 %vm562_vm2, %v4314_v57  ;;  %v437_v57 = vld [vmem:[%s4220_s14 + $0xa0] sm:$0xff] }
 0x10f   : > { %v1954_v9 = vrot.slane %v437_v57, 6 }
 0x110   : > { %3287 = vmatmul.mubr.msk.f32.gmra.mrb[22].mxu1 %vm562_vm2, %v1444_v16 }
 0x111   : > { %3355 = vmatmul.mubr.msk.f32.gmra.mrb[22].mxu0 %vm562_vm2, %v4319_v61  ;;  %v1952_v61 = vrot.slane %v436_v55, 6  ;;  %3407 = vmatprep.mubr.msk.f32.mxu1 %vm3942_vm7, %v3943_v19 }
 0x112   : > { %3373 = vmatprep.mubr.msk.f32.mxu0 %vm562_vm2, %v1935_v42 }
 0x113   : > { %v1953_v31 = vsel %vm1932_vm5, %v1950_v11, %v1952_v61  ;;  %v1955_v59 = vsel %vm1932_vm5, %v1952_v61, %v1954_v9 }
 0x115   : > { %3374 = vmatmul.mubr.msk.f32.vlgmr.msra.gmra.mrb[12].mxu0 %vm562_vm2, %v1937_v26  ;;  %v2803_v26 = vld [vmem:[#allocation2] ss:$0 sm:$0xff] }
 0x116   : > { %3376 = vmatprep.mubr.msk.f32.mxu0 %vm562_vm2, %v1939_v46 }
 0x119   : > { %3377 = vmatmul.mubr.msk.f32.gmra.mrb[14].mxu0 %vm562_vm2, %v4541_v4  ;;  %v1957_v4 = vsel %vm1932_vm5, %v1954_v9, %v1956_v43  ;;  %v4867_v9 = vld [vmem:[#allocation4] ss:$0 sm:$0xff] }
 0x11a   : > { %3379 = vmatprep.mubr.msk.f32.mxu0 %vm562_vm2, %v4544_v7 }
 0x11d   : > { %3380 = vmatmul.mubr.msk.f32.gmra.mrb[16].mxu0 %vm562_vm2, %v4549_v10  ;;  %v2223_v10 = vld [vmem:[%s5248_s4] sm:$0xff] }
 0x11e   : > { %3382 = vmatprep.mubr.msk.f32.mxu0 %vm562_vm2, %v4552_v13  ;;  %v3570_v11 = vpack.c.bf16 %v2224_v3, %v2223_v10 }
 0x121   : > { %3383 = vmatmul.mubr.msk.f32.gmra.mrb[18].mxu0 %vm562_vm2, %v4564_v15  ;;  %v3941_v15 = vmov 0.0|0.0  }
 0x122   : > { %3385 = vmatprep.mubr.msk.f32.mxu0 %vm562_vm2, %v4578_v30  ;;  %3569 = vmatprep.subr.bf16.mxu1 %v3941_v15 }
 0x123   : > { %3571 = vmatpush3.bf16.msra.mxu1 %v3570_v11 }
 0x124   : > { %3572 = vmatprep.subr.bf16.mxu1 %v3941_v15 }
 0x125   : > { %3386 = vmatmul.mubr.msk.f32.gmra.mrb[20].mxu0 %vm562_vm2, %v1953_v31 }
 0x126   : > { %3388 = vmatprep.mubr.msk.f32.mxu0 %vm562_vm2, %v1955_v59 }
 0x127   : > { %3574 = vmatpush3.bf16.msra.mxu1 %v3573_v22 }
 0x128   : > { %3575 = vmatprep.subr.bf16.mxu1 %v3941_v15 }
 0x129   : > { %3389 = vmatmul.mubr.msk.f32.gmra.mrb[22].mxu0 %vm562_vm2, %v1957_v4  ;;  %v4869_v4 = vld [vmem:[#allocation2 + $0x1] ss:$0 sm:$0xff] }
 0x12b   : > { %3577 = vmatpush3.bf16.msra.mxu1 %v3576_v40 }
 0x12c   : > { %3578 = vmatprep.subr.bf16.mxu1 %v3941_v15 }
 0x12f   : > { %3580 = vmatpush3.bf16.msra.mxu1 %v3579_v21 }
 0x130   : > { %3410 = vmatprep.subr.mxu1 %v3943_v19 }
 0x187   : > { %v3103_v7 = vpop.f32.mrb[0].mxu1 }
 0x188   : > { %v653_v13 = vpop.f32.mrb[1].mxu1 }
 0x18b   : > { %v3106_v30 = vpop.f32.mrb[2].mxu1 }
 0x18c   : > { %v663_v8 = vpop.f32.mrb[3].mxu1 }
 0x18f   : > { %v3109_v23 = vpop.f32.mrb[4].mxu1 }
 0x190   : > { %v673_v36 = vpop.f32.mrb[5].mxu1 }
 0x193   : > { %v3112_v41 = vpop.f32.mrb[6].mxu1 }
 0x194   : > { %v683_v47 = vpop.f32.mrb[7].mxu1 }
 0x197   : > { %v3115_v28 = vpop.f32.mrb[8].mxu1 }
 0x198   : > { %v693_v35 = vpop.f32.mrb[9].mxu1 }
 0x19b   : > { %v3118_v25 = vpop.f32.mrb[10].mxu1 }
 0x19c   : > { %v703_v37 = vpop.f32.mrb[11].mxu1 }
 0x1a0   : > { %v3171_v38 = vpop.f32.mrb[0].mxu0 }
 0x1a1   : > { %v3581_v39 = vadd.f32 %v3171_v38, %v3103_v7  ;;  %v1001_v45 = vpop.f32.mrb[1].mxu0 }
 0x1a2   : > { %v3582_v48 = vadd.f32 %v1001_v45, %v653_v13 }
 0x1a3   : > { %v1079_v61 = vmul.f32 %v3581_v39, %v2803_v26 }
 0x1a4   : > { %v3174_v29 = vpop.f32.mrb[2].mxu0  ;;  %v1078_v27 = vmul.f32 %v3582_v48, %v2803_v26 }
 0x1a5   : > { %v3583_v51 = vadd.f32 %v3174_v29, %v3106_v30  ;;  %v1011_v56 = vpop.f32.mrb[3].mxu0  ;;  %v4872_v3 = vadd.f32 %v4867_v9, %v1079_v61 }
 0x1a6   : > { %v3584_v60 = vadd.f32 %v1011_v56, %v663_v8  ;;  %v4875_v11 = vadd.f32 %v4867_v9, %v1078_v27 }
 0x1a7   : > { %v1081_v31 = vmul.f32 %v3583_v51, %v2803_v26 }
 0x1a8   : > { %v3177_v52 = vpop.f32.mrb[4].mxu0  ;;  %v1080_v59 = vmul.f32 %v3584_v60, %v2803_v26  ;;  %v1108_v21 = vmax.f32 %v4875_v11, 0.0 }
 0x1a9   : > { %v3585_v0 = vadd.f32 %v3177_v52, %v3109_v23  ;;  %v1021_v49 = vpop.f32.mrb[5].mxu0  ;;  %v4878_v15 = vadd.f32 %v4867_v9, %v1081_v31  ;;  %v4886_v23 = vld [vmem:[#allocation4 + $0x1] ss:$0 sm:$0xff] }
 0x1aa   : > { %v3586_v53 = vadd.f32 %v1021_v49, %v673_v36  ;;  %v4884_v8 = vadd.f32 %v4867_v9, %v1080_v59 }
 0x1ab   : > { %v1083_v10 = vmul.f32 %v3585_v0, %v2803_v26 }
 0x1ac   : > { %v3180_v2 = vpop.f32.mrb[6].mxu0  ;;  %v1082_v13 = vmul.f32 %v3586_v53, %v2803_v26  ;;  %v1110_v38 = vmax.f32 %v4884_v8, 0.0 }
 0x1ad   : > { %v3587_v12 = vadd.f32 %v3180_v2, %v3112_v41  ;;  %v1031_v14 = vpop.f32.mrb[7].mxu0  ;;  %v4892_v36 = vadd.f32 %v4867_v9, %v1083_v10  ;;  %v1109_v41 = vmax.f32 %v4872_v3, 0.0 }
 0x1ae   : > { %v3588_v58 = vadd.f32 %v1031_v14, %v683_v47  ;;  %v4896_v6 = vadd.f32 %v4867_v9, %v1082_v13 }
 0x1af   : > { %v1085_v30 = vmul.f32 %v3587_v12, %v2803_v26  ;;  %v1113_v51 = vmax.f32 %v4892_v36, 0.0  ;;  %v4933_v12 = vld [vmem:[#allocation2 + $0x2] ss:$0 sm:$0xff] }
 0x1b0   : > { %v3183_v5 = vpop.f32.mrb[8].mxu0  ;;  %v1084_v22 = vmul.f32 %v3588_v58, %v2803_v26  ;;  %v1112_v0 = vmax.f32 %v4896_v6, 0.0 }
 0x1b1   : > { %v3589_v62 = vadd.f32 %v3183_v5, %v3115_v28  ;;  %v1041_v55 = vpop.f32.mrb[9].mxu0  ;;  %v1111_v28 = vmax.f32 %v4878_v15, 0.0 }
 0x1b2   : > { %v3590_v24 = vadd.f32 %v1041_v55, %v693_v35  ;;  %v4902_v35 = vadd.f32 %v4867_v9, %v1085_v30  ;;  %v4911_v39 = vadd.f32 %v4867_v9, %v1084_v22 }
 0x1b3   : > { %v1087_v40 = vmul.f32 %v3589_v62, %v2803_v26 }
 0x1b4   : > { %v3186_v17 = vpop.f32.mrb[10].mxu0  ;;  %v1086_v44 = vmul.f32 %v3590_v24, %v2803_v26  ;;  %v5265_v14 = vmax.f32 %v4902_v35, 0.0  ;;  %v5269_v55 = vmax.f32 %v4911_v39, 0.0  ;;  %v5298_v11 = vmax.f32 %v4902_v35, 0.0 }
 0x1b5   : > { %v3591_v16 = vadd.f32 %v3186_v17, %v3118_v25  ;;  %v1051_v18 = vpop.f32.mrb[11].mxu0  ;;  %v4921_v56 = vadd.f32 %v4867_v9, %v1087_v40 }
 0x1b6   : > { %v3592_v32 = vadd.f32 %v1051_v18, %v703_v37  ;;  %v4927_v49 = vadd.f32 %v4867_v9, %v1086_v44 }
 0x1b7   : > { %v1089_v58 = vmul.f32 %v3591_v16, %v2803_v26  ;;  %v5299_v8 = vmax.f32 %v4921_v56, 0.0 }
 0x1b8   : > { %v1088_v5 = vmul.f32 %v3592_v32, %v2803_v26 }
 0x1b9   : > { %v4960_v31 = vadd.f32 %v4867_v9, %v1089_v58 }
 0x1bb   : > { %v5301_v6 = vmax.f32 %v4960_v31, 0.0 }
 0x1cf   : > { %v3273_v50 = vpop.f32.mrb[12].mxu1 }
 0x1d0   : > { %v1536_v20 = vpop.f32.mrb[13].mxu1  ;;  %v1614_v63 = vmul.f32 %v3273_v50, %v4869_v4  ;;  %v4943_v50 = vld [vmem:[#allocation4 + $0x2] ss:$0 sm:$0xff] }
 0x1d1   : > { %v1613_v1 = vmul.f32 %v4869_v4, %v1536_v20 }
 0x1d2   : > { %v4905_v25 = vadd.f32 %v4886_v23, %v1614_v63 }
 0x1d3   : > { %v3276_v34 = vpop.f32.mrb[14].mxu1  ;;  %v4914_v45 = vadd.f32 %v4886_v23, %v1613_v1 }
 0x1d4   : > { %v1546_v42 = vpop.f32.mrb[15].mxu1  ;;  %v1616_v47 = vmul.f32 %v3276_v34, %v4869_v4  ;;  %v5263_v62 = vmax.f32 %v4905_v25, 0.0  ;;  %v5276_v34 = vmax.f32 %v4921_v56, 0.0 }
 0x1d5   : > { %v1615_v48 = vmul.f32 %v4869_v4, %v1546_v42  ;;  %v5264_v24 = vmax.f32 %v4914_v45, 0.0  ;;  %v5302_v36 = vmax.f32 %v4914_v45, 0.0 }
 0x1d6   : > { %v4930_v53 = vadd.f32 %v4886_v23, %v1616_v47  ;;  %v2168_v59 = vadd.f32 %v5263_v62, %v1109_v41 }
 0x1d7   : > { %v3279_v46 = vpop.f32.mrb[16].mxu1  ;;  %v4940_v17 = vadd.f32 %v4886_v23, %v1615_v48  ;;  %v2167_v10 = vadd.f32 %v5264_v24, %v1108_v21 }
 0x1d8   : > { %v1556_v57 = vpop.f32.mrb[17].mxu1  ;;  %v1618_v60 = vmul.f32 %v3279_v46, %v4869_v4  ;;  %v1116_v46 = vmax.f32 %v4927_v49, 0.0 }
 0x1d9   : > { %v1617_v52 = vmul.f32 %v4869_v4, %v1556_v57  ;;  %v5258_v57 = vmax.f32 %v4930_v53, 0.0  ;;  %v5261_v13 = vmax.f32 %v4940_v17, 0.0 }
 0x1da   : > { %v4947_v42 = vadd.f32 %v4886_v23, %v1618_v60 }
 0x1db   : > { %v3282_v43 = vpop.f32.mrb[18].mxu1  ;;  %v4950_v16 = vadd.f32 %v4886_v23, %v1617_v52  ;;  %v2170_v48 = vadd.f32 %v5258_v57, %v1111_v28 }
 0x1dc   : > { %v1566_v7 = vpop.f32.mrb[19].mxu1  ;;  %v1620_v2 = vmul.f32 %v3282_v43, %v4869_v4  ;;  %v4963_v43 = vadd.f32 %v4867_v9, %v1088_v5  ;;  %v5259_v22 = vmax.f32 %v4947_v42, 0.0 }
 0x1dd   : > { %v1619_v18 = vmul.f32 %v4869_v4, %v1566_v7  ;;  %v5260_v1 = vmax.f32 %v4950_v16, 0.0 }
 0x1de   : > { %v4956_v61 = vadd.f32 %v4886_v23, %v1620_v2  ;;  %v5300_v15 = vmax.f32 %v4963_v43, 0.0 }
 0x1df   : > { %v4881_v54 = vpop.f32.mrb[20].mxu1  ;;  %v4978_v30 = vadd.f32 %v4886_v23, %v1619_v18 }
 0x1e0   : > { %v4889_v33 = vpop.f32.mrb[21].mxu1  ;;  %v5262_v60 = vmax.f32 %v4956_v61, 0.0  ;;  %v1622_v58 = vmul.f32 %v4881_v54, %v4869_v4 }
 0x1e1   : > { %v1621_v5 = vmul.f32 %v4869_v4, %v4889_v33 }
 0x1e3   : > { %v4907_v37 = vpop.f32.mrb[22].mxu1 }
 0x1e4   : > { %v4917_v29 = vpop.f32.mrb[23].mxu1 }
 0x1e8   : > { %v3375_v20 = vpop.f32.mrb[12].mxu0 }
 0x1e9   : > { %v2126_v32 = vmul.f32 %v3375_v20, %v4933_v12  ;;  %v2048_v26 = vpop.f32.mrb[13].mxu0 }
 0x1ea   : > { %v2125_v27 = vmul.f32 %v4933_v12, %v2048_v26  ;;  %v5266_v26 = vmax.f32 %v4978_v30, 0.0 }
 0x1eb   : > { %v4970_v7 = vadd.f32 %v4943_v50, %v2126_v32  ;;  %v2169_v32 = vadd.f32 %v5261_v13, %v1110_v38  ;;  %v5035_v13 = vadd.f32 %v4886_v23, %v1621_v5  ;;  %v1624_v5 = vmul.f32 %v4907_v37, %v4869_v4 }
 0x1ec   : > { %v4981_v9 = vadd.f32 %v4943_v50, %v2125_v27  ;;  %v3378_v63 = vpop.f32.mrb[14].mxu0 }
 0x1ed   : > { %v5256_v40 = vmax.f32 %v4970_v7, 0.0  ;;  %v2128_v44 = vmul.f32 %v3378_v63, %v4933_v12  ;;  %v2058_v47 = vpop.f32.mrb[15].mxu0  ;;  %v2171_v63 = vadd.f32 %v5260_v1, %v1112_v0  ;;  %v5032_v1 = vadd.f32 %v4886_v23, %v1622_v58 }
 0x1ee   : > { %v5257_v52 = vmax.f32 %v4981_v9, 0.0  ;;  %v2127_v2 = vmul.f32 %v4933_v12, %v2058_v47 }
 0x1ef   : > { %v2180_v18 = vadd.f32 %v2168_v59, %v5256_v40  ;;  %v5001_v20 = vadd.f32 %v4943_v50, %v2128_v44  ;;  %v2172_v59 = vadd.f32 %v5259_v22, %v1113_v51  ;;  %v2174_v22 = vadd.f32 %v5262_v60, %v5265_v14 }
 0x1f0   : > { %v2179_v27 = vadd.f32 %v2167_v10, %v5257_v52  ;;  %v5011_v54 = vadd.f32 %v4943_v50, %v2127_v2  ;;  %v3381_v33 = vpop.f32.mrb[16].mxu0 }
 0x1f1   : > { %v5267_v44 = vmax.f32 %v5001_v20, 0.0  ;;  %v2130_v47 = vmul.f32 %v3381_v33, %v4933_v12  ;;  %v2068_v40 = vpop.f32.mrb[17].mxu0  ;;  %v2192_v10 = vsel %vm562_vm2, %v2180_v18, 0.0  ;;  %v2173_v18 = vadd.f32 %v5266_v26, %v5269_v55 }
 0x1f2   : > { %v2191_v2 = vsel %vm562_vm2, %v2179_v27, 0.0  ;;  %v5268_v52 = vmax.f32 %v5011_v54, 0.0  ;;  %v2129_v57 = vmul.f32 %v4933_v12, %v2068_v40  ;;  %v1623_v26 = vmul.f32 %v4869_v4, %v4917_v29 }
 0x1f3   : > { %v5038_v33 = vadd.f32 %v4943_v50, %v2130_v47  ;;  %v2182_v40 = vadd.f32 %v2170_v48, %v5267_v44  ;;  %v2193_v47 = vadd.f32 %v2192_v10, %v2191_v2  ;;  %v5272_v44 = vmax.f32 %v5032_v1, 0.0 }
 0x1f4   : > { %v2181_v27 = vadd.f32 %v2169_v32, %v5268_v52  ;;  %v5049_v58 = vadd.f32 %v4943_v50, %v2129_v57  ;;  %v3384_v60 = vpop.f32.mrb[18].mxu0  ;;  %v5273_v52 = vmax.f32 %v5035_v13, 0.0 }
 0x1f5   : > { %v5270_v62 = vmax.f32 %v5038_v33, 0.0  ;;  %v2132_v24 = vmul.f32 %v3384_v60, %v4933_v12  ;;  %v2078_v14 = vpop.f32.mrb[19].mxu0  ;;  %v2196_v60 = vsel %vm562_vm2, %v2182_v40, 0.0  ;;  %v5079_v40 = vadd.f32 %v4886_v23, %v1623_v26 }
 0x1f6   : > { %v2194_v48 = vsel %vm562_vm2, %v2181_v27, 0.0  ;;  %v5271_v32 = vmax.f32 %v5049_v58, 0.0  ;;  %v2131_v57 = vmul.f32 %v4933_v12, %v2078_v14  ;;  %v5074_v27 = vadd.f32 %v4886_v23, %v1624_v5 }
 0x1f7   : > { %v2195_v37 = vadd.f32 %v2194_v48, %v2193_v47  ;;  %v5063_v10 = vadd.f32 %v4943_v50, %v2132_v24  ;;  %v2184_v2 = vadd.f32 %v2172_v59, %v5270_v62  ;;  %v2176_v5 = vadd.f32 %v5272_v44, %v5276_v34 }
 0x1f8   : > { %v2183_v4 = vadd.f32 %v2171_v63, %v5271_v32  ;;  %v5071_v29 = vadd.f32 %v4943_v50, %v2131_v57  ;;  %v3387_v14 = vpop.f32.mrb[20].mxu0  ;;  %v5279_v32 = vmax.f32 %v5074_v27, 0.0 }
 0x1f9   : > { %v2197_v55 = vadd.f32 %v2196_v60, %v2195_v37  ;;  %v5274_v47 = vmax.f32 %v5063_v10, 0.0  ;;  %v2134_v24 = vmul.f32 %v3387_v14, %v4933_v12  ;;  %v2088_v48 = vpop.f32.mrb[21].mxu0  ;;  %v2175_v37 = vadd.f32 %v5273_v52, %v1116_v46 }
 0x1fa   : > { %v2198_v59 = vsel %vm562_vm2, %v2183_v4, 0.0  ;;  %v5275_v63 = vmax.f32 %v5071_v29, 0.0  ;;  %v2133_v57 = vmul.f32 %v4933_v12, %v2088_v48  ;;  %v2200_v26 = vsel %vm562_vm2, %v2184_v2, 0.0 }
 0x1fb   : > { %v2199_v60 = vadd.f32 %v2198_v59, %v2197_v55  ;;  %v5093_v23 = vadd.f32 %v4943_v50, %v2134_v24  ;;  %v2186_v4 = vadd.f32 %v2174_v22, %v5274_v47  ;;  %v5280_v2 = vmax.f32 %v5079_v40, 0.0 }
 0x1fc   : > { %v2185_v14 = vadd.f32 %v2173_v18, %v5275_v63  ;;  %v5101_v48 = vadd.f32 %v4943_v50, %v2133_v57  ;;  %v3390_v62 = vpop.f32.mrb[22].mxu0  ;;  %v5281_v57 = vmax.f32 %v4960_v31, 0.0  ;;  %v5282_v47 = vmax.f32 %v4963_v43, 0.0 }
 0x1fd   : > { %v2201_v44 = vadd.f32 %v2200_v26, %v2199_v60  ;;  %v5277_v55 = vmax.f32 %v5093_v23, 0.0  ;;  %v2136_v24 = vmul.f32 %v3390_v62, %v4933_v12  ;;  %v2098_v59 = vpop.f32.mrb[23].mxu0  ;;  %v2204_v26 = vsel %vm562_vm2, %v2186_v4, 0.0 }
 0x1fe   : > { %v2202_v52 = vsel %vm562_vm2, %v2185_v14, 0.0  ;;  %v5278_v22 = vmax.f32 %v5101_v48, 0.0  ;;  %v2135_v18 = vmul.f32 %v4933_v12, %v2098_v59 }
 0x1ff   : > { %v2203_v63 = vadd.f32 %v2202_v52, %v2201_v44  ;;  %v5113_v60 = vadd.f32 %v4943_v50, %v2136_v24  ;;  %v2188_v62 = vadd.f32 %v2176_v5, %v5277_v55  ;;  %v2178_v52 = vadd.f32 %v5279_v32, %v5281_v57 }
 0x200   : > { %v2187_v14 = vadd.f32 %v2175_v37, %v5278_v22  ;;  %v5121_v34 = vadd.f32 %v4943_v50, %v2135_v18  ;;  %v2177_v44 = vadd.f32 %v5280_v2, %v5282_v47 }
 0x201   : > { %v2205_v12 = vadd.f32 %v2204_v26, %v2203_v63  ;;  %v5283_v59 = vmax.f32 %v5113_v60, 0.0  ;;  %v2208_v50 = vsel %vm562_vm2, %v2188_v62, 0.0 }
 0x202   : > { %v2206_v5 = vsel %vm562_vm2, %v2187_v14, 0.0  ;;  %v5284_v37 = vmax.f32 %v5121_v34, 0.0 }
 0x203   : > { %v2207_v4 = vadd.f32 %v2206_v5, %v2205_v12  ;;  %v2190_v63 = vadd.f32 %v2178_v52, %v5283_v59  ;;  %v517_v52 = vld [vmem:[#allocation9] sm:$0x3] }
 0x204   : > { %v2189_v24 = vadd.f32 %v2177_v44, %v5284_v37  ;;  %v2304_v44 = vld [vmem:[#allocation6] sm:$0x1] }
 0x205   : > { %v2209_v18 = vadd.f32 %v2208_v50, %v2207_v4  ;;  %v2213_v22 = vsel %vm2212_vm8, %v2190_v63, 0.0 }
 0x206   : > { %v2210_v26 = vsel %vm562_vm2, %v2189_v24, 0.0 }
 0x207   : > { %v2211_v55 = vadd.f32 %v2210_v26, %v2209_v18  ;;  %v520_v18 = vld [vmem:[#allocation10] sm:$0x1]  ;;  %v521_v26 = vld [vmem:[#allocation10 + $0x1] sm:$0x1] }
 0x209   : > { %v2214_v32 = vadd.f32 %v2213_v22, %v2211_v55  ;;  %v2306_v55 = vld [vmem:[#allocation7] sm:$0x1] }
 0x20b   : > { %v2215_v14 = vrot.slane %v2214_v32, 4 }
 0x20d   : > { %v2216_v2 = vadd.f32 %v2215_v14, %v2214_v32 }
 0x20f   : > { %v2217_v57 = vrot.slane %v2216_v2, 2 }
 0x211   : > { %v2218_v12 = vadd.f32 %v2217_v57, %v2216_v2  ;;  %v518_v57 = vld [vmem:[#allocation9 + $0x2] sm:$0x3] }
 0x213   : > { %v2219_v5 = vrot.slane %v2218_v12, 1 }
 0x215   : > { %v2220_v62 = vadd.f32 %v2219_v5, %v2218_v12 }
 0x217   : > { %v2222_v47 = vmul.f32 0.010989011, %v2220_v62 }
 0x219   : > { %3408 = vmatmul.mubr.msk.f32.vlgmr.msra.gmra.mrb[24].mxu1 %vm562_vm2, %v2222_v47  ;;  %v519_v47 = vld [vmem:[#allocation9 + $0x4] sm:$0x3] }
 0x21a   : > { %3412 = vmatprep.mubr.msk.f32.mxu1 %vm3942_vm7, %v3943_v19  ;;  %3411 = vmatpush3.msk.msra.mxu1 %vm1932_vm5, %v517_v52  ;;  %v522_v52 = vld [vmem:[#allocation10 + $0x2] sm:$0x1] }
 0x21b   : > { %3415 = vmatprep.subr.mxu1 %v3943_v19 }
 0x2ec   : > { %v2300_v4 = vpop.f32.mrb[24].mxu1 }
 0x2ed   : > { %v2305_v22 = vmul.f32 %v2304_v44, %v2300_v4  ;;  %v3409_v32 = vpop.f32.mrb[25].mxu1 }
 0x2ef   : > { %v2307_v50 = vadd.f32 %v2306_v55, %v2305_v22 }
 0x2f1   : > { %v2308_v2 = vmax.f32 %v2307_v50, 0.0 }
 0x2f3   : > { %3413 = vmatmul.mubr.msk.f32.vlgmr.msra.gmra.mrb[26].mxu1 %vm2309_vm9, %v2308_v2 }
 0x2f4   : > { %3416 = vmatpush3.msk.msra.mxu1 %vm1932_vm5, %v518_v57  ;;  %3417 = vmatprep.mubr.msk.f32.mxu1 %vm3942_vm7, %v3943_v19 }
 0x2f5   : > { %3420 = vmatprep.subr.mxu1 %v3943_v19 }
 0x2f7   : > { %3418 = vmatmul.mubr.msk.f32.vlgmr.msra.gmra.mrb[28].mxu1 %vm2309_vm9, %v2308_v2 }
 0x2f8   : > { %3421 = vmatpush3.msk.msra.mxu1 %vm1932_vm5, %v519_v47  ;;  %3422 = vmatprep.mubr.msk.f32.mxu1 %vm3942_vm7, %v3943_v19 }
 0x2fb   : > { %3423 = vmatmul.mubr.msk.f32.vlgmr.msra.gmra.mrb[30].mxu1 %vm2309_vm9, %v2308_v2 }
 0x3c6   : > { %v2382_v63 = vpop.f32.mrb[26].mxu1 }
 0x3c7   : > { %v3414_v24 = vpop.f32.mrb[27].mxu1  ;;  %v2383_v12 = vadd.f32 %v2382_v63, %v520_v18 }
 0x3ca   : > { %v2455_v14 = vpop.f32.mrb[28].mxu1 }
 0x3cb   : > { %v2456_v5 = vadd.f32 %v2455_v14, %v521_v26  ;;  %v3419_v62 = vpop.f32.mrb[29].mxu1  ;;  %v2547_v14 = vlaneseq }
 0x3cd   : > { %v2532_v44 = vmax.f32 %v2383_v12, %v2456_v5  ;;  %v2548_v62 = vshrl.u32 %v2547_v14, 7  ;;  %v5309_v14 = vmax.f32 %v4956_v61, 0.0 }
 0x3ce   : > { %v2528_v4 = vpop.f32.mrb[30].mxu1 }
 0x3cf   : > { %v2529_v55 = vadd.f32 %v2528_v4, %v522_v52  ;;  %v3424_v22 = vpop.f32.mrb[31].mxu1  ;;  %v2549_v52 = vsub.s32 0, %v2548_v62  ;;  %v5310_v62 = vmax.f32 %v5035_v13, 0.0 }
 0x3d1   : > { %v2533_v32 = vmax.f32 %v2532_v44, %v2529_v55 }
 0x3d3   : > { %v2534_v50 = vsub.f32 %v2383_v12, %v2533_v32  ;;  %v2537_v57 = vsub.f32 %v2456_v5, %v2533_v32  ;;  %v2540_v47 = vsub.f32 %v2529_v55, %v2533_v32 }
 0x3d5   : > { %v2535_v59 = vmul.f32 1.442695, %v2534_v50  ;;  %v2538_v19 = vmul.f32 1.442695, %v2537_v57  ;;  %v2541_v2 = vmul.f32 1.442695, %v2540_v47 }
 0x3d7   : > { %3731 = vpow2.f32 %v2535_v59 }
 0x3d8   : > { %3733 = vpow2.f32 %v2538_v19 }
 0x3d9   : > { %3735 = vpow2.f32 %v2541_v2  ;;  %v5297_v2 = vmax.f32 %v4911_v39, 0.0  ;;  %v5303_v39 = vmax.f32 %v4905_v25, 0.0 }
 0x3e1   : > { %v3732_v24 = vpop.eup %3731 }
 0x3e2   : > { %v3734_v37 = vpop.eup %3733 }
 0x3e3   : > { %v2543_v63 = vadd.f32 %v3734_v37, %v3732_v24  ;;  %v3736_v18 = vpop.eup %3735 }
 0x3e5   : > { %v2544_v26 = vadd.f32 %v3736_v18, %v2543_v63  ;;  %v5306_v63 = vmax.f32 %v4950_v16, 0.0  ;;  %v5313_v16 = vmax.f32 %v5074_v27, 0.0 }
 0x3e7   : > { %3737 = vrcp.f32 %v2544_v26  ;;  %v5308_v26 = vmax.f32 %v4978_v30, 0.0 }
 0x3f1   : > { %v3738_v4 = vpop.eup %3737 }
 0x3f2   : > { %v2546_v44 = vmul.f32 %v3738_v4, %v3732_v24  ;;  %v2563_v12 = vmul.f32 %v3738_v4, %v3734_v37  ;;  %v2592_v5 = vmul.f32 %v3738_v4, %v3736_v18  ;;  %v5307_v18 = vmax.f32 %v4947_v42, 0.0 }
 0x3f4   : > { %v2550_v55 = vrot.slane %v2546_v44, %v2549_v52  ;;  %v2567_v22 = vrot.slane %v2563_v12, %v2549_v52  ;;  %v2596_v32 = vrot.slane %v2592_v5, %v2549_v52 }
 0x3f6   : > { %v2551_v59 = vmul.f32 %v2550_v55, %v1108_v21  ;;  %v2552_v50 = vmul.f32 %v2550_v55, %v1109_v41  ;;  %v2553_v57 = vmul.f32 %v2550_v55, %v1110_v38  ;;  %v2554_v47 = vmul.f32 %v2550_v55, %v1111_v28 }
 0x3f7   : > { %v2555_v19 = vmul.f32 %v2550_v55, %v1112_v0  ;;  %v2556_v37 = vmul.f32 %v2550_v55, %v1113_v51  ;;  %v2557_v24 = vmul.f32 %v2550_v55, %v5297_v2  ;;  %v2558_v21 = vmul.f32 %v2550_v55, %v5298_v11 }
 0x3f8   : > { %v2559_v3 = vmul.f32 %v2550_v55, %v1116_v46  ;;  %v2560_v41 = vmul.f32 %v2550_v55, %v5299_v8  ;;  %v2561_v28 = vmul.f32 %v2550_v55, %v5300_v15  ;;  %v2562_v38 = vmul.f32 %v2550_v55, %v5301_v6 }
 0x3f9   : > { %v2568_v51 = vmul.f32 %v2567_v22, %v5302_v36  ;;  %v2569_v35 = vmul.f32 %v2567_v22, %v5303_v39  ;;  %v5304_v0 = vmax.f32 %v4940_v17, 0.0  ;;  %v5305_v46 = vmax.f32 %v4930_v53, 0.0 }
 0x3fa   : > { %v2572_v43 = vmul.f32 %v2567_v22, %v5306_v63  ;;  %v2573_v31 = vmul.f32 %v2567_v22, %v5307_v18  ;;  %v2574_v45 = vmul.f32 %v2567_v22, %v5308_v26  ;;  %v2575_v25 = vmul.f32 %v2567_v22, %v5309_v14 }
 0x3fb   : > { %v2570_v49 = vmul.f32 %v2567_v22, %v5304_v0  ;;  %v2571_v56 = vmul.f32 %v2567_v22, %v5305_v46  ;;  %v2576_v52 = vmul.f32 %v2567_v22, %v5310_v62  ;;  %v5311_v17 = vmax.f32 %v5032_v1, 0.0 }
 0x3fc   : > { %v5312_v53 = vmax.f32 %v5079_v40, 0.0  ;;  %v2579_v12 = vmul.f32 %v2567_v22, %v5313_v16  ;;  %v2580_v42 = vadd.f32 %v2568_v51, %v2551_v59  ;;  %v2581_v5 = vadd.f32 %v2569_v35, %v2552_v50 }
 0x3fd   : > { %v2577_v4 = vmul.f32 %v2567_v22, %v5311_v17  ;;  %v2582_v55 = vadd.f32 %v2570_v49, %v2553_v57  ;;  %v2583_v30 = vadd.f32 %v2571_v56, %v2554_v47  ;;  %v2584_v2 = vadd.f32 %v2572_v43, %v2555_v19 }
 0x3fe   : > { %v2578_v44 = vmul.f32 %v2567_v22, %v5312_v53  ;;  %v2585_v61 = vadd.f32 %v2573_v31, %v2556_v37  ;;  %v2586_v11 = vadd.f32 %v2574_v45, %v2557_v24  ;;  %v2587_v8 = vadd.f32 %v2575_v25, %v2558_v21 }
 0x3ff   : > { %v2588_v13 = vadd.f32 %v2576_v52, %v2559_v3  ;;  %v2589_v15 = vadd.f32 %v2577_v4, %v2560_v41  ;;  %v2591_v1 = vadd.f32 %v2579_v12, %v2562_v38  ;;  %v5314_v36 = vmax.f32 %v4981_v9, 0.0 }
 0x400   : > { %v2590_v6 = vadd.f32 %v2578_v44, %v2561_v28  ;;  %v5315_v39 = vmax.f32 %v4970_v7, 0.0  ;;  %v5316_v22 = vmax.f32 %v5011_v54, 0.0  ;;  %v5317_v50 = vmax.f32 %v5001_v20, 0.0 }
 0x401   : > { %v2597_v40 = vmul.f32 %v2596_v32, %v5314_v36  ;;  %v5318_v47 = vmax.f32 %v5049_v58, 0.0  ;;  %v5319_v37 = vmax.f32 %v5038_v33, 0.0  ;;  %v5320_v21 = vmax.f32 %v5071_v29, 0.0 }
 0x402   : > { %v2598_v27 = vmul.f32 %v2596_v32, %v5315_v39  ;;  %v2599_v59 = vmul.f32 %v2596_v32, %v5316_v22  ;;  %v2600_v57 = vmul.f32 %v2596_v32, %v5317_v50  ;;  %v5321_v9 = vmax.f32 %v5063_v10, 0.0 }
 0x403   : > { %v2601_v19 = vmul.f32 %v2596_v32, %v5318_v47  ;;  %v2602_v24 = vmul.f32 %v2596_v32, %v5319_v37  ;;  %v2603_v3 = vmul.f32 %v2596_v32, %v5320_v21  ;;  %v5322_v7 = vmax.f32 %v5101_v48, 0.0 }
 0x404   : > { %v2604_v41 = vmul.f32 %v2596_v32, %v5321_v9  ;;  %v5323_v54 = vmax.f32 %v5093_v23, 0.0  ;;  %v5324_v28 = vmax.f32 %v5121_v34, 0.0  ;;  %v5325_v38 = vmax.f32 %v5113_v60, 0.0 }
 0x405   : > { %v2605_v20 = vmul.f32 %v2596_v32, %v5322_v7  ;;  %v2609_v51 = vadd.f32 %v2597_v40, %v2580_v42  ;;  %v2610_v35 = vadd.f32 %v2598_v27, %v2581_v5  ;;  %v2611_v10 = vadd.f32 %v2599_v59, %v2582_v55 }
 0x406   : > { %v2606_v58 = vmul.f32 %v2596_v32, %v5323_v54  ;;  %v2607_v33 = vmul.f32 %v2596_v32, %v5324_v28  ;;  %v2608_v29 = vmul.f32 %v2596_v32, %v5325_v38  ;;  %v2612_v0 = vadd.f32 %v2600_v57, %v2583_v30 }
 0x407   : > { %v2613_v49 = vadd.f32 %v2601_v19, %v2584_v2  ;;  %v2614_v46 = vadd.f32 %v2602_v24, %v2585_v61  ;;  %v2615_v56 = vadd.f32 %v2603_v3, %v2586_v11  ;;  %v2616_v63 = vadd.f32 %v2604_v41, %v2587_v8  ;;  %2621 = vst.msk [vmem:[%s416_s26] sm:$0xff] %vm562_vm2, %v2609_v51 }
 0x408   : > { %v2617_v43 = vadd.f32 %v2605_v20, %v2588_v13  ;;  %v2618_v48 = vadd.f32 %v2606_v58, %v2589_v15  ;;  %v2619_v18 = vadd.f32 %v2607_v33, %v2590_v6  ;;  %v2620_v31 = vadd.f32 %v2608_v29, %v2591_v1  ;;  %2622 = vst.msk [vmem:[%s416_s26 + $0x8] sm:$0xff] %vm562_vm2, %v2610_v35 }
 0x409   : > { %2623 = vst.msk [vmem:[%s416_s26 + $0x10] sm:$0xff] %vm562_vm2, %v2611_v10  ;;  %2624 = vst.msk [vmem:[%s416_s26 + $0x18] sm:$0xff] %vm562_vm2, %v2612_v0 }
 0x40a   : > { %2625 = vst.msk [vmem:[%s416_s26 + $0x20] sm:$0xff] %vm562_vm2, %v2613_v49  ;;  %2626 = vst.msk [vmem:[%s416_s26 + $0x28] sm:$0xff] %vm562_vm2, %v2614_v46 }
 0x40b   : > { %2627 = vst.msk [vmem:[%s416_s26 + $0x30] sm:$0xff] %vm562_vm2, %v2615_v56  ;;  %2628 = vst.msk [vmem:[%s416_s26 + $0x38] sm:$0xff] %vm562_vm2, %v2616_v63 }
 0x40c   : > { %2629 = vst.msk [vmem:[%s416_s26 + $0x40] sm:$0xff] %vm562_vm2, %v2617_v43  ;;  %2630 = vst.msk [vmem:[%s416_s26 + $0x48] sm:$0xff] %vm562_vm2, %v2618_v48 }
 0x40d   : > { %2631 = vst.msk [vmem:[%s416_s26 + $0x50] sm:$0xff] %vm562_vm2, %v2619_v18 }
 0x40e   : > { %2632 = vst.msk [vmem:[%s416_s26 + $0x58] sm:$0x7] %vm2212_vm8, %v2620_v31 }
 0x40f PF: > { %s23_s30 = sadd.s32 1, %s3929_s30  }
 0x410   : > { %p20_p9 = scmp.ge.s32.totalorder %s23_s30, 4  }
 0x412   :  { %22 = sbr.rel (!%p20_p9) target bundleno = 4 (0x4), region = 111 }
 0x419   :  { %2654 = vsyncpa [#allocation3], 1 }
 0x41a   :  { %2656 = vsyncpa [#allocation3 + $0x1], 1 }
 0x41b   :  { %2657 = vsyncpa [#allocation5], 1 }
 0x41c   :  { %2658 = vsyncpa [#allocation8], 1 }
 0x41d   :  { %2659 = vsyncpa [#allocation11], 1 }

// kernel: sknet_forward.7
= control target key start
LH: loop header
LB: loop body
LE: loop exit
PB: predicated region body
PF: predicated region fallthrough
CT: control target
= control target key end

     0   :  { %v4230_v13 = vmov 1983009808   ;;  %v778_v15 = vlaneseq  ;;  %s6716_s0 = inlined_call_operand.vmem [shape: f32[2,5824], index: 0, kind: input, shape index: {}]   ;;  %s6717_s1 = inlined_call_operand.vmem [shape: f32[5824,18], index: 1, kind: input, shape index: {}]   ;;  %s6718_s2 = inlined_call_operand.vmem [shape: f32[1,18], index: 2, kind: input, shape index: {}]   ;;  %s6719_s3 = inlined_call_operand.hbm [shape: f32[2,18], index: 3, kind: output, shape index: {}]  }
   0x1   :  { %v43_v0 = vld [vmem:[%s6717_s1 + $0x80] sm:$0xff]  ;;  %v44_v1 = vld [vmem:[%s6717_s1 + $0x88] sm:$0xff]  ;;  %v45_v5 = vld [vmem:[%s6717_s1 + $0x90] sm:$0xff]  ;;  %v776_v14 = vunpack.c.l.s4 %v4230_v13 }
   0x2   :  { %v27_v2 = vld [vmem:[%s6717_s1] sm:$0xff]  ;;  %v3446_v3 = vpack.c.bf16 %v44_v1, %v43_v0  ;;  %v28_v4 = vld [vmem:[%s6717_s1 + $0x8] sm:$0xff]  ;;  %v46_v6 = vld [vmem:[%s6717_s1 + $0x98] sm:$0xff]  ;;  %v779_v25 = vshrl.u32 %v778_v15, 7 }
   0x3   :  { %v3448_v7 = vpack.c.bf16 %v28_v4, %v27_v2  ;;  %v3450_v8 = vpack.c.bf16 %v46_v6, %v45_v5  ;;  %v29_v9 = vld [vmem:[%s6717_s1 + $0x10] sm:$0xff]  ;;  %v30_v10 = vld [vmem:[%s6717_s1 + $0x18] sm:$0xff]  ;;  %v47_v11 = vld [vmem:[%s6717_s1 + $0xa0] sm:$0xff]  ;;  %v777_v24 = vunpack.c.0.s8 %v776_v14 }
   0x4   :  { %3447 = vmatprep.subr.bf16.mxu1 %v3446_v3  ;;  %v48_v12 = vld [vmem:[%s6717_s1 + $0xa8] sm:$0xff]  ;;  %v3452_v16 = vpack.c.bf16 %v30_v10, %v29_v9  ;;  %v31_v18 = vld [vmem:[%s6717_s1 + $0x20] sm:$0xff]  ;;  %v49_v20 = vld [vmem:[%s6717_s1 + $0xb0] sm:$0xff] }
   0x5   :  { %3449 = vmatpush3.bf16.msra.mxu1 %v3448_v7  ;;  %v3454_v17 = vpack.c.bf16 %v48_v12, %v47_v11  ;;  %v32_v19 = vld [vmem:[%s6717_s1 + $0x28] sm:$0xff]  ;;  %v50_v21 = vld [vmem:[%s6717_s1 + $0xb8] sm:$0xff]  ;;  %v107_v22 = vld [vmem:[%s6717_s1 + $0x280] sm:$0xff]  ;;  %v4331_v41 = vsub.s32 %v777_v24, %v779_v25 }
   0x6   :  { %3451 = vmatprep.subr.bf16.mxu1 %v3450_v8  ;;  %v108_v23 = vld [vmem:[%s6717_s1 + $0x288] sm:$0xff]  ;;  %v3456_v26 = vpack.c.bf16 %v32_v19, %v31_v18  ;;  %v33_v27 = vld [vmem:[%s6717_s1 + $0x30] sm:$0xff]  ;;  %v91_v29 = vld [vmem:[%s6717_s1 + $0x200] sm:$0xff]  ;;  %v3458_v30 = vpack.c.bf16 %v50_v21, %v49_v20 }
   0x7   :  { %v3510_v28 = vpack.c.bf16 %v108_v23, %v107_v22  ;;  %v34_v31 = vld [vmem:[%s6717_s1 + $0x38] sm:$0xff]  ;;  %v51_v32 = vld [vmem:[%s6717_s1 + $0xc0] sm:$0xff]  ;;  %v92_v33 = vld [vmem:[%s6717_s1 + $0x208] sm:$0xff] }
   0x8   :  { %v52_v34 = vld [vmem:[%s6717_s1 + $0xc8] sm:$0xff]  ;;  %v3512_v35 = vpack.c.bf16 %v92_v33, %v91_v29  ;;  %v109_v36 = vld [vmem:[%s6717_s1 + $0x290] sm:$0xff]  ;;  %v110_v37 = vld [vmem:[%s6717_s1 + $0x298] sm:$0xff]  ;;  %v3460_v42 = vpack.c.bf16 %v34_v31, %v33_v27 }
   0x9   :  { %3453 = vmatpush3.bf16.msra.mxu1 %v3452_v16  ;;  %3511 = vmatprep.subr.bf16.mxu0 %v3510_v28  ;;  %v3514_v38 = vpack.c.bf16 %v110_v37, %v109_v36  ;;  %v93_v39 = vld [vmem:[%s6717_s1 + $0x210] sm:$0xff]  ;;  %v94_v40 = vld [vmem:[%s6717_s1 + $0x218] sm:$0xff]  ;;  %v35_v43 = vld [vmem:[%s6717_s1 + $0x40] sm:$0xff]  ;;  %v3462_v47 = vpack.c.bf16 %v52_v34, %v51_v32 }
   0xa   :  { %3455 = vmatprep.subr.bf16.mxu1 %v3454_v17  ;;  %v36_v44 = vld [vmem:[%s6717_s1 + $0x48] sm:$0xff]  ;;  %3513 = vmatpush3.bf16.msra.mxu0 %v3512_v35  ;;  %v3516_v45 = vpack.c.bf16 %v94_v40, %v93_v39  ;;  %v111_v46 = vld [vmem:[%s6717_s1 + $0x2a0] sm:$0xff]  ;;  %v53_v48 = vld [vmem:[%s6717_s1 + $0xd0] sm:$0xff] }
   0xb   :  { %v54_v49 = vld [vmem:[%s6717_s1 + $0xd8] sm:$0xff]  ;;  %3515 = vmatprep.subr.bf16.mxu0 %v3514_v38  ;;  %v112_v50 = vld [vmem:[%s6717_s1 + $0x2a8] sm:$0xff]  ;;  %v95_v52 = vld [vmem:[%s6717_s1 + $0x220] sm:$0xff]  ;;  %v3464_v57 = vpack.c.bf16 %v36_v44, %v35_v43 }
   0xc   :  { %v3518_v51 = vpack.c.bf16 %v112_v50, %v111_v46  ;;  %v96_v53 = vld [vmem:[%s6717_s1 + $0x228] sm:$0xff]  ;;  %v4360_v54 = vld [vmem:[%s6716_s0] sm:$0xff]  ;;  %v113_v56 = vld [vmem:[%s6717_s1 + $0x2b0] sm:$0xff]  ;;  %v3466_v62 = vpack.c.bf16 %v54_v49, %v53_v48 }
   0xd   :  { %3457 = vmatpush3.bf16.msra.mxu1 %v3456_v26  ;;  %v4364_v55 = vrot.slane %v4360_v54, %v4331_v41  ;;  %v37_v58 = vld [vmem:[%s6717_s1 + $0x50] sm:$0xff]  ;;  %v38_v59 = vld [vmem:[%s6717_s1 + $0x58] sm:$0xff]  ;;  %v3520_v60 = vpack.c.bf16 %v96_v53, %v95_v52  ;;  %v55_v63 = vld [vmem:[%s6717_s1 + $0xe0] sm:$0xff]  ;;  %v774_v28 = vcombine.high %v4360_v54, %v4360_v54 }
   0xe   :  { %3459 = vmatprep.subr.bf16.mxu1 %v3458_v30  ;;  %3517 = vmatpush3.bf16.msra.mxu0 %v3516_v45  ;;  %v114_v61 = vld [vmem:[%s6717_s1 + $0x2b8] sm:$0xff]  ;;  %v97_v2 = vld [vmem:[%s6717_s1 + $0x230] sm:$0xff]  ;;  %v56_v4 = vld [vmem:[%s6717_s1 + $0xe8] sm:$0xff]  ;;  %v3468_v7 = vpack.c.bf16 %v38_v59, %v37_v58 }
   0xf   :  { %3519 = vmatprep.subr.bf16.mxu0 %v3518_v51  ;;  %v789_v0 = vcombine.high %v4364_v55, %v4364_v55  ;;  %v3522_v1 = vpack.c.bf16 %v114_v61, %v113_v56  ;;  %v98_v3 = vld [vmem:[%s6717_s1 + $0x238] sm:$0xff]  ;;  %v115_v5 = vld [vmem:[%s6717_s1 + $0x2c0] sm:$0xff]  ;;  %v116_v6 = vld [vmem:[%s6717_s1 + $0x2c8] sm:$0xff]  ;;  %v3470_v11 = vpack.c.bf16 %v56_v4, %v55_v63 }
  0x10   :  { %v39_v8 = vld [vmem:[%s6717_s1 + $0x60] sm:$0xff]  ;;  %v40_v9 = vld [vmem:[%s6717_s1 + $0x68] sm:$0xff]  ;;  %v3524_v10 = vpack.c.bf16 %v98_v3, %v97_v2  ;;  %v57_v12 = vld [vmem:[%s6717_s1 + $0xf0] sm:$0xff]  ;;  %v3526_v13 = vpack.c.bf16 %v116_v6, %v115_v5 }
  0x11   :  { %3461 = vmatpush3.bf16.msra.mxu1 %v3460_v42  ;;  %1081 = vmatprep.mubr.f32.mxu1 %v789_v0  ;;  %v99_v14 = vld [vmem:[%s6717_s1 + $0x240] sm:$0xff]  ;;  %v100_v15 = vld [vmem:[%s6717_s1 + $0x248] sm:$0xff]  ;;  %v58_v16 = vld [vmem:[%s6717_s1 + $0xf8] sm:$0xff]  ;;  %v3472_v19 = vpack.c.bf16 %v40_v9, %v39_v8 }
  0x12   :  { %3463 = vmatprep.subr.bf16.mxu1 %v3462_v47  ;;  %3521 = vmatpush3.bf16.msra.mxu0 %v3520_v60  ;;  %v117_v17 = vld [vmem:[%s6717_s1 + $0x2d0] sm:$0xff]  ;;  %v118_v18 = vld [vmem:[%s6717_s1 + $0x2d8] sm:$0xff]  ;;  %v3528_v22 = vpack.c.bf16 %v100_v15, %v99_v14  ;;  %v3474_v23 = vpack.c.bf16 %v58_v16, %v57_v12  ;;  %v75_v24 = vld [vmem:[%s6717_s1 + $0x180] sm:$0xff]  ;;  %v4480_v47 = vrot.slane %v774_v28, %v4331_v41 }
  0x13   :  { %3523 = vmatprep.subr.bf16.mxu0 %v3522_v1  ;;  %v41_v20 = vld [vmem:[%s6717_s1 + $0x70] sm:$0xff]  ;;  %v42_v21 = vld [vmem:[%s6717_s1 + $0x78] sm:$0xff]  ;;  %v3530_v25 = vpack.c.bf16 %v118_v18, %v117_v17  ;;  %v76_v29 = vld [vmem:[%s6717_s1 + $0x188] sm:$0xff] }
  0x14   :  { %v101_v26 = vld [vmem:[%s6717_s1 + $0x250] sm:$0xff]  ;;  %v102_v27 = vld [vmem:[%s6717_s1 + $0x258] sm:$0xff]  ;;  %v119_v30 = vld [vmem:[%s6717_s1 + $0x2e0] sm:$0xff]  ;;  %v3476_v32 = vpack.c.bf16 %v42_v21, %v41_v20  ;;  %v3478_v37 = vpack.c.bf16 %v76_v29, %v75_v24 }
  0x15   :  { %3465 = vmatpush3.bf16.msra.mxu1 %v3464_v57  ;;  %v120_v31 = vld [vmem:[%s6717_s1 + $0x2e8] sm:$0xff]  ;;  %v59_v33 = vld [vmem:[%s6717_s1 + $0x100] sm:$0xff]  ;;  %v77_v35 = vld [vmem:[%s6717_s1 + $0x190] sm:$0xff]  ;;  %v3532_v36 = vpack.c.bf16 %v102_v27, %v101_v26 }
  0x16   :  { %3467 = vmatprep.subr.bf16.mxu1 %v3466_v62  ;;  %3525 = vmatpush3.bf16.msra.mxu0 %v3524_v10  ;;  %v60_v34 = vld [vmem:[%s6717_s1 + $0x108] sm:$0xff]  ;;  %v3534_v38 = vpack.c.bf16 %v120_v31, %v119_v30  ;;  %v103_v39 = vld [vmem:[%s6717_s1 + $0x260] sm:$0xff]  ;;  %v78_v43 = vld [vmem:[%s6717_s1 + $0x198] sm:$0xff]  ;;  %v790_v62 = vcombine.high %v4480_v47, %v4480_v47 }
  0x17   :  { %3527 = vmatprep.subr.bf16.mxu0 %v3526_v13  ;;  %v104_v40 = vld [vmem:[%s6717_s1 + $0x268] sm:$0xff]  ;;  %v121_v44 = vld [vmem:[%s6717_s1 + $0x2f0] sm:$0xff]  ;;  %v122_v45 = vld [vmem:[%s6717_s1 + $0x2f8] sm:$0xff]  ;;  %v3480_v48 = vpack.c.bf16 %v60_v34, %v59_v33  ;;  %v3482_v53 = vpack.c.bf16 %v78_v43, %v77_v35 }
  0x18   :  { %v4466_v42 = vld [vmem:[%s6716_s0 + $0x8] sm:$0xff]  ;;  %v61_v49 = vld [vmem:[%s6717_s1 + $0x110] sm:$0xff]  ;;  %v62_v50 = vld [vmem:[%s6717_s1 + $0x118] sm:$0xff]  ;;  %v3536_v51 = vpack.c.bf16 %v104_v40, %v103_v39  ;;  %v3538_v56 = vpack.c.bf16 %v122_v45, %v121_v44 }
  0x19   :  { %3469 = vmatpush3.bf16.msra.mxu1 %v3468_v7  ;;  %v798_v46 = vrot.slane %v4466_v42, %v4331_v41  ;;  %v79_v54 = vld [vmem:[%s6717_s1 + $0x1a0] sm:$0xff]  ;;  %v105_v57 = vld [vmem:[%s6717_s1 + $0x270] sm:$0xff]  ;;  %v106_v58 = vld [vmem:[%s6717_s1 + $0x278] sm:$0xff]  ;;  %v3484_v63 = vpack.c.bf16 %v62_v50, %v61_v49 }
  0x1a   :  { %3471 = vmatprep.subr.bf16.mxu1 %v3470_v11  ;;  %3529 = vmatpush3.bf16.msra.mxu0 %v3528_v22  ;;  %v80_v59 = vld [vmem:[%s6717_s1 + $0x1a8] sm:$0xff]  ;;  %v171_v60 = vld [vmem:[%s6717_s1 + $0x480] sm:$0xff]  ;;  %v3540_v2 = vpack.c.bf16 %v106_v58, %v105_v57  ;;  %v81_v4 = vld [vmem:[%s6717_s1 + $0x1b0] sm:$0xff] }
  0x1b   :  { %3531 = vmatprep.subr.bf16.mxu0 %v3530_v25  ;;  %v806_v52 = vcombine.high %v798_v46, %v798_v46  ;;  %v172_v61 = vld [vmem:[%s6717_s1 + $0x488] sm:$0xff]  ;;  %v63_v0 = vld [vmem:[%s6717_s1 + $0x120] sm:$0xff]  ;;  %v3486_v3 = vpack.c.bf16 %v80_v59, %v79_v54  ;;  %v82_v7 = vld [vmem:[%s6717_s1 + $0x1b8] sm:$0xff] }
  0x1c   :  { %v64_v1 = vld [vmem:[%s6717_s1 + $0x128] sm:$0xff]  ;;  %v155_v5 = vld [vmem:[%s6717_s1 + $0x400] sm:$0xff]  ;;  %v173_v8 = vld [vmem:[%s6717_s1 + $0x490] sm:$0xff]  ;;  %v3490_v14 = vpack.c.bf16 %v82_v7, %v81_v4 }
  0x1d   :  { %3473 = vmatpush3.bf16.msra.mxu1 %v3472_v19  ;;  %1221 = vmatprep.mubr.f32.mxu0 %v806_v52  ;;  %v156_v6 = vld [vmem:[%s6717_s1 + $0x408] sm:$0xff]  ;;  %v174_v9 = vld [vmem:[%s6717_s1 + $0x498] sm:$0xff]  ;;  %v3488_v10 = vpack.c.bf16 %v64_v1, %v63_v0  ;;  %v65_v11 = vld [vmem:[%s6717_s1 + $0x130] sm:$0xff] }
  0x1e   :  { %3475 = vmatprep.subr.bf16.mxu1 %v3474_v23  ;;  %3533 = vmatpush3.bf16.msra.mxu0 %v3532_v36  ;;  %v66_v12 = vld [vmem:[%s6717_s1 + $0x138] sm:$0xff]  ;;  %v3576_v13 = vpack.c.bf16 %v156_v6, %v155_v5  ;;  %v83_v15 = vld [vmem:[%s6717_s1 + $0x1c0] sm:$0xff]  ;;  %v3578_v16 = vpack.c.bf16 %v174_v9, %v173_v8  ;;  %v157_v17 = vld [vmem:[%s6717_s1 + $0x410] sm:$0xff]  ;;  %v791_v9 = vcombine.high %v4466_v42, %v4466_v42 }
  0x1f   :  { %3535 = vmatprep.subr.bf16.mxu0 %v3534_v38  ;;  %v158_v18 = vld [vmem:[%s6717_s1 + $0x418] sm:$0xff]  ;;  %v84_v19 = vld [vmem:[%s6717_s1 + $0x1c8] sm:$0xff]  ;;  %v175_v20 = vld [vmem:[%s6717_s1 + $0x4a0] sm:$0xff]  ;;  %v3492_v22 = vpack.c.bf16 %v66_v12, %v65_v11 }
  0x20   :  { %v176_v21 = vld [vmem:[%s6717_s1 + $0x4a8] sm:$0xff]  ;;  %v67_v23 = vld [vmem:[%s6717_s1 + $0x140] sm:$0xff]  ;;  %v3580_v25 = vpack.c.bf16 %v158_v18, %v157_v17  ;;  %v3494_v26 = vpack.c.bf16 %v84_v19, %v83_v15  ;;  %v85_v27 = vld [vmem:[%s6717_s1 + $0x1d0] sm:$0xff] }
  0x21   :  { %3477 = vmatpush3.bf16.msra.mxu1 %v3476_v32  ;;  %v68_v24 = vld [vmem:[%s6717_s1 + $0x148] sm:$0xff]  ;;  %v3582_v28 = vpack.c.bf16 %v176_v21, %v175_v20  ;;  %v159_v29 = vld [vmem:[%s6717_s1 + $0x420] sm:$0xff]  ;;  %v86_v31 = vld [vmem:[%s6717_s1 + $0x1d8] sm:$0xff] }
  0x22   :  { %3479 = vmatprep.subr.bf16.mxu1 %v3478_v37  ;;  %3537 = vmatpush3.bf16.msra.mxu0 %v3536_v51  ;;  %v160_v30 = vld [vmem:[%s6717_s1 + $0x428] sm:$0xff]  ;;  %v177_v32 = vld [vmem:[%s6717_s1 + $0x4b0] sm:$0xff]  ;;  %v178_v33 = vld [vmem:[%s6717_s1 + $0x4b8] sm:$0xff]  ;;  %v3496_v34 = vpack.c.bf16 %v68_v24, %v67_v23  ;;  %v3498_v39 = vpack.c.bf16 %v86_v31, %v85_v27  ;;  %v4691_v24 = vrot.slane %v791_v9, %v4331_v41 }
  0x23   :  { %3539 = vmatprep.subr.bf16.mxu0 %v3538_v56  ;;  %v69_v35 = vld [vmem:[%s6717_s1 + $0x150] sm:$0xff]  ;;  %v70_v36 = vld [vmem:[%s6717_s1 + $0x158] sm:$0xff]  ;;  %v87_v37 = vld [vmem:[%s6717_s1 + $0x1e0] sm:$0xff]  ;;  %v3584_v38 = vpack.c.bf16 %v160_v30, %v159_v29  ;;  %v3586_v43 = vpack.c.bf16 %v178_v33, %v177_v32 }
  0x24   :  { %1082 = vmatmul.mubr.f32.vlgmr.msra.gmra.mrb[0].mxu1 %v4364_v55  ;;  %v3574_v55 = vpack.c.bf16 %v172_v61, %v171_v60  ;;  %v88_v40 = vld [vmem:[%s6717_s1 + $0x1e8] sm:$0xff]  ;;  %v161_v44 = vld [vmem:[%s6717_s1 + $0x430] sm:$0xff]  ;;  %v162_v45 = vld [vmem:[%s6717_s1 + $0x438] sm:$0xff]  ;;  %v3500_v51 = vpack.c.bf16 %v70_v36, %v69_v35 }
  0x25   :  { %3481 = vmatpush3.bf16.msra.mxu1 %v3480_v48  ;;  %1151 = vmatprep.mubr.f32.mxu1 %v790_v62  ;;  %v180_v48 = vld [vmem:[%s6717_s1 + $0x4c8] sm:$0xff]  ;;  %v4608_v49 = vld [vmem:[%s6716_s0 + $0x10] sm:$0xff]  ;;  %v71_v52 = vld [vmem:[%s6717_s1 + $0x160] sm:$0xff]  ;;  %v3588_v54 = vpack.c.bf16 %v162_v45, %v161_v44  ;;  %v3502_v56 = vpack.c.bf16 %v88_v40, %v87_v37  ;;  %v807_v37 = vcombine.high %v4691_v24, %v4691_v24 }
  0x26   :  { %3483 = vmatprep.subr.bf16.mxu1 %v3482_v53  ;;  %3541 = vmatpush3.bf16.msra.mxu0 %v3540_v2  ;;  %v4612_v50 = vrot.slane %v4608_v49, %v4331_v41  ;;  %v72_v53 = vld [vmem:[%s6717_s1 + $0x168] sm:$0xff]  ;;  %v89_v57 = vld [vmem:[%s6717_s1 + $0x1f0] sm:$0xff]  ;;  %v163_v59 = vld [vmem:[%s6717_s1 + $0x440] sm:$0xff] }
  0x27   :  { %3575 = vmatprep.subr.bf16.mxu0 %v3574_v55  ;;  %v164_v60 = vld [vmem:[%s6717_s1 + $0x448] sm:$0xff]  ;;  %v90_v62 = vld [vmem:[%s6717_s1 + $0x1f8] sm:$0xff]  ;;  %v3504_v1 = vpack.c.bf16 %v72_v53, %v71_v52  ;;  %v73_v2 = vld [vmem:[%s6717_s1 + $0x170] sm:$0xff] }
  0x28   :  { %v823_v61 = vcombine.high %v4612_v50, %v4612_v50  ;;  %v182_v0 = vld [vmem:[%s6717_s1 + $0x4d8] sm:$0xff]  ;;  %v3592_v4 = vpack.c.bf16 %v164_v60, %v163_v59  ;;  %v3506_v55 = vpack.c.bf16 %v90_v62, %v89_v57  ;;  %v139_v5 = vld [vmem:[%s6717_s1 + $0x380] sm:$0xff]  ;;  %v165_v7 = vld [vmem:[%s6717_s1 + $0x450] sm:$0xff] }
  0x29   :  { %3485 = vmatpush3.bf16.msra.mxu1 %v3484_v63  ;;  %1222 = vmatmul.mubr.f32.vlgmr.msra.gmra.mrb[0].mxu0 %v798_v46  ;;  %v179_v46 = vld [vmem:[%s6717_s1 + $0x4c0] sm:$0xff]  ;;  %v181_v63 = vld [vmem:[%s6717_s1 + $0x4d0] sm:$0xff]  ;;  %v166_v8 = vld [vmem:[%s6717_s1 + $0x458] sm:$0xff] }
  0x2a   :  { %3487 = vmatprep.subr.bf16.mxu1 %v3486_v3  ;;  %3577 = vmatpush3.bf16.msra.mxu0 %v3576_v13  ;;  %v3590_v58 = vpack.c.bf16 %v180_v48, %v179_v46  ;;  %v74_v3 = vld [vmem:[%s6717_s1 + $0x178] sm:$0xff]  ;;  %v3594_v6 = vpack.c.bf16 %v182_v0, %v181_v63  ;;  %v183_v11 = vld [vmem:[%s6717_s1 + $0x4e0] sm:$0xff]  ;;  %v184_v12 = vld [vmem:[%s6717_s1 + $0x4e8] sm:$0xff]  ;;  %v3596_v15 = vpack.c.bf16 %v166_v8, %v165_v7 }
  0x2b   :  { %3579 = vmatprep.subr.bf16.mxu0 %v3578_v16  ;;  %1361 = vmatprep.mubr.f32.mxu0 %v823_v61  ;;  %v3508_v13 = vpack.c.bf16 %v74_v3, %v73_v2  ;;  %v124_v42 = vld [vmem:[%s6717_s1 + $0x308] sm:$0xff]  ;;  %v141_v17 = vld [vmem:[%s6717_s1 + $0x390] sm:$0xff]  ;;  %v3598_v18 = vpack.c.bf16 %v184_v12, %v183_v11  ;;  %v167_v19 = vld [vmem:[%s6717_s1 + $0x460] sm:$0xff] }
  0x2c   :  { %v168_v20 = vld [vmem:[%s6717_s1 + $0x468] sm:$0xff]  ;;  %v142_v21 = vld [vmem:[%s6717_s1 + $0x398] sm:$0xff]  ;;  %v143_v30 = vld [vmem:[%s6717_s1 + $0x3a0] sm:$0xff] }
  0x2d   :  { %3489 = vmatpush3.bf16.msra.mxu1 %v3488_v10  ;;  %v140_v10 = vld [vmem:[%s6717_s1 + $0x388] sm:$0xff]  ;;  %v186_v23 = vld [vmem:[%s6717_s1 + $0x4f8] sm:$0xff]  ;;  %v3546_v29 = vpack.c.bf16 %v142_v21, %v141_v17  ;;  %v169_v32 = vld [vmem:[%s6717_s1 + $0x470] sm:$0xff] }
  0x2e   :  { %3491 = vmatprep.subr.bf16.mxu1 %v3490_v14  ;;  %3581 = vmatpush3.bf16.msra.mxu0 %v3580_v25  ;;  %v123_v14 = vld [vmem:[%s6717_s1 + $0x300] sm:$0xff]  ;;  %v3542_v16 = vpack.c.bf16 %v140_v10, %v139_v5  ;;  %v126_v27 = vld [vmem:[%s6717_s1 + $0x318] sm:$0xff]  ;;  %v236_v36 = vld [vmem:[%s6717_s1 + $0x688] sm:$0xff] }
  0x2f   :  { %3583 = vmatprep.subr.bf16.mxu0 %v3582_v28  ;;  %v3544_v25 = vpack.c.bf16 %v124_v42, %v123_v14  ;;  %v3600_v28 = vpack.c.bf16 %v168_v20, %v167_v19  ;;  %v170_v33 = vld [vmem:[%s6717_s1 + $0x478] sm:$0xff]  ;;  %v235_v35 = vld [vmem:[%s6717_s1 + $0x680] sm:$0xff]  ;;  %v128_v40 = vld [vmem:[%s6717_s1 + $0x328] sm:$0xff] }
  0x30   :  { %v145_v45 = vld [vmem:[%s6717_s1 + $0x3b0] sm:$0xff]  ;;  %v219_v46 = vld [vmem:[%s6717_s1 + $0x600] sm:$0xff]  ;;  %v220_v48 = vld [vmem:[%s6717_s1 + $0x608] sm:$0xff] }
  0x31   :  { %3493 = vmatpush3.bf16.msra.mxu1 %v3492_v22  ;;  %v185_v22 = vld [vmem:[%s6717_s1 + $0x4f0] sm:$0xff]  ;;  %v238_v53 = vld [vmem:[%s6717_s1 + $0x698] sm:$0xff]  ;;  %v147_v61 = vld [vmem:[%s6717_s1 + $0x3c0] sm:$0xff] }
  0x32   :  { %3495 = vmatprep.subr.bf16.mxu1 %v3494_v26  ;;  %3585 = vmatpush3.bf16.msra.mxu0 %v3584_v38  ;;  %v125_v26 = vld [vmem:[%s6717_s1 + $0x310] sm:$0xff]  ;;  %v3602_v31 = vpack.c.bf16 %v186_v23, %v185_v22  ;;  %v130_v57 = vld [vmem:[%s6717_s1 + $0x338] sm:$0xff]  ;;  %v148_v2 = vld [vmem:[%s6717_s1 + $0x3c8] sm:$0xff] }
  0x33   :  { %3587 = vmatprep.subr.bf16.mxu0 %v3586_v43  ;;  %v3548_v38 = vpack.c.bf16 %v126_v27, %v125_v26  ;;  %v3604_v43 = vpack.c.bf16 %v170_v33, %v169_v32  ;;  %v237_v52 = vld [vmem:[%s6717_s1 + $0x690] sm:$0xff]  ;;  %v4753_v59 = vld [vmem:[%s6716_s0 + $0x18] sm:$0xff]  ;;  %v239_v3 = vld [vmem:[%s6717_s1 + $0x6a0] sm:$0xff]  ;;  %v3558_v9 = vpack.c.bf16 %v148_v2, %v147_v61 }
  0x34   :  { %v3642_v62 = vpack.c.bf16 %v238_v53, %v237_v52  ;;  %v221_v63 = vld [vmem:[%s6717_s1 + $0x610] sm:$0xff]  ;;  %v222_v0 = vld [vmem:[%s6717_s1 + $0x618] sm:$0xff]  ;;  %v132_v7 = vld [vmem:[%s6717_s1 + $0x348] sm:$0xff] }
  0x35   :  { %3497 = vmatpush3.bf16.msra.mxu1 %v3496_v34  ;;  %v144_v34 = vld [vmem:[%s6717_s1 + $0x3a8] sm:$0xff]  ;;  %v3644_v8 = vpack.c.bf16 %v222_v0, %v221_v63  ;;  %v223_v11 = vld [vmem:[%s6717_s1 + $0x620] sm:$0xff]  ;;  %v241_v14 = vld [vmem:[%s6717_s1 + $0x6b0] sm:$0xff] }
  0x36   :  { %3499 = vmatprep.subr.bf16.mxu1 %v3498_v39  ;;  %3589 = vmatpush3.bf16.msra.mxu0 %v3588_v54  ;;  %v127_v39 = vld [vmem:[%s6717_s1 + $0x320] sm:$0xff]  ;;  %v3550_v44 = vpack.c.bf16 %v144_v34, %v143_v30  ;;  %v224_v12 = vld [vmem:[%s6717_s1 + $0x628] sm:$0xff]  ;;  %v242_v42 = vld [vmem:[%s6717_s1 + $0x6b8] sm:$0xff] }
  0x37   :  { %3591 = vmatprep.subr.bf16.mxu0 %v3590_v58  ;;  %v3552_v54 = vpack.c.bf16 %v128_v40, %v127_v39  ;;  %v3640_v58 = vpack.c.bf16 %v220_v48, %v219_v46  ;;  %v134_v17 = vld [vmem:[%s6717_s1 + $0x358] sm:$0xff]  ;;  %v151_v20 = vld [vmem:[%s6717_s1 + $0x3e0] sm:$0xff]  ;;  %v3650_v21 = vpack.c.bf16 %v242_v42, %v241_v14  ;;  %v225_v22 = vld [vmem:[%s6717_s1 + $0x630] sm:$0xff] }
  0x38   :  { %v226_v23 = vld [vmem:[%s6717_s1 + $0x638] sm:$0xff]  ;;  %v243_v26 = vld [vmem:[%s6717_s1 + $0x6c0] sm:$0xff]  ;;  %v244_v27 = vld [vmem:[%s6717_s1 + $0x6c8] sm:$0xff] }
  0x39   :  { %3501 = vmatpush3.bf16.msra.mxu1 %v3500_v51  ;;  %v146_v51 = vld [vmem:[%s6717_s1 + $0x3b8] sm:$0xff]  ;;  %v136_v30 = vld [vmem:[%s6717_s1 + $0x368] sm:$0xff]  ;;  %v153_v33 = vld [vmem:[%s6717_s1 + $0x3f0] sm:$0xff]  ;;  %v3654_v34 = vpack.c.bf16 %v244_v27, %v243_v26 }
  0x3a   :  { %3503 = vmatprep.subr.bf16.mxu1 %v3502_v56  ;;  %3593 = vmatpush3.bf16.msra.mxu0 %v3592_v4  ;;  %v129_v56 = vld [vmem:[%s6717_s1 + $0x330] sm:$0xff]  ;;  %v3554_v60 = vpack.c.bf16 %v146_v51, %v145_v45  ;;  %v240_v4 = vld [vmem:[%s6717_s1 + $0x6a8] sm:$0xff]  ;;  %v246_v39 = vld [vmem:[%s6717_s1 + $0x6d8] sm:$0xff] }
  0x3b   :  { %3595 = vmatprep.subr.bf16.mxu0 %v3594_v6  ;;  %v3556_v5 = vpack.c.bf16 %v130_v57, %v129_v56  ;;  %v131_v6 = vld [vmem:[%s6717_s1 + $0x340] sm:$0xff]  ;;  %v3646_v10 = vpack.c.bf16 %v240_v4, %v239_v3  ;;  %v229_v51 = vld [vmem:[%s6717_s1 + $0x650] sm:$0xff]  ;;  %v230_v52 = vld [vmem:[%s6717_s1 + $0x658] sm:$0xff]  ;;  %v808_v57 = vcombine.high %v4608_v49, %v4608_v49 }
  0x3c   :  { %v203_v46 = vld [vmem:[%s6717_s1 + $0x580] sm:$0xff]  ;;  %v204_v53 = vld [vmem:[%s6717_s1 + $0x588] sm:$0xff]  ;;  %v205_v0 = vld [vmem:[%s6717_s1 + $0x590] sm:$0xff] }
  0x3d   :  { %3505 = vmatpush3.bf16.msra.mxu1 %v3504_v1  ;;  %v4766_v1 = vrot.slane %v4753_v59, %v4331_v41  ;;  %v248_v56 = vld [vmem:[%s6717_s1 + $0x6e8] sm:$0xff]  ;;  %v3606_v63 = vpack.c.bf16 %v204_v53, %v203_v46  ;;  %v231_v2 = vld [vmem:[%s6717_s1 + $0x660] sm:$0xff]  ;;  %v206_v4 = vld [vmem:[%s6717_s1 + $0x598] sm:$0xff] }
  0x3e   :  { %3507 = vmatprep.subr.bf16.mxu1 %v3506_v55  ;;  %3597 = vmatpush3.bf16.msra.mxu0 %v3596_v15  ;;  %v3560_v15 = vpack.c.bf16 %v132_v7, %v131_v6  ;;  %v188_v61 = vld [vmem:[%s6717_s1 + $0x508] sm:$0xff]  ;;  %v4903_v6 = vrot.slane %v808_v57, %v4331_v41  ;;  %v234_v14 = vld [vmem:[%s6717_s1 + $0x678] sm:$0xff]  ;;  %v283_v26 = vld [vmem:[%s6717_s1 + $0x800] sm:$0xff] }
  0x3f   :  { %3599 = vmatprep.subr.bf16.mxu0 %v3598_v18  ;;  %v840_v55 = vcombine.high %v4766_v1, %v4766_v1  ;;  %v3648_v18 = vpack.c.bf16 %v224_v12, %v223_v11  ;;  %v232_v3 = vld [vmem:[%s6717_s1 + $0x668] sm:$0xff]  ;;  %v207_v11 = vld [vmem:[%s6717_s1 + $0x5a0] sm:$0xff] }
  0x40   :  { %v208_v42 = vld [vmem:[%s6717_s1 + $0x5a8] sm:$0xff] }
  0x41   :  { %3509 = vmatpush3.bf16.msra.mxu1 %v3508_v13  ;;  %v150_v13 = vld [vmem:[%s6717_s1 + $0x3d8] sm:$0xff]  ;;  %v284_v27 = vld [vmem:[%s6717_s1 + $0x808] sm:$0xff] }
  0x42   :  { %3543 = vmatprep.subr.bf16.mxu1 %v3542_v16  ;;  %3601 = vmatpush3.bf16.msra.mxu0 %v3600_v28  ;;  %v133_v16 = vld [vmem:[%s6717_s1 + $0x350] sm:$0xff]  ;;  %v288_v57 = vld [vmem:[%s6717_s1 + $0x828] sm:$0xff] }
  0x43   :  { %3603 = vmatprep.subr.bf16.mxu0 %v3602_v31  ;;  %v3564_v28 = vpack.c.bf16 %v134_v17, %v133_v16  ;;  %v3652_v31 = vpack.c.bf16 %v226_v23, %v225_v22  ;;  %v300_v16 = vld [vmem:[%s6717_s1 + $0x888] sm:$0xff]  ;;  %v824_v17 = vcombine.high %v4903_v6, %v4903_v6  ;;  %v3614_v23 = vpack.c.bf16 %v208_v42, %v207_v11 }
  0x44   :  { %1152 = vmatmul.mubr.f32.vlgmr.msra.gmra.mrb[2].mxu1 %v4480_v47  ;;  %v3638_v47 = vpack.c.bf16 %v236_v36, %v235_v35  ;;  %v227_v35 = vld [vmem:[%s6717_s1 + $0x640] sm:$0xff]  ;;  %v228_v36 = vld [vmem:[%s6717_s1 + $0x648] sm:$0xff] }
  0x45   :  { %3545 = vmatpush3.bf16.msra.mxu1 %v3544_v25  ;;  %1291 = vmatprep.mubr.f32.mxu1 %v807_v37  ;;  %v152_v25 = vld [vmem:[%s6717_s1 + $0x3e8] sm:$0xff]  ;;  %v154_v37 = vld [vmem:[%s6717_s1 + $0x3f8] sm:$0xff]  ;;  %v3656_v45 = vpack.c.bf16 %v228_v36, %v227_v35  ;;  %v3704_v35 = vpack.c.bf16 %v284_v27, %v283_v26  ;;  %v267_v26 = vld [vmem:[%s6717_s1 + $0x780] sm:$0xff] }
  0x46   :  { %3547 = vmatprep.subr.bf16.mxu1 %v3546_v29  ;;  %3605 = vmatpush3.bf16.msra.mxu0 %v3604_v43  ;;  %v135_v29 = vld [vmem:[%s6717_s1 + $0x360] sm:$0xff]  ;;  %v3566_v32 = vpack.c.bf16 %v152_v25, %v151_v20  ;;  %v137_v43 = vld [vmem:[%s6717_s1 + $0x370] sm:$0xff]  ;;  %v200_v11 = vld [vmem:[%s6717_s1 + $0x568] sm:$0xff] }
  0x47   :  { %3639 = vmatprep.subr.bf16.mxu0 %v3638_v47  ;;  %v3568_v40 = vpack.c.bf16 %v136_v30, %v135_v29  ;;  %v3570_v47 = vpack.c.bf16 %v154_v37, %v153_v33  ;;  %v191_v20 = vld [vmem:[%s6717_s1 + $0x520] sm:$0xff]  ;;  %v301_v29 = vld [vmem:[%s6717_s1 + $0x890] sm:$0xff]  ;;  %v302_v30 = vld [vmem:[%s6717_s1 + $0x898] sm:$0xff] }
  0x48   :  { %v193_v33 = vld [vmem:[%s6717_s1 + $0x530] sm:$0xff]  ;;  %v211_v37 = vld [vmem:[%s6717_s1 + $0x5c0] sm:$0xff] }
  0x49   :  { %3549 = vmatpush3.bf16.msra.mxu1 %v3548_v38  ;;  %1362 = vmatmul.mubr.f32.vlgmr.msra.gmra.mrb[2].mxu0 %v4612_v50  ;;  %v149_v50 = vld [vmem:[%s6717_s1 + $0x3d0] sm:$0xff] }
  0x4a   :  { %3551 = vmatprep.subr.bf16.mxu1 %v3550_v44  ;;  %3641 = vmatpush3.bf16.msra.mxu0 %v3640_v58  ;;  %v3562_v19 = vpack.c.bf16 %v150_v13, %v149_v50  ;;  %v245_v38 = vld [vmem:[%s6717_s1 + $0x6d0] sm:$0xff]  ;;  %v138_v44 = vld [vmem:[%s6717_s1 + $0x378] sm:$0xff]  ;;  %v3664_v50 = vpack.c.bf16 %v232_v3, %v231_v2  ;;  %v215_v3 = vld [vmem:[%s6717_s1 + $0x5e0] sm:$0xff] }
  0x4b   :  { %3643 = vmatprep.subr.bf16.mxu0 %v3642_v62  ;;  %1501 = vmatprep.mubr.f32.mxu0 %v840_v55  ;;  %v3658_v48 = vpack.c.bf16 %v246_v39, %v245_v38  ;;  %v3572_v58 = vpack.c.bf16 %v138_v44, %v137_v43  ;;  %v3660_v62 = vpack.c.bf16 %v230_v52, %v229_v51  ;;  %v249_v55 = vld [vmem:[%s6717_s1 + $0x6f0] sm:$0xff]  ;;  %v212_v43 = vld [vmem:[%s6717_s1 + $0x5c8] sm:$0xff]  ;;  %v303_v44 = vld [vmem:[%s6717_s1 + $0x8a0] sm:$0xff] }
  0x4c   :  { %v233_v13 = vld [vmem:[%s6717_s1 + $0x670] sm:$0xff]  ;;  %v3706_v38 = vpack.c.bf16 %v302_v30, %v301_v29  ;;  %v196_v51 = vld [vmem:[%s6717_s1 + $0x548] sm:$0xff]  ;;  %v3622_v53 = vpack.c.bf16 %v212_v43, %v211_v37  ;;  %v294_v29 = vld [vmem:[%s6717_s1 + $0x858] sm:$0xff] }
  0x4d   :  { %3553 = vmatpush3.bf16.msra.mxu1 %v3552_v54  ;;  %v247_v54 = vld [vmem:[%s6717_s1 + $0x6e0] sm:$0xff]  ;;  %v3668_v22 = vpack.c.bf16 %v234_v14, %v233_v13  ;;  %v285_v39 = vld [vmem:[%s6717_s1 + $0x810] sm:$0xff]  ;;  %v268_v30 = vld [vmem:[%s6717_s1 + $0x788] sm:$0xff] }
  0x4e   :  { %3555 = vmatprep.subr.bf16.mxu1 %v3554_v60  ;;  %3645 = vmatpush3.bf16.msra.mxu0 %v3644_v8  ;;  %v187_v60 = vld [vmem:[%s6717_s1 + $0x500] sm:$0xff]  ;;  %v3662_v49 = vpack.c.bf16 %v248_v56, %v247_v54  ;;  %v189_v8 = vld [vmem:[%s6717_s1 + $0x510] sm:$0xff]  ;;  %v252_v37 = vld [vmem:[%s6717_s1 + $0x708] sm:$0xff] }
  0x4f   :  { %3647 = vmatprep.subr.bf16.mxu0 %v3646_v10  ;;  %v3608_v7 = vpack.c.bf16 %v188_v61, %v187_v60  ;;  %v3610_v10 = vpack.c.bf16 %v206_v4, %v205_v0  ;;  %v213_v54 = vld [vmem:[%s6717_s1 + $0x5d0] sm:$0xff]  ;;  %v287_v56 = vld [vmem:[%s6717_s1 + $0x820] sm:$0xff]  ;;  %v306_v61 = vld [vmem:[%s6717_s1 + $0x8b8] sm:$0xff] }
  0x50   :  { %v305_v60 = vld [vmem:[%s6717_s1 + $0x8b0] sm:$0xff]  ;;  %v198_v0 = vld [vmem:[%s6717_s1 + $0x558] sm:$0xff]  ;;  %v295_v43 = vld [vmem:[%s6717_s1 + $0x860] sm:$0xff] }
  0x51   :  { %3557 = vmatpush3.bf16.msra.mxu1 %v3556_v5  ;;  %v250_v5 = vld [vmem:[%s6717_s1 + $0x6f8] sm:$0xff]  ;;  %v3714_v4 = vpack.c.bf16 %v306_v61, %v305_v60  ;;  %v217_v14 = vld [vmem:[%s6717_s1 + $0x5f0] sm:$0xff]  ;;  %v272_v61 = vld [vmem:[%s6717_s1 + $0x7a8] sm:$0xff] }
  0x52   :  { %3559 = vmatprep.subr.bf16.mxu1 %v3558_v9  ;;  %3649 = vmatpush3.bf16.msra.mxu0 %v3648_v18  ;;  %v190_v9 = vld [vmem:[%s6717_s1 + $0x518] sm:$0xff]  ;;  %v3666_v12 = vpack.c.bf16 %v250_v5, %v249_v55  ;;  %v4935_v18 = vld [vmem:[%s6716_s0 + $0x20] sm:$0xff]  ;;  %v289_v55 = vld [vmem:[%s6717_s1 + $0x830] sm:$0xff] }
  0x53   :  { %3651 = vmatprep.subr.bf16.mxu0 %v3650_v21  ;;  %v192_v21 = vld [vmem:[%s6717_s1 + $0x528] sm:$0xff]  ;;  %v290_v5 = vld [vmem:[%s6717_s1 + $0x838] sm:$0xff] }
  0x54   :  { %v298_v60 = vld [vmem:[%s6717_s1 + $0x878] sm:$0xff] }
  0x55   :  { %3561 = vmatpush3.bf16.msra.mxu1 %v3560_v15  ;;  %v299_v15 = vld [vmem:[%s6717_s1 + $0x880] sm:$0xff] }
  0x56   :  { %3563 = vmatprep.subr.bf16.mxu1 %v3562_v19  ;;  %3653 = vmatpush3.bf16.msra.mxu0 %v3652_v31  ;;  %v3612_v19 = vpack.c.bf16 %v190_v9, %v189_v8  ;;  %v3702_v25 = vpack.c.bf16 %v300_v16, %v299_v15  ;;  %v4963_v31 = vrot.slane %v4935_v18, %v4331_v41  ;;  %v307_v8 = vld [vmem:[%s6717_s1 + $0x8c0] sm:$0xff]  ;;  %v308_v9 = vld [vmem:[%s6717_s1 + $0x8c8] sm:$0xff] }
  0x57   :  { %3655 = vmatprep.subr.bf16.mxu0 %v3654_v34  ;;  %v194_v34 = vld [vmem:[%s6717_s1 + $0x538] sm:$0xff]  ;;  %v3718_v42 = vpack.c.bf16 %v308_v9, %v307_v8  ;;  %v291_v15 = vld [vmem:[%s6717_s1 + $0x840] sm:$0xff]  ;;  %v292_v16 = vld [vmem:[%s6717_s1 + $0x848] sm:$0xff] }
  0x58   :  { %v3620_v46 = vpack.c.bf16 %v194_v34, %v193_v33  ;;  %v312_v33 = vld [vmem:[%s6717_s1 + $0x8e8] sm:$0xff]  ;;  %v825_v34 = vcombine.high %v4753_v59, %v4753_v59  ;;  %v347_v8 = vld [vmem:[%s6717_s1 + $0xa00] sm:$0xff] }
  0x59   :  { %3565 = vmatpush3.bf16.msra.mxu1 %v3564_v28  ;;  %v210_v28 = vld [vmem:[%s6717_s1 + $0x5b8] sm:$0xff]  ;;  %v348_v9 = vld [vmem:[%s6717_s1 + $0xa08] sm:$0xff] }
  0x5a   :  { %3567 = vmatprep.subr.bf16.mxu1 %v3566_v32  ;;  %3657 = vmatpush3.bf16.msra.mxu0 %v3656_v45  ;;  %v3616_v32 = vpack.c.bf16 %v192_v21, %v191_v20  ;;  %v304_v45 = vld [vmem:[%s6717_s1 + $0x8a8] sm:$0xff]  ;;  %v310_v20 = vld [vmem:[%s6717_s1 + $0x8d8] sm:$0xff] }
  0x5b   :  { %3659 = vmatprep.subr.bf16.mxu0 %v3658_v48  ;;  %v195_v48 = vld [vmem:[%s6717_s1 + $0x540] sm:$0xff] }
  0x5d   :  { %3569 = vmatpush3.bf16.msra.mxu1 %v3568_v40  ;;  %v286_v40 = vld [vmem:[%s6717_s1 + $0x818] sm:$0xff] }
  0x5e   :  { %3571 = vmatprep.subr.bf16.mxu1 %v3570_v47  ;;  %3661 = vmatpush3.bf16.msra.mxu0 %v3660_v62  ;;  %v857_v47 = vcombine.high %v4963_v31, %v4963_v31  ;;  %v3708_v52 = vpack.c.bf16 %v286_v40, %v285_v39  ;;  %v3624_v62 = vpack.c.bf16 %v196_v51, %v195_v48  ;;  %v269_v40 = vld [vmem:[%s6717_s1 + $0x790] sm:$0xff] }
  0x5f   :  { %3663 = vmatprep.subr.bf16.mxu0 %v3662_v49  ;;  %v3712_v49 = vpack.c.bf16 %v288_v57, %v287_v56  ;;  %v3670_v39 = vpack.c.bf16 %v268_v30, %v267_v26  ;;  %v5115_v48 = vrot.slane %v825_v34, %v4331_v41  ;;  %v271_v56 = vld [vmem:[%s6717_s1 + $0x7a0] sm:$0xff]  ;;  %v352_v34 = vld [vmem:[%s6717_s1 + $0xa28] sm:$0xff] }
  0x61   :  { %3573 = vmatpush3.bf16.msra.mxu1 %v3572_v58  ;;  %v214_v58 = vld [vmem:[%s6717_s1 + $0x5d8] sm:$0xff] }
  0x62   :  { %3607 = vmatprep.subr.bf16.mxu1 %v3606_v63  ;;  %3665 = vmatpush3.bf16.msra.mxu0 %v3664_v50  ;;  %v197_v63 = vld [vmem:[%s6717_s1 + $0x550] sm:$0xff]  ;;  %v3626_v2 = vpack.c.bf16 %v214_v58, %v213_v54 }
  0x63   :  { %3667 = vmatprep.subr.bf16.mxu0 %v3666_v12  ;;  %v3628_v50 = vpack.c.bf16 %v198_v0, %v197_v63  ;;  %v3716_v12 = vpack.c.bf16 %v290_v5, %v289_v55  ;;  %v297_v58 = vld [vmem:[%s6717_s1 + $0x870] sm:$0xff]  ;;  %v364_v63 = vld [vmem:[%s6717_s1 + $0xa88] sm:$0xff]  ;;  %v841_v0 = vcombine.high %v5115_v48, %v5115_v48  ;;  %v3678_v5 = vpack.c.bf16 %v272_v61, %v271_v56 }
  0x64   :  { %1292 = vmatmul.mubr.f32.vlgmr.msra.gmra.mrb[4].mxu1 %v4691_v24  ;;  %v209_v24 = vld [vmem:[%s6717_s1 + $0x5b0] sm:$0xff]  ;;  %v3732_v55 = vpack.c.bf16 %v298_v60, %v297_v58  ;;  %v264_v56 = vld [vmem:[%s6717_s1 + $0x768] sm:$0xff] }
  0x65   :  { %3609 = vmatpush3.bf16.msra.mxu1 %v3608_v7  ;;  %1431 = vmatprep.mubr.f32.mxu1 %v824_v17  ;;  %v3618_v36 = vpack.c.bf16 %v210_v28, %v209_v24  ;;  %v216_v7 = vld [vmem:[%s6717_s1 + $0x5e8] sm:$0xff]  ;;  %v218_v17 = vld [vmem:[%s6717_s1 + $0x5f8] sm:$0xff]  ;;  %v3720_v24 = vpack.c.bf16 %v292_v16, %v291_v15  ;;  %v293_v28 = vld [vmem:[%s6717_s1 + $0x850] sm:$0xff]  ;;  %v3768_v15 = vpack.c.bf16 %v348_v9, %v347_v8 }
  0x66   :  { %3611 = vmatprep.subr.bf16.mxu1 %v3610_v10  ;;  %3669 = vmatpush3.bf16.msra.mxu0 %v3668_v22  ;;  %v199_v10 = vld [vmem:[%s6717_s1 + $0x560] sm:$0xff]  ;;  %v3630_v13 = vpack.c.bf16 %v216_v7, %v215_v3  ;;  %v201_v22 = vld [vmem:[%s6717_s1 + $0x570] sm:$0xff] }
  0x67   :  { %3703 = vmatprep.subr.bf16.mxu0 %v3702_v25  ;;  %v3632_v21 = vpack.c.bf16 %v200_v11, %v199_v10  ;;  %v3634_v25 = vpack.c.bf16 %v218_v17, %v217_v14  ;;  %v255_v3 = vld [vmem:[%s6717_s1 + $0x720] sm:$0xff]  ;;  %v365_v10 = vld [vmem:[%s6717_s1 + $0xa90] sm:$0xff]  ;;  %v366_v11 = vld [vmem:[%s6717_s1 + $0xa98] sm:$0xff] }
  0x68   :  { %v257_v14 = vld [vmem:[%s6717_s1 + $0x730] sm:$0xff]  ;;  %v275_v17 = vld [vmem:[%s6717_s1 + $0x7c0] sm:$0xff] }
  0x69   :  { %3613 = vmatpush3.bf16.msra.mxu1 %v3612_v19  ;;  %1502 = vmatmul.mubr.f32.vlgmr.msra.gmra.mrb[4].mxu0 %v4766_v1  ;;  %v3710_v1 = vpack.c.bf16 %v304_v45, %v303_v44  ;;  %v309_v19 = vld [vmem:[%s6717_s1 + $0x8d0] sm:$0xff]  ;;  %v296_v44 = vld [vmem:[%s6717_s1 + $0x868] sm:$0xff]  ;;  %v270_v45 = vld [vmem:[%s6717_s1 + $0x798] sm:$0xff] }
  0x6a   :  { %3615 = vmatprep.subr.bf16.mxu1 %v3614_v23  ;;  %3705 = vmatpush3.bf16.msra.mxu0 %v3704_v35  ;;  %v202_v23 = vld [vmem:[%s6717_s1 + $0x578] sm:$0xff]  ;;  %v3722_v27 = vpack.c.bf16 %v310_v20, %v309_v19  ;;  %v3728_v54 = vpack.c.bf16 %v296_v44, %v295_v43  ;;  %v3770_v19 = vpack.c.bf16 %v366_v11, %v365_v10  ;;  %v349_v20 = vld [vmem:[%s6717_s1 + $0xa10] sm:$0xff]  ;;  %v279_v44 = vld [vmem:[%s6717_s1 + $0x7e0] sm:$0xff] }
  0x6b   :  { %3707 = vmatprep.subr.bf16.mxu0 %v3706_v38  ;;  %1641 = vmatprep.mubr.f32.mxu0 %v857_v47  ;;  %v3636_v35 = vpack.c.bf16 %v202_v23, %v201_v22  ;;  %v3724_v38 = vpack.c.bf16 %v294_v29, %v293_v28  ;;  %v313_v47 = vld [vmem:[%s6717_s1 + $0x8f0] sm:$0xff]  ;;  %v276_v22 = vld [vmem:[%s6717_s1 + $0x7c8] sm:$0xff]  ;;  %v367_v23 = vld [vmem:[%s6717_s1 + $0xaa0] sm:$0xff] }
  0x6c   :  { %v260_v28 = vld [vmem:[%s6717_s1 + $0x748] sm:$0xff]  ;;  %v3686_v30 = vpack.c.bf16 %v276_v22, %v275_v17  ;;  %v281_v60 = vld [vmem:[%s6717_s1 + $0x7f0] sm:$0xff]  ;;  %v331_v8 = vld [vmem:[%s6717_s1 + $0x980] sm:$0xff] }
  0x6d   :  { %3617 = vmatpush3.bf16.msra.mxu1 %v3616_v32  ;;  %v311_v32 = vld [vmem:[%s6717_s1 + $0x8e0] sm:$0xff]  ;;  %v358_v10 = vld [vmem:[%s6717_s1 + $0xa58] sm:$0xff]  ;;  %v332_v11 = vld [vmem:[%s6717_s1 + $0x988] sm:$0xff] }
  0x6e   :  { %3619 = vmatprep.subr.bf16.mxu1 %v3618_v36  ;;  %3709 = vmatpush3.bf16.msra.mxu0 %v3708_v52  ;;  %v251_v36 = vld [vmem:[%s6717_s1 + $0x700] sm:$0xff]  ;;  %v3726_v59 = vpack.c.bf16 %v312_v33, %v311_v32  ;;  %v253_v52 = vld [vmem:[%s6717_s1 + $0x710] sm:$0xff]  ;;  %v316_v17 = vld [vmem:[%s6717_s1 + $0x908] sm:$0xff] }
  0x6f   :  { %3711 = vmatprep.subr.bf16.mxu0 %v3710_v1  ;;  %v3672_v51 = vpack.c.bf16 %v252_v37, %v251_v36  ;;  %v3674_v1 = vpack.c.bf16 %v270_v45, %v269_v40  ;;  %v277_v32 = vld [vmem:[%s6717_s1 + $0x7d0] sm:$0xff]  ;;  %v351_v33 = vld [vmem:[%s6717_s1 + $0xa20] sm:$0xff]  ;;  %v370_v37 = vld [vmem:[%s6717_s1 + $0xab8] sm:$0xff] }
  0x70   :  { %v369_v36 = vld [vmem:[%s6717_s1 + $0xab0] sm:$0xff]  ;;  %v262_v40 = vld [vmem:[%s6717_s1 + $0x758] sm:$0xff]  ;;  %v359_v22 = vld [vmem:[%s6717_s1 + $0xa60] sm:$0xff] }
  0x71   :  { %3621 = vmatpush3.bf16.msra.mxu1 %v3620_v46  ;;  %v314_v46 = vld [vmem:[%s6717_s1 + $0x8f8] sm:$0xff]  ;;  %v3778_v45 = vpack.c.bf16 %v370_v37, %v369_v36  ;;  %v336_v37 = vld [vmem:[%s6717_s1 + $0x9a8] sm:$0xff] }
  0x72   :  { %3623 = vmatprep.subr.bf16.mxu1 %v3622_v53  ;;  %3713 = vmatpush3.bf16.msra.mxu0 %v3712_v49  ;;  %v254_v53 = vld [vmem:[%s6717_s1 + $0x718] sm:$0xff]  ;;  %v3730_v57 = vpack.c.bf16 %v314_v46, %v313_v47  ;;  %v5147_v49 = vld [vmem:[%s6716_s0 + $0x28] sm:$0xff]  ;;  %v353_v47 = vld [vmem:[%s6717_s1 + $0xa30] sm:$0xff] }
  0x73   :  { %3715 = vmatprep.subr.bf16.mxu0 %v3714_v4  ;;  %v256_v4 = vld [vmem:[%s6717_s1 + $0x728] sm:$0xff]  ;;  %v354_v46 = vld [vmem:[%s6717_s1 + $0xa38] sm:$0xff] }
  0x74   :  { %v362_v36 = vld [vmem:[%s6717_s1 + $0xa78] sm:$0xff] }
  0x75   :  { %3625 = vmatpush3.bf16.msra.mxu1 %v3624_v62  ;;  %v363_v62 = vld [vmem:[%s6717_s1 + $0xa80] sm:$0xff] }
  0x76   :  { %3627 = vmatprep.subr.bf16.mxu1 %v3626_v2  ;;  %3717 = vmatpush3.bf16.msra.mxu0 %v3716_v12  ;;  %v3676_v2 = vpack.c.bf16 %v254_v53, %v253_v52  ;;  %v3766_v7 = vpack.c.bf16 %v364_v63, %v363_v62  ;;  %v5175_v12 = vrot.slane %v5147_v49, %v4331_v41  ;;  %v371_v52 = vld [vmem:[%s6717_s1 + $0xac0] sm:$0xff]  ;;  %v372_v53 = vld [vmem:[%s6717_s1 + $0xac8] sm:$0xff] }
  0x77   :  { %3719 = vmatprep.subr.bf16.mxu0 %v3718_v42  ;;  %v258_v42 = vld [vmem:[%s6717_s1 + $0x738] sm:$0xff]  ;;  %v3782_v61 = vpack.c.bf16 %v372_v53, %v371_v52  ;;  %v355_v62 = vld [vmem:[%s6717_s1 + $0xa40] sm:$0xff]  ;;  %v356_v63 = vld [vmem:[%s6717_s1 + $0xa48] sm:$0xff] }
  0x78   :  { %v3684_v26 = vpack.c.bf16 %v258_v42, %v257_v14  ;;  %v376_v14 = vld [vmem:[%s6717_s1 + $0xae8] sm:$0xff]  ;;  %v842_v42 = vcombine.high %v4935_v18, %v4935_v18  ;;  %v411_v52 = vld [vmem:[%s6717_s1 + $0xc00] sm:$0xff] }
  0x79   :  { %3629 = vmatpush3.bf16.msra.mxu1 %v3628_v50  ;;  %v274_v50 = vld [vmem:[%s6717_s1 + $0x7b8] sm:$0xff]  ;;  %v412_v53 = vld [vmem:[%s6717_s1 + $0xc08] sm:$0xff] }
  0x7a   :  { %3631 = vmatprep.subr.bf16.mxu1 %v3630_v13  ;;  %3721 = vmatpush3.bf16.msra.mxu0 %v3720_v24  ;;  %v3680_v13 = vpack.c.bf16 %v256_v4, %v255_v3  ;;  %v368_v24 = vld [vmem:[%s6717_s1 + $0xaa8] sm:$0xff]  ;;  %v374_v3 = vld [vmem:[%s6717_s1 + $0xad8] sm:$0xff] }
  0x7b   :  { %3723 = vmatprep.subr.bf16.mxu0 %v3722_v27  ;;  %v259_v27 = vld [vmem:[%s6717_s1 + $0x740] sm:$0xff] }
  0x7d   :  { %3633 = vmatpush3.bf16.msra.mxu1 %v3632_v21  ;;  %v350_v21 = vld [vmem:[%s6717_s1 + $0xa18] sm:$0xff] }
  0x7e   :  { %3635 = vmatprep.subr.bf16.mxu1 %v3634_v25  ;;  %3725 = vmatpush3.bf16.msra.mxu0 %v3724_v38  ;;  %v874_v25 = vcombine.high %v5175_v12, %v5175_v12  ;;  %v3772_v29 = vpack.c.bf16 %v350_v21, %v349_v20  ;;  %v3688_v38 = vpack.c.bf16 %v260_v28, %v259_v27  ;;  %v333_v21 = vld [vmem:[%s6717_s1 + $0x990] sm:$0xff] }
  0x7f   :  { %3727 = vmatprep.subr.bf16.mxu0 %v3726_v59  ;;  %v3776_v59 = vpack.c.bf16 %v352_v34, %v351_v33  ;;  %v3734_v20 = vpack.c.bf16 %v332_v11, %v331_v8  ;;  %v5327_v27 = vrot.slane %v842_v42, %v4331_v41  ;;  %v335_v33 = vld [vmem:[%s6717_s1 + $0x9a0] sm:$0xff]  ;;  %v416_v42 = vld [vmem:[%s6717_s1 + $0xc28] sm:$0xff] }
  0x81   :  { %3637 = vmatpush3.bf16.msra.mxu1 %v3636_v35  ;;  %v278_v35 = vld [vmem:[%s6717_s1 + $0x7d8] sm:$0xff] }
  0x82   :  { %3671 = vmatprep.subr.bf16.mxu1 %v3670_v39  ;;  %3729 = vmatpush3.bf16.msra.mxu0 %v3728_v54  ;;  %v261_v39 = vld [vmem:[%s6717_s1 + $0x750] sm:$0xff]  ;;  %v3690_v43 = vpack.c.bf16 %v278_v35, %v277_v32 }
  0x83   :  { %3731 = vmatprep.subr.bf16.mxu0 %v3730_v57  ;;  %v3692_v54 = vpack.c.bf16 %v262_v40, %v261_v39  ;;  %v3780_v57 = vpack.c.bf16 %v354_v46, %v353_v47  ;;  %v361_v35 = vld [vmem:[%s6717_s1 + $0xa70] sm:$0xff]  ;;  %v428_v39 = vld [vmem:[%s6717_s1 + $0xc88] sm:$0xff]  ;;  %v858_v40 = vcombine.high %v5327_v27, %v5327_v27  ;;  %v3742_v46 = vpack.c.bf16 %v336_v37, %v335_v33 }
  0x84   :  { %1432 = vmatmul.mubr.f32.vlgmr.msra.gmra.mrb[6].mxu1 %v4903_v6  ;;  %v273_v6 = vld [vmem:[%s6717_s1 + $0x7b0] sm:$0xff]  ;;  %v3796_v47 = vpack.c.bf16 %v362_v36, %v361_v35  ;;  %v328_v33 = vld [vmem:[%s6717_s1 + $0x968] sm:$0xff] }
  0x85   :  { %3673 = vmatpush3.bf16.msra.mxu1 %v3672_v51  ;;  %1571 = vmatprep.mubr.f32.mxu1 %v841_v0  ;;  %v3682_v16 = vpack.c.bf16 %v274_v50, %v273_v6  ;;  %v280_v51 = vld [vmem:[%s6717_s1 + $0x7e8] sm:$0xff]  ;;  %v282_v0 = vld [vmem:[%s6717_s1 + $0x7f8] sm:$0xff]  ;;  %v3784_v6 = vpack.c.bf16 %v356_v63, %v355_v62  ;;  %v357_v50 = vld [vmem:[%s6717_s1 + $0xa50] sm:$0xff]  ;;  %v3832_v62 = vpack.c.bf16 %v412_v53, %v411_v52 }
  0x86   :  { %3675 = vmatprep.subr.bf16.mxu1 %v3674_v1  ;;  %3733 = vmatpush3.bf16.msra.mxu0 %v3732_v55  ;;  %v263_v1 = vld [vmem:[%s6717_s1 + $0x760] sm:$0xff]  ;;  %v3694_v58 = vpack.c.bf16 %v280_v51, %v279_v44  ;;  %v265_v55 = vld [vmem:[%s6717_s1 + $0x770] sm:$0xff] }
  0x87   :  { %3767 = vmatprep.subr.bf16.mxu0 %v3766_v7  ;;  %v3696_v4 = vpack.c.bf16 %v264_v56, %v263_v1  ;;  %v3698_v7 = vpack.c.bf16 %v282_v0, %v281_v60  ;;  %v319_v44 = vld [vmem:[%s6717_s1 + $0x920] sm:$0xff]  ;;  %v429_v1 = vld [vmem:[%s6717_s1 + $0xc90] sm:$0xff]  ;;  %v430_v56 = vld [vmem:[%s6717_s1 + $0xc98] sm:$0xff] }
  0x88   :  { %v321_v60 = vld [vmem:[%s6717_s1 + $0x930] sm:$0xff]  ;;  %v339_v0 = vld [vmem:[%s6717_s1 + $0x9c0] sm:$0xff] }
  0x89   :  { %3677 = vmatpush3.bf16.msra.mxu1 %v3676_v2  ;;  %1642 = vmatmul.mubr.f32.vlgmr.msra.gmra.mrb[6].mxu0 %v4963_v31  ;;  %v3774_v31 = vpack.c.bf16 %v368_v24, %v367_v23  ;;  %v373_v2 = vld [vmem:[%s6717_s1 + $0xad0] sm:$0xff]  ;;  %v360_v23 = vld [vmem:[%s6717_s1 + $0xa68] sm:$0xff]  ;;  %v334_v24 = vld [vmem:[%s6717_s1 + $0x998] sm:$0xff] }
  0x8a   :  { %3679 = vmatprep.subr.bf16.mxu1 %v3678_v5  ;;  %3769 = vmatpush3.bf16.msra.mxu0 %v3768_v15  ;;  %v266_v5 = vld [vmem:[%s6717_s1 + $0x778] sm:$0xff]  ;;  %v3786_v9 = vpack.c.bf16 %v374_v3, %v373_v2  ;;  %v3792_v32 = vpack.c.bf16 %v360_v23, %v359_v22  ;;  %v3834_v2 = vpack.c.bf16 %v430_v56, %v429_v1  ;;  %v413_v3 = vld [vmem:[%s6717_s1 + $0xc10] sm:$0xff]  ;;  %v343_v23 = vld [vmem:[%s6717_s1 + $0x9e0] sm:$0xff] }
  0x8b   :  { %3771 = vmatprep.subr.bf16.mxu0 %v3770_v19  ;;  %1781 = vmatprep.mubr.f32.mxu0 %v874_v25  ;;  %v3700_v15 = vpack.c.bf16 %v266_v5, %v265_v55  ;;  %v3788_v19 = vpack.c.bf16 %v358_v10, %v357_v50  ;;  %v377_v25 = vld [vmem:[%s6717_s1 + $0xaf0] sm:$0xff]  ;;  %v340_v55 = vld [vmem:[%s6717_s1 + $0x9c8] sm:$0xff]  ;;  %v431_v5 = vld [vmem:[%s6717_s1 + $0xca0] sm:$0xff] }
  0x8c   :  { %v324_v50 = vld [vmem:[%s6717_s1 + $0x948] sm:$0xff]  ;;  %v3750_v11 = vpack.c.bf16 %v340_v55, %v339_v0  ;;  %v345_v36 = vld [vmem:[%s6717_s1 + $0x9f0] sm:$0xff]  ;;  %v395_v52 = vld [vmem:[%s6717_s1 + $0xb80] sm:$0xff] }
  0x8d   :  { %3681 = vmatpush3.bf16.msra.mxu1 %v3680_v13  ;;  %v375_v13 = vld [vmem:[%s6717_s1 + $0xae0] sm:$0xff]  ;;  %v422_v1 = vld [vmem:[%s6717_s1 + $0xc58] sm:$0xff]  ;;  %v396_v56 = vld [vmem:[%s6717_s1 + $0xb88] sm:$0xff] }
  0x8e   :  { %3683 = vmatprep.subr.bf16.mxu1 %v3682_v16  ;;  %3773 = vmatpush3.bf16.msra.mxu0 %v3772_v29  ;;  %v315_v16 = vld [vmem:[%s6717_s1 + $0x900] sm:$0xff]  ;;  %v3790_v18 = vpack.c.bf16 %v376_v14, %v375_v13  ;;  %v317_v29 = vld [vmem:[%s6717_s1 + $0x910] sm:$0xff]  ;;  %v380_v0 = vld [vmem:[%s6717_s1 + $0xb08] sm:$0xff] }
  0x8f   :  { %3775 = vmatprep.subr.bf16.mxu0 %v3774_v31  ;;  %v3736_v28 = vpack.c.bf16 %v316_v17, %v315_v16  ;;  %v3738_v31 = vpack.c.bf16 %v334_v24, %v333_v21  ;;  %v341_v13 = vld [vmem:[%s6717_s1 + $0x9d0] sm:$0xff]  ;;  %v415_v14 = vld [vmem:[%s6717_s1 + $0xc20] sm:$0xff]  ;;  %v434_v17 = vld [vmem:[%s6717_s1 + $0xcb8] sm:$0xff] }
  0x90   :  { %v433_v16 = vld [vmem:[%s6717_s1 + $0xcb0] sm:$0xff]  ;;  %v326_v21 = vld [vmem:[%s6717_s1 + $0x958] sm:$0xff]  ;;  %v423_v55 = vld [vmem:[%s6717_s1 + $0xc60] sm:$0xff] }
  0x91   :  { %3685 = vmatpush3.bf16.msra.mxu1 %v3684_v26  ;;  %v378_v26 = vld [vmem:[%s6717_s1 + $0xaf8] sm:$0xff]  ;;  %v3842_v24 = vpack.c.bf16 %v434_v17, %v433_v16  ;;  %v400_v17 = vld [vmem:[%s6717_s1 + $0xba8] sm:$0xff] }
  0x92   :  { %3687 = vmatprep.subr.bf16.mxu1 %v3686_v30  ;;  %3777 = vmatpush3.bf16.msra.mxu0 %v3776_v59  ;;  %v318_v30 = vld [vmem:[%s6717_s1 + $0x918] sm:$0xff]  ;;  %v3794_v34 = vpack.c.bf16 %v378_v26, %v377_v25  ;;  %v5359_v59 = vld [vmem:[%s6716_s0 + $0x30] sm:$0xff] }
  0x93   :  { %3779 = vmatprep.subr.bf16.mxu0 %v3778_v45  ;;  %v320_v45 = vld [vmem:[%s6717_s1 + $0x928] sm:$0xff]  ;;  %v417_v25 = vld [vmem:[%s6717_s1 + $0xc30] sm:$0xff]  ;;  %v418_v26 = vld [vmem:[%s6717_s1 + $0xc38] sm:$0xff] }
  0x94   :  { %v426_v16 = vld [vmem:[%s6717_s1 + $0xc78] sm:$0xff] }
  0x95   :  { %3689 = vmatpush3.bf16.msra.mxu1 %v3688_v38  ;;  %v427_v38 = vld [vmem:[%s6717_s1 + $0xc80] sm:$0xff] }
  0x96   :  { %3691 = vmatprep.subr.bf16.mxu1 %v3690_v43  ;;  %3781 = vmatpush3.bf16.msra.mxu0 %v3780_v57  ;;  %v3740_v43 = vpack.c.bf16 %v318_v30, %v317_v29  ;;  %v3830_v51 = vpack.c.bf16 %v428_v39, %v427_v38  ;;  %v5387_v57 = vrot.slane %v5359_v59, %v4331_v41  ;;  %v435_v29 = vld [vmem:[%s6717_s1 + $0xcc0] sm:$0xff]  ;;  %v436_v30 = vld [vmem:[%s6717_s1 + $0xcc8] sm:$0xff] }
  0x97   :  { %3783 = vmatprep.subr.bf16.mxu0 %v3782_v61  ;;  %v322_v61 = vld [vmem:[%s6717_s1 + $0x938] sm:$0xff]  ;;  %v3846_v37 = vpack.c.bf16 %v436_v30, %v435_v29  ;;  %v419_v38 = vld [vmem:[%s6717_s1 + $0xc40] sm:$0xff]  ;;  %v420_v39 = vld [vmem:[%s6717_s1 + $0xc48] sm:$0xff] }
  0x98   :  { %v3748_v8 = vpack.c.bf16 %v322_v61, %v321_v60  ;;  %v440_v60 = vld [vmem:[%s6717_s1 + $0xce8] sm:$0xff]  ;;  %v859_v61 = vcombine.high %v5147_v49, %v5147_v49  ;;  %v475_v29 = vld [vmem:[%s6717_s1 + $0xe00] sm:$0xff] }
  0x99   :  { %3693 = vmatpush3.bf16.msra.mxu1 %v3692_v54  ;;  %v338_v54 = vld [vmem:[%s6717_s1 + $0x9b8] sm:$0xff]  ;;  %v476_v30 = vld [vmem:[%s6717_s1 + $0xe08] sm:$0xff] }
  0x9a   :  { %3695 = vmatprep.subr.bf16.mxu1 %v3694_v58  ;;  %3785 = vmatpush3.bf16.msra.mxu0 %v3784_v6  ;;  %v3744_v58 = vpack.c.bf16 %v320_v45, %v319_v44  ;;  %v432_v6 = vld [vmem:[%s6717_s1 + $0xca8] sm:$0xff]  ;;  %v438_v44 = vld [vmem:[%s6717_s1 + $0xcd8] sm:$0xff] }
  0x9b   :  { %3787 = vmatprep.subr.bf16.mxu0 %v3786_v9  ;;  %v323_v9 = vld [vmem:[%s6717_s1 + $0x940] sm:$0xff] }
  0x9d   :  { %3697 = vmatpush3.bf16.msra.mxu1 %v3696_v4  ;;  %v414_v4 = vld [vmem:[%s6717_s1 + $0xc18] sm:$0xff] }
  0x9e   :  { %3699 = vmatprep.subr.bf16.mxu1 %v3698_v7  ;;  %3789 = vmatpush3.bf16.msra.mxu0 %v3788_v19  ;;  %v891_v7 = vcombine.high %v5387_v57, %v5387_v57  ;;  %v3836_v10 = vpack.c.bf16 %v414_v4, %v413_v3  ;;  %v3752_v19 = vpack.c.bf16 %v324_v50, %v323_v9  ;;  %v397_v4 = vld [vmem:[%s6717_s1 + $0xb90] sm:$0xff] }
  0x9f   :  { %3791 = vmatprep.subr.bf16.mxu0 %v3790_v18  ;;  %v3840_v18 = vpack.c.bf16 %v416_v42, %v415_v14  ;;  %v3798_v3 = vpack.c.bf16 %v396_v56, %v395_v52  ;;  %v5539_v9 = vrot.slane %v859_v61, %v4331_v41  ;;  %v399_v14 = vld [vmem:[%s6717_s1 + $0xba0] sm:$0xff]  ;;  %v480_v61 = vld [vmem:[%s6717_s1 + $0xe28] sm:$0xff] }
  0xa1   :  { %3701 = vmatpush3.bf16.msra.mxu1 %v3700_v15  ;;  %v342_v15 = vld [vmem:[%s6717_s1 + $0x9d8] sm:$0xff] }
  0xa2   :  { %3735 = vmatprep.subr.bf16.mxu1 %v3734_v20  ;;  %3793 = vmatpush3.bf16.msra.mxu0 %v3792_v32  ;;  %v325_v20 = vld [vmem:[%s6717_s1 + $0x950] sm:$0xff]  ;;  %v3754_v22 = vpack.c.bf16 %v342_v15, %v341_v13 }
  0xa3   :  { %3795 = vmatprep.subr.bf16.mxu0 %v3794_v34  ;;  %v3756_v32 = vpack.c.bf16 %v326_v21, %v325_v20  ;;  %v3844_v34 = vpack.c.bf16 %v418_v26, %v417_v25  ;;  %v425_v15 = vld [vmem:[%s6717_s1 + $0xc70] sm:$0xff]  ;;  %v492_v20 = vld [vmem:[%s6717_s1 + $0xe88] sm:$0xff]  ;;  %v875_v21 = vcombine.high %v5539_v9, %v5539_v9  ;;  %v3806_v26 = vpack.c.bf16 %v400_v17, %v399_v14 }
  0xa4   :  { %1572 = vmatmul.mubr.f32.vlgmr.msra.gmra.mrb[8].mxu1 %v5115_v48  ;;  %v337_v48 = vld [vmem:[%s6717_s1 + $0x9b0] sm:$0xff]  ;;  %v3860_v25 = vpack.c.bf16 %v426_v16, %v425_v15  ;;  %v392_v14 = vld [vmem:[%s6717_s1 + $0xb68] sm:$0xff] }
  0xa5   :  { %3737 = vmatpush3.bf16.msra.mxu1 %v3736_v28  ;;  %1711 = vmatprep.mubr.f32.mxu1 %v858_v40  ;;  %v3746_v63 = vpack.c.bf16 %v338_v54, %v337_v48  ;;  %v344_v28 = vld [vmem:[%s6717_s1 + $0x9e8] sm:$0xff]  ;;  %v346_v40 = vld [vmem:[%s6717_s1 + $0x9f8] sm:$0xff]  ;;  %v3848_v48 = vpack.c.bf16 %v420_v39, %v419_v38  ;;  %v421_v54 = vld [vmem:[%s6717_s1 + $0xc50] sm:$0xff]  ;;  %v3896_v38 = vpack.c.bf16 %v476_v30, %v475_v29 }
  0xa6   :  { %3739 = vmatprep.subr.bf16.mxu1 %v3738_v31  ;;  %3797 = vmatpush3.bf16.msra.mxu0 %v3796_v47  ;;  %v327_v31 = vld [vmem:[%s6717_s1 + $0x960] sm:$0xff]  ;;  %v3758_v35 = vpack.c.bf16 %v344_v28, %v343_v23  ;;  %v329_v47 = vld [vmem:[%s6717_s1 + $0x970] sm:$0xff] }
  0xa7   :  { %3831 = vmatprep.subr.bf16.mxu0 %v3830_v51  ;;  %v3760_v45 = vpack.c.bf16 %v328_v33, %v327_v31  ;;  %v3762_v51 = vpack.c.bf16 %v346_v40, %v345_v36  ;;  %v383_v23 = vld [vmem:[%s6717_s1 + $0xb20] sm:$0xff]  ;;  %v493_v31 = vld [vmem:[%s6717_s1 + $0xe90] sm:$0xff]  ;;  %v494_v33 = vld [vmem:[%s6717_s1 + $0xe98] sm:$0xff] }
  0xa8   :  { %v385_v36 = vld [vmem:[%s6717_s1 + $0xb30] sm:$0xff]  ;;  %v403_v40 = vld [vmem:[%s6717_s1 + $0xbc0] sm:$0xff] }
  0xa9   :  { %3741 = vmatpush3.bf16.msra.mxu1 %v3740_v43  ;;  %1782 = vmatmul.mubr.f32.vlgmr.msra.gmra.mrb[8].mxu0 %v5175_v12  ;;  %v3838_v12 = vpack.c.bf16 %v432_v6, %v431_v5  ;;  %v437_v43 = vld [vmem:[%s6717_s1 + $0xcd0] sm:$0xff]  ;;  %v424_v5 = vld [vmem:[%s6717_s1 + $0xc68] sm:$0xff]  ;;  %v398_v6 = vld [vmem:[%s6717_s1 + $0xb98] sm:$0xff] }
  0xaa   :  { %3743 = vmatprep.subr.bf16.mxu1 %v3742_v46  ;;  %3833 = vmatpush3.bf16.msra.mxu0 %v3832_v62  ;;  %v330_v46 = vld [vmem:[%s6717_s1 + $0x978] sm:$0xff]  ;;  %v3850_v53 = vpack.c.bf16 %v438_v44, %v437_v43  ;;  %v3856_v13 = vpack.c.bf16 %v424_v5, %v423_v55  ;;  %v3898_v43 = vpack.c.bf16 %v494_v33, %v493_v31  ;;  %v477_v44 = vld [vmem:[%s6717_s1 + $0xe10] sm:$0xff]  ;;  %v407_v5 = vld [vmem:[%s6717_s1 + $0xbe0] sm:$0xff] }
  0xab   :  { %3835 = vmatprep.subr.bf16.mxu0 %v3834_v2  ;;  %1921 = vmatprep.mubr.f32.mxu0 %v891_v7  ;;  %v3764_v62 = vpack.c.bf16 %v330_v46, %v329_v47  ;;  %v3852_v2 = vpack.c.bf16 %v422_v1, %v421_v54  ;;  %v441_v7 = vld [vmem:[%s6717_s1 + $0xcf0] sm:$0xff]  ;;  %v404_v47 = vld [vmem:[%s6717_s1 + $0xbc8] sm:$0xff]  ;;  %v495_v46 = vld [vmem:[%s6717_s1 + $0xea0] sm:$0xff] }
  0xac   :  { %v388_v54 = vld [vmem:[%s6717_s1 + $0xb48] sm:$0xff]  ;;  %v3814_v56 = vpack.c.bf16 %v404_v47, %v403_v40  ;;  %v409_v16 = vld [vmem:[%s6717_s1 + $0xbf0] sm:$0xff]  ;;  %v459_v29 = vld [vmem:[%s6717_s1 + $0xd80] sm:$0xff] }
  0xad   :  { %3745 = vmatpush3.bf16.msra.mxu1 %v3744_v58  ;;  %v439_v58 = vld [vmem:[%s6717_s1 + $0xce0] sm:$0xff]  ;;  %v486_v31 = vld [vmem:[%s6717_s1 + $0xe58] sm:$0xff]  ;;  %v460_v33 = vld [vmem:[%s6717_s1 + $0xd88] sm:$0xff] }
  0xae   :  { %3747 = vmatprep.subr.bf16.mxu1 %v3746_v63  ;;  %3837 = vmatpush3.bf16.msra.mxu0 %v3836_v10  ;;  %v379_v63 = vld [vmem:[%s6717_s1 + $0xb00] sm:$0xff]  ;;  %v3854_v49 = vpack.c.bf16 %v440_v60, %v439_v58  ;;  %v381_v10 = vld [vmem:[%s6717_s1 + $0xb10] sm:$0xff]  ;;  %v444_v40 = vld [vmem:[%s6717_s1 + $0xd08] sm:$0xff] }
  0xaf   :  { %3839 = vmatprep.subr.bf16.mxu0 %v3838_v12  ;;  %v3800_v50 = vpack.c.bf16 %v380_v0, %v379_v63  ;;  %v3802_v12 = vpack.c.bf16 %v398_v6, %v397_v4  ;;  %v405_v58 = vld [vmem:[%s6717_s1 + $0xbd0] sm:$0xff]  ;;  %v479_v60 = vld [vmem:[%s6717_s1 + $0xe20] sm:$0xff]  ;;  %v498_v0 = vld [vmem:[%s6717_s1 + $0xeb8] sm:$0xff] }
  0xb0   :  { %v497_v63 = vld [vmem:[%s6717_s1 + $0xeb0] sm:$0xff]  ;;  %v390_v4 = vld [vmem:[%s6717_s1 + $0xb58] sm:$0xff]  ;;  %v487_v47 = vld [vmem:[%s6717_s1 + $0xe60] sm:$0xff] }
  0xb1   :  { %3749 = vmatpush3.bf16.msra.mxu1 %v3748_v8  ;;  %v442_v8 = vld [vmem:[%s6717_s1 + $0xcf8] sm:$0xff]  ;;  %v3906_v6 = vpack.c.bf16 %v498_v0, %v497_v63  ;;  %v464_v0 = vld [vmem:[%s6717_s1 + $0xda8] sm:$0xff] }
  0xb2   :  { %3751 = vmatprep.subr.bf16.mxu1 %v3750_v11  ;;  %3841 = vmatpush3.bf16.msra.mxu0 %v3840_v18  ;;  %v382_v11 = vld [vmem:[%s6717_s1 + $0xb18] sm:$0xff]  ;;  %v3858_v42 = vpack.c.bf16 %v442_v8, %v441_v7  ;;  %v481_v7 = vld [vmem:[%s6717_s1 + $0xe30] sm:$0xff] }
  0xb3   :  { %3843 = vmatprep.subr.bf16.mxu0 %v3842_v24  ;;  %v5571_v18 = vld [vmem:[%s6716_s0 + $0x38] sm:$0xff]  ;;  %v384_v24 = vld [vmem:[%s6717_s1 + $0xb28] sm:$0xff] }
  0xb4   :  { %v482_v8 = vld [vmem:[%s6717_s1 + $0xe38] sm:$0xff] }
  0xb5   :  { %3753 = vmatpush3.bf16.msra.mxu1 %v3752_v19  ;;  %v491_v19 = vld [vmem:[%s6717_s1 + $0xe80] sm:$0xff]  ;;  %v490_v63 = vld [vmem:[%s6717_s1 + $0xe78] sm:$0xff] }
  0xb6   :  { %3755 = vmatprep.subr.bf16.mxu1 %v3754_v22  ;;  %3845 = vmatpush3.bf16.msra.mxu0 %v3844_v34  ;;  %v3804_v22 = vpack.c.bf16 %v382_v11, %v381_v10  ;;  %v3894_v28 = vpack.c.bf16 %v492_v20, %v491_v19  ;;  %v5599_v34 = vrot.slane %v5571_v18, %v4331_v41  ;;  %v499_v10 = vld [vmem:[%s6717_s1 + $0xec0] sm:$0xff]  ;;  %v500_v11 = vld [vmem:[%s6717_s1 + $0xec8] sm:$0xff] }
  0xb7   :  { %3847 = vmatprep.subr.bf16.mxu0 %v3846_v37  ;;  %v386_v37 = vld [vmem:[%s6717_s1 + $0xb38] sm:$0xff]  ;;  %v3910_v17 = vpack.c.bf16 %v500_v11, %v499_v10  ;;  %v483_v19 = vld [vmem:[%s6717_s1 + $0xe40] sm:$0xff]  ;;  %v484_v20 = vld [vmem:[%s6717_s1 + $0xe48] sm:$0xff] }
  0xb8   :  { %v3812_v52 = vpack.c.bf16 %v386_v37, %v385_v36  ;;  %v504_v36 = vld [vmem:[%s6717_s1 + $0xee8] sm:$0xff]  ;;  %v876_v37 = vcombine.high %v5359_v59, %v5359_v59  ;;  %v539_v10 = vld [vmem:[%s6717_s1 + $0x1000] sm:$0xff] }
  0xb9   :  { %3757 = vmatpush3.bf16.msra.mxu1 %v3756_v32  ;;  %v402_v32 = vld [vmem:[%s6717_s1 + $0xbb8] sm:$0xff]  ;;  %v540_v11 = vld [vmem:[%s6717_s1 + $0x1008] sm:$0xff] }
  0xba   :  { %3759 = vmatprep.subr.bf16.mxu1 %v3758_v35  ;;  %3849 = vmatpush3.bf16.msra.mxu0 %v3848_v48  ;;  %v3808_v35 = vpack.c.bf16 %v384_v24, %v383_v23  ;;  %v496_v48 = vld [vmem:[%s6717_s1 + $0xea8] sm:$0xff]  ;;  %v502_v23 = vld [vmem:[%s6717_s1 + $0xed8] sm:$0xff] }
  0xbb   :  { %3851 = vmatprep.subr.bf16.mxu0 %v3850_v53  ;;  %v387_v53 = vld [vmem:[%s6717_s1 + $0xb40] sm:$0xff] }
  0xbd   :  { %3761 = vmatpush3.bf16.msra.mxu1 %v3760_v45  ;;  %v478_v45 = vld [vmem:[%s6717_s1 + $0xe18] sm:$0xff] }
  0xbe   :  { %3763 = vmatprep.subr.bf16.mxu1 %v3762_v51  ;;  %3853 = vmatpush3.bf16.msra.mxu0 %v3852_v2  ;;  %v908_v51 = vcombine.high %v5599_v34, %v5599_v34  ;;  %v3900_v1 = vpack.c.bf16 %v478_v45, %v477_v44  ;;  %v3816_v2 = vpack.c.bf16 %v388_v54, %v387_v53  ;;  %v461_v45 = vld [vmem:[%s6717_s1 + $0xd90] sm:$0xff] }
  0xbf   :  { %3855 = vmatprep.subr.bf16.mxu0 %v3854_v49  ;;  %v3904_v49 = vpack.c.bf16 %v480_v61, %v479_v60  ;;  %v3862_v44 = vpack.c.bf16 %v460_v33, %v459_v29  ;;  %v5751_v53 = vrot.slane %v876_v37, %v4331_v41  ;;  %v463_v60 = vld [vmem:[%s6717_s1 + $0xda0] sm:$0xff] }
  0xc1   :  { %3765 = vmatpush3.bf16.msra.mxu1 %v3764_v62  ;;  %v406_v62 = vld [vmem:[%s6717_s1 + $0xbd8] sm:$0xff] }
  0xc2   :  { %3799 = vmatprep.subr.bf16.mxu1 %v3798_v3  ;;  %3857 = vmatpush3.bf16.msra.mxu0 %v3856_v13  ;;  %v389_v3 = vld [vmem:[%s6717_s1 + $0xb50] sm:$0xff]  ;;  %v3818_v55 = vpack.c.bf16 %v406_v62, %v405_v58 }
  0xc3   :  { %3859 = vmatprep.subr.bf16.mxu0 %v3858_v42  ;;  %v3820_v13 = vpack.c.bf16 %v390_v4, %v389_v3  ;;  %v3908_v42 = vpack.c.bf16 %v482_v8, %v481_v7  ;;  %v489_v62 = vld [vmem:[%s6717_s1 + $0xe70] sm:$0xff]  ;;  %v556_v3 = vld [vmem:[%s6717_s1 + $0x1088] sm:$0xff]  ;;  %v892_v4 = vcombine.high %v5751_v53, %v5751_v53  ;;  %v3870_v8 = vpack.c.bf16 %v464_v0, %v463_v60 }
  0xc4   :  { %1712 = vmatmul.mubr.f32.vlgmr.msra.gmra.mrb[10].mxu1 %v5327_v27  ;;  %v401_v27 = vld [vmem:[%s6717_s1 + $0xbb0] sm:$0xff]  ;;  %v3924_v7 = vpack.c.bf16 %v490_v63, %v489_v62 }
  0xc5   :  { %3801 = vmatpush3.bf16.msra.mxu1 %v3800_v50  ;;  %1851 = vmatprep.mubr.f32.mxu1 %v875_v21  ;;  %v3810_v39 = vpack.c.bf16 %v402_v32, %v401_v27  ;;  %v408_v50 = vld [vmem:[%s6717_s1 + $0xbe8] sm:$0xff]  ;;  %v410_v21 = vld [vmem:[%s6717_s1 + $0xbf8] sm:$0xff]  ;;  %v3912_v27 = vpack.c.bf16 %v484_v20, %v483_v19  ;;  %v485_v32 = vld [vmem:[%s6717_s1 + $0xe50] sm:$0xff]  ;;  %v3960_v19 = vpack.c.bf16 %v540_v11, %v539_v10 }
  0xc6   :  { %3803 = vmatprep.subr.bf16.mxu1 %v3802_v12  ;;  %3861 = vmatpush3.bf16.msra.mxu0 %v3860_v25  ;;  %v391_v12 = vld [vmem:[%s6717_s1 + $0xb60] sm:$0xff]  ;;  %v3822_v15 = vpack.c.bf16 %v408_v50, %v407_v5  ;;  %v393_v25 = vld [vmem:[%s6717_s1 + $0xb70] sm:$0xff] }
  0xc7   :  { %3895 = vmatprep.subr.bf16.mxu0 %v3894_v28  ;;  %v3824_v24 = vpack.c.bf16 %v392_v14, %v391_v12  ;;  %v3826_v28 = vpack.c.bf16 %v410_v21, %v409_v16  ;;  %v447_v5 = vld [vmem:[%s6717_s1 + $0xd20] sm:$0xff]  ;;  %v557_v12 = vld [vmem:[%s6717_s1 + $0x1090] sm:$0xff]  ;;  %v558_v14 = vld [vmem:[%s6717_s1 + $0x1098] sm:$0xff] }
  0xc8   :  { %v449_v16 = vld [vmem:[%s6717_s1 + $0xd30] sm:$0xff]  ;;  %v467_v21 = vld [vmem:[%s6717_s1 + $0xdc0] sm:$0xff] }
  0xc9   :  { %3805 = vmatpush3.bf16.msra.mxu1 %v3804_v22  ;;  %1922 = vmatmul.mubr.f32.vlgmr.msra.gmra.mrb[10].mxu0 %v5387_v57  ;;  %v3902_v57 = vpack.c.bf16 %v496_v48, %v495_v46  ;;  %v501_v22 = vld [vmem:[%s6717_s1 + $0xed0] sm:$0xff]  ;;  %v488_v46 = vld [vmem:[%s6717_s1 + $0xe68] sm:$0xff]  ;;  %v462_v48 = vld [vmem:[%s6717_s1 + $0xd98] sm:$0xff] }
  0xca   :  { %3807 = vmatprep.subr.bf16.mxu1 %v3806_v26  ;;  %3897 = vmatpush3.bf16.msra.mxu0 %v3896_v38  ;;  %v394_v26 = vld [vmem:[%s6717_s1 + $0xb78] sm:$0xff]  ;;  %v3914_v30 = vpack.c.bf16 %v502_v23, %v501_v22  ;;  %v3920_v58 = vpack.c.bf16 %v488_v46, %v487_v47  ;;  %v3962_v22 = vpack.c.bf16 %v558_v14, %v557_v12  ;;  %v541_v23 = vld [vmem:[%s6717_s1 + $0x1010] sm:$0xff] }
  0xcb   :  { %3899 = vmatprep.subr.bf16.mxu0 %v3898_v43  ;;  %2061 = vmatprep.mubr.f32.mxu0 %v908_v51  ;;  %v3828_v38 = vpack.c.bf16 %v394_v26, %v393_v25  ;;  %v3916_v43 = vpack.c.bf16 %v486_v31, %v485_v32  ;;  %v505_v51 = vld [vmem:[%s6717_s1 + $0xef0] sm:$0xff]  ;;  %v468_v25 = vld [vmem:[%s6717_s1 + $0xdc8] sm:$0xff]  ;;  %v559_v26 = vld [vmem:[%s6717_s1 + $0x10a0] sm:$0xff] }
  0xcc   :  { %v452_v32 = vld [vmem:[%s6717_s1 + $0xd48] sm:$0xff] }
  0xcd   :  { %3809 = vmatpush3.bf16.msra.mxu1 %v3808_v35  ;;  %v503_v35 = vld [vmem:[%s6717_s1 + $0xee0] sm:$0xff] }
  0xce   :  { %3811 = vmatprep.subr.bf16.mxu1 %v3810_v39  ;;  %3901 = vmatpush3.bf16.msra.mxu0 %v3900_v1  ;;  %v443_v39 = vld [vmem:[%s6717_s1 + $0xd00] sm:$0xff]  ;;  %v3918_v59 = vpack.c.bf16 %v504_v36, %v503_v35  ;;  %v445_v1 = vld [vmem:[%s6717_s1 + $0xd10] sm:$0xff] }
  0xcf   :  { %3903 = vmatprep.subr.bf16.mxu0 %v3902_v57  ;;  %v3864_v54 = vpack.c.bf16 %v444_v40, %v443_v39  ;;  %v3866_v57 = vpack.c.bf16 %v462_v48, %v461_v45 }
  0xd1   :  { %3813 = vmatpush3.bf16.msra.mxu1 %v3812_v52  ;;  %v506_v52 = vld [vmem:[%s6717_s1 + $0xef8] sm:$0xff] }
  0xd2   :  { %3815 = vmatprep.subr.bf16.mxu1 %v3814_v56  ;;  %3905 = vmatpush3.bf16.msra.mxu0 %v3904_v49  ;;  %v446_v56 = vld [vmem:[%s6717_s1 + $0xd18] sm:$0xff]  ;;  %v3922_v61 = vpack.c.bf16 %v506_v52, %v505_v51  ;;  %v5783_v49 = vld [vmem:[%s6716_s0 + $0x40] sm:$0xff] }
  0xd3   :  { %3907 = vmatprep.subr.bf16.mxu0 %v3906_v6  ;;  %v448_v6 = vld [vmem:[%s6717_s1 + $0xd28] sm:$0xff] }
  0xd5   :  { %3817 = vmatpush3.bf16.msra.mxu1 %v3816_v2  ;;  %v555_v2 = vld [vmem:[%s6717_s1 + $0x1080] sm:$0xff] }
  0xd6   :  { %3819 = vmatprep.subr.bf16.mxu1 %v3818_v55  ;;  %3909 = vmatpush3.bf16.msra.mxu0 %v3908_v42  ;;  %v3868_v55 = vpack.c.bf16 %v446_v56, %v445_v1  ;;  %v3958_v50 = vpack.c.bf16 %v556_v3, %v555_v2  ;;  %v5811_v42 = vrot.slane %v5783_v49, %v4331_v41 }
  0xd7   :  { %3911 = vmatprep.subr.bf16.mxu0 %v3910_v17  ;;  %v450_v17 = vld [vmem:[%s6717_s1 + $0xd38] sm:$0xff] }
  0xd8   :  { %v3876_v29 = vpack.c.bf16 %v450_v17, %v449_v16 }
  0xd9   :  { %3821 = vmatpush3.bf16.msra.mxu1 %v3820_v13  ;;  %v466_v13 = vld [vmem:[%s6717_s1 + $0xdb8] sm:$0xff] }
  0xda   :  { %3823 = vmatprep.subr.bf16.mxu1 %v3822_v15  ;;  %3913 = vmatpush3.bf16.msra.mxu0 %v3912_v27  ;;  %v3872_v15 = vpack.c.bf16 %v448_v6, %v447_v5  ;;  %v560_v27 = vld [vmem:[%s6717_s1 + $0x10a8] sm:$0xff] }
  0xdb   :  { %3915 = vmatprep.subr.bf16.mxu0 %v3914_v30  ;;  %v451_v30 = vld [vmem:[%s6717_s1 + $0xd40] sm:$0xff] }
  0xdd   :  { %3825 = vmatpush3.bf16.msra.mxu1 %v3824_v24  ;;  %v542_v24 = vld [vmem:[%s6717_s1 + $0x1018] sm:$0xff] }
  0xde   :  { %3827 = vmatprep.subr.bf16.mxu1 %v3826_v28  ;;  %3917 = vmatpush3.bf16.msra.mxu0 %v3916_v43  ;;  %v925_v28 = vcombine.high %v5811_v42, %v5811_v42  ;;  %v3964_v31 = vpack.c.bf16 %v542_v24, %v541_v23 }
  0xdf   :  { %3919 = vmatprep.subr.bf16.mxu0 %v3918_v59 }
  0xe1   :  { %3829 = vmatpush3.bf16.msra.mxu1 %v3828_v38 }
  0xe2   :  { %3863 = vmatprep.subr.bf16.mxu1 %v3862_v44  ;;  %3921 = vmatpush3.bf16.msra.mxu0 %v3920_v58 }
  0xe3   :  { %3923 = vmatprep.subr.bf16.mxu0 %v3922_v61 }
  0xe4   :  { %1852 = vmatmul.mubr.f32.vlgmr.msra.gmra.mrb[12].mxu1 %v5539_v9  ;;  %v465_v9 = vld [vmem:[%s6717_s1 + $0xdb0] sm:$0xff] }
  0xe5   :  { %3865 = vmatpush3.bf16.msra.mxu1 %v3864_v54  ;;  %1991 = vmatprep.mubr.f32.mxu1 %v892_v4  ;;  %v3874_v20 = vpack.c.bf16 %v466_v13, %v465_v9 }
  0xe6   :  { %3867 = vmatprep.subr.bf16.mxu1 %v3866_v57  ;;  %3925 = vmatpush3.bf16.msra.mxu0 %v3924_v7 }
  0xe7   :  { %3959 = vmatprep.subr.bf16.mxu0 %v3958_v50 }
  0xe9   :  { %3869 = vmatpush3.bf16.msra.mxu1 %v3868_v55  ;;  %2062 = vmatmul.mubr.f32.vlgmr.msra.gmra.mrb[12].mxu0 %v5599_v34 }
  0xea   :  { %3871 = vmatprep.subr.bf16.mxu1 %v3870_v8  ;;  %3961 = vmatpush3.bf16.msra.mxu0 %v3960_v19 }
  0xed   :  { %3873 = vmatpush3.bf16.msra.mxu1 %v3872_v15 }
  0xee   :  { %8 = vsyncpa [#allocation3], 0  ;;  %3875 = vmatprep.subr.bf16.mxu1 %v3874_v20  ;;  %v3878_v33 = vpack.c.bf16 %v468_v25, %v467_v21  ;;  %v469_v35 = vld [vmem:[%s6717_s1 + $0xdd0] sm:$0xff]  ;;  %3963 = vmatprep.subr.bf16.mxu0 %v3962_v22  ;;  %v3966_v34 = vpack.c.bf16 %v560_v27, %v559_v26  ;;  %v543_v36 = vld [vmem:[%s6717_s1 + $0x1020] sm:$0xff]  ;;  %v3880_v43 = vpack.c.bf16 %v452_v32, %v451_v30  ;;  %vm1014_vm0 = vcmask 523264   ;;  %s4232_s19 = smov [#allocation2]  }
  0xef   :  { %v544_v37 = vld [vmem:[%s6717_s1 + $0x1028] sm:$0xff]  ;;  %v470_v38 = vld [vmem:[%s6717_s1 + $0xdd8] sm:$0xff]  ;;  %v561_v39 = vld [vmem:[%s6717_s1 + $0x10b0] sm:$0xff]  ;;  %2201 = vmatprep.mubr.f32.mxu0 %v925_v28  ;;  %3965 = vmatpush3.bf16.msra.mxu0 %v3964_v31  ;;  %v893_v21 = vcombine.high %v5571_v18, %v5571_v18  ;;  %vm2627_vm1 = vcmask 140288   ;;  %s2665_s20 = sshll.u32 %s4232_s19, 4  ;;  %s2666_s20 = int_to_ptr.vmem [resolvable:$true] %s2665_s20 }
  0xf0   :  { %v562_v40 = vld [vmem:[%s6717_s1 + $0x10b8] sm:$0xff]  ;;  %v453_v44 = vld [vmem:[%s6717_s1 + $0xd50] sm:$0xff]  ;;  %v3968_v59 = vpack.c.bf16 %v544_v37, %v543_v36  ;;  %v3882_v47 = vpack.c.bf16 %v470_v38, %v469_v35  ;;  %v471_v46 = vld [vmem:[%s6717_s1 + $0xde0] sm:$0xff]  ;;  %3967 = vmatprep.subr.bf16.mxu0 %v3966_v34  ;;  %s4206_s21 = scalar_lea.vmem %s2666_s20, 32  ;;  %p4211_p1 = scmp.lt.s32.totalorder %s2666_s20, %s2666_s20 }
  0xf1   :  { %3877 = vmatpush3.bf16.msra.mxu1 %v3876_v29  ;;  %v454_v45 = vld [vmem:[%s6717_s1 + $0xd58] sm:$0xff]  ;;  %v3970_v48 = vpack.c.bf16 %v562_v40, %v561_v39  ;;  %v545_v51 = vld [vmem:[%s6717_s1 + $0x1030] sm:$0xff]  ;;  %v472_v54 = vld [vmem:[%s6717_s1 + $0xde8] sm:$0xff]  ;;  %v5965_v35 = vrot.slane %v893_v21, %v4331_v41  ;;  %p4207_p0 = scmp.ne.s32.totalorder %s2666_s20, %s4206_s21  ;;  %p4212_p2 = scmp.lt.s32.totalorder %s4206_s21, %s4206_s21 }
  0xf2   :  { %3879 = vmatprep.subr.bf16.mxu1 %v3878_v33  ;;  %v546_v52 = vld [vmem:[%s6717_s1 + $0x1038] sm:$0xff]  ;;  %v563_v1 = vld [vmem:[%s6717_s1 + $0x10c0] sm:$0xff]  ;;  %v564_v56 = vld [vmem:[%s6717_s1 + $0x10c8] sm:$0xff]  ;;  %v3884_v58 = vpack.c.bf16 %v454_v45, %v453_v44  ;;  %v3886_v62 = vpack.c.bf16 %v472_v54, %v471_v46 }
  0xf3   :  { %v455_v57 = vld [vmem:[%s6717_s1 + $0xd60] sm:$0xff]  ;;  %v456_v60 = vld [vmem:[%s6717_s1 + $0xd68] sm:$0xff]  ;;  %3969 = vmatpush3.bf16.msra.mxu0 %v3968_v59  ;;  %v3972_v61 = vpack.c.bf16 %v546_v52, %v545_v51  ;;  %v473_v63 = vld [vmem:[%s6717_s1 + $0xdf0] sm:$0xff]  ;;  %v3974_v0 = vpack.c.bf16 %v564_v56, %v563_v1  ;;  %v909_v52 = vcombine.high %v5965_v35, %v5965_v35  ;;  %p4213_p3 = por %p4212_p2, %p4211_p1 }
  0xf4   :  { %3971 = vmatprep.subr.bf16.mxu0 %v3970_v48  ;;  %v547_v2 = vld [vmem:[%s6717_s1 + $0x1040] sm:$0xff]  ;;  %v548_v3 = vld [vmem:[%s6717_s1 + $0x1048] sm:$0xff]  ;;  %v474_v55 = vld [vmem:[%s6717_s1 + $0xdf8] sm:$0xff]  ;;  %v3888_v9 = vpack.c.bf16 %v456_v60, %v455_v57 }
  0xf5   :  { %3881 = vmatpush3.bf16.msra.mxu1 %v3880_v43  ;;  %v565_v5 = vld [vmem:[%s6717_s1 + $0x10d0] sm:$0xff]  ;;  %v566_v6 = vld [vmem:[%s6717_s1 + $0x10d8] sm:$0xff]  ;;  %v3976_v11 = vpack.c.bf16 %v548_v3, %v547_v2  ;;  %v3890_v13 = vpack.c.bf16 %v474_v55, %v473_v63  ;;  %v523_v12 = vld [vmem:[%s6717_s1 + $0xf80] sm:$0xff]  ;;  %p4214_p4 = pnand %p4213_p3, %p4207_p0 }
  0xf6   :  { %3883 = vmatprep.subr.bf16.mxu1 %v3882_v47  ;;  %v457_v50 = vld [vmem:[%s6717_s1 + $0xd70] sm:$0xff]  ;;  %v458_v10 = vld [vmem:[%s6717_s1 + $0xd78] sm:$0xff]  ;;  %v3978_v14 = vpack.c.bf16 %v566_v6, %v565_v5  ;;  %v524_v17 = vld [vmem:[%s6717_s1 + $0xf88] sm:$0xff] }
  0xf7   :  { %v2708_v4 = vpop.f32.mrb[0].mxu1  ;;  %3973 = vmatpush3.bf16.msra.mxu0 %v3972_v61  ;;  %v549_v15 = vld [vmem:[%s6717_s1 + $0x1050] sm:$0xff]  ;;  %v550_v16 = vld [vmem:[%s6717_s1 + $0x1058] sm:$0xff]  ;;  %v567_v19 = vld [vmem:[%s6717_s1 + $0x10e0] sm:$0xff]  ;;  %v3892_v22 = vpack.c.bf16 %v458_v10, %v457_v50  ;;  %v3926_v26 = vpack.c.bf16 %v524_v17, %v523_v12 }
  0xf8   :  { %v2709_v7 = vpop.f32.mrb[1].mxu1  ;;  %3975 = vmatprep.subr.bf16.mxu0 %v3974_v0  ;;  %v568_v20 = vld [vmem:[%s6717_s1 + $0x10e8] sm:$0xff]  ;;  %v507_v23 = vld [vmem:[%s6717_s1 + $0xf00] sm:$0xff]  ;;  %v3980_v25 = vpack.c.bf16 %v550_v16, %v549_v15  ;;  %v525_v27 = vld [vmem:[%s6717_s1 + $0xf90] sm:$0xff] }
  0xf9   :  { %v5912_v8 = vadd.f32 %v2709_v7, %v2708_v4  ;;  %3885 = vmatpush3.bf16.msra.mxu1 %v3884_v58  ;;  %v508_v24 = vld [vmem:[%s6717_s1 + $0xf08] sm:$0xff]  ;;  %v3982_v18 = vpack.c.bf16 %v568_v20, %v567_v19  ;;  %v551_v28 = vld [vmem:[%s6717_s1 + $0x1060] sm:$0xff]  ;;  %v526_v30 = vld [vmem:[%s6717_s1 + $0xf98] sm:$0xff] }
  0xfa   :  { %3887 = vmatprep.subr.bf16.mxu1 %v3886_v62  ;;  %v552_v29 = vld [vmem:[%s6717_s1 + $0x1068] sm:$0xff]  ;;  %v569_v31 = vld [vmem:[%s6717_s1 + $0x10f0] sm:$0xff]  ;;  %v570_v33 = vld [vmem:[%s6717_s1 + $0x10f8] sm:$0xff]  ;;  %v3928_v36 = vpack.c.bf16 %v508_v24, %v507_v23  ;;  %v3930_v43 = vpack.c.bf16 %v526_v30, %v525_v27 }
  0xfb   :  { %3977 = vmatpush3.bf16.msra.mxu0 %v3976_v11  ;;  %v509_v37 = vld [vmem:[%s6717_s1 + $0xf10] sm:$0xff]  ;;  %v510_v38 = vld [vmem:[%s6717_s1 + $0xf18] sm:$0xff]  ;;  %v3984_v40 = vpack.c.bf16 %v552_v29, %v551_v28  ;;  %v527_v44 = vld [vmem:[%s6717_s1 + $0xfa0] sm:$0xff]  ;;  %v3986_v45 = vpack.c.bf16 %v570_v33, %v569_v31 }
  0xfc   :  { %3979 = vmatprep.subr.bf16.mxu0 %v3978_v14  ;;  %v2778_v32 = vpop.f32.mrb[0].mxu0  ;;  %v553_v59 = vld [vmem:[%s6717_s1 + $0x1070] sm:$0xff]  ;;  %v554_v47 = vld [vmem:[%s6717_s1 + $0x1078] sm:$0xff]  ;;  %v528_v46 = vld [vmem:[%s6717_s1 + $0xfa8] sm:$0xff]  ;;  %v3932_v1 = vpack.c.bf16 %v510_v38, %v509_v37 }
  0xfd   :  { %3889 = vmatpush3.bf16.msra.mxu1 %v3888_v9  ;;  %v2779_v34 = vpop.f32.mrb[1].mxu0  ;;  %v619_v48 = vld [vmem:[%s6717_s1 + $0x1280] sm:$0xff]  ;;  %v620_v51 = vld [vmem:[%s6717_s1 + $0x1288] sm:$0xff]  ;;  %v3988_v57 = vpack.c.bf16 %v554_v47, %v553_v59  ;;  %v3934_v60 = vpack.c.bf16 %v528_v46, %v527_v44  ;;  %v530_v0 = vld [vmem:[%s6717_s1 + $0xfb8] sm:$0xff] }
  0xfe   :  { %3891 = vmatprep.subr.bf16.mxu1 %v3890_v13  ;;  %v5973_v39 = vadd.f32 %v2779_v34, %v2778_v32  ;;  %v5999_v54 = vld [vmem:[%s6716_s0 + $0x48] sm:$0xff]  ;;  %v511_v56 = vld [vmem:[%s6717_s1 + $0xf20] sm:$0xff]  ;;  %v4022_v61 = vpack.c.bf16 %v620_v51, %v619_v48  ;;  %v621_v2 = vld [vmem:[%s6717_s1 + $0x1290] sm:$0xff] }
  0xff   :  { %3981 = vmatpush3.bf16.msra.mxu0 %v3980_v25  ;;  %v512_v58 = vld [vmem:[%s6717_s1 + $0xf28] sm:$0xff]  ;;  %v603_v62 = vld [vmem:[%s6717_s1 + $0x1200] sm:$0xff]  ;;  %v622_v3 = vld [vmem:[%s6717_s1 + $0x1298] sm:$0xff]  ;;  %v6027_v4 = vrot.slane %v5999_v54, %v4331_v41 }
 0x100   :  { %3983 = vmatprep.subr.bf16.mxu0 %v3982_v18  ;;  %v604_v63 = vld [vmem:[%s6717_s1 + $0x1208] sm:$0xff]  ;;  %v3936_v55 = vpack.c.bf16 %v512_v58, %v511_v56  ;;  %v513_v5 = vld [vmem:[%s6717_s1 + $0xf30] sm:$0xff]  ;;  %v514_v6 = vld [vmem:[%s6717_s1 + $0xf38] sm:$0xff]  ;;  %v4026_v10 = vpack.c.bf16 %v622_v3, %v621_v2 }
 0x101   :  { %3893 = vmatpush3.bf16.msra.mxu1 %v3892_v22  ;;  %v4024_v7 = vpack.c.bf16 %v604_v63, %v603_v62  ;;  %v531_v50 = vld [vmem:[%s6717_s1 + $0xfc0] sm:$0xff]  ;;  %v605_v11 = vld [vmem:[%s6717_s1 + $0x1210] sm:$0xff]  ;;  %v606_v13 = vld [vmem:[%s6717_s1 + $0x1218] sm:$0xff]  ;;  %v942_v16 = vcombine.high %v6027_v4, %v6027_v4  ;;  %v3940_v17 = vpack.c.bf16 %v514_v6, %v513_v5 }
 0x102   :  { %3927 = vmatprep.subr.bf16.mxu1 %v3926_v26  ;;  %v532_v12 = vld [vmem:[%s6717_s1 + $0xfc8] sm:$0xff]  ;;  %v623_v14 = vld [vmem:[%s6717_s1 + $0x12a0] sm:$0xff]  ;;  %v4028_v21 = vpack.c.bf16 %v606_v13, %v605_v11  ;;  %v533_v23 = vld [vmem:[%s6717_s1 + $0xfd0] sm:$0xff] }
 0x103   :  { %3985 = vmatpush3.bf16.msra.mxu0 %v3984_v40  ;;  %v624_v15 = vld [vmem:[%s6717_s1 + $0x12a8] sm:$0xff]  ;;  %v515_v19 = vld [vmem:[%s6717_s1 + $0xf40] sm:$0xff]  ;;  %v3942_v22 = vpack.c.bf16 %v532_v12, %v531_v50  ;;  %v534_v26 = vld [vmem:[%s6717_s1 + $0xfd8] sm:$0xff]  ;;  %v910_v12 = vcombine.high %v5783_v49, %v5783_v49 }
 0x104   :  { %1992 = vmatmul.mubr.f32.vlgmr.msra.gmra.mrb[14].mxu1 %v5751_v53  ;;  %v529_v53 = vld [vmem:[%s6717_s1 + $0xfb0] sm:$0xff]  ;;  %3987 = vmatprep.subr.bf16.mxu0 %v3986_v45  ;;  %v516_v20 = vld [vmem:[%s6717_s1 + $0xf48] sm:$0xff]  ;;  %v607_v24 = vld [vmem:[%s6717_s1 + $0x1220] sm:$0xff]  ;;  %v3946_v31 = vpack.c.bf16 %v534_v26, %v533_v23 }
 0x105   :  { %3929 = vmatpush3.bf16.msra.mxu1 %v3928_v36  ;;  %2131 = vmatprep.mubr.f32.mxu1 %v909_v52  ;;  %v3938_v9 = vpack.c.bf16 %v530_v0, %v529_v53  ;;  %v608_v25 = vld [vmem:[%s6717_s1 + $0x1228] sm:$0xff]  ;;  %v625_v27 = vld [vmem:[%s6717_s1 + $0x12b0] sm:$0xff]  ;;  %v626_v18 = vld [vmem:[%s6717_s1 + $0x12b8] sm:$0xff]  ;;  %v3944_v28 = vpack.c.bf16 %v516_v20, %v515_v19  ;;  %v6186_v26 = vrot.slane %v910_v12, %v4331_v41 }
 0x106   :  { %3931 = vmatprep.subr.bf16.mxu1 %v3930_v43  ;;  %v517_v29 = vld [vmem:[%s6717_s1 + $0xf50] sm:$0xff]  ;;  %v518_v30 = vld [vmem:[%s6717_s1 + $0xf58] sm:$0xff]  ;;  %v4032_v32 = vpack.c.bf16 %v608_v25, %v607_v24  ;;  %v535_v33 = vld [vmem:[%s6717_s1 + $0xfe0] sm:$0xff]  ;;  %v4034_v34 = vpack.c.bf16 %v626_v18, %v625_v27 }
 0x107   :  { %3989 = vmatpush3.bf16.msra.mxu0 %v3988_v57  ;;  %v609_v36 = vld [vmem:[%s6717_s1 + $0x1230] sm:$0xff]  ;;  %v610_v37 = vld [vmem:[%s6717_s1 + $0x1238] sm:$0xff]  ;;  %v536_v38 = vld [vmem:[%s6717_s1 + $0xfe8] sm:$0xff]  ;;  %v3948_v45 = vpack.c.bf16 %v518_v30, %v517_v29 }
 0x108   :  { %4023 = vmatprep.subr.bf16.mxu0 %v4022_v61  ;;  %v627_v40 = vld [vmem:[%s6717_s1 + $0x12c0] sm:$0xff]  ;;  %v628_v43 = vld [vmem:[%s6717_s1 + $0x12c8] sm:$0xff]  ;;  %v4036_v46 = vpack.c.bf16 %v610_v37, %v609_v36  ;;  %v3950_v48 = vpack.c.bf16 %v536_v38, %v535_v33  ;;  %v537_v51 = vld [vmem:[%s6717_s1 + $0xff0] sm:$0xff] }
 0x109   :  { %3933 = vmatpush3.bf16.msra.mxu1 %v3932_v1  ;;  %v2673_v44 = vld [vmem:[%s6718_s2] ss:$0 sm:$0xff]  ;;  %v520_v47 = vld [vmem:[%s6717_s1 + $0xf68] sm:$0xff]  ;;  %v4038_v52 = vpack.c.bf16 %v628_v43, %v627_v40  ;;  %v538_v57 = vld [vmem:[%s6717_s1 + $0xff8] sm:$0xff] }
 0x10a   :  { %3935 = vmatprep.subr.bf16.mxu1 %v3934_v60  ;;  %2202 = vmatmul.mubr.f32.vlgmr.msra.gmra.mrb[14].mxu0 %v5811_v42  ;;  %v4030_v42 = vpack.c.bf16 %v624_v15, %v623_v14  ;;  %v519_v59 = vld [vmem:[%s6717_s1 + $0xf60] sm:$0xff]  ;;  %v612_v56 = vld [vmem:[%s6717_s1 + $0x1248] sm:$0xff]  ;;  %v629_v60 = vld [vmem:[%s6717_s1 + $0x12d0] sm:$0xff]  ;;  %v1084_v63 = vadd.f32 %v5912_v8, %v2673_v44  ;;  %v3954_v5 = vpack.c.bf16 %v538_v57, %v537_v51 }
 0x10b   :  { %4025 = vmatpush3.bf16.msra.mxu0 %v4024_v7  ;;  %2341 = vmatprep.mubr.f32.mxu0 %v942_v16  ;;  %v611_v1 = vld [vmem:[%s6717_s1 + $0x1240] sm:$0xff]  ;;  %v630_v53 = vld [vmem:[%s6717_s1 + $0x12d8] sm:$0xff]  ;;  %v3952_v62 = vpack.c.bf16 %v520_v47, %v519_v59  ;;  %v521_v2 = vld [vmem:[%s6717_s1 + $0xf70] sm:$0xff]  ;;  %v926_v44 = vcombine.high %v6186_v26, %v6186_v26 }
 0x10c   :  { %4027 = vmatprep.subr.bf16.mxu0 %v4026_v10  ;;  %v522_v3 = vld [vmem:[%s6717_s1 + $0xf78] sm:$0xff]  ;;  %v587_v6 = vld [vmem:[%s6717_s1 + $0x1180] sm:$0xff]  ;;  %v4042_v8 = vpack.c.bf16 %v630_v53, %v629_v60  ;;  %v613_v7 = vld [vmem:[%s6717_s1 + $0x1250] sm:$0xff] }
 0x10d   :  { %3937 = vmatpush3.bf16.msra.mxu1 %v3936_v55  ;;  %v4040_v55 = vpack.c.bf16 %v612_v56, %v611_v1  ;;  %v588_v10 = vld [vmem:[%s6717_s1 + $0x1188] sm:$0xff]  ;;  %v631_v11 = vld [vmem:[%s6717_s1 + $0x12e0] sm:$0xff]  ;;  %v3956_v14 = vpack.c.bf16 %v522_v3, %v521_v2  ;;  %v589_v49 = vld [vmem:[%s6717_s1 + $0x1190] sm:$0xff] }
 0x10e   :  { %3939 = vmatprep.subr.bf16.mxu1 %v3938_v9  ;;  %v614_v9 = vld [vmem:[%s6717_s1 + $0x1258] sm:$0xff]  ;;  %v632_v13 = vld [vmem:[%s6717_s1 + $0x12e8] sm:$0xff]  ;;  %v571_v15 = vld [vmem:[%s6717_s1 + $0x1100] sm:$0xff]  ;;  %v3990_v20 = vpack.c.bf16 %v588_v10, %v587_v6 }
 0x10f   :  { %4029 = vmatpush3.bf16.msra.mxu0 %v4028_v21  ;;  %v572_v16 = vld [vmem:[%s6717_s1 + $0x1108] sm:$0xff]  ;;  %v4046_v21 = vpack.c.bf16 %v632_v13, %v631_v11  ;;  %v633_v24 = vld [vmem:[%s6717_s1 + $0x12f0] sm:$0xff]  ;;  %v634_v25 = vld [vmem:[%s6717_s1 + $0x12f8] sm:$0xff] }
 0x110   :  { %4031 = vmatprep.subr.bf16.mxu0 %v4030_v42  ;;  %v616_v23 = vld [vmem:[%s6717_s1 + $0x1268] sm:$0xff]  ;;  %v3992_v18 = vpack.c.bf16 %v572_v16, %v571_v15  ;;  %v574_v29 = vld [vmem:[%s6717_s1 + $0x1118] sm:$0xff]  ;;  %v591_v33 = vld [vmem:[%s6717_s1 + $0x11a0] sm:$0xff] }
 0x111   :  { %3941 = vmatpush3.bf16.msra.mxu1 %v3940_v17  ;;  %v4044_v17 = vpack.c.bf16 %v614_v9, %v613_v7  ;;  %v617_v36 = vld [vmem:[%s6717_s1 + $0x1270] sm:$0xff]  ;;  %v618_v37 = vld [vmem:[%s6717_s1 + $0x1278] sm:$0xff]  ;;  %v592_v38 = vld [vmem:[%s6717_s1 + $0x11a8] sm:$0xff] }
 0x112   :  { %3943 = vmatprep.subr.bf16.mxu1 %v3942_v22  ;;  %v615_v22 = vld [vmem:[%s6717_s1 + $0x1260] sm:$0xff]  ;;  %v684_v43 = vld [vmem:[%s6717_s1 + $0x1488] sm:$0xff]  ;;  %v3998_v51 = vpack.c.bf16 %v592_v38, %v591_v33  ;;  %v685_v57 = vld [vmem:[%s6717_s1 + $0x1490] sm:$0xff] }
 0x113   :  { %4033 = vmatpush3.bf16.msra.mxu0 %v4032_v32  ;;  %v4048_v32 = vpack.c.bf16 %v616_v23, %v615_v22  ;;  %v683_v40 = vld [vmem:[%s6717_s1 + $0x1480] sm:$0xff]  ;;  %v668_v56 = vld [vmem:[%s6717_s1 + $0x1408] sm:$0xff]  ;;  %v686_v60 = vld [vmem:[%s6717_s1 + $0x1498] sm:$0xff] }
 0x114   :  { %4035 = vmatprep.subr.bf16.mxu0 %v4034_v34  ;;  %v4050_v34 = vpack.c.bf16 %v634_v25, %v633_v24  ;;  %v575_v47 = vld [vmem:[%s6717_s1 + $0x1120] sm:$0xff]  ;;  %v670_v6 = vld [vmem:[%s6717_s1 + $0x1418] sm:$0xff]  ;;  %v688_v9 = vld [vmem:[%s6717_s1 + $0x14a8] sm:$0xff] }
 0x115   :  { %3945 = vmatpush3.bf16.msra.mxu1 %v3944_v28  ;;  %v573_v28 = vld [vmem:[%s6717_s1 + $0x1110] sm:$0xff]  ;;  %v667_v1 = vld [vmem:[%s6717_s1 + $0x1400] sm:$0xff]  ;;  %v580_v13 = vld [vmem:[%s6717_s1 + $0x1148] sm:$0xff] }
 0x116   :  { %3947 = vmatprep.subr.bf16.mxu1 %v3946_v31  ;;  %v3996_v59 = vpack.c.bf16 %v574_v29, %v573_v28  ;;  %v595_v3 = vld [vmem:[%s6717_s1 + $0x11c0] sm:$0xff]  ;;  %v597_v15 = vld [vmem:[%s6717_s1 + $0x11d0] sm:$0xff]  ;;  %v674_v28 = vld [vmem:[%s6717_s1 + $0x1438] sm:$0xff] }
 0x117   :  { %v2743_v58 = vpop.f32.mrb[2].mxu1  ;;  %4037 = vmatpush3.bf16.msra.mxu0 %v4036_v46  ;;  %v576_v46 = vld [vmem:[%s6717_s1 + $0x1128] sm:$0xff]  ;;  %v687_v7 = vld [vmem:[%s6717_s1 + $0x14a0] sm:$0xff]  ;;  %v581_v23 = vld [vmem:[%s6717_s1 + $0x1150] sm:$0xff] }
 0x118   :  { %v2744_v61 = vpop.f32.mrb[3].mxu1  ;;  %4039 = vmatprep.subr.bf16.mxu0 %v4038_v52  ;;  %v4086_v52 = vpack.c.bf16 %v684_v43, %v683_v40  ;;  %v579_v11 = vld [vmem:[%s6717_s1 + $0x1140] sm:$0xff]  ;;  %v600_v29 = vld [vmem:[%s6717_s1 + $0x11e8] sm:$0xff]  ;;  %v601_v40 = vld [vmem:[%s6717_s1 + $0x11f0] sm:$0xff] }
 0x119   :  { %v2745_v0 = vadd.f32 %v2744_v61, %v2743_v58  ;;  %3949 = vmatpush3.bf16.msra.mxu1 %v3948_v45  ;;  %v6220_v45 = vld [vmem:[%s6716_s0 + $0x50] sm:$0xff]  ;;  %v594_v58 = vld [vmem:[%s6717_s1 + $0x11b8] sm:$0xff]  ;;  %v4000_v61 = vpack.c.bf16 %v576_v46, %v575_v47  ;;  %v671_v16 = vld [vmem:[%s6717_s1 + $0x1420] sm:$0xff]  ;;  %v4008_v22 = vpack.c.bf16 %v580_v13, %v579_v11 }
 0x11a   :  { %3951 = vmatprep.subr.bf16.mxu1 %v3950_v48  ;;  %v4052_v48 = vpack.c.bf16 %v618_v37, %v617_v36  ;;  %v6248_v53 = vrot.slane %v6220_v45, %v4331_v41  ;;  %v599_v25 = vld [vmem:[%s6717_s1 + $0x11e0] sm:$0xff]  ;;  %v584_v36 = vld [vmem:[%s6717_s1 + $0x1168] sm:$0xff]  ;;  %v602_v46 = vld [vmem:[%s6717_s1 + $0x11f8] sm:$0xff] }
 0x11b   :  { %v1154_v50 = vadd.f32 %v2745_v0, %v1084_v63  ;;  %4041 = vmatpush3.bf16.msra.mxu0 %v4040_v55  ;;  %v578_v63 = vld [vmem:[%s6717_s1 + $0x1138] sm:$0xff]  ;;  %v4088_v0 = vpack.c.bf16 %v668_v56, %v667_v1  ;;  %v4090_v55 = vpack.c.bf16 %v686_v60, %v685_v57  ;;  %v4014_v38 = vpack.c.bf16 %v600_v29, %v599_v25  ;;  %v585_v56 = vld [vmem:[%s6717_s1 + $0x1170] sm:$0xff]  ;;  %v679_v13 = vld [vmem:[%s6717_s1 + $0x1460] sm:$0xff] }
 0x11c   :  { %4043 = vmatprep.subr.bf16.mxu0 %v4042_v8  ;;  %v2848_v42 = vpop.f32.mrb[2].mxu0  ;;  %v596_v8 = vld [vmem:[%s6717_s1 + $0x11c8] sm:$0xff]  ;;  %v4018_v60 = vpack.c.bf16 %v602_v46, %v601_v40  ;;  %v682_v25 = vld [vmem:[%s6717_s1 + $0x1478] sm:$0xff] }
 0x11d   :  { %3953 = vmatpush3.bf16.msra.mxu1 %v3952_v62  ;;  %v6165_v19 = vadd.f32 %v5973_v39, %v1154_v50  ;;  %v590_v39 = vld [vmem:[%s6717_s1 + $0x1198] sm:$0xff]  ;;  %v2849_v27 = vpop.f32.mrb[3].mxu0  ;;  %v577_v62 = vld [vmem:[%s6717_s1 + $0x1130] sm:$0xff]  ;;  %v959_v50 = vcombine.high %v6248_v53, %v6248_v53 }
 0x11e   :  { %3955 = vmatprep.subr.bf16.mxu1 %v3954_v5  ;;  %v6194_v30 = vadd.f32 %v2849_v27, %v2848_v42  ;;  %v3994_v31 = vpack.c.bf16 %v590_v39, %v589_v49  ;;  %v669_v5 = vld [vmem:[%s6717_s1 + $0x1410] sm:$0xff]  ;;  %v4004_v10 = vpack.c.bf16 %v578_v63, %v577_v62  ;;  %v582_v39 = vld [vmem:[%s6717_s1 + $0x1158] sm:$0xff] }
 0x11f   :  { %4045 = vmatpush3.bf16.msra.mxu0 %v4044_v17  ;;  %v4092_v12 = vpack.c.bf16 %v670_v6, %v669_v5  ;;  %v672_v17 = vld [vmem:[%s6717_s1 + $0x1428] sm:$0xff]  ;;  %v689_v49 = vld [vmem:[%s6717_s1 + $0x14b0] sm:$0xff]  ;;  %v4012_v33 = vpack.c.bf16 %v582_v39, %v581_v23  ;;  %v927_v6 = vcombine.high %v5999_v54, %v5999_v54  ;;  %v638_v39 = vld [vmem:[%s6717_s1 + $0x1318] sm:$0xff] }
 0x120   :  { %4047 = vmatprep.subr.bf16.mxu0 %v4046_v21  ;;  %v690_v21 = vld [vmem:[%s6717_s1 + $0x14b8] sm:$0xff]  ;;  %v4096_v42 = vpack.c.bf16 %v672_v17, %v671_v16  ;;  %v677_v63 = vld [vmem:[%s6717_s1 + $0x1450] sm:$0xff]  ;;  %v696_v5 = vld [vmem:[%s6717_s1 + $0x14e8] sm:$0xff] }
 0x121   :  { %3957 = vmatpush3.bf16.msra.mxu1 %v3956_v14  ;;  %v4006_v14 = vpack.c.bf16 %v596_v8, %v595_v3  ;;  %v4098_v27 = vpack.c.bf16 %v690_v21, %v689_v49  ;;  %v652_v3 = vld [vmem:[%s6717_s1 + $0x1388] sm:$0xff]  ;;  %v653_v54 = vld [vmem:[%s6717_s1 + $0x1390] sm:$0xff]  ;;  %v6404_v16 = vrot.slane %v927_v6, %v4331_v41  ;;  %v6450_v40 = vld.sshfl [vmem:[%s6716_s0 + $0x58] sm:$0x33 pattern:$0x76325410] }
 0x122   :  { %3991 = vmatprep.subr.bf16.mxu1 %v3990_v20  ;;  %v598_v20 = vld [vmem:[%s6717_s1 + $0x11d8] sm:$0xff]  ;;  %v637_v49 = vld [vmem:[%s6717_s1 + $0x1310] sm:$0xff] }
 0x123   :  { %4049 = vmatpush3.bf16.msra.mxu0 %v4048_v32  ;;  %v4010_v24 = vpack.c.bf16 %v598_v20, %v597_v15  ;;  %v691_v32 = vld [vmem:[%s6717_s1 + $0x14c0] sm:$0xff]  ;;  %v697_v15 = vld [vmem:[%s6717_s1 + $0x14f0] sm:$0xff]  ;;  %v4060_v29 = vpack.c.bf16 %v638_v39, %v637_v49  ;;  %v642_v46 = vld [vmem:[%s6717_s1 + $0x1338] sm:$0xff] }
 0x124   :  { %2132 = vmatmul.mubr.f32.vlgmr.msra.gmra.mrb[16].mxu1 %v5965_v35  ;;  %v593_v35 = vld [vmem:[%s6717_s1 + $0x11b0] sm:$0xff]  ;;  %4051 = vmatprep.subr.bf16.mxu0 %v4050_v34  ;;  %v583_v34 = vld [vmem:[%s6717_s1 + $0x1160] sm:$0xff] }
 0x125   :  { %3993 = vmatpush3.bf16.msra.mxu1 %v3992_v18  ;;  %2271 = vmatprep.mubr.f32.mxu1 %v926_v44  ;;  %v4002_v2 = vpack.c.bf16 %v594_v58, %v593_v35  ;;  %v673_v18 = vld [vmem:[%s6717_s1 + $0x1430] sm:$0xff]  ;;  %v675_v44 = vld [vmem:[%s6717_s1 + $0x1440] sm:$0xff]  ;;  %v4016_v1 = vpack.c.bf16 %v584_v36, %v583_v34  ;;  %v586_v58 = vld [vmem:[%s6717_s1 + $0x1178] sm:$0xff] }
 0x126   :  { %3995 = vmatprep.subr.bf16.mxu1 %v3994_v31  ;;  %v692_v31 = vld [vmem:[%s6717_s1 + $0x14c8] sm:$0xff]  ;;  %v4100_v37 = vpack.c.bf16 %v674_v28, %v673_v18  ;;  %v4020_v8 = vpack.c.bf16 %v586_v58, %v585_v56  ;;  %v943_v28 = vcombine.high %v6404_v16, %v6404_v16  ;;  %v731_v36 = vld [vmem:[%s6717_s1 + $0x1600] sm:$0xff]  ;;  %v968_v56 = vcombine.high %v6450_v40, %v6450_v40  ;;  %v649_v39 = vld [vmem:[%s6717_s1 + $0x1370] sm:$0xff] }
 0x127   :  { %4053 = vmatpush3.bf16.msra.mxu0 %v4052_v48  ;;  %v4102_v43 = vpack.c.bf16 %v692_v31, %v691_v32  ;;  %v693_v48 = vld [vmem:[%s6717_s1 + $0x14d0] sm:$0xff]  ;;  %v656_v18 = vld [vmem:[%s6717_s1 + $0x13a8] sm:$0xff]  ;;  %v639_v32 = vld [vmem:[%s6717_s1 + $0x1320] sm:$0xff] }
 0x128   :  { %4087 = vmatprep.subr.bf16.mxu0 %v4086_v52  ;;  %v640_v34 = vld [vmem:[%s6717_s1 + $0x1328] sm:$0xff] }
 0x129   :  { %3997 = vmatpush3.bf16.msra.mxu1 %v3996_v59  ;;  %v676_v59 = vld [vmem:[%s6717_s1 + $0x1448] sm:$0xff] }
 0x12a   :  { %3999 = vmatprep.subr.bf16.mxu1 %v3998_v51  ;;  %2342 = vmatmul.mubr.f32.vlgmr.msra.gmra.mrb[16].mxu0 %v6027_v4  ;;  %v4094_v4 = vpack.c.bf16 %v688_v9, %v687_v7  ;;  %v694_v51 = vld [vmem:[%s6717_s1 + $0x14d8] sm:$0xff]  ;;  %v4104_v57 = vpack.c.bf16 %v676_v59, %v675_v44  ;;  %v636_v7 = vld [vmem:[%s6717_s1 + $0x1308] sm:$0xff]  ;;  %v641_v44 = vld [vmem:[%s6717_s1 + $0x1330] sm:$0xff] }
 0x12b   :  { %4089 = vmatpush3.bf16.msra.mxu0 %v4088_v0  ;;  %2481 = vmatprep.mubr.f32.mxu0 %v959_v50  ;;  %v4106_v62 = vpack.c.bf16 %v694_v51, %v693_v48  ;;  %v678_v0 = vld [vmem:[%s6717_s1 + $0x1458] sm:$0xff]  ;;  %v4231_v48 = vmov 0.0|0.0   ;;  %v733_v51 = vld [vmem:[%s6717_s1 + $0x1610] sm:$0xff]  ;;  %v4068_v58 = vpack.c.bf16 %v642_v46, %v641_v44 }
 0x12c   :  { %4091 = vmatprep.subr.bf16.mxu0 %v4090_v55  ;;  %v695_v55 = vld [vmem:[%s6717_s1 + $0x14e0] sm:$0xff]  ;;  %v4108_v9 = vpack.c.bf16 %v678_v0, %v677_v63  ;;  %v736_v63 = vld [vmem:[%s6717_s1 + $0x1628] sm:$0xff]  ;;  %v661_v0 = vld [vmem:[%s6717_s1 + $0x13d0] sm:$0xff] }
 0x12d   :  { %4001 = vmatpush3.bf16.msra.mxu1 %v4000_v61  ;;  %v651_v61 = vld [vmem:[%s6717_s1 + $0x1380] sm:$0xff]  ;;  %v4110_v11 = vpack.c.bf16 %v696_v5, %v695_v55  ;;  %v645_v55 = vld [vmem:[%s6717_s1 + $0x1350] sm:$0xff] }
 0x12e   :  { %4003 = vmatprep.subr.bf16.mxu1 %v4002_v2 }
 0x12f   :  { %4093 = vmatpush3.bf16.msra.mxu0 %v4092_v12  ;;  %v680_v12 = vld [vmem:[%s6717_s1 + $0x1468] sm:$0xff] }
 0x130   :  { %4095 = vmatprep.subr.bf16.mxu0 %v4094_v4  ;;  %v698_v4 = vld [vmem:[%s6717_s1 + $0x14f8] sm:$0xff] }
 0x131   :  { %4005 = vmatpush3.bf16.msra.mxu1 %v4004_v10  ;;  %v4054_v10 = vpack.c.bf16 %v652_v3, %v651_v61 }
 0x132   :  { %4007 = vmatprep.subr.bf16.mxu1 %v4006_v14 }
 0x133   :  { %4097 = vmatpush3.bf16.msra.mxu0 %v4096_v42  ;;  %v4114_v42 = vpack.c.bf16 %v698_v4, %v697_v15  ;;  %v740_v15 = vld [vmem:[%s6717_s1 + $0x1648] sm:$0xff] }
 0x134   :  { %4099 = vmatprep.subr.bf16.mxu0 %v4098_v27  ;;  %v655_v27 = vld [vmem:[%s6717_s1 + $0x13a0] sm:$0xff] }
 0x135   :  { %4009 = vmatpush3.bf16.msra.mxu1 %v4008_v22  ;;  %v4112_v22 = vpack.c.bf16 %v680_v12, %v679_v13 }
 0x136   :  { %4011 = vmatprep.subr.bf16.mxu1 %v4010_v24  ;;  %v681_v24 = vld [vmem:[%s6717_s1 + $0x1470] sm:$0xff] }
 0x137   :  { %v2813_v47 = vpop.f32.mrb[4].mxu1  ;;  %4101 = vmatpush3.bf16.msra.mxu0 %v4100_v37  ;;  %v4116_v31 = vpack.c.bf16 %v682_v25, %v681_v24  ;;  %v657_v37 = vld [vmem:[%s6717_s1 + $0x13b0] sm:$0xff]  ;;  %v650_v25 = vld [vmem:[%s6717_s1 + $0x1378] sm:$0xff] }
 0x138   :  { %v2814_v35 = vpop.f32.mrb[5].mxu1  ;;  %4103 = vmatprep.subr.bf16.mxu0 %v4102_v43  ;;  %v4064_v43 = vpack.c.bf16 %v640_v34, %v639_v32  ;;  %v716_v32 = vld [vmem:[%s6717_s1 + $0x1588] sm:$0xff]  ;;  %v699_v34 = vld [vmem:[%s6717_s1 + $0x1500] sm:$0xff] }
 0x139   :  { %v2815_v52 = vadd.f32 %v2814_v35, %v2813_v47  ;;  %4013 = vmatpush3.bf16.msra.mxu1 %v4012_v33  ;;  %v4062_v33 = vpack.c.bf16 %v656_v18, %v655_v27  ;;  %v734_v35 = vld [vmem:[%s6717_s1 + $0x1618] sm:$0xff]  ;;  %v741_v27 = vld [vmem:[%s6717_s1 + $0x1650] sm:$0xff] }
 0x13a   :  { %4015 = vmatprep.subr.bf16.mxu1 %v4014_v38  ;;  %v658_v38 = vld [vmem:[%s6717_s1 + $0x13b8] sm:$0xff] }
 0x13b   :  { %v1294_v2 = vadd.f32 %v2815_v52, %v6165_v19  ;;  %v635_v19 = vld [vmem:[%s6717_s1 + $0x1300] sm:$0xff]  ;;  %4105 = vmatpush3.bf16.msra.mxu0 %v4104_v57  ;;  %v4066_v47 = vpack.c.bf16 %v658_v38, %v657_v37  ;;  %v742_v18 = vld [vmem:[%s6717_s1 + $0x1658] sm:$0xff]  ;;  %v700_v37 = vld [vmem:[%s6717_s1 + $0x1508] sm:$0xff] }
 0x13c   :  { %4107 = vmatprep.subr.bf16.mxu0 %v4106_v62  ;;  %v2918_v14 = vpop.f32.mrb[4].mxu0  ;;  %v4056_v20 = vpack.c.bf16 %v636_v7, %v635_v19  ;;  %v659_v52 = vld [vmem:[%s6717_s1 + $0x13c0] sm:$0xff]  ;;  %v644_v62 = vld [vmem:[%s6717_s1 + $0x1348] sm:$0xff]  ;;  %v737_v19 = vld [vmem:[%s6717_s1 + $0x1630] sm:$0xff]  ;;  %v4120_v46 = vpack.c.bf16 %v700_v37, %v699_v34 }
 0x13d   :  { %4017 = vmatpush3.bf16.msra.mxu1 %v4016_v1  ;;  %v6383_v50 = vadd.f32 %v6194_v30, %v1294_v2  ;;  %v654_v30 = vld [vmem:[%s6717_s1 + $0x1398] sm:$0xff]  ;;  %v2919_v17 = vpop.f32.mrb[5].mxu0  ;;  %v660_v1 = vld [vmem:[%s6717_s1 + $0x13c8] sm:$0xff]  ;;  %v643_v57 = vld [vmem:[%s6717_s1 + $0x1340] sm:$0xff] }
 0x13e   :  { %4019 = vmatprep.subr.bf16.mxu1 %v4018_v60  ;;  %v6409_v21 = vadd.f32 %v2919_v17, %v2918_v14  ;;  %v4058_v23 = vpack.c.bf16 %v654_v30, %v653_v54  ;;  %v4154_v60 = vpack.c.bf16 %v734_v35, %v733_v51  ;;  %v4070_v61 = vpack.c.bf16 %v660_v1, %v659_v52  ;;  %v662_v2 = vld [vmem:[%s6717_s1 + $0x13d8] sm:$0xff]  ;;  %v648_v30 = vld [vmem:[%s6717_s1 + $0x1368] sm:$0xff]  ;;  %v739_v14 = vld [vmem:[%s6717_s1 + $0x1640] sm:$0xff] }
 0x13f   :  { %4109 = vmatpush3.bf16.msra.mxu0 %v4108_v9  ;;  %v4072_v3 = vpack.c.bf16 %v644_v62, %v643_v57  ;;  %v4074_v6 = vpack.c.bf16 %v662_v2, %v661_v0  ;;  %v738_v7 = vld [vmem:[%s6717_s1 + $0x1638] sm:$0xff]  ;;  %v663_v9 = vld [vmem:[%s6717_s1 + $0x13e0] sm:$0xff]  ;;  %v665_v17 = vld [vmem:[%s6717_s1 + $0x13f0] sm:$0xff] }
 0x140   :  { %4111 = vmatprep.subr.bf16.mxu0 %v4110_v11  ;;  %v647_v11 = vld [vmem:[%s6717_s1 + $0x1360] sm:$0xff]  ;;  %v4160_v13 = vpack.c.bf16 %v738_v7, %v737_v19  ;;  %v744_v38 = vld [vmem:[%s6717_s1 + $0x1668] sm:$0xff]  ;;  %v701_v51 = vld [vmem:[%s6717_s1 + $0x1510] sm:$0xff] }
 0x141   :  { %4021 = vmatpush3.bf16.msra.mxu1 %v4020_v8  ;;  %v646_v8 = vld [vmem:[%s6717_s1 + $0x1358] sm:$0xff]  ;;  %v719_v57 = vld [vmem:[%s6717_s1 + $0x15a0] sm:$0xff]  ;;  %v704_v2 = vld [vmem:[%s6717_s1 + $0x1528] sm:$0xff] }
 0x142   :  { %4055 = vmatprep.subr.bf16.mxu1 %v4054_v10  ;;  %v664_v10 = vld [vmem:[%s6717_s1 + $0x13e8] sm:$0xff]  ;;  %v4076_v54 = vpack.c.bf16 %v646_v8, %v645_v55  ;;  %v721_v55 = vld [vmem:[%s6717_s1 + $0x15b0] sm:$0xff]  ;;  %v711_v34 = vld [vmem:[%s6717_s1 + $0x1560] sm:$0xff] }
 0x143   :  { %4113 = vmatpush3.bf16.msra.mxu0 %v4112_v22  ;;  %v4078_v12 = vpack.c.bf16 %v664_v10, %v663_v9  ;;  %v705_v8 = vld [vmem:[%s6717_s1 + $0x1530] sm:$0xff]  ;;  %v706_v9 = vld [vmem:[%s6717_s1 + $0x1538] sm:$0xff] }
 0x144   :  { %2272 = vmatmul.mubr.f32.vlgmr.msra.gmra.mrb[18].mxu1 %v6186_v26  ;;  %4115 = vmatprep.subr.bf16.mxu0 %v4114_v42  ;;  %v732_v26 = vld [vmem:[%s6717_s1 + $0x1608] sm:$0xff]  ;;  %v4163_v42 = vpack.c.bf16 %v740_v15, %v739_v14  ;;  %v749_v10 = vld [vmem:[%s6717_s1 + $0x1690] sm:$0xff] }
 0x145   :  { %4057 = vmatpush3.bf16.msra.mxu1 %v4056_v20  ;;  %2411 = vmatprep.mubr.f32.mxu1 %v943_v28  ;;  %v4151_v59 = vpack.c.bf16 %v732_v26, %v731_v36  ;;  %v666_v20 = vld [vmem:[%s6717_s1 + $0x13f8] sm:$0xff]  ;;  %v4166_v36 = vpack.c.bf16 %v742_v18, %v741_v27  ;;  %v753_v27 = vld [vmem:[%s6717_s1 + $0x16b0] sm:$0xff] }
 0x146   :  { %4059 = vmatprep.subr.bf16.mxu1 %v4058_v23  ;;  %v4080_v23 = vpack.c.bf16 %v648_v30, %v647_v11  ;;  %v4082_v24 = vpack.c.bf16 %v666_v20, %v665_v17  ;;  %v723_v11 = vld [vmem:[%s6717_s1 + $0x15c0] sm:$0xff]  ;;  %v752_v20 = vld [vmem:[%s6717_s1 + $0x16a8] sm:$0xff]  ;;  %v754_v18 = vld [vmem:[%s6717_s1 + $0x16b8] sm:$0xff] }
 0x147   :  { %4117 = vmatpush3.bf16.msra.mxu0 %v4116_v31  ;;  %v944_v31 = vcombine.high %v6220_v45, %v6220_v45  ;;  %v743_v45 = vld [vmem:[%s6717_s1 + $0x1660] sm:$0xff]  ;;  %v729_v37 = vld [vmem:[%s6717_s1 + $0x15f0] sm:$0xff] }
 0x148   :  { %4150 = vmatprep.subr.bf16.mxu0 %v4231_v48  ;;  %v4169_v52 = vpack.c.bf16 %v744_v38, %v743_v45  ;;  %v707_v30 = vld [vmem:[%s6717_s1 + $0x1540] sm:$0xff]  ;;  %v730_v45 = vld [vmem:[%s6717_s1 + $0x15f8] sm:$0xff] }
 0x149   :  { %4061 = vmatpush3.bf16.msra.mxu1 %v4060_v29  ;;  %v715_v29 = vld [vmem:[%s6717_s1 + $0x1580] sm:$0xff] }
 0x14a   :  { %4063 = vmatprep.subr.bf16.mxu1 %v4062_v33  ;;  %2482 = vmatmul.mubr.f32.vlgmr.msra.gmra.mrb[18].mxu0 %v6248_v53  ;;  %v735_v53 = vld [vmem:[%s6717_s1 + $0x1620] sm:$0xff]  ;;  %v4084_v33 = vpack.c.bf16 %v650_v25, %v649_v39  ;;  %v4118_v26 = vpack.c.bf16 %v716_v32, %v715_v29  ;;  %v709_v39 = vld [vmem:[%s6717_s1 + $0x1550] sm:$0xff]  ;;  %v710_v25 = vld [vmem:[%s6717_s1 + $0x1558] sm:$0xff] }
 0x14b   :  { %4152 = vmatpush1.bf16.msra.mxu0 %v4151_v59  ;;  %2675 = vmatprep.mubr.msk.f32.mxu0 %vm1014_vm0, %v968_v56  ;;  %v4157_v5 = vpack.c.bf16 %v736_v63, %v735_v53  ;;  %v6576_v59 = vrot.slane %v944_v31, %v4331_v41  ;;  %v702_v56 = vld [vmem:[%s6717_s1 + $0x1518] sm:$0xff]  ;;  %v745_v41 = vld [vmem:[%s6717_s1 + $0x1670] sm:$0xff]  ;;  %v703_v53 = vld [vmem:[%s6717_s1 + $0x1520] sm:$0xff]  ;;  %v4140_v32 = vpack.c.bf16 %v710_v25, %v709_v39 }
 0x14c   :  { %4153 = vmatprep.subr.bf16.mxu0 %v4231_v48  ;;  %v4124_v62 = vpack.c.bf16 %v702_v56, %v701_v51  ;;  %v751_v17 = vld [vmem:[%s6717_s1 + $0x16a0] sm:$0xff]  ;;  %v728_v29 = vld [vmem:[%s6717_s1 + $0x15e8] sm:$0xff]  ;;  %v4184_v31 = vpack.c.bf16 %v754_v18, %v753_v27 }
 0x14d   :  { %4065 = vmatpush3.bf16.msra.mxu1 %v4064_v43  ;;  %v718_v43 = vld [vmem:[%s6717_s1 + $0x1598] sm:$0xff] }
 0x14e   :  { %4067 = vmatprep.subr.bf16.mxu1 %v4066_v47 }
 0x14f   :  { %4155 = vmatpush1.bf16.msra.mxu0 %v4154_v60  ;;  %v720_v60 = vld [vmem:[%s6717_s1 + $0x15a8] sm:$0xff] }
 0x150   :  { %4156 = vmatprep.subr.bf16.mxu0 %v4231_v48  ;;  %v4126_v0 = vpack.c.bf16 %v720_v60, %v719_v57 }
 0x151   :  { %4069 = vmatpush3.bf16.msra.mxu1 %v4068_v58  ;;  %v746_v58 = vld [vmem:[%s6717_s1 + $0x1678] sm:$0xff] }
 0x152   :  { %4071 = vmatprep.subr.bf16.mxu1 %v4070_v61  ;;  %v960_v61 = vcombine.high %v6576_v59, %v6576_v59  ;;  %v4172_v63 = vpack.c.bf16 %v746_v58, %v745_v41 }
 0x153   :  { %4158 = vmatpush1.bf16.msra.mxu0 %v4157_v5  ;;  %v722_v5 = vld [vmem:[%s6717_s1 + $0x15b8] sm:$0xff] }
 0x154   :  { %4159 = vmatprep.subr.bf16.mxu0 %v4231_v48  ;;  %v4130_v7 = vpack.c.bf16 %v722_v5, %v721_v55 }
 0x155   :  { %4073 = vmatpush3.bf16.msra.mxu1 %v4072_v3  ;;  %v748_v3 = vld [vmem:[%s6717_s1 + $0x1688] sm:$0xff] }
 0x156   :  { %4075 = vmatprep.subr.bf16.mxu1 %v4074_v6  ;;  %v4128_v6 = vpack.c.bf16 %v704_v2, %v703_v53 }
 0x157   :  { %v2883_v4 = vpop.f32.mrb[6].mxu1  ;;  %4161 = vmatpush1.bf16.msra.mxu0 %v4160_v13  ;;  %v724_v13 = vld [vmem:[%s6717_s1 + $0x15c8] sm:$0xff] }
 0x158   :  { %v2884_v49 = vpop.f32.mrb[7].mxu1  ;;  %4162 = vmatprep.subr.bf16.mxu0 %v4231_v48  ;;  %v4134_v15 = vpack.c.bf16 %v724_v13, %v723_v11 }
 0x159   :  { %v2885_v22 = vadd.f32 %v2884_v49, %v2883_v4  ;;  %4077 = vmatpush3.bf16.msra.mxu1 %v4076_v54  ;;  %v750_v54 = vld [vmem:[%s6717_s1 + $0x1698] sm:$0xff]  ;;  %v708_v4 = vld [vmem:[%s6717_s1 + $0x1548] sm:$0xff]  ;;  %v725_v49 = vld [vmem:[%s6717_s1 + $0x15d0] sm:$0xff] }
 0x15a   :  { %4079 = vmatprep.subr.bf16.mxu1 %v4078_v12  ;;  %v4132_v12 = vpack.c.bf16 %v706_v9, %v705_v8  ;;  %v4178_v14 = vpack.c.bf16 %v750_v54, %v749_v10 }
 0x15b   :  { %v1434_v28 = vadd.f32 %v2885_v22, %v6383_v50  ;;  %4164 = vmatpush1.bf16.msra.mxu0 %v4163_v42  ;;  %v726_v22 = vld [vmem:[%s6717_s1 + $0x15d8] sm:$0xff]  ;;  %v4181_v42 = vpack.c.bf16 %v752_v20, %v751_v17 }
 0x15c   :  { %4165 = vmatprep.subr.bf16.mxu0 %v4231_v48  ;;  %v2988_v44 = vpop.f32.mrb[6].mxu0 }
 0x15d   :  { %4081 = vmatpush3.bf16.msra.mxu1 %v4080_v23  ;;  %v6557_v50 = vadd.f32 %v6409_v21, %v1434_v28  ;;  %v717_v21 = vld [vmem:[%s6717_s1 + $0x1590] sm:$0xff]  ;;  %v2989_v47 = vpop.f32.mrb[7].mxu0  ;;  %v4136_v23 = vpack.c.bf16 %v708_v4, %v707_v30  ;;  %v727_v28 = vld [vmem:[%s6717_s1 + $0x15e0] sm:$0xff] }
 0x15e   :  { %4083 = vmatprep.subr.bf16.mxu1 %v4082_v24  ;;  %v6581_v35 = vadd.f32 %v2989_v47, %v2988_v44  ;;  %v4122_v1 = vpack.c.bf16 %v718_v43, %v717_v21  ;;  %v4138_v24 = vpack.c.bf16 %v726_v22, %v725_v49  ;;  %v4146_v44 = vpack.c.bf16 %v730_v45, %v729_v37  ;;  %v714_v47 = vld [vmem:[%s6717_s1 + $0x1578] sm:$0xff] }
 0x15f   :  { %4167 = vmatpush1.bf16.msra.mxu0 %v4166_v36  ;;  %v712_v36 = vld [vmem:[%s6717_s1 + $0x1568] sm:$0xff] }
 0x160   :  { %4168 = vmatprep.subr.bf16.mxu0 %v4231_v48  ;;  %v4144_v43 = vpack.c.bf16 %v712_v36, %v711_v34 }
 0x161   :  { %4085 = vmatpush3.bf16.msra.mxu1 %v4084_v33  ;;  %v4142_v33 = vpack.c.bf16 %v728_v29, %v727_v28 }
 0x162   :  { %4119 = vmatprep.subr.bf16.mxu1 %v4118_v26 }
 0x163   :  { %4170 = vmatpush1.bf16.msra.mxu0 %v4169_v52 }
 0x164   :  { %2412 = vmatmul.mubr.f32.vlgmr.msra.gmra.mrb[20].mxu1 %v6404_v16  ;;  %4171 = vmatprep.subr.bf16.mxu0 %v4231_v48  ;;  %v747_v16 = vld [vmem:[%s6717_s1 + $0x1680] sm:$0xff] }
 0x165   :  { %4121 = vmatpush3.bf16.msra.mxu1 %v4120_v46  ;;  %2551 = vmatprep.mubr.f32.mxu1 %v960_v61  ;;  %v4175_v19 = vpack.c.bf16 %v748_v3, %v747_v16 }
 0x166   :  { %4123 = vmatprep.subr.bf16.mxu1 %v4122_v1 }
 0x167   :  { %4173 = vmatpush1.bf16.msra.mxu0 %v4172_v63 }
 0x168   :  { %4174 = vmatprep.subr.bf16.mxu0 %v4231_v48 }
 0x169   :  { %4125 = vmatpush3.bf16.msra.mxu1 %v4124_v62 }
 0x16a   :  { %4127 = vmatprep.subr.bf16.mxu1 %v4126_v0 }
 0x16b   :  { %4176 = vmatpush1.bf16.msra.mxu0 %v4175_v19 }
 0x16c   :  { %4177 = vmatprep.subr.bf16.mxu0 %v4231_v48 }
 0x16d   :  { %4129 = vmatpush3.bf16.msra.mxu1 %v4128_v6 }
 0x16e   :  { %4131 = vmatprep.subr.bf16.mxu1 %v4130_v7 }
 0x16f   :  { %4179 = vmatpush1.bf16.msra.mxu0 %v4178_v14 }
 0x170   :  { %4180 = vmatprep.subr.bf16.mxu0 %v4231_v48 }
 0x171   :  { %4133 = vmatpush3.bf16.msra.mxu1 %v4132_v12 }
 0x172   :  { %4135 = vmatprep.subr.bf16.mxu1 %v4134_v15 }
 0x173   :  { %4182 = vmatpush1.bf16.msra.mxu0 %v4181_v42 }
 0x174   :  { %4183 = vmatprep.subr.bf16.mxu0 %v4231_v48  ;;  %v713_v48 = vld [vmem:[%s6717_s1 + $0x1570] sm:$0xff] }
 0x175   :  { %4137 = vmatpush3.bf16.msra.mxu1 %v4136_v23  ;;  %v4148_v51 = vpack.c.bf16 %v714_v47, %v713_v48 }
 0x176   :  { %4139 = vmatprep.subr.bf16.mxu1 %v4138_v24 }
 0x177   :  { %v2953_v26 = vpop.f32.mrb[8].mxu1  ;;  %4185 = vmatpush1.bf16.msra.mxu0 %v4184_v31 }
 0x178   :  { %v2954_v38 = vpop.f32.mrb[9].mxu1 }
 0x179   :  { %v2955_v21 = vadd.f32 %v2954_v38, %v2953_v26  ;;  %4141 = vmatpush3.bf16.msra.mxu1 %v4140_v32 }
 0x17a   :  { %4143 = vmatprep.subr.bf16.mxu1 %v4142_v33  ;;  %2622 = vmatmul.mubr.f32.vlgmr.msra.gmra.mrb[20].mxu0 %v6450_v40 }
 0x17b   :  { %v1574_v46 = vadd.f32 %v2955_v21, %v6557_v50 }
 0x17c   :  { %v3058_v1 = vpop.f32.mrb[8].mxu0 }
 0x17d   :  { %4145 = vmatpush3.bf16.msra.mxu1 %v4144_v43  ;;  %v1644_v52 = vadd.f32 %v6581_v35, %v1574_v46  ;;  %v3059_v56 = vpop.f32.mrb[9].mxu0 }
 0x17e   :  { %4147 = vmatprep.subr.bf16.mxu1 %v4146_v44  ;;  %v3060_v41 = vadd.f32 %v3059_v56, %v3058_v1 }
 0x181   :  { %4149 = vmatpush3.bf16.msra.mxu1 %v4148_v51 }
 0x184   :  { %2552 = vmatmul.mubr.f32.vlgmr.msra.gmra.mrb[22].mxu1 %v6576_v59 }
 0x197   :  { %v3023_v58 = vpop.f32.mrb[10].mxu1 }
 0x198   :  { %v3024_v57 = vpop.f32.mrb[11].mxu1 }
 0x199   :  { %v3025_v60 = vadd.f32 %v3024_v57, %v3023_v58 }
 0x19b   :  { %v1714_v61 = vadd.f32 %v3025_v60, %v1644_v52 }
 0x19c   :  { %v3128_v53 = vpop.f32.mrb[10].mxu0 }
 0x19d   :  { %v1784_v62 = vadd.f32 %v3060_v41, %v1714_v61  ;;  %v3129_v50 = vpop.f32.mrb[11].mxu0 }
 0x19e   :  { %v3130_v63 = vadd.f32 %v3129_v50, %v3128_v53 }
 0x1b7   :  { %v3093_v40 = vpop.f32.mrb[12].mxu1 }
 0x1b8   :  { %v3094_v0 = vpop.f32.mrb[13].mxu1 }
 0x1b9   :  { %v3095_v2 = vadd.f32 %v3094_v0, %v3093_v40 }
 0x1bb   :  { %v1854_v16 = vadd.f32 %v3095_v2, %v1784_v62 }
 0x1bc   :  { %v3198_v3 = vpop.f32.mrb[12].mxu0 }
 0x1bd   :  { %v1924_v35 = vadd.f32 %v3130_v63, %v1854_v16  ;;  %v3199_v55 = vpop.f32.mrb[13].mxu0 }
 0x1be   :  { %v3200_v5 = vadd.f32 %v3199_v55, %v3198_v3 }
 0x1d7   :  { %v3163_v6 = vpop.f32.mrb[14].mxu1 }
 0x1d8   :  { %v3164_v8 = vpop.f32.mrb[15].mxu1 }
 0x1d9   :  { %v3165_v19 = vadd.f32 %v3164_v8, %v3163_v6 }
 0x1db   :  { %v1994_v59 = vadd.f32 %v3165_v19, %v1924_v35 }
 0x1dd   :  { %v2064_v7 = vadd.f32 %v3200_v5, %v1994_v59  ;;  %v3268_v9 = vpop.f32.mrb[14].mxu0 }
 0x1de   :  { %v3269_v10 = vpop.f32.mrb[15].mxu0 }
 0x1df   :  { %v3270_v54 = vadd.f32 %v3269_v10, %v3268_v9 }
 0x1f7   :  { %v3233_v11 = vpop.f32.mrb[16].mxu1 }
 0x1f8   :  { %v3234_v13 = vpop.f32.mrb[17].mxu1 }
 0x1f9   :  { %v3235_v12 = vadd.f32 %v3234_v13, %v3233_v11 }
 0x1fb   :  { %v2134_v30 = vadd.f32 %v3235_v12, %v2064_v7 }
 0x1fd   :  { %v2204_v14 = vadd.f32 %v3270_v54, %v2134_v30  ;;  %v3338_v15 = vpop.f32.mrb[16].mxu0 }
 0x1fe   :  { %v3339_v4 = vpop.f32.mrb[17].mxu0 }
 0x1ff   :  { %v3340_v17 = vadd.f32 %v3339_v4, %v3338_v15 }
 0x217   :  { %v3303_v20 = vpop.f32.mrb[18].mxu1 }
 0x218   :  { %v3304_v49 = vpop.f32.mrb[19].mxu1 }
 0x219   :  { %v3305_v22 = vadd.f32 %v3304_v49, %v3303_v20 }
 0x21b   :  { %v2274_v23 = vadd.f32 %v3305_v22, %v2204_v14 }
 0x21d   :  { %v2344_v39 = vadd.f32 %v3340_v17, %v2274_v23  ;;  %v3408_v42 = vpop.f32.mrb[18].mxu0 }
 0x21e   :  { %v3409_v24 = vpop.f32.mrb[19].mxu0 }
 0x21f   :  { %v3410_v25 = vadd.f32 %v3409_v24, %v3408_v42 }
 0x237   :  { %v3373_v27 = vpop.f32.mrb[20].mxu1 }
 0x238   :  { %v3374_v18 = vpop.f32.mrb[21].mxu1 }
 0x239   :  { %v3375_v28 = vadd.f32 %v3374_v18, %v3373_v27 }
 0x23b   :  { %v2414_v29 = vadd.f32 %v3375_v28, %v2344_v39 }
 0x23d   :  { %v2484_v32 = vadd.f32 %v3410_v25, %v2414_v29 }
 0x24d   :  { %v2623_v31 = vpop.f32.mrb[20].mxu0 }
 0x24e   :  { %v2625_v33 = vpop.f32.mrb[21].mxu0 }
 0x257   :  { %v3443_v34 = vpop.f32.mrb[22].mxu1 }
 0x258   :  { %v3444_v36 = vpop.f32.mrb[23].mxu1 }
 0x259   :  { %v3445_v26 = vadd.f32 %v3444_v36, %v3443_v34 }
 0x25b   :  { %v2554_v37 = vadd.f32 %v3445_v26, %v2484_v32 }
 0x25d   :  { %v2624_v45 = vadd.f32 %v2623_v31, %v2554_v37 }
 0x25f   :  { %v2628_v38 = vsel %vm2627_vm1, %v2624_v45, 0.0 }
 0x260   :  { %2629 = vadd.xlane.f32.xlu0 %v2628_v38 }
 0x2ed   :  { %v2630_v21 = vpop.xlane.xlu0 %2629 }
 0x2ee   :  { %v2631_v43 = vrot.slane %v2630_v21, 4 }
 0x2f0   :  { %v2632_v44 = vadd.f32 %v2631_v43, %v2630_v21 }
 0x2f2   :  { %v2633_v48 = vrot.slane %v2632_v44, 2 }
 0x2f4   :  { %v2634_v47 = vadd.f32 %v2633_v48, %v2632_v44 }
 0x2f6   :  { %v2635_v46 = vrot.slane %v2634_v47, 1 }
 0x2f8   :  { %v2636_v51 = vadd.f32 %v2635_v46, %v2634_v47 }
 0x2fa   :  { %4186 = vpush %v2636_v51 }
 0x32b   :  { %s4187_s1 = spop %4186 }
 0x32c   :  { %v2638_v52 = vstv %s4187_s1 }
 0x32d   :  { %v2640_v1 = vmul.f32 0.027777778, %v2638_v52 }
 0x32f   :  { %v2641_v56 = vsub.f32 %v2624_v45, %v2640_v1 }
 0x331   :  { %v2642_v41 = vmul.f32 %v2641_v56, %v2641_v56 }
 0x333   :  { %v2643_v58 = vsel %vm2627_vm1, %v2642_v41, 0.0 }
 0x334   :  { %2644 = vadd.xlane.f32.xlu0 %v2643_v58 }
 0x3c1   :  { %v2645_v57 = vpop.xlane.xlu0 %2644 }
 0x3c2   :  { %v2646_v60 = vrot.slane %v2645_v57, 4 }
 0x3c4   :  { %v2647_v61 = vadd.f32 %v2646_v60, %v2645_v57 }
 0x3c6   :  { %v2648_v62 = vrot.slane %v2647_v61, 2 }
 0x3c8   :  { %v2649_v53 = vadd.f32 %v2648_v62, %v2647_v61 }
 0x3ca   :  { %v2650_v50 = vrot.slane %v2649_v53, 1 }
 0x3cc   :  { %v2651_v63 = vadd.f32 %v2650_v50, %v2649_v53 }
 0x3ce   :  { %4188 = vpush %v2651_v63 }
 0x3ff   :  { %s4189_s18 = spop %4188 }
 0x400   :  { %v2653_v40 = vstv %s4189_s18 }
 0x401   :  { %v2654_v0 = vmul.f32 0.027777778, %v2653_v40 }
 0x403   :  { %v2655_v2 = vadd.f32 1e-05, %v2654_v0 }
 0x405   :  { %4204 = vrsqrt.f32 %v2655_v2 }
 0x40f   :  { %v4205_v16 = vpop.eup %4204 }
 0x410   :  { %v2657_v35 = vmul.f32 %v4205_v16, %v2641_v56 }
 0x412   :  { %2658 = vst.msk [vmem:[#allocation2] sm:$0x3] %vm2627_vm1, %v2657_v35 }
 0x413   :  { %4217 = shalt.err (!%p4214_p4)
}
 0x414   :  { %s4218_s0 = scalar_lea.hbm %s6719_s3, 32 }
 0x415   :  { %p4219_p5 = scmp.ne.s32.totalorder %s6719_s3, %s4218_s0  ;;  %p4222_p6 = scmp.lt.u32.totalorder %s4218_s0, %s6719_s3 }
 0x417   :  { %p4224_p7 = pnand %p4222_p6, %p4219_p5 }
 0x419   :  { %4227 = shalt.err (!%p4224_p7)
}
 0x41a   :  { %2668 = dma.vmem_to_hbm [thread:$0]  %s2666_s20, 32, %s6719_s3, [#allocation3]  }
 0x41b   :  { %4228 = dma.done.wait [#allocation3], 32  }
 0x41c   :  { %4229 = vsyncadd [#allocation3], 4294967264 }
 0x41d   :  { %2672 = vsyncpa [#allocation3], 1 }

</bundles_post_ra>
